<compile_context>
chip_gen: v5e
topology: v5e:2x2
jax: 0.10.0
libtpu: 0.0.40
codegen_flags: <defaults>
</compile_context>

<pallas_src>
import jax
import jax.numpy as jnp
from jax import lax
from jax.experimental import pallas as pl
from jax.experimental.pallas import tpu as pltpu


# ----------------------------- kernel helpers -------------------------------

def _layer_norm(x, gamma, beta, eps=1e-5):
    # one-pass: mean and E[x^2] together, var = E[x^2] - mean^2
    mean = jnp.mean(x, axis=-1, keepdims=True)
    mean2 = jnp.mean(x * x, axis=-1, keepdims=True)
    var = mean2 - mean * mean
    return (x - mean) * lax.rsqrt(var + eps) * gamma + beta


# --------------------------------- kernel -----------------------------------

def enc_block_kernel(x_ref, mask_ref,
                     wg_ref, bg_ref,
                     wq_ref, bq_ref, wk_ref, bk_ref, wv_ref, bv_ref,
                     wo_ref, bo_ref, p_ref,
                     g1_ref, be1_ref,
                     w1_ref, b1_ref, w2_ref, b2_ref,
                     g2_ref, be2_ref,
                     o_ref):
    Bblk, L, D = x_ref.shape
    hid = wq_ref.shape[-1]
    M = Bblk * L
    f32 = jnp.float32
    bf16 = jnp.bfloat16

    x = x_ref[...].reshape(M, D)                     # [M, D]  f32
    mask = mask_ref[...].reshape(M, 1)               # [M, 1]  f32

    # conv boundary masks generated in-kernel (no DMA): within-sequence pos
    pos = lax.broadcasted_iota(jnp.int32, (M, 1), 0) % L
    keep_prev = (pos != 0).astype(f32)               # zero rows that would wrap
    keep_next = (pos != (L - 1)).astype(f32)         # across sequence boundaries

    x_bf = x.astype(bf16)

    def shift3(z, z_bf):
        # [M,C] -> [M,3C] bf16 : [z[l-1] | z[l] | z[l+1]] with per-seq zero pad.
        zp = (pltpu.roll(z, 1, axis=0) * keep_prev).astype(bf16)
        zn = (pltpu.roll(z, M - 1, axis=0) * keep_next).astype(bf16)
        return jnp.concatenate([zp, z_bf, zn], axis=-1)

    x3 = shift3(x, x_bf)                             # [M, 3D] bf16

    # gate = sigmoid(Conv1d(D, D, k=1)(x))  (pointwise == matmul); keep bf16
    gate = jax.nn.sigmoid(
        jnp.dot(x_bf, wg_ref[...], preferred_element_type=f32) + bg_ref[...]
    ).astype(bf16)

    # q, k, v = Conv1d(D, hid, k=3, pad=1)(x)  -- fused-tap single matmul each
    q = jnp.dot(x3, wq_ref[...], preferred_element_type=f32) + bq_ref[...]
    k = jnp.dot(x3, wk_ref[...], preferred_element_type=f32) + bk_ref[...]
    v = jnp.dot(x3, wv_ref[...], preferred_element_type=f32) + bv_ref[...]

    # per-sequence channel-wise max over L (implicit sublane broadcast on use)
    k3 = k.reshape(Bblk, L, hid)
    v3 = v.reshape(Bblk, L, hid)
    kdiff = (k3 - jnp.max(k3, axis=1, keepdims=True)).reshape(M, hid)
    vmax = jnp.max(v3, axis=1, keepdims=True)        # [Bblk, 1, hid]
    vdiff = (v3 - vmax).reshape(M, hid)

    # Two-key attention per (position, head): softmax over {local, max-pooled}.
    # P is block-diagonal ones * 1/sqrt(hid): one lane-dense matmul returns the
    # per-head sum broadcast back to every channel of its head.
    d = jnp.dot((q * kdiff).astype(bf16), p_ref[...],
                preferred_element_type=f32)
    a1 = jax.nn.sigmoid(d)                           # == softmax([s_l, s_g])[0]
    # TODO(synk): dropout on attention weights omitted (drop_rate=0.0 -> identity).
    att = ((a1 * vdiff).reshape(Bblk, L, hid) + vmax).reshape(M, hid)

    # output conv (k=3), gate, mask
    att3 = shift3(att, att.astype(bf16))
    att_out = (jnp.dot(att3, wo_ref[...], preferred_element_type=f32)
               + bo_ref[...])
    att_out = att_out * gate * mask

    # residual + LayerNorm 1
    y = _layer_norm(att_out + x, g1_ref[...], be1_ref[...])

    # feed-forward (k=1 convs == matmuls), relu, mask; hidden kept in bf16
    h = jnp.maximum(
        jnp.dot(y.astype(bf16), w1_ref[...], preferred_element_type=f32)
        + b1_ref[...], 0.0).astype(bf16)
    ff = (jnp.dot(h, w2_ref[...], preferred_element_type=f32)
          + b2_ref[...]) * mask

    # residual + LayerNorm 2
    o_ref[...] = _layer_norm(y + ff, g2_ref[...], be2_ref[...]).reshape(Bblk, L, D)


# -------------------------------- wrapper -----------------------------------

def enc_block(x, x_mask, params, head_num, block_b=None):
    x = x.astype(jnp.float32)
    B, L, D = x.shape
    hid = params["wq"].shape[-1]
    head_dim = hid // head_num
    F = params["w1"].shape[-1]
    bf = jnp.bfloat16

    # ---- device / VMEM budget ---------------------------------------------
    try:
        kind = jax.devices()[0].device_kind.lower()
    except Exception:
        kind = ""
    is_v7 = "v7" in kind
    try:
        vmem_cap = int(pltpu.get_tpu_info().vmem_capacity_bytes)
    except Exception:
        vmem_cap = (64 if is_v7 else 128) << 20
    vmem_budget = int(vmem_cap * 0.8)        # leave headroom for compiler scratch

    # resident weights (bf16) + biases / LN params (f32)
    weight_bytes = (2 * (D * D + 9 * D * hid + 3 * hid * D + hid * hid + 2 * D * F)
                    + 4 * (8 * D + 3 * hid + F))
    # rough per-row activation working set (f32 + bf16 mix), conservative
    act_row = 4 * (5 * D + 7 * hid) + 2 * (6 * D + 4 * hid + F)
    stream_row = 2 * (8 * D + 4)             # double-buffered x / out / mask blocks

    def fits(bb):                            # weights counted double-buffered (safe)
        return 2 * weight_bytes + bb * L * (act_row + stream_row) <= vmem_budget

    # ---- rows per grid step -------------------------------------------------
    if block_b is None:
        target_m = 512 if is_v7 else 1024    # MXU M-fill target per grid step
        bb = max(1, min(B, max(1, target_m // max(L, 1))))
        while bb > 1 and not fits(bb):
            bb = max(1, bb // 2)
        if is_v7 and B > 1 and bb >= B:
            bb = (B + 1) // 2                # keep >= 2 steps so both TCs get work
        block_b = bb

    grid_b = -(-B // block_b)
    B_pad = grid_b * block_b
    # TODO(synk): L is used as given; a non multiple-of-8 L still runs correctly
    # but the (Bblk,L,C)<->(M,C) reshapes become Mosaic relayout copies.

    if B_pad != B:                           # pad batch with zero rows (sliced off)
        x = jnp.concatenate([x, jnp.zeros((B_pad - B, L, D), x.dtype)], axis=0)
        x_mask = jnp.concatenate(
            [x_mask, jnp.zeros((B_pad - B, L), x_mask.dtype)], axis=0)

    # ---- host-side constant / weight preparation (done once) ----------------
    def stack3(w):   # [3, Din, Dout] -> [3*Din, Dout], taps [prev; center; next]
        return w.reshape(3 * w.shape[1], w.shape[2]).astype(bf)

    wg = params["wg"].astype(bf)
    wq3, wk3, wv3 = stack3(params["wq"]), stack3(params["wk"]), stack3(params["wv"])
    wo3 = stack3(params["wo"])
    w1 = params["w1"].astype(bf)
    w2 = params["w2"].astype(bf)
    head_of = jnp.arange(hid, dtype=jnp.int32) // head_dim
    # block-diagonal head-sum matrix with 1/sqrt(hid) folded in
    p_mat = ((head_of[:, None] == head_of[None, :]).astype(jnp.float32)
             * (hid ** -0.5)).astype(bf)
    mask = x_mask.astype(jnp.float32)[:, :, None]                 # [B_pad, L, 1]

    args = (x, mask,
            wg, params["bg"],
            wq3, params["bq"], wk3, params["bk"], wv3, params["bv"],
            wo3, params["bo"], p_mat,
            params["g1"], params["be1"],
            w1, params["b1"], w2, params["b2"],
            params["g2"], params["be2"])

    def build(single_buffer_weights):
        def const(shape):
            n = len(shape)
            if single_buffer_weights:
                # constant index_map -> never refetched; single VMEM buffer
                return pl.BlockSpec(shape, lambda b, n=n: (0,) * n,
                                    pipeline_mode=pl.Buffered(1))
            return pl.BlockSpec(shape, lambda b, n=n: (0,) * n)

        in_specs = [
            pl.BlockSpec((block_b, L, D), lambda b: (b, 0, 0)),   # x
            pl.BlockSpec((block_b, L, 1), lambda b: (b, 0, 0)),   # mask [B,L,1]
            const((D, D)), const((1, D)),                         # gate conv (k=1)
            const((3 * D, hid)), const((1, hid)),                 # q conv (fused taps)
            const((3 * D, hid)), const((1, hid)),                 # k conv
            const((3 * D, hid)), const((1, hid)),                 # v conv
            const((3 * hid, D)), const((1, D)),                   # out conv
            const((hid, hid)),                                    # head-sum matrix P
            const((1, D)), const((1, D)),                         # LN1 gamma/beta
            const((D, F)), const((1, F)),                         # FF in
            const((F, D)), const((1, D)),                         # FF out
            const((1, D)), const((1, D)),                         # LN2 gamma/beta
        ]
        return pl.pallas_call(
            enc_block_kernel,
            out_shape=jax.ShapeDtypeStruct((B_pad, L, D), jnp.float32),
            grid=(grid_b,),
            in_specs=in_specs,
            out_specs=pl.BlockSpec((block_b, L, D), lambda b: (b, 0, 0)),
            compiler_params=pltpu.CompilerParams(
                dimension_semantics=("parallel",),
                vmem_limit_bytes=vmem_budget),
        )

    try:
        out = build(True)(*args)
    except Exception:
        # This Pallas build rejects buffer_count=1 -> default double buffering.
        out = build(False)(*args)
    return out[:B]


# -------------------------- pure-JAX reference ------------------------------

def _conv3_ref(x, w, b):
    xp = jnp.pad(x, ((0, 0), (1, 1), (0, 0)))
    return (jnp.einsum("bld,de->ble", xp[:, :-2], w[0])
            + jnp.einsum("bld,de->ble", xp[:, 1:-1], w[1])
            + jnp.einsum("bld,de->ble", xp[:, 2:], w[2]) + b)


def enc_block_ref(x, x_mask, p, H):
    B, L, D = x.shape
    hid = p["wq"].shape[-1]
    hd = hid // H
    mask = x_mask.astype(jnp.float32)[:, :, None]
    gate = jax.nn.sigmoid(x @ p["wg"] + p["bg"])
    q = _conv3_ref(x, p["wq"], p["bq"])
    k = _conv3_ref(x, p["wk"], p["bk"])
    v = _conv3_ref(x, p["wv"], p["bv"])
    kmax = jnp.max(k, axis=1, keepdims=True)
    vmax = jnp.max(v, axis=1, keepdims=True)
    qh, kh, vh = (t.reshape(B, L, H, hd) for t in (q, k, v))
    kmh, vmh = (t.reshape(B, 1, H, hd) for t in (kmax, vmax))
    scale = 1.0 / (hid ** 0.5)
    s1 = jnp.sum(qh * kh, -1) * scale
    s2 = jnp.sum(qh * kmh, -1) * scale
    a = jax.nn.softmax(jnp.stack([s1, s2], -1), axis=-1)
    out = (a[..., 0:1] * vh + a[..., 1:2] * vmh).reshape(B, L, hid)
    out = _conv3_ref(out, p["wo"], p["bo"]) * gate * mask

    def ln(z, g, be):
        mu = jnp.mean(z, -1, keepdims=True)
        var = jnp.mean((z - mu) ** 2, -1, keepdims=True)
        return (z - mu) / jnp.sqrt(var + 1e-5) * g + be

    y = ln(out + x, p["g1"], p["be1"])
    h = jnp.maximum(y @ p["w1"] + p["b1"], 0.0)
    ff = (h @ p["w2"] + p["b2"]) * mask
    return ln(y + ff, p["g2"], p["be2"])


# ---------------------------------- main -------------------------------------

if __name__ == "__main__":
    # lane-dense small test: D, hid, F multiples of 128
    B, L, D, H, F = 8, 16, 128, 8, 256
    hid = H * (D // H)

    key = jax.random.PRNGKey(0)
    keys = jax.random.split(key, 16)

    def rnd(k, shape, scale=0.1):
        return jax.random.normal(k, shape, dtype=jnp.float32) * scale

    params = dict(
        wg=rnd(keys[0], (D, D)), bg=rnd(keys[1], (1, D)),
        wq=rnd(keys[2], (3, D, hid)), bq=rnd(keys[3], (1, hid)),
        wk=rnd(keys[4], (3, D, hid)), bk=rnd(keys[5], (1, hid)),
        wv=rnd(keys[6], (3, D, hid)), bv=rnd(keys[7], (1, hid)),
        wo=rnd(keys[8], (3, hid, D)), bo=rnd(keys[9], (1, D)),
        g1=jnp.ones((1, D), jnp.float32), be1=jnp.zeros((1, D), jnp.float32),
        w1=rnd(keys[10], (D, F)), b1=rnd(keys[11], (1, F)),
        w2=rnd(keys[12], (F, D)), b2=rnd(keys[13], (1, D)),
        g2=jnp.ones((1, D), jnp.float32), be2=jnp.zeros((1, D), jnp.float32),
    )

    x = jax.random.normal(keys[14], (B, L, D), dtype=jnp.float32)
    x_mask = (jax.random.uniform(keys[15], (B, L)) > 0.2).astype(jnp.float32)

    out = enc_block(x, x_mask, params, H)
    jax.block_until_ready(out)

    ref = enc_block_ref(x, x_mask, params, H)
    max_err = float(jnp.max(jnp.abs(out - ref)))
    mean_err = float(jnp.mean(jnp.abs(out - ref)))
    # bf16 MXU operands (f32 accumulation) vs. a pure-f32 reference.
    assert max_err < 0.15 and mean_err < 0.03, (max_err, mean_err)
    print("KERNEL_OK")
</pallas_src>

<mosaic_0001>
module attributes {stable_mosaic.version = 11 : i64} {
  func.func @enc_block_kernel(%arg0: i32, %arg1: memref<8x16x128xf32, #tpu.memory_space<vmem>>, %arg2: memref<8x16x1xf32, #tpu.memory_space<vmem>>, %arg3: memref<128x128xbf16, #tpu.memory_space<vmem>>, %arg4: memref<1x128xf32, #tpu.memory_space<vmem>>, %arg5: memref<384x128xbf16, #tpu.memory_space<vmem>>, %arg6: memref<1x128xf32, #tpu.memory_space<vmem>>, %arg7: memref<384x128xbf16, #tpu.memory_space<vmem>>, %arg8: memref<1x128xf32, #tpu.memory_space<vmem>>, %arg9: memref<384x128xbf16, #tpu.memory_space<vmem>>, %arg10: memref<1x128xf32, #tpu.memory_space<vmem>>, %arg11: memref<384x128xbf16, #tpu.memory_space<vmem>>, %arg12: memref<1x128xf32, #tpu.memory_space<vmem>>, %arg13: memref<128x128xbf16, #tpu.memory_space<vmem>>, %arg14: memref<1x128xf32, #tpu.memory_space<vmem>>, %arg15: memref<1x128xf32, #tpu.memory_space<vmem>>, %arg16: memref<128x256xbf16, #tpu.memory_space<vmem>>, %arg17: memref<1x256xf32, #tpu.memory_space<vmem>>, %arg18: memref<256x128xbf16, #tpu.memory_space<vmem>>, %arg19: memref<1x128xf32, #tpu.memory_space<vmem>>, %arg20: memref<1x128xf32, #tpu.memory_space<vmem>>, %arg21: memref<1x128xf32, #tpu.memory_space<vmem>>, %arg22: memref<8x16x128xf32, #tpu.memory_space<vmem>>) attributes {dimension_semantics = [#tpu.dimension_semantics<parallel>], iteration_bounds = array<i64: 1>, scalar_prefetch = 0 : i64, scratch_operands = 0 : i64, tpu.core_type = #tpu.core_type<tc>, window_params = [{transform_indices = @transform_0, window_bounds = array<i64: 8, 16, 128>}, {transform_indices = @transform_1, window_bounds = array<i64: 8, 16, 1>}, {pipeline_mode = #tpu.pipeline_mode<synchronous>, transform_indices = @transform_2, window_bounds = array<i64: 128, 128>}, {pipeline_mode = #tpu.pipeline_mode<synchronous>, transform_indices = @transform_3, window_bounds = array<i64: 1, 128>}, {pipeline_mode = #tpu.pipeline_mode<synchronous>, transform_indices = @transform_4, window_bounds = array<i64: 384, 128>}, {pipeline_mode = #tpu.pipeline_mode<synchronous>, transform_indices = @transform_5, window_bounds = array<i64: 1, 128>}, {pipeline_mode = #tpu.pipeline_mode<synchronous>, transform_indices = @transform_6, window_bounds = array<i64: 384, 128>}, {pipeline_mode = #tpu.pipeline_mode<synchronous>, transform_indices = @transform_7, window_bounds = array<i64: 1, 128>}, {pipeline_mode = #tpu.pipeline_mode<synchronous>, transform_indices = @transform_8, window_bounds = array<i64: 384, 128>}, {pipeline_mode = #tpu.pipeline_mode<synchronous>, transform_indices = @transform_9, window_bounds = array<i64: 1, 128>}, {pipeline_mode = #tpu.pipeline_mode<synchronous>, transform_indices = @transform_10, window_bounds = array<i64: 384, 128>}, {pipeline_mode = #tpu.pipeline_mode<synchronous>, transform_indices = @transform_11, window_bounds = array<i64: 1, 128>}, {pipeline_mode = #tpu.pipeline_mode<synchronous>, transform_indices = @transform_12, window_bounds = array<i64: 128, 128>}, {pipeline_mode = #tpu.pipeline_mode<synchronous>, transform_indices = @transform_13, window_bounds = array<i64: 1, 128>}, {pipeline_mode = #tpu.pipeline_mode<synchronous>, transform_indices = @transform_14, window_bounds = array<i64: 1, 128>}, {pipeline_mode = #tpu.pipeline_mode<synchronous>, transform_indices = @transform_15, window_bounds = array<i64: 128, 256>}, {pipeline_mode = #tpu.pipeline_mode<synchronous>, transform_indices = @transform_16, window_bounds = array<i64: 1, 256>}, {pipeline_mode = #tpu.pipeline_mode<synchronous>, transform_indices = @transform_17, window_bounds = array<i64: 256, 128>}, {pipeline_mode = #tpu.pipeline_mode<synchronous>, transform_indices = @transform_18, window_bounds = array<i64: 1, 128>}, {pipeline_mode = #tpu.pipeline_mode<synchronous>, transform_indices = @transform_19, window_bounds = array<i64: 1, 128>}, {pipeline_mode = #tpu.pipeline_mode<synchronous>, transform_indices = @transform_20, window_bounds = array<i64: 1, 128>}, {transform_indices = @transform_21, window_bounds = array<i64: 8, 16, 128>}]} {
    %c0 = arith.constant 0 : index
    %c0_0 = arith.constant 0 : index
    %c0_1 = arith.constant 0 : index
    %0 = vector.load %arg1[%c0, %c0_0, %c0_1] : memref<8x16x128xf32, #tpu.memory_space<vmem>>, vector<8x16x128xf32>
    %1 = vector.shape_cast %0 : vector<8x16x128xf32> to vector<128x128xf32>
    %c0_2 = arith.constant 0 : index
    %c0_3 = arith.constant 0 : index
    %c0_4 = arith.constant 0 : index
    %2 = vector.load %arg2[%c0_2, %c0_3, %c0_4] : memref<8x16x1xf32, #tpu.memory_space<vmem>>, vector<8x16x1xf32>
    %3 = vector.shape_cast %2 : vector<8x16x1xf32> to vector<128x1xf32>
    %4 = tpu.iota {dimensions = array<i32: 0>} : vector<128x1xi32>
    %c16_i32 = arith.constant 16 : i32
    %c0_i32 = arith.constant 0 : i32
    %5 = arith.cmpi eq, %c16_i32, %c0_i32 : i32
    %c1_i32 = arith.constant 1 : i32
    %6 = arith.select %5, %c1_i32, %c16_i32 : i32
    %7 = vector.broadcast %6 : i32 to vector<128x1xi32>
    %8 = arith.remsi %4, %7 : vector<128x1xi32>
    %c0_i32_5 = arith.constant 0 : i32
    %9 = vector.broadcast %c0_i32_5 : i32 to vector<128x1xi32>
    %10 = arith.cmpi ne, %8, %9 : vector<128x1xi32>
    %c0_i32_6 = arith.constant 0 : i32
    %11 = vector.broadcast %c0_i32_6 : i32 to vector<128x1xi32>
    %12 = arith.cmpi slt, %8, %11 : vector<128x1xi32>
    %c0_i32_7 = arith.constant 0 : i32
    %13 = arith.cmpi slt, %6, %c0_i32_7 : i32
    %14 = vector.broadcast %13 : i1 to vector<128x1xi1>
    %15 = vector.broadcast %14 : vector<128x1xi1> to vector<128x1xi1>
    %16 = arith.xori %12, %15 : vector<128x1xi1>
    %17 = arith.andi %16, %10 : vector<128x1xi1>
    %18 = vector.broadcast %6 : i32 to vector<128x1xi32>
    %19 = arith.addi %8, %18 : vector<128x1xi32>
    %20 = arith.select %17, %19, %8 : vector<128x1xi1>, vector<128x1xi32>
    %c0_i32_8 = arith.constant 0 : i32
    %21 = vector.broadcast %c0_i32_8 : i32 to vector<128x1xi32>
    %22 = arith.cmpi ne, %20, %21 : vector<128x1xi32>
    %23 = arith.extui %22 : vector<128x1xi1> to vector<128x1xi32>
    %24 = arith.sitofp %23 : vector<128x1xi32> to vector<128x1xf32>
    %c15_i32 = arith.constant 15 : i32
    %25 = vector.broadcast %c15_i32 : i32 to vector<128x1xi32>
    %26 = arith.cmpi ne, %20, %25 : vector<128x1xi32>
    %27 = arith.extui %26 : vector<128x1xi1> to vector<128x1xi32>
    %28 = arith.sitofp %27 : vector<128x1xi32> to vector<128x1xf32>
    %29 = arith.truncf %1 : vector<128x128xf32> to vector<128x128xbf16>
    %c1_i32_9 = arith.constant 1 : i32
    %30 = tpu.dynamic_rotate %1 by %c1_i32_9 dim 0 : vector<128x128xf32>, i32 -> vector<128x128xf32>
    %31 = vector.broadcast %24 : vector<128x1xf32> to vector<128x128xf32>
    %32 = arith.mulf %30, %31 : vector<128x128xf32>
    %33 = arith.truncf %32 : vector<128x128xf32> to vector<128x128xbf16>
    %c127_i32 = arith.constant 127 : i32
    %34 = tpu.dynamic_rotate %1 by %c127_i32 dim 0 : vector<128x128xf32>, i32 -> vector<128x128xf32>
    %35 = vector.broadcast %28 : vector<128x1xf32> to vector<128x128xf32>
    %36 = arith.mulf %34, %35 : vector<128x128xf32>
    %37 = arith.truncf %36 : vector<128x128xf32> to vector<128x128xbf16>
    %38 = tpu.concatenate %33, %29, %37 in 1 : vector<128x128xbf16>, vector<128x128xbf16>, vector<128x128xbf16> -> vector<128x384xbf16>
    %c0_10 = arith.constant 0 : index
    %c0_11 = arith.constant 0 : index
    %39 = vector.load %arg3[%c0_10, %c0_11] : memref<128x128xbf16, #tpu.memory_space<vmem>>, vector<128x128xbf16>
    %cst = arith.constant dense<0.000000e+00> : vector<128x128xf32>
    %40 = tpu.matmul %29, %39, %cst {dimension_numbers = #tpu.dot_dimension_numbers<[1], [0], [0], [1], [0, 0, 1, 1], [], []>} : vector<128x128xbf16>, vector<128x128xbf16>, vector<128x128xf32> -> vector<128x128xf32>
    %c0_12 = arith.constant 0 : index
    %c0_13 = arith.constant 0 : index
    %41 = vector.load %arg4[%c0_12, %c0_13] : memref<1x128xf32, #tpu.memory_space<vmem>>, vector<1x128xf32>
    %42 = vector.broadcast %41 : vector<1x128xf32> to vector<128x128xf32>
    %43 = arith.addf %40, %42 : vector<128x128xf32>
    %44 = arith.negf %43 : vector<128x128xf32>
    %45 = math.exp %44 : vector<128x128xf32>
    %cst_14 = arith.constant 1.000000e+00 : f32
    %46 = vector.broadcast %cst_14 : f32 to vector<128x128xf32>
    %47 = arith.addf %46, %45 : vector<128x128xf32>
    %48 = arith.divf %46, %47 : vector<128x128xf32>
    %49 = arith.truncf %48 : vector<128x128xf32> to vector<128x128xbf16>
    %c0_15 = arith.constant 0 : index
    %c0_16 = arith.constant 0 : index
    %50 = vector.load %arg5[%c0_15, %c0_16] : memref<384x128xbf16, #tpu.memory_space<vmem>>, vector<384x128xbf16>
    %cst_17 = arith.constant dense<0.000000e+00> : vector<128x128xf32>
    %51 = tpu.matmul %38, %50, %cst_17 {dimension_numbers = #tpu.dot_dimension_numbers<[1], [0], [0], [1], [0, 0, 1, 1], [], []>} : vector<128x384xbf16>, vector<384x128xbf16>, vector<128x128xf32> -> vector<128x128xf32>
    %c0_18 = arith.constant 0 : index
    %c0_19 = arith.constant 0 : index
    %52 = vector.load %arg6[%c0_18, %c0_19] : memref<1x128xf32, #tpu.memory_space<vmem>>, vector<1x128xf32>
    %53 = vector.broadcast %52 : vector<1x128xf32> to vector<128x128xf32>
    %54 = arith.addf %51, %53 : vector<128x128xf32>
    %c0_20 = arith.constant 0 : index
    %c0_21 = arith.constant 0 : index
    %55 = vector.load %arg7[%c0_20, %c0_21] : memref<384x128xbf16, #tpu.memory_space<vmem>>, vector<384x128xbf16>
    %cst_22 = arith.constant dense<0.000000e+00> : vector<128x128xf32>
    %56 = tpu.matmul %38, %55, %cst_22 {dimension_numbers = #tpu.dot_dimension_numbers<[1], [0], [0], [1], [0, 0, 1, 1], [], []>} : vector<128x384xbf16>, vector<384x128xbf16>, vector<128x128xf32> -> vector<128x128xf32>
    %c0_23 = arith.constant 0 : index
    %c0_24 = arith.constant 0 : index
    %57 = vector.load %arg8[%c0_23, %c0_24] : memref<1x128xf32, #tpu.memory_space<vmem>>, vector<1x128xf32>
    %58 = vector.broadcast %57 : vector<1x128xf32> to vector<128x128xf32>
    %59 = arith.addf %56, %58 : vector<128x128xf32>
    %c0_25 = arith.constant 0 : index
    %c0_26 = arith.constant 0 : index
    %60 = vector.load %arg9[%c0_25, %c0_26] : memref<384x128xbf16, #tpu.memory_space<vmem>>, vector<384x128xbf16>
    %cst_27 = arith.constant dense<0.000000e+00> : vector<128x128xf32>
    %61 = tpu.matmul %38, %60, %cst_27 {dimension_numbers = #tpu.dot_dimension_numbers<[1], [0], [0], [1], [0, 0, 1, 1], [], []>} : vector<128x384xbf16>, vector<384x128xbf16>, vector<128x128xf32> -> vector<128x128xf32>
    %c0_28 = arith.constant 0 : index
    %c0_29 = arith.constant 0 : index
    %62 = vector.load %arg10[%c0_28, %c0_29] : memref<1x128xf32, #tpu.memory_space<vmem>>, vector<1x128xf32>
    %63 = vector.broadcast %62 : vector<1x128xf32> to vector<128x128xf32>
    %64 = arith.addf %61, %63 : vector<128x128xf32>
    %65 = vector.shape_cast %59 : vector<128x128xf32> to vector<8x16x128xf32>
    %66 = vector.shape_cast %64 : vector<128x128xf32> to vector<8x16x128xf32>
    %cst_30 = arith.constant dense<0xFF800000> : vector<8x128xf32>
    %67 = vector.multi_reduction <maximumf>, %65, %cst_30 [1] : vector<8x16x128xf32> to vector<8x128xf32>
    %68 = vector.shape_cast %67 : vector<8x128xf32> to vector<8x1x128xf32>
    %69 = vector.broadcast %68 : vector<8x1x128xf32> to vector<8x16x128xf32>
    %70 = arith.subf %65, %69 : vector<8x16x128xf32>
    %71 = vector.shape_cast %70 : vector<8x16x128xf32> to vector<128x128xf32>
    %cst_31 = arith.constant dense<0xFF800000> : vector<8x128xf32>
    %72 = vector.multi_reduction <maximumf>, %66, %cst_31 [1] : vector<8x16x128xf32> to vector<8x128xf32>
    %73 = vector.shape_cast %72 : vector<8x128xf32> to vector<8x1x128xf32>
    %74 = vector.broadcast %73 : vector<8x1x128xf32> to vector<8x16x128xf32>
    %75 = arith.subf %66, %74 : vector<8x16x128xf32>
    %76 = vector.shape_cast %75 : vector<8x16x128xf32> to vector<128x128xf32>
    %77 = arith.mulf %54, %71 : vector<128x128xf32>
    %78 = arith.truncf %77 : vector<128x128xf32> to vector<128x128xbf16>
    %c0_32 = arith.constant 0 : index
    %c0_33 = arith.constant 0 : index
    %79 = vector.load %arg13[%c0_32, %c0_33] : memref<128x128xbf16, #tpu.memory_space<vmem>>, vector<128x128xbf16>
    %cst_34 = arith.constant dense<0.000000e+00> : vector<128x128xf32>
    %80 = tpu.matmul %78, %79, %cst_34 {dimension_numbers = #tpu.dot_dimension_numbers<[1], [0], [0], [1], [0, 0, 1, 1], [], []>} : vector<128x128xbf16>, vector<128x128xbf16>, vector<128x128xf32> -> vector<128x128xf32>
    %81 = arith.negf %80 : vector<128x128xf32>
    %82 = math.exp %81 : vector<128x128xf32>
    %cst_35 = arith.constant 1.000000e+00 : f32
    %83 = vector.broadcast %cst_35 : f32 to vector<128x128xf32>
    %84 = arith.addf %83, %82 : vector<128x128xf32>
    %85 = arith.divf %83, %84 : vector<128x128xf32>
    %86 = arith.mulf %85, %76 : vector<128x128xf32>
    %87 = vector.shape_cast %86 : vector<128x128xf32> to vector<8x16x128xf32>
    %88 = vector.broadcast %73 : vector<8x1x128xf32> to vector<8x16x128xf32>
    %89 = arith.addf %87, %88 : vector<8x16x128xf32>
    %90 = vector.shape_cast %89 : vector<8x16x128xf32> to vector<128x128xf32>
    %91 = arith.truncf %90 : vector<128x128xf32> to vector<128x128xbf16>
    %c1_i32_36 = arith.constant 1 : i32
    %92 = tpu.dynamic_rotate %90 by %c1_i32_36 dim 0 : vector<128x128xf32>, i32 -> vector<128x128xf32>
    %93 = vector.broadcast %24 : vector<128x1xf32> to vector<128x128xf32>
    %94 = arith.mulf %92, %93 : vector<128x128xf32>
    %95 = arith.truncf %94 : vector<128x128xf32> to vector<128x128xbf16>
    %c127_i32_37 = arith.constant 127 : i32
    %96 = tpu.dynamic_rotate %90 by %c127_i32_37 dim 0 : vector<128x128xf32>, i32 -> vector<128x128xf32>
    %97 = vector.broadcast %28 : vector<128x1xf32> to vector<128x128xf32>
    %98 = arith.mulf %96, %97 : vector<128x128xf32>
    %99 = arith.truncf %98 : vector<128x128xf32> to vector<128x128xbf16>
    %100 = tpu.concatenate %95, %91, %99 in 1 : vector<128x128xbf16>, vector<128x128xbf16>, vector<128x128xbf16> -> vector<128x384xbf16>
    %c0_38 = arith.constant 0 : index
    %c0_39 = arith.constant 0 : index
    %101 = vector.load %arg11[%c0_38, %c0_39] : memref<384x128xbf16, #tpu.memory_space<vmem>>, vector<384x128xbf16>
    %cst_40 = arith.constant dense<0.000000e+00> : vector<128x128xf32>
    %102 = tpu.matmul %100, %101, %cst_40 {dimension_numbers = #tpu.dot_dimension_numbers<[1], [0], [0], [1], [0, 0, 1, 1], [], []>} : vector<128x384xbf16>, vector<384x128xbf16>, vector<128x128xf32> -> vector<128x128xf32>
    %c0_41 = arith.constant 0 : index
    %c0_42 = arith.constant 0 : index
    %103 = vector.load %arg12[%c0_41, %c0_42] : memref<1x128xf32, #tpu.memory_space<vmem>>, vector<1x128xf32>
    %104 = vector.broadcast %103 : vector<1x128xf32> to vector<128x128xf32>
    %105 = arith.addf %102, %104 : vector<128x128xf32>
    %106 = arith.extf %49 : vector<128x128xbf16> to vector<128x128xf32>
    %107 = arith.mulf %105, %106 : vector<128x128xf32>
    %108 = vector.broadcast %3 : vector<128x1xf32> to vector<128x128xf32>
    %109 = arith.mulf %107, %108 : vector<128x128xf32>
    %110 = arith.addf %109, %1 : vector<128x128xf32>
    %c0_43 = arith.constant 0 : index
    %c0_44 = arith.constant 0 : index
    %111 = vector.load %arg14[%c0_43, %c0_44] : memref<1x128xf32, #tpu.memory_space<vmem>>, vector<1x128xf32>
    %c0_45 = arith.constant 0 : index
    %c0_46 = arith.constant 0 : index
    %112 = vector.load %arg15[%c0_45, %c0_46] : memref<1x128xf32, #tpu.memory_space<vmem>>, vector<1x128xf32>
    %cst_47 = arith.constant dense<0.000000e+00> : vector<128xf32>
    %113 = vector.multi_reduction <add>, %110, %cst_47 [1] : vector<128x128xf32> to vector<128xf32>
    %114 = vector.shape_cast %113 : vector<128xf32> to vector<128x1xf32>
    %cst_48 = arith.constant 1.280000e+02 : f32
    %115 = vector.broadcast %cst_48 : f32 to vector<128x1xf32>
    %116 = arith.divf %114, %115 : vector<128x1xf32>
    %117 = arith.mulf %110, %110 : vector<128x128xf32>
    %cst_49 = arith.constant dense<0.000000e+00> : vector<128xf32>
    %118 = vector.multi_reduction <add>, %117, %cst_49 [1] : vector<128x128xf32> to vector<128xf32>
    %119 = vector.shape_cast %118 : vector<128xf32> to vector<128x1xf32>
    %cst_50 = arith.constant 1.280000e+02 : f32
    %120 = vector.broadcast %cst_50 : f32 to vector<128x1xf32>
    %121 = arith.divf %119, %120 : vector<128x1xf32>
    %122 = arith.mulf %116, %116 : vector<128x1xf32>
    %123 = arith.subf %121, %122 : vector<128x1xf32>
    %124 = vector.broadcast %116 : vector<128x1xf32> to vector<128x128xf32>
    %125 = arith.subf %110, %124 : vector<128x128xf32>
    %cst_51 = arith.constant 9.99999974E-6 : f32
    %126 = vector.broadcast %cst_51 : f32 to vector<128x1xf32>
    %127 = arith.addf %123, %126 : vector<128x1xf32>
    %128 = math.rsqrt %127 : vector<128x1xf32>
    %129 = vector.broadcast %128 : vector<128x1xf32> to vector<128x128xf32>
    %130 = arith.mulf %125, %129 : vector<128x128xf32>
    %131 = vector.broadcast %111 : vector<1x128xf32> to vector<128x128xf32>
    %132 = arith.mulf %130, %131 : vector<128x128xf32>
    %133 = vector.broadcast %112 : vector<1x128xf32> to vector<128x128xf32>
    %134 = arith.addf %132, %133 : vector<128x128xf32>
    %135 = arith.truncf %134 : vector<128x128xf32> to vector<128x128xbf16>
    %c0_52 = arith.constant 0 : index
    %c0_53 = arith.constant 0 : index
    %136 = vector.load %arg16[%c0_52, %c0_53] : memref<128x256xbf16, #tpu.memory_space<vmem>>, vector<128x256xbf16>
    %cst_54 = arith.constant dense<0.000000e+00> : vector<128x256xf32>
    %137 = tpu.matmul %135, %136, %cst_54 {dimension_numbers = #tpu.dot_dimension_numbers<[1], [0], [0], [1], [0, 0, 1, 1], [], []>} : vector<128x128xbf16>, vector<128x256xbf16>, vector<128x256xf32> -> vector<128x256xf32>
    %c0_55 = arith.constant 0 : index
    %c0_56 = arith.constant 0 : index
    %138 = vector.load %arg17[%c0_55, %c0_56] : memref<1x256xf32, #tpu.memory_space<vmem>>, vector<1x256xf32>
    %139 = vector.broadcast %138 : vector<1x256xf32> to vector<128x256xf32>
    %140 = arith.addf %137, %139 : vector<128x256xf32>
    %cst_57 = arith.constant 0.000000e+00 : f32
    %141 = vector.broadcast %cst_57 : f32 to vector<128x256xf32>
    %142 = arith.maximumf %140, %141 : vector<128x256xf32>
    %143 = arith.truncf %142 : vector<128x256xf32> to vector<128x256xbf16>
    %c0_58 = arith.constant 0 : index
    %c0_59 = arith.constant 0 : index
    %144 = vector.load %arg18[%c0_58, %c0_59] : memref<256x128xbf16, #tpu.memory_space<vmem>>, vector<256x128xbf16>
    %cst_60 = arith.constant dense<0.000000e+00> : vector<128x128xf32>
    %145 = tpu.matmul %143, %144, %cst_60 {dimension_numbers = #tpu.dot_dimension_numbers<[1], [0], [0], [1], [0, 0, 1, 1], [], []>} : vector<128x256xbf16>, vector<256x128xbf16>, vector<128x128xf32> -> vector<128x128xf32>
    %c0_61 = arith.constant 0 : index
    %c0_62 = arith.constant 0 : index
    %146 = vector.load %arg19[%c0_61, %c0_62] : memref<1x128xf32, #tpu.memory_space<vmem>>, vector<1x128xf32>
    %147 = vector.broadcast %146 : vector<1x128xf32> to vector<128x128xf32>
    %148 = arith.addf %145, %147 : vector<128x128xf32>
    %149 = vector.broadcast %3 : vector<128x1xf32> to vector<128x128xf32>
    %150 = arith.mulf %148, %149 : vector<128x128xf32>
    %151 = arith.addf %134, %150 : vector<128x128xf32>
    %c0_63 = arith.constant 0 : index
    %c0_64 = arith.constant 0 : index
    %152 = vector.load %arg20[%c0_63, %c0_64] : memref<1x128xf32, #tpu.memory_space<vmem>>, vector<1x128xf32>
    %c0_65 = arith.constant 0 : index
    %c0_66 = arith.constant 0 : index
    %153 = vector.load %arg21[%c0_65, %c0_66] : memref<1x128xf32, #tpu.memory_space<vmem>>, vector<1x128xf32>
    %cst_67 = arith.constant dense<0.000000e+00> : vector<128xf32>
    %154 = vector.multi_reduction <add>, %151, %cst_67 [1] : vector<128x128xf32> to vector<128xf32>
    %155 = vector.shape_cast %154 : vector<128xf32> to vector<128x1xf32>
    %cst_68 = arith.constant 1.280000e+02 : f32
    %156 = vector.broadcast %cst_68 : f32 to vector<128x1xf32>
    %157 = arith.divf %155, %156 : vector<128x1xf32>
    %158 = arith.mulf %151, %151 : vector<128x128xf32>
    %cst_69 = arith.constant dense<0.000000e+00> : vector<128xf32>
    %159 = vector.multi_reduction <add>, %158, %cst_69 [1] : vector<128x128xf32> to vector<128xf32>
    %160 = vector.shape_cast %159 : vector<128xf32> to vector<128x1xf32>
    %cst_70 = arith.constant 1.280000e+02 : f32
    %161 = vector.broadcast %cst_70 : f32 to vector<128x1xf32>
    %162 = arith.divf %160, %161 : vector<128x1xf32>
    %163 = arith.mulf %157, %157 : vector<128x1xf32>
    %164 = arith.subf %162, %163 : vector<128x1xf32>
    %165 = vector.broadcast %157 : vector<128x1xf32> to vector<128x128xf32>
    %166 = arith.subf %151, %165 : vector<128x128xf32>
    %cst_71 = arith.constant 9.99999974E-6 : f32
    %167 = vector.broadcast %cst_71 : f32 to vector<128x1xf32>
    %168 = arith.addf %164, %167 : vector<128x1xf32>
    %169 = math.rsqrt %168 : vector<128x1xf32>
    %170 = vector.broadcast %169 : vector<128x1xf32> to vector<128x128xf32>
    %171 = arith.mulf %166, %170 : vector<128x128xf32>
    %172 = vector.broadcast %152 : vector<1x128xf32> to vector<128x128xf32>
    %173 = arith.mulf %171, %172 : vector<128x128xf32>
    %174 = vector.broadcast %153 : vector<1x128xf32> to vector<128x128xf32>
    %175 = arith.addf %173, %174 : vector<128x128xf32>
    %176 = vector.shape_cast %175 : vector<128x128xf32> to vector<8x16x128xf32>
    %c0_72 = arith.constant 0 : index
    %c0_73 = arith.constant 0 : index
    %c0_74 = arith.constant 0 : index
    %177 = vector.load %arg22[%c0_72, %c0_73, %c0_74] : memref<8x16x128xf32, #tpu.memory_space<vmem>>, vector<8x16x128xf32>
    tpu.vector_store %arg22[%c0_72, %c0_73, %c0_74], %176 {strides = array<i32>} : memref<8x16x128xf32, #tpu.memory_space<vmem>>, vector<8x16x128xf32>,
    return
  }
  func.func @transform_0(%arg0: i32) -> (i32, i32, i32) {
    %c0_i32 = arith.constant 0 : i32
    %c0_i32_0 = arith.constant 0 : i32
    %c0_i32_1 = arith.constant 0 : i32
    return %arg0, %c0_i32, %c0_i32_0 : i32, i32, i32
  }
  func.func @transform_1(%arg0: i32) -> (i32, i32, i32) {
    %c0_i32 = arith.constant 0 : i32
    %c0_i32_0 = arith.constant 0 : i32
    %c0_i32_1 = arith.constant 0 : i32
    return %arg0, %c0_i32, %c0_i32_0 : i32, i32, i32
  }
  func.func @transform_2(%arg0: i32) -> (i32, i32) {
    %c0_i32 = arith.constant 0 : i32
    %c0_i32_0 = arith.constant 0 : i32
    %c0_i32_1 = arith.constant 0 : i32
    return %c0_i32, %c0_i32_0 : i32, i32
  }
  func.func @transform_3(%arg0: i32) -> (i32, i32) {
    %c0_i32 = arith.constant 0 : i32
    %c0_i32_0 = arith.constant 0 : i32
    %c0_i32_1 = arith.constant 0 : i32
    return %c0_i32, %c0_i32_0 : i32, i32
  }
  func.func @transform_4(%arg0: i32) -> (i32, i32) {
    %c0_i32 = arith.constant 0 : i32
    %c0_i32_0 = arith.constant 0 : i32
    %c0_i32_1 = arith.constant 0 : i32
    return %c0_i32, %c0_i32_0 : i32, i32
  }
  func.func @transform_5(%arg0: i32) -> (i32, i32) {
    %c0_i32 = arith.constant 0 : i32
    %c0_i32_0 = arith.constant 0 : i32
    %c0_i32_1 = arith.constant 0 : i32
    return %c0_i32, %c0_i32_0 : i32, i32
  }
  func.func @transform_6(%arg0: i32) -> (i32, i32) {
    %c0_i32 = arith.constant 0 : i32
    %c0_i32_0 = arith.constant 0 : i32
    %c0_i32_1 = arith.constant 0 : i32
    return %c0_i32, %c0_i32_0 : i32, i32
  }
  func.func @transform_7(%arg0: i32) -> (i32, i32) {
    %c0_i32 = arith.constant 0 : i32
    %c0_i32_0 = arith.constant 0 : i32
    %c0_i32_1 = arith.constant 0 : i32
    return %c0_i32, %c0_i32_0 : i32, i32
  }
  func.func @transform_8(%arg0: i32) -> (i32, i32) {
    %c0_i32 = arith.constant 0 : i32
    %c0_i32_0 = arith.constant 0 : i32
    %c0_i32_1 = arith.constant 0 : i32
    return %c0_i32, %c0_i32_0 : i32, i32
  }
  func.func @transform_9(%arg0: i32) -> (i32, i32) {
    %c0_i32 = arith.constant 0 : i32
    %c0_i32_0 = arith.constant 0 : i32
    %c0_i32_1 = arith.constant 0 : i32
    return %c0_i32, %c0_i32_0 : i32, i32
  }
  func.func @transform_10(%arg0: i32) -> (i32, i32) {
    %c0_i32 = arith.constant 0 : i32
    %c0_i32_0 = arith.constant 0 : i32
    %c0_i32_1 = arith.constant 0 : i32
    return %c0_i32, %c0_i32_0 : i32, i32
  }
  func.func @transform_11(%arg0: i32) -> (i32, i32) {
    %c0_i32 = arith.constant 0 : i32
    %c0_i32_0 = arith.constant 0 : i32
    %c0_i32_1 = arith.constant 0 : i32
    return %c0_i32, %c0_i32_0 : i32, i32
  }
  func.func @transform_12(%arg0: i32) -> (i32, i32) {
    %c0_i32 = arith.constant 0 : i32
    %c0_i32_0 = arith.constant 0 : i32
    %c0_i32_1 = arith.constant 0 : i32
    return %c0_i32, %c0_i32_0 : i32, i32
  }
  func.func @transform_13(%arg0: i32) -> (i32, i32) {
    %c0_i32 = arith.constant 0 : i32
    %c0_i32_0 = arith.constant 0 : i32
    %c0_i32_1 = arith.constant 0 : i32
    return %c0_i32, %c0_i32_0 : i32, i32
  }
  func.func @transform_14(%arg0: i32) -> (i32, i32) {
    %c0_i32 = arith.constant 0 : i32
    %c0_i32_0 = arith.constant 0 : i32
    %c0_i32_1 = arith.constant 0 : i32
    return %c0_i32, %c0_i32_0 : i32, i32
  }
  func.func @transform_15(%arg0: i32) -> (i32, i32) {
    %c0_i32 = arith.constant 0 : i32
    %c0_i32_0 = arith.constant 0 : i32
    %c0_i32_1 = arith.constant 0 : i32
    return %c0_i32, %c0_i32_0 : i32, i32
  }
  func.func @transform_16(%arg0: i32) -> (i32, i32) {
    %c0_i32 = arith.constant 0 : i32
    %c0_i32_0 = arith.constant 0 : i32
    %c0_i32_1 = arith.constant 0 : i32
    return %c0_i32, %c0_i32_0 : i32, i32
  }
  func.func @transform_17(%arg0: i32) -> (i32, i32) {
    %c0_i32 = arith.constant 0 : i32
    %c0_i32_0 = arith.constant 0 : i32
    %c0_i32_1 = arith.constant 0 : i32
    return %c0_i32, %c0_i32_0 : i32, i32
  }
  func.func @transform_18(%arg0: i32) -> (i32, i32) {
    %c0_i32 = arith.constant 0 : i32
    %c0_i32_0 = arith.constant 0 : i32
    %c0_i32_1 = arith.constant 0 : i32
    return %c0_i32, %c0_i32_0 : i32, i32
  }
  func.func @transform_19(%arg0: i32) -> (i32, i32) {
    %c0_i32 = arith.constant 0 : i32
    %c0_i32_0 = arith.constant 0 : i32
    %c0_i32_1 = arith.constant 0 : i32
    return %c0_i32, %c0_i32_0 : i32, i32
  }
  func.func @transform_20(%arg0: i32) -> (i32, i32) {
    %c0_i32 = arith.constant 0 : i32
    %c0_i32_0 = arith.constant 0 : i32
    %c0_i32_1 = arith.constant 0 : i32
    return %c0_i32, %c0_i32_0 : i32, i32
  }
  func.func @transform_21(%arg0: i32) -> (i32, i32, i32) {
    %c0_i32 = arith.constant 0 : i32
    %c0_i32_0 = arith.constant 0 : i32
    %c0_i32_1 = arith.constant 0 : i32
    return %arg0, %c0_i32, %c0_i32_0 : i32, i32, i32
  }
}

module attributes {stable_mosaic.version = 11 : i64} {
  func.func @enc_block_kernel(%arg0: i32, %arg1: memref<8x16x128xf32, #tpu.memory_space<vmem>>, %arg2: memref<8x16x1xf32, #tpu.memory_space<vmem>>, %arg3: memref<128x128xbf16, #tpu.memory_space<vmem>>, %arg4: memref<1x128xf32, #tpu.memory_space<vmem>>, %arg5: memref<384x128xbf16, #tpu.memory_space<vmem>>, %arg6: memref<1x128xf32, #tpu.memory_space<vmem>>, %arg7: memref<384x128xbf16, #tpu.memory_space<vmem>>, %arg8: memref<1x128xf32, #tpu.memory_space<vmem>>, %arg9: memref<384x128xbf16, #tpu.memory_space<vmem>>, %arg10: memref<1x128xf32, #tpu.memory_space<vmem>>, %arg11: memref<384x128xbf16, #tpu.memory_space<vmem>>, %arg12: memref<1x128xf32, #tpu.memory_space<vmem>>, %arg13: memref<128x128xbf16, #tpu.memory_space<vmem>>, %arg14: memref<1x128xf32, #tpu.memory_space<vmem>>, %arg15: memref<1x128xf32, #tpu.memory_space<vmem>>, %arg16: memref<128x256xbf16, #tpu.memory_space<vmem>>, %arg17: memref<1x256xf32, #tpu.memory_space<vmem>>, %arg18: memref<256x128xbf16, #tpu.memory_space<vmem>>, %arg19: memref<1x128xf32, #tpu.memory_space<vmem>>, %arg20: memref<1x128xf32, #tpu.memory_space<vmem>>, %arg21: memref<1x128xf32, #tpu.memory_space<vmem>>, %arg22: memref<8x16x128xf32, #tpu.memory_space<vmem>>) attributes {dimension_semantics = [#tpu.dimension_semantics<parallel>], iteration_bounds = array<i64: 1>, scalar_prefetch = 0 : i64, scratch_operands = 0 : i64, tpu.core_type = #tpu.core_type<tc>, window_params = [{transform_indices = @transform_0, window_bounds = array<i64: 8, 16, 128>}, {transform_indices = @transform_1, window_bounds = array<i64: 8, 16, 1>}, {pipeline_mode = #tpu.pipeline_mode<synchronous>, transform_indices = @transform_2, window_bounds = array<i64: 128, 128>}, {pipeline_mode = #tpu.pipeline_mode<synchronous>, transform_indices = @transform_3, window_bounds = array<i64: 1, 128>}, {pipeline_mode = #tpu.pipeline_mode<synchronous>, transform_indices = @transform_4, window_bounds = array<i64: 384, 128>}, {pipeline_mode = #tpu.pipeline_mode<synchronous>, transform_indices = @transform_5, window_bounds = array<i64: 1, 128>}, {pipeline_mode = #tpu.pipeline_mode<synchronous>, transform_indices = @transform_6, window_bounds = array<i64: 384, 128>}, {pipeline_mode = #tpu.pipeline_mode<synchronous>, transform_indices = @transform_7, window_bounds = array<i64: 1, 128>}, {pipeline_mode = #tpu.pipeline_mode<synchronous>, transform_indices = @transform_8, window_bounds = array<i64: 384, 128>}, {pipeline_mode = #tpu.pipeline_mode<synchronous>, transform_indices = @transform_9, window_bounds = array<i64: 1, 128>}, {pipeline_mode = #tpu.pipeline_mode<synchronous>, transform_indices = @transform_10, window_bounds = array<i64: 384, 128>}, {pipeline_mode = #tpu.pipeline_mode<synchronous>, transform_indices = @transform_11, window_bounds = array<i64: 1, 128>}, {pipeline_mode = #tpu.pipeline_mode<synchronous>, transform_indices = @transform_12, window_bounds = array<i64: 128, 128>}, {pipeline_mode = #tpu.pipeline_mode<synchronous>, transform_indices = @transform_13, window_bounds = array<i64: 1, 128>}, {pipeline_mode = #tpu.pipeline_mode<synchronous>, transform_indices = @transform_14, window_bounds = array<i64: 1, 128>}, {pipeline_mode = #tpu.pipeline_mode<synchronous>, transform_indices = @transform_15, window_bounds = array<i64: 128, 256>}, {pipeline_mode = #tpu.pipeline_mode<synchronous>, transform_indices = @transform_16, window_bounds = array<i64: 1, 256>}, {pipeline_mode = #tpu.pipeline_mode<synchronous>, transform_indices = @transform_17, window_bounds = array<i64: 256, 128>}, {pipeline_mode = #tpu.pipeline_mode<synchronous>, transform_indices = @transform_18, window_bounds = array<i64: 1, 128>}, {pipeline_mode = #tpu.pipeline_mode<synchronous>, transform_indices = @transform_19, window_bounds = array<i64: 1, 128>}, {pipeline_mode = #tpu.pipeline_mode<synchronous>, transform_indices = @transform_20, window_bounds = array<i64: 1, 128>}, {transform_indices = @transform_21, window_bounds = array<i64: 8, 16, 128>}]} {
    %c0 = arith.constant 0 : index
    %c0_0 = arith.constant 0 : index
    %c0_1 = arith.constant 0 : index
    %0 = vector.load %arg1[%c0, %c0_0, %c0_1] : memref<8x16x128xf32, #tpu.memory_space<vmem>>, vector<8x16x128xf32>
    %1 = vector.shape_cast %0 : vector<8x16x128xf32> to vector<128x128xf32>
    %c0_2 = arith.constant 0 : index
    %c0_3 = arith.constant 0 : index
    %c0_4 = arith.constant 0 : index
    %2 = vector.load %arg2[%c0_2, %c0_3, %c0_4] : memref<8x16x1xf32, #tpu.memory_space<vmem>>, vector<8x16x1xf32>
    %3 = vector.shape_cast %2 : vector<8x16x1xf32> to vector<128x1xf32>
    %4 = tpu.iota {dimensions = array<i32: 0>} : vector<128x1xi32>
    %c16_i32 = arith.constant 16 : i32
    %c0_i32 = arith.constant 0 : i32
    %5 = arith.cmpi eq, %c16_i32, %c0_i32 : i32
    %c1_i32 = arith.constant 1 : i32
    %6 = arith.select %5, %c1_i32, %c16_i32 : i32
    %7 = vector.broadcast %6 : i32 to vector<128x1xi32>
    %8 = arith.remsi %4, %7 : vector<128x1xi32>
    %c0_i32_5 = arith.constant 0 : i32
    %9 = vector.broadcast %c0_i32_5 : i32 to vector<128x1xi32>
    %10 = arith.cmpi ne, %8, %9 : vector<128x1xi32>
    %c0_i32_6 = arith.constant 0 : i32
    %11 = vector.broadcast %c0_i32_6 : i32 to vector<128x1xi32>
    %12 = arith.cmpi slt, %8, %11 : vector<128x1xi32>
    %c0_i32_7 = arith.constant 0 : i32
    %13 = arith.cmpi slt, %6, %c0_i32_7 : i32
    %14 = vector.broadcast %13 : i1 to vector<128x1xi1>
    %15 = vector.broadcast %14 : vector<128x1xi1> to vector<128x1xi1>
    %16 = arith.xori %12, %15 : vector<128x1xi1>
    %17 = arith.andi %16, %10 : vector<128x1xi1>
    %18 = vector.broadcast %6 : i32 to vector<128x1xi32>
    %19 = arith.addi %8, %18 : vector<128x1xi32>
    %20 = arith.select %17, %19, %8 : vector<128x1xi1>, vector<128x1xi32>
    %c0_i32_8 = arith.constant 0 : i32
    %21 = vector.broadcast %c0_i32_8 : i32 to vector<128x1xi32>
    %22 = arith.cmpi ne, %20, %21 : vector<128x1xi32>
    %23 = arith.extui %22 : vector<128x1xi1> to vector<128x1xi32>
    %24 = arith.sitofp %23 : vector<128x1xi32> to vector<128x1xf32>
    %c15_i32 = arith.constant 15 : i32
    %25 = vector.broadcast %c15_i32 : i32 to vector<128x1xi32>
    %26 = arith.cmpi ne, %20, %25 : vector<128x1xi32>
    %27 = arith.extui %26 : vector<128x1xi1> to vector<128x1xi32>
    %28 = arith.sitofp %27 : vector<128x1xi32> to vector<128x1xf32>
    %29 = arith.truncf %1 : vector<128x128xf32> to vector<128x128xbf16>
    %c1_i32_9 = arith.constant 1 : i32
    %30 = tpu.dynamic_rotate %1 by %c1_i32_9 dim 0 : vector<128x128xf32>, i32 -> vector<128x128xf32>
    %31 = vector.broadcast %24 : vector<128x1xf32> to vector<128x128xf32>
    %32 = arith.mulf %30, %31 : vector<128x128xf32>
    %33 = arith.truncf %32 : vector<128x128xf32> to vector<128x128xbf16>
    %c127_i32 = arith.constant 127 : i32
    %34 = tpu.dynamic_rotate %1 by %c127_i32 dim 0 : vector<128x128xf32>, i32 -> vector<128x128xf32>
    %35 = vector.broadcast %28 : vector<128x1xf32> to vector<128x128xf32>
    %36 = arith.mulf %34, %35 : vector<128x128xf32>
    %37 = arith.truncf %36 : vector<128x128xf32> to vector<128x128xbf16>
    %38 = tpu.concatenate %33, %29, %37 in 1 : vector<128x128xbf16>, vector<128x128xbf16>, vector<128x128xbf16> -> vector<128x384xbf16>
    %c0_10 = arith.constant 0 : index
    %c0_11 = arith.constant 0 : index
    %39 = vector.load %arg3[%c0_10, %c0_11] : memref<128x128xbf16, #tpu.memory_space<vmem>>, vector<128x128xbf16>
    %cst = arith.constant dense<0.000000e+00> : vector<128x128xf32>
    %40 = tpu.matmul %29, %39, %cst {dimension_numbers = #tpu.dot_dimension_numbers<[1], [0], [0], [1], [0, 0, 1, 1], [], []>} : vector<128x128xbf16>, vector<128x128xbf16>, vector<128x128xf32> -> vector<128x128xf32>
    %c0_12 = arith.constant 0 : index
    %c0_13 = arith.constant 0 : index
    %41 = vector.load %arg4[%c0_12, %c0_13] : memref<1x128xf32, #tpu.memory_space<vmem>>, vector<1x128xf32>
    %42 = vector.broadcast %41 : vector<1x128xf32> to vector<128x128xf32>
    %43 = arith.addf %40, %42 : vector<128x128xf32>
    %44 = arith.negf %43 : vector<128x128xf32>
    %45 = math.exp %44 : vector<128x128xf32>
    %cst_14 = arith.constant 1.000000e+00 : f32
    %46 = vector.broadcast %cst_14 : f32 to vector<128x128xf32>
    %47 = arith.addf %46, %45 : vector<128x128xf32>
    %48 = arith.divf %46, %47 : vector<128x128xf32>
    %49 = arith.truncf %48 : vector<128x128xf32> to vector<128x128xbf16>
    %c0_15 = arith.constant 0 : index
    %c0_16 = arith.constant 0 : index
    %50 = vector.load %arg5[%c0_15, %c0_16] : memref<384x128xbf16, #tpu.memory_space<vmem>>, vector<384x128xbf16>
    %cst_17 = arith.constant dense<0.000000e+00> : vector<128x128xf32>
    %51 = tpu.matmul %38, %50, %cst_17 {dimension_numbers = #tpu.dot_dimension_numbers<[1], [0], [0], [1], [0, 0, 1, 1], [], []>} : vector<128x384xbf16>, vector<384x128xbf16>, vector<128x128xf32> -> vector<128x128xf32>
    %c0_18 = arith.constant 0 : index
    %c0_19 = arith.constant 0 : index
    %52 = vector.load %arg6[%c0_18, %c0_19] : memref<1x128xf32, #tpu.memory_space<vmem>>, vector<1x128xf32>
    %53 = vector.broadcast %52 : vector<1x128xf32> to vector<128x128xf32>
    %54 = arith.addf %51, %53 : vector<128x128xf32>
    %c0_20 = arith.constant 0 : index
    %c0_21 = arith.constant 0 : index
    %55 = vector.load %arg7[%c0_20, %c0_21] : memref<384x128xbf16, #tpu.memory_space<vmem>>, vector<384x128xbf16>
    %cst_22 = arith.constant dense<0.000000e+00> : vector<128x128xf32>
    %56 = tpu.matmul %38, %55, %cst_22 {dimension_numbers = #tpu.dot_dimension_numbers<[1], [0], [0], [1], [0, 0, 1, 1], [], []>} : vector<128x384xbf16>, vector<384x128xbf16>, vector<128x128xf32> -> vector<128x128xf32>
    %c0_23 = arith.constant 0 : index
    %c0_24 = arith.constant 0 : index
    %57 = vector.load %arg8[%c0_23, %c0_24] : memref<1x128xf32, #tpu.memory_space<vmem>>, vector<1x128xf32>
    %58 = vector.broadcast %57 : vector<1x128xf32> to vector<128x128xf32>
    %59 = arith.addf %56, %58 : vector<128x128xf32>
    %c0_25 = arith.constant 0 : index
    %c0_26 = arith.constant 0 : index
    %60 = vector.load %arg9[%c0_25, %c0_26] : memref<384x128xbf16, #tpu.memory_space<vmem>>, vector<384x128xbf16>
    %cst_27 = arith.constant dense<0.000000e+00> : vector<128x128xf32>
    %61 = tpu.matmul %38, %60, %cst_27 {dimension_numbers = #tpu.dot_dimension_numbers<[1], [0], [0], [1], [0, 0, 1, 1], [], []>} : vector<128x384xbf16>, vector<384x128xbf16>, vector<128x128xf32> -> vector<128x128xf32>
    %c0_28 = arith.constant 0 : index
    %c0_29 = arith.constant 0 : index
    %62 = vector.load %arg10[%c0_28, %c0_29] : memref<1x128xf32, #tpu.memory_space<vmem>>, vector<1x128xf32>
    %63 = vector.broadcast %62 : vector<1x128xf32> to vector<128x128xf32>
    %64 = arith.addf %61, %63 : vector<128x128xf32>
    %65 = vector.shape_cast %59 : vector<128x128xf32> to vector<8x16x128xf32>
    %66 = vector.shape_cast %64 : vector<128x128xf32> to vector<8x16x128xf32>
    %cst_30 = arith.constant dense<0xFF800000> : vector<8x128xf32>
    %67 = vector.multi_reduction <maximumf>, %65, %cst_30 [1] : vector<8x16x128xf32> to vector<8x128xf32>
    %68 = vector.shape_cast %67 : vector<8x128xf32> to vector<8x1x128xf32>
    %69 = vector.broadcast %68 : vector<8x1x128xf32> to vector<8x16x128xf32>
    %70 = arith.subf %65, %69 : vector<8x16x128xf32>
    %71 = vector.shape_cast %70 : vector<8x16x128xf32> to vector<128x128xf32>
    %cst_31 = arith.constant dense<0xFF800000> : vector<8x128xf32>
    %72 = vector.multi_reduction <maximumf>, %66, %cst_31 [1] : vector<8x16x128xf32> to vector<8x128xf32>
    %73 = vector.shape_cast %72 : vector<8x128xf32> to vector<8x1x128xf32>
    %74 = vector.broadcast %73 : vector<8x1x128xf32> to vector<8x16x128xf32>
    %75 = arith.subf %66, %74 : vector<8x16x128xf32>
    %76 = vector.shape_cast %75 : vector<8x16x128xf32> to vector<128x128xf32>
    %77 = arith.mulf %54, %71 : vector<128x128xf32>
    %78 = arith.truncf %77 : vector<128x128xf32> to vector<128x128xbf16>
    %c0_32 = arith.constant 0 : index
    %c0_33 = arith.constant 0 : index
    %79 = vector.load %arg13[%c0_32, %c0_33] : memref<128x128xbf16, #tpu.memory_space<vmem>>, vector<128x128xbf16>
    %cst_34 = arith.constant dense<0.000000e+00> : vector<128x128xf32>
    %80 = tpu.matmul %78, %79, %cst_34 {dimension_numbers = #tpu.dot_dimension_numbers<[1], [0], [0], [1], [0, 0, 1, 1], [], []>} : vector<128x128xbf16>, vector<128x128xbf16>, vector<128x128xf32> -> vector<128x128xf32>
    %81 = arith.negf %80 : vector<128x128xf32>
    %82 = math.exp %81 : vector<128x128xf32>
    %cst_35 = arith.constant 1.000000e+00 : f32
    %83 = vector.broadcast %cst_35 : f32 to vector<128x128xf32>
    %84 = arith.addf %83, %82 : vector<128x128xf32>
    %85 = arith.divf %83, %84 : vector<128x128xf32>
    %86 = arith.mulf %85, %76 : vector<128x128xf32>
    %87 = vector.shape_cast %86 : vector<128x128xf32> to vector<8x16x128xf32>
    %88 = vector.broadcast %73 : vector<8x1x128xf32> to vector<8x16x128xf32>
    %89 = arith.addf %87, %88 : vector<8x16x128xf32>
    %90 = vector.shape_cast %89 : vector<8x16x128xf32> to vector<128x128xf32>
    %91 = arith.truncf %90 : vector<128x128xf32> to vector<128x128xbf16>
    %c1_i32_36 = arith.constant 1 : i32
    %92 = tpu.dynamic_rotate %90 by %c1_i32_36 dim 0 : vector<128x128xf32>, i32 -> vector<128x128xf32>
    %93 = vector.broadcast %24 : vector<128x1xf32> to vector<128x128xf32>
    %94 = arith.mulf %92, %93 : vector<128x128xf32>
    %95 = arith.truncf %94 : vector<128x128xf32> to vector<128x128xbf16>
    %c127_i32_37 = arith.constant 127 : i32
    %96 = tpu.dynamic_rotate %90 by %c127_i32_37 dim 0 : vector<128x128xf32>, i32 -> vector<128x128xf32>
    %97 = vector.broadcast %28 : vector<128x1xf32> to vector<128x128xf32>
    %98 = arith.mulf %96, %97 : vector<128x128xf32>
    %99 = arith.truncf %98 : vector<128x128xf32> to vector<128x128xbf16>
    %100 = tpu.concatenate %95, %91, %99 in 1 : vector<128x128xbf16>, vector<128x128xbf16>, vector<128x128xbf16> -> vector<128x384xbf16>
    %c0_38 = arith.constant 0 : index
    %c0_39 = arith.constant 0 : index
    %101 = vector.load %arg11[%c0_38, %c0_39] : memref<384x128xbf16, #tpu.memory_space<vmem>>, vector<384x128xbf16>
    %cst_40 = arith.constant dense<0.000000e+00> : vector<128x128xf32>
    %102 = tpu.matmul %100, %101, %cst_40 {dimension_numbers = #tpu.dot_dimension_numbers<[1], [0], [0], [1], [0, 0, 1, 1], [], []>} : vector<128x384xbf16>, vector<384x128xbf16>, vector<128x128xf32> -> vector<128x128xf32>
    %c0_41 = arith.constant 0 : index
    %c0_42 = arith.constant 0 : index
    %103 = vector.load %arg12[%c0_41, %c0_42] : memref<1x128xf32, #tpu.memory_space<vmem>>, vector<1x128xf32>
    %104 = vector.broadcast %103 : vector<1x128xf32> to vector<128x128xf32>
    %105 = arith.addf %102, %104 : vector<128x128xf32>
    %106 = arith.extf %49 : vector<128x128xbf16> to vector<128x128xf32>
    %107 = arith.mulf %105, %106 : vector<128x128xf32>
    %108 = vector.broadcast %3 : vector<128x1xf32> to vector<128x128xf32>
    %109 = arith.mulf %107, %108 : vector<128x128xf32>
    %110 = arith.addf %109, %1 : vector<128x128xf32>
    %c0_43 = arith.constant 0 : index
    %c0_44 = arith.constant 0 : index
    %111 = vector.load %arg14[%c0_43, %c0_44] : memref<1x128xf32, #tpu.memory_space<vmem>>, vector<1x128xf32>
    %c0_45 = arith.constant 0 : index
    %c0_46 = arith.constant 0 : index
    %112 = vector.load %arg15[%c0_45, %c0_46] : memref<1x128xf32, #tpu.memory_space<vmem>>, vector<1x128xf32>
    %cst_47 = arith.constant dense<0.000000e+00> : vector<128xf32>
    %113 = vector.multi_reduction <add>, %110, %cst_47 [1] : vector<128x128xf32> to vector<128xf32>
    %114 = vector.shape_cast %113 : vector<128xf32> to vector<128x1xf32>
    %cst_48 = arith.constant 1.280000e+02 : f32
    %115 = vector.broadcast %cst_48 : f32 to vector<128x1xf32>
    %116 = arith.divf %114, %115 : vector<128x1xf32>
    %117 = arith.mulf %110, %110 : vector<128x128xf32>
    %cst_49 = arith.constant dense<0.000000e+00> : vector<128xf32>
    %118 = vector.multi_reduction <add>, %117, %cst_49 [1] : vector<128x128xf32> to vector<128xf32>
    %119 = vector.shape_cast %118 : vector<128xf32> to vector<128x1xf32>
    %cst_50 = arith.constant 1.280000e+02 : f32
    %120 = vector.broadcast %cst_50 : f32 to vector<128x1xf32>
    %121 = arith.divf %119, %120 : vector<128x1xf32>
    %122 = arith.mulf %116, %116 : vector<128x1xf32>
    %123 = arith.subf %121, %122 : vector<128x1xf32>
    %124 = vector.broadcast %116 : vector<128x1xf32> to vector<128x128xf32>
    %125 = arith.subf %110, %124 : vector<128x128xf32>
    %cst_51 = arith.constant 9.99999974E-6 : f32
    %126 = vector.broadcast %cst_51 : f32 to vector<128x1xf32>
    %127 = arith.addf %123, %126 : vector<128x1xf32>
    %128 = math.rsqrt %127 : vector<128x1xf32>
    %129 = vector.broadcast %128 : vector<128x1xf32> to vector<128x128xf32>
    %130 = arith.mulf %125, %129 : vector<128x128xf32>
    %131 = vector.broadcast %111 : vector<1x128xf32> to vector<128x128xf32>
    %132 = arith.mulf %130, %131 : vector<128x128xf32>
    %133 = vector.broadcast %112 : vector<1x128xf32> to vector<128x128xf32>
    %134 = arith.addf %132, %133 : vector<128x128xf32>
    %135 = arith.truncf %134 : vector<128x128xf32> to vector<128x128xbf16>
    %c0_52 = arith.constant 0 : index
    %c0_53 = arith.constant 0 : index
    %136 = vector.load %arg16[%c0_52, %c0_53] : memref<128x256xbf16, #tpu.memory_space<vmem>>, vector<128x256xbf16>
    %cst_54 = arith.constant dense<0.000000e+00> : vector<128x256xf32>
    %137 = tpu.matmul %135, %136, %cst_54 {dimension_numbers = #tpu.dot_dimension_numbers<[1], [0], [0], [1], [0, 0, 1, 1], [], []>} : vector<128x128xbf16>, vector<128x256xbf16>, vector<128x256xf32> -> vector<128x256xf32>
    %c0_55 = arith.constant 0 : index
    %c0_56 = arith.constant 0 : index
    %138 = vector.load %arg17[%c0_55, %c0_56] : memref<1x256xf32, #tpu.memory_space<vmem>>, vector<1x256xf32>
    %139 = vector.broadcast %138 : vector<1x256xf32> to vector<128x256xf32>
    %140 = arith.addf %137, %139 : vector<128x256xf32>
    %cst_57 = arith.constant 0.000000e+00 : f32
    %141 = vector.broadcast %cst_57 : f32 to vector<128x256xf32>
    %142 = arith.maximumf %140, %141 : vector<128x256xf32>
    %143 = arith.truncf %142 : vector<128x256xf32> to vector<128x256xbf16>
    %c0_58 = arith.constant 0 : index
    %c0_59 = arith.constant 0 : index
    %144 = vector.load %arg18[%c0_58, %c0_59] : memref<256x128xbf16, #tpu.memory_space<vmem>>, vector<256x128xbf16>
    %cst_60 = arith.constant dense<0.000000e+00> : vector<128x128xf32>
    %145 = tpu.matmul %143, %144, %cst_60 {dimension_numbers = #tpu.dot_dimension_numbers<[1], [0], [0], [1], [0, 0, 1, 1], [], []>} : vector<128x256xbf16>, vector<256x128xbf16>, vector<128x128xf32> -> vector<128x128xf32>
    %c0_61 = arith.constant 0 : index
    %c0_62 = arith.constant 0 : index
    %146 = vector.load %arg19[%c0_61, %c0_62] : memref<1x128xf32, #tpu.memory_space<vmem>>, vector<1x128xf32>
    %147 = vector.broadcast %146 : vector<1x128xf32> to vector<128x128xf32>
    %148 = arith.addf %145, %147 : vector<128x128xf32>
    %149 = vector.broadcast %3 : vector<128x1xf32> to vector<128x128xf32>
    %150 = arith.mulf %148, %149 : vector<128x128xf32>
    %151 = arith.addf %134, %150 : vector<128x128xf32>
    %c0_63 = arith.constant 0 : index
    %c0_64 = arith.constant 0 : index
    %152 = vector.load %arg20[%c0_63, %c0_64] : memref<1x128xf32, #tpu.memory_space<vmem>>, vector<1x128xf32>
    %c0_65 = arith.constant 0 : index
    %c0_66 = arith.constant 0 : index
    %153 = vector.load %arg21[%c0_65, %c0_66] : memref<1x128xf32, #tpu.memory_space<vmem>>, vector<1x128xf32>
    %cst_67 = arith.constant dense<0.000000e+00> : vector<128xf32>
    %154 = vector.multi_reduction <add>, %151, %cst_67 [1] : vector<128x128xf32> to vector<128xf32>
    %155 = vector.shape_cast %154 : vector<128xf32> to vector<128x1xf32>
    %cst_68 = arith.constant 1.280000e+02 : f32
    %156 = vector.broadcast %cst_68 : f32 to vector<128x1xf32>
    %157 = arith.divf %155, %156 : vector<128x1xf32>
    %158 = arith.mulf %151, %151 : vector<128x128xf32>
    %cst_69 = arith.constant dense<0.000000e+00> : vector<128xf32>
    %159 = vector.multi_reduction <add>, %158, %cst_69 [1] : vector<128x128xf32> to vector<128xf32>
    %160 = vector.shape_cast %159 : vector<128xf32> to vector<128x1xf32>
    %cst_70 = arith.constant 1.280000e+02 : f32
    %161 = vector.broadcast %cst_70 : f32 to vector<128x1xf32>
    %162 = arith.divf %160, %161 : vector<128x1xf32>
    %163 = arith.mulf %157, %157 : vector<128x1xf32>
    %164 = arith.subf %162, %163 : vector<128x1xf32>
    %165 = vector.broadcast %157 : vector<128x1xf32> to vector<128x128xf32>
    %166 = arith.subf %151, %165 : vector<128x128xf32>
    %cst_71 = arith.constant 9.99999974E-6 : f32
    %167 = vector.broadcast %cst_71 : f32 to vector<128x1xf32>
    %168 = arith.addf %164, %167 : vector<128x1xf32>
    %169 = math.rsqrt %168 : vector<128x1xf32>
    %170 = vector.broadcast %169 : vector<128x1xf32> to vector<128x128xf32>
    %171 = arith.mulf %166, %170 : vector<128x128xf32>
    %172 = vector.broadcast %152 : vector<1x128xf32> to vector<128x128xf32>
    %173 = arith.mulf %171, %172 : vector<128x128xf32>
    %174 = vector.broadcast %153 : vector<1x128xf32> to vector<128x128xf32>
    %175 = arith.addf %173, %174 : vector<128x128xf32>
    %176 = vector.shape_cast %175 : vector<128x128xf32> to vector<8x16x128xf32>
    %c0_72 = arith.constant 0 : index
    %c0_73 = arith.constant 0 : index
    %c0_74 = arith.constant 0 : index
    %177 = vector.load %arg22[%c0_72, %c0_73, %c0_74] : memref<8x16x128xf32, #tpu.memory_space<vmem>>, vector<8x16x128xf32>
    tpu.vector_store %arg22[%c0_72, %c0_73, %c0_74], %176 {strides = array<i32>} : memref<8x16x128xf32, #tpu.memory_space<vmem>>, vector<8x16x128xf32>,
    return
  }
  func.func @transform_0(%arg0: i32) -> (i32, i32, i32) {
    %c0_i32 = arith.constant 0 : i32
    %c0_i32_0 = arith.constant 0 : i32
    %c0_i32_1 = arith.constant 0 : i32
    return %arg0, %c0_i32, %c0_i32_0 : i32, i32, i32
  }
  func.func @transform_1(%arg0: i32) -> (i32, i32, i32) {
    %c0_i32 = arith.constant 0 : i32
    %c0_i32_0 = arith.constant 0 : i32
    %c0_i32_1 = arith.constant 0 : i32
    return %arg0, %c0_i32, %c0_i32_0 : i32, i32, i32
  }
  func.func @transform_2(%arg0: i32) -> (i32, i32) {
    %c0_i32 = arith.constant 0 : i32
    %c0_i32_0 = arith.constant 0 : i32
    %c0_i32_1 = arith.constant 0 : i32
    return %c0_i32, %c0_i32_0 : i32, i32
  }
  func.func @transform_3(%arg0: i32) -> (i32, i32) {
    %c0_i32 = arith.constant 0 : i32
    %c0_i32_0 = arith.constant 0 : i32
    %c0_i32_1 = arith.constant 0 : i32
    return %c0_i32, %c0_i32_0 : i32, i32
  }
  func.func @transform_4(%arg0: i32) -> (i32, i32) {
    %c0_i32 = arith.constant 0 : i32
    %c0_i32_0 = arith.constant 0 : i32
    %c0_i32_1 = arith.constant 0 : i32
    return %c0_i32, %c0_i32_0 : i32, i32
  }
  func.func @transform_5(%arg0: i32) -> (i32, i32) {
    %c0_i32 = arith.constant 0 : i32
    %c0_i32_0 = arith.constant 0 : i32
    %c0_i32_1 = arith.constant 0 : i32
    return %c0_i32, %c0_i32_0 : i32, i32
  }
  func.func @transform_6(%arg0: i32) -> (i32, i32) {
    %c0_i32 = arith.constant 0 : i32
    %c0_i32_0 = arith.constant 0 : i32
    %c0_i32_1 = arith.constant 0 : i32
    return %c0_i32, %c0_i32_0 : i32, i32
  }
  func.func @transform_7(%arg0: i32) -> (i32, i32) {
    %c0_i32 = arith.constant 0 : i32
    %c0_i32_0 = arith.constant 0 : i32
    %c0_i32_1 = arith.constant 0 : i32
    return %c0_i32, %c0_i32_0 : i32, i32
  }
  func.func @transform_8(%arg0: i32) -> (i32, i32) {
    %c0_i32 = arith.constant 0 : i32
    %c0_i32_0 = arith.constant 0 : i32
    %c0_i32_1 = arith.constant 0 : i32
    return %c0_i32, %c0_i32_0 : i32, i32
  }
  func.func @transform_9(%arg0: i32) -> (i32, i32) {
    %c0_i32 = arith.constant 0 : i32
    %c0_i32_0 = arith.constant 0 : i32
    %c0_i32_1 = arith.constant 0 : i32
    return %c0_i32, %c0_i32_0 : i32, i32
  }
  func.func @transform_10(%arg0: i32) -> (i32, i32) {
    %c0_i32 = arith.constant 0 : i32
    %c0_i32_0 = arith.constant 0 : i32
    %c0_i32_1 = arith.constant 0 : i32
    return %c0_i32, %c0_i32_0 : i32, i32
  }
  func.func @transform_11(%arg0: i32) -> (i32, i32) {
    %c0_i32 = arith.constant 0 : i32
    %c0_i32_0 = arith.constant 0 : i32
    %c0_i32_1 = arith.constant 0 : i32
    return %c0_i32, %c0_i32_0 : i32, i32
  }
  func.func @transform_12(%arg0: i32) -> (i32, i32) {
    %c0_i32 = arith.constant 0 : i32
    %c0_i32_0 = arith.constant 0 : i32
    %c0_i32_1 = arith.constant 0 : i32
    return %c0_i32, %c0_i32_0 : i32, i32
  }
  func.func @transform_13(%arg0: i32) -> (i32, i32) {
    %c0_i32 = arith.constant 0 : i32
    %c0_i32_0 = arith.constant 0 : i32
    %c0_i32_1 = arith.constant 0 : i32
    return %c0_i32, %c0_i32_0 : i32, i32
  }
  func.func @transform_14(%arg0: i32) -> (i32, i32) {
    %c0_i32 = arith.constant 0 : i32
    %c0_i32_0 = arith.constant 0 : i32
    %c0_i32_1 = arith.constant 0 : i32
    return %c0_i32, %c0_i32_0 : i32, i32
  }
  func.func @transform_15(%arg0: i32) -> (i32, i32) {
    %c0_i32 = arith.constant 0 : i32
    %c0_i32_0 = arith.constant 0 : i32
    %c0_i32_1 = arith.constant 0 : i32
    return %c0_i32, %c0_i32_0 : i32, i32
  }
  func.func @transform_16(%arg0: i32) -> (i32, i32) {
    %c0_i32 = arith.constant 0 : i32
    %c0_i32_0 = arith.constant 0 : i32
    %c0_i32_1 = arith.constant 0 : i32
    return %c0_i32, %c0_i32_0 : i32, i32
  }
  func.func @transform_17(%arg0: i32) -> (i32, i32) {
    %c0_i32 = arith.constant 0 : i32
    %c0_i32_0 = arith.constant 0 : i32
    %c0_i32_1 = arith.constant 0 : i32
    return %c0_i32, %c0_i32_0 : i32, i32
  }
  func.func @transform_18(%arg0: i32) -> (i32, i32) {
    %c0_i32 = arith.constant 0 : i32
    %c0_i32_0 = arith.constant 0 : i32
    %c0_i32_1 = arith.constant 0 : i32
    return %c0_i32, %c0_i32_0 : i32, i32
  }
  func.func @transform_19(%arg0: i32) -> (i32, i32) {
    %c0_i32 = arith.constant 0 : i32
    %c0_i32_0 = arith.constant 0 : i32
    %c0_i32_1 = arith.constant 0 : i32
    return %c0_i32, %c0_i32_0 : i32, i32
  }
  func.func @transform_20(%arg0: i32) -> (i32, i32) {
    %c0_i32 = arith.constant 0 : i32
    %c0_i32_0 = arith.constant 0 : i32
    %c0_i32_1 = arith.constant 0 : i32
    return %c0_i32, %c0_i32_0 : i32, i32
  }
  func.func @transform_21(%arg0: i32) -> (i32, i32, i32) {
    %c0_i32 = arith.constant 0 : i32
    %c0_i32_0 = arith.constant 0 : i32
    %c0_i32_1 = arith.constant 0 : i32
    return %arg0, %c0_i32, %c0_i32_0 : i32, i32, i32
  }
}

</mosaic_0001>

<bundles_post_ra>
// kernel: tpu_custom_call.1
= control target key start
LH: loop header
LB: loop body
LE: loop exit
PB: predicated region body
PF: predicated region fallthrough
CT: control target
= control target key end

     0   :  { %s9021_s0 = inlined_call_operand.vmem [shape: f32[8,16,128], index: 0, kind: input, shape index: {}]   ;;  %s9022_s1 = inlined_call_operand.vmem [shape: f32[8,16,1], index: 1, kind: input, shape index: {}]   ;;  %s9023_s2 = inlined_call_operand.hbm [shape: bf16[128,128], index: 2, kind: input, shape index: {}]   ;;  %s9024_s3 = inlined_call_operand.vmem [shape: f32[1,128], index: 3, kind: input, shape index: {}]   ;;  %s9025_s4 = inlined_call_operand.hbm [shape: bf16[384,128], index: 4, kind: input, shape index: {}]   ;;  %s9026_s5 = inlined_call_operand.vmem [shape: f32[1,128], index: 5, kind: input, shape index: {}]   ;;  %s9027_s6 = inlined_call_operand.hbm [shape: bf16[384,128], index: 6, kind: input, shape index: {}]   ;;  %s9028_s7 = inlined_call_operand.vmem [shape: f32[1,128], index: 7, kind: input, shape index: {}]   ;;  %s9029_s8 = inlined_call_operand.hbm [shape: bf16[384,128], index: 8, kind: input, shape index: {}]   ;;  %s9030_s9 = inlined_call_operand.vmem [shape: f32[1,128], index: 9, kind: input, shape index: {}]   ;;  %s9031_s10 = inlined_call_operand.hbm [shape: bf16[384,128], index: 10, kind: input, shape index: {}]   ;;  %s9032_s11 = inlined_call_operand.vmem [shape: f32[1,128], index: 11, kind: input, shape index: {}]   ;;  %s9033_s12 = inlined_call_operand.hbm [shape: bf16[128,128], index: 12, kind: input, shape index: {}]   ;;  %s9034_s13 = inlined_call_operand.vmem [shape: f32[1,128], index: 13, kind: input, shape index: {}]   ;;  %s9035_s14 = inlined_call_operand.vmem [shape: f32[1,128], index: 14, kind: input, shape index: {}]   ;;  %s9036_s15 = inlined_call_operand.hbm [shape: bf16[128,256], index: 15, kind: input, shape index: {}]   ;;  %s9037_s16 = inlined_call_operand.vmem [shape: f32[1,256], index: 16, kind: input, shape index: {}]   ;;  %s9038_s17 = inlined_call_operand.hbm [shape: bf16[256,128], index: 17, kind: input, shape index: {}]   ;;  %s9039_s18 = inlined_call_operand.vmem [shape: f32[1,128], index: 18, kind: input, shape index: {}]   ;;  %s9040_s19 = inlined_call_operand.vmem [shape: f32[1,128], index: 19, kind: input, shape index: {}]   ;;  %s9041_s20 = inlined_call_operand.vmem [shape: f32[1,128], index: 20, kind: input, shape index: {}]   ;;  %s9042_s21 = inlined_call_operand.hbm [shape: f32[8,16,128], index: 21, kind: output, shape index: {}]  }
   0x1   :  { %9070 = sst [smem:[#allocation68_spill]] %s9021_s0 }
   0x2   :  { %9071 = sst [smem:[#allocation69_spill]] %s9022_s1 }
   0x3   :  { %9072 = sst [smem:[#allocation70_spill]] %s9023_s2 }
   0x4   :  { %9073 = sst [smem:[#allocation71_spill]] %s9024_s3 }
   0x5   :  { %9074 = sst [smem:[#allocation72_spill]] %s9025_s4 }
   0x6   :  { %9075 = sst [smem:[#allocation73_spill]] %s9026_s5 }
   0x7   :  { %26 = vsyncpa [#allocation3], 0 }
   0x8   :  { %27 = vsyncpa [#allocation6], 0 }
   0x9   :  { %28 = vsyncpa [#allocation9], 0 }
   0xa   :  { %29 = vsyncpa [#allocation12], 0 }
   0xb   :  { %30 = vsyncpa [#allocation15], 0 }
   0xc   :  { %31 = vsyncpa [#allocation4], 0  ;;  %s9076_s26 = sld [smem:[#allocation72_spill]]  ;;  %s6280_s3 = smov [#allocation5]  }
   0xd   :  { %s57_s28 = sshll.u32 %s6280_s3, 4  ;;  %s85_s4 = sshll.u32 %s9029_s8, 4  ;;  %s58_s28 = int_to_ptr.vmem [resolvable:$true] %s57_s28  ;;  %s86_s4 = int_to_ptr.hbm [resolvable:$true] %s85_s4 }
   0xe   :  { %s6281_s30 = smov 64   ;;  %s6282_s5 = smov 4  }
   0xf   :  { %s6283_s22 = smov [#allocation8]   ;;  %s115_s2 = sshll.u32 %s9033_s12, 4  ;;  %s116_s2 = int_to_ptr.hbm [resolvable:$true] %s115_s2 }
  0x10   :  { %s87_s23 = sshll.u32 %s6283_s22, 4  ;;  %s6284_s29 = smov [#allocation11]   ;;  %s88_s23 = int_to_ptr.vmem [resolvable:$true] %s87_s23 }
  0x11   :  { %93 = dma.hbm_to_vmem [thread:$0]  %s86_s4, 3072, %s88_s23, [#allocation9], %s6281_s30, %s6281_s30, %s6282_s5  }
  0x12   :  { %s55_s27 = sshll.u32 %s9076_s26, 4  ;;  %s9077_s26 = sld [smem:[#allocation70_spill]]  ;;  %s56_s27 = int_to_ptr.hbm [resolvable:$true] %s55_s27 }
  0x13   :  { %63 = dma.hbm_to_vmem [thread:$0]  %s56_s27, 3072, %s58_s28, [#allocation6], %s6281_s30, %s6281_s30, %s6282_s5  }
  0x14   :  { %s117_s0 = sshll.u32 %s6284_s29, 4  ;;  %s6285_s27 = smov [#allocation2]   ;;  %s118_s0 = int_to_ptr.vmem [resolvable:$true] %s117_s0 }
  0x15   :  { %123 = dma.hbm_to_vmem [thread:$0]  %s116_s2, 1024, %s118_s0, [#allocation12], %s6281_s30, %s6281_s30, %s6282_s5  }
  0x16   :  { %s42_s12 = sshll.u32 %s6285_s27, 4  ;;  %s70_s1 = sshll.u32 %s9027_s6, 4  ;;  %s43_s12 = int_to_ptr.vmem [resolvable:$true] %s42_s12  ;;  %s71_s1 = int_to_ptr.hbm [resolvable:$true] %s70_s1 }
  0x17   :  { %s100_s24 = sshll.u32 %s9031_s10, 4  ;;  %s6286_s8 = smov [#allocation7]   ;;  %s101_s24 = int_to_ptr.hbm [resolvable:$true] %s100_s24 }
  0x18   :  { %s40_s3 = sshll.u32 %s9077_s26, 4  ;;  %s72_s25 = sshll.u32 %s6286_s8, 4  ;;  %s41_s3 = int_to_ptr.hbm [resolvable:$true] %s40_s3  ;;  %s73_s25 = int_to_ptr.vmem [resolvable:$true] %s72_s25 }
  0x19   :  { %48 = dma.hbm_to_vmem [thread:$0]  %s41_s3, 1024, %s43_s12, [#allocation3], %s6281_s30, %s6281_s30, %s6282_s5  }
  0x1a   :  { %78 = dma.hbm_to_vmem [thread:$0]  %s71_s1, 3072, %s73_s25, [#allocation6], %s6281_s30, %s6281_s30, %s6282_s5  }
  0x1b   :  { %s6287_s2 = smov [#allocation10]   ;;  %s132_s0 = sshll.u32 %s9036_s15, 4  ;;  %s133_s0 = int_to_ptr.hbm [resolvable:$true] %s132_s0 }
  0x1c   :  { %s102_s6 = sshll.u32 %s6287_s2, 4  ;;  %s6288_s10 = smov [#allocation13]   ;;  %s103_s6 = int_to_ptr.vmem [resolvable:$true] %s102_s6 }
  0x1d   :  { %108 = dma.hbm_to_vmem [thread:$0]  %s101_s24, 3072, %s103_s6, [#allocation9], %s6281_s30, %s6281_s30, %s6282_s5  }
  0x1e   :  { %s134_s3 = sshll.u32 %s6288_s10, 4  ;;  %s147_s28 = sshll.u32 %s9038_s17, 4  ;;  %s135_s3 = int_to_ptr.vmem [resolvable:$true] %s134_s3  ;;  %s148_s28 = int_to_ptr.hbm [resolvable:$true] %s147_s28 }
  0x1f   :  { %s6289_s22 = smov 128   ;;  %s6290_s1 = smov 8  }
  0x20   :  { %140 = dma.hbm_to_vmem [thread:$0]  %s133_s0, 2048, %s135_s3, [#allocation12], %s6289_s22, %s6289_s22, %s6290_s1  }
  0x21   :  { %s6291_s15 = smov [#allocation14]  }
  0x22   :  { %s149_s4 = sshll.u32 %s6291_s15, 4  ;;  %s150_s4 = int_to_ptr.vmem [resolvable:$true] %s149_s4 }
  0x23   :  { %155 = dma.hbm_to_vmem [thread:$0]  %s148_s28, 2048, %s150_s4, [#allocation15], %s6281_s30, %s6281_s30, %s6282_s5  }
  0x24   :  { %6268 = dma.done.wait [#allocation3], 1024  }
  0x25   :  { %6269 = vsyncadd [#allocation3], 4294966272 }
  0x26   :  { %6270 = dma.done.wait [#allocation6], 6144  }
  0x27   :  { %6271 = vsyncadd [#allocation6], 4294961152 }
  0x28   :  { %6272 = dma.done.wait [#allocation9], 6144  }
  0x29   :  { %6273 = vsyncadd [#allocation9], 4294961152 }
  0x2a   :  { %6274 = dma.done.wait [#allocation12], 3072  }
  0x2b   :  { %6275 = vsyncadd [#allocation12], 4294964224 }
  0x2c   :  { %6276 = dma.done.wait [#allocation15], 2048  }
  0x2d   :  { %6277 = vsyncadd [#allocation15], 4294965248  ;;  %v226_v0 = vlaneseq  ;;  %v5658_v2 = vld [vmem:[#allocation2 + $0x38] sm:$0xff]  ;;  %v5657_v4 = vld [vmem:[#allocation2 + $0x30] sm:$0xff]  ;;  %s9079_s5 = sld [smem:[#allocation68_spill]]  ;;  %v6292_v19 = vmov 0.0  }
  0x2e   :  { %v5666_v3 = vld [vmem:[#allocation5 + $0x38] sm:$0xff]  ;;  %5795 = vmatpush.bf16.msra.mxu2 %v5658_v2  ;;  %v5665_v5 = vld [vmem:[#allocation5 + $0x30] sm:$0xff]  ;;  %889 = vmatpush.bf16.msra.mxu0 %v5658_v2  ;;  %v5656_v7 = vld [vmem:[#allocation2 + $0x28] sm:$0xff]  ;;  %s9107_s15 = sld [smem:[#allocation73_spill]]  ;;  %s5010_s2 = sshll.u32 %s9042_s21, 4  ;;  %s5011_s2 = int_to_ptr.hbm [resolvable:$true] %s5010_s2 }
  0x2f   :  { %v6454_v1 = vshrl.u32 %v226_v0, 7  ;;  %5803 = vmatpush.bf16.msra.mxu3 %v5666_v3  ;;  %1454 = vmatpush.bf16.msra.mxu1 %v5666_v3  ;;  %v5664_v8 = vld [vmem:[#allocation5 + $0x28] sm:$0xff]  ;;  %v5655_v12 = vld [vmem:[#allocation2 + $0x20] sm:$0xff]  ;;  %v5654_v17 = vld [vmem:[#allocation2 + $0x18] sm:$0xff]  ;;  %s9179_s24 = sld [smem:[#allocation69_spill]] }
  0x30   :  { %v5663_v13 = vld [vmem:[#allocation5 + $0x20] sm:$0xff]  ;;  %v5662_v18 = vld [vmem:[#allocation5 + $0x18] sm:$0xff]  ;;  %v5653_v24 = vld [vmem:[#allocation2 + $0x10] sm:$0xff]  ;;  %s9183_s10 = sld [smem:[#allocation71_spill]] }
  0x31   :  { %9078 = vst [vmem:[#allocation23_spill] sm:$0xff] %v6454_v1  ;;  %v235_v6 = vadd.s32 64, %v6454_v1  ;;  %vm563_vm0 = vcmp.lt.s32.totalorder %v6454_v1, 1  ;;  %v5661_v25 = vld [vmem:[#allocation5 + $0x10] sm:$0xff]  ;;  %v237_v27 = vadd.s32 80, %v6454_v1  ;;  %v5652_v32 = vld [vmem:[#allocation2 + $0x8] sm:$0xff] }
  0x32   :  { %5796 = vmatpush.bf16.msra.mxu2 %v5657_v4  ;;  %890 = vmatpush.bf16.msra.mxu0 %v5657_v4  ;;  %v5660_v33 = vld [vmem:[#allocation5 + $0x8] sm:$0xff]  ;;  %v5651_v40 = vld [vmem:[#allocation2] sm:$0xff]  ;;  %v5674_v43 = vld [vmem:[#allocation5 + $0x78] sm:$0xff]  ;;  %v239_v55 = vadd.s32 96, %v6454_v1  ;;  %vm628_vm7 = vcmp.lt.s32.totalorder %v6454_v1, 7 }
  0x33   :  { %5804 = vmatpush.bf16.msra.mxu3 %v5665_v5  ;;  %v6460_v9 = vld [vmem:[%s9079_s5 + $0x40] sm:$0xff]  ;;  %v6465_v10 = vld [vmem:[%s9079_s5 + $0x38] sm:$0xff]  ;;  %v303_v11 = vand.u32 15, %v235_v6  ;;  %1455 = vmatpush.bf16.msra.mxu1 %v5665_v5  ;;  %v6473_v16 = vld [vmem:[%s9079_s5 + $0x48] sm:$0xff]  ;;  %v317_v35 = vand.u32 15, %v237_v27 }
  0x34   :  { %v554_v14 = vrot.slane %v6465_v10, 7  ;;  %v555_v15 = vrot.slane %v6460_v9, 7  ;;  %v556_v21 = vrot.slane %v6473_v16, 7  ;;  %v539_v28 = vpack.c.bf16 %v6460_v9, %v6460_v9  ;;  %v6494_v34 = vld [vmem:[%s9079_s5 + $0x50] sm:$0xff]  ;;  %v5659_v41 = vld [vmem:[#allocation5] sm:$0xff]  ;;  %v6500_v44 = vld [vmem:[%s9079_s5 + $0x58] sm:$0xff] }
  0x35   :  { %vm443_vm1 = vcmp.ne.s32.totalorder %v303_v11, 0  ;;  %v540_v29 = vpack.c.bf16 %v6473_v16, %v6473_v16  ;;  %v557_v42 = vrot.slane %v6494_v34, 7  ;;  %vm445_vm2 = vcmp.ne.s32.totalorder %v317_v35, 0  ;;  %v5673_v50 = vld [vmem:[#allocation5 + $0x70] sm:$0xff]  ;;  %v5682_v52 = vld [vmem:[#allocation5 + $0xb8] sm:$0xff]  ;;  %v5672_v54 = vld [vmem:[#allocation5 + $0x68] sm:$0xff] }
  0x36   :  { %5797 = vmatpush.bf16.msra.mxu2 %v5656_v7  ;;  %891 = vmatpush.bf16.msra.mxu0 %v5656_v7  ;;  %v6476_v20 = vsel %vm443_vm1, 1.0, %v6292_v19  ;;  %v571_v22 = vsel %vm563_vm0, %v554_v14, %v555_v15  ;;  %v570_v26 = vsel %vm563_vm0, %v555_v15, %v556_v21  ;;  %v749_v36 = vunpack.c.l.b16 %v539_v28  ;;  %v5681_v56 = vld [vmem:[#allocation5 + $0xb0] sm:$0xff]  ;;  %v5671_v61 = vld [vmem:[#allocation5 + $0x60] sm:$0xff]  ;;  %v5680_v0 = vld [vmem:[#allocation5 + $0xa8] sm:$0xff] }
  0x37   :  { %5805 = vmatpush.bf16.msra.mxu3 %v5664_v8  ;;  %1456 = vmatpush.bf16.msra.mxu1 %v5664_v8  ;;  %9080 = vst [vmem:[#allocation24_spill] sm:$0xff] %v6476_v20  ;;  %v588_v23 = vmul.f32 %v6476_v20, %v571_v22  ;;  %v605_v31 = vpack.c.bf16 %v570_v26, %v570_v26  ;;  %v750_v37 = vunpack.c.l.b16 %v540_v29  ;;  %v6507_v47 = vsel %vm445_vm2, 1.0, %v6292_v19  ;;  %v6525_v62 = vld [vmem:[%s9079_s5 + $0x60] sm:$0xff]  ;;  %v6531_v7 = vld [vmem:[%s9079_s5 + $0x68] sm:$0xff]  ;;  %v5670_v8 = vld [vmem:[#allocation5 + $0x58] sm:$0xff] }
  0x38   :  { %9081 = vst [vmem:[#allocation25_spill] sm:$0xff] %v6507_v47  ;;  %v558_v48 = vrot.slane %v6500_v44, 7  ;;  %v569_v49 = vsel %vm563_vm0, %v556_v21, %v557_v42  ;;  %v541_v57 = vpack.c.bf16 %v6494_v34, %v6494_v34  ;;  %v542_v58 = vpack.c.bf16 %v6500_v44, %v6500_v44  ;;  %v5679_v11 = vld [vmem:[#allocation5 + $0xa0] sm:$0xff]  ;;  %v5669_v21 = vld [vmem:[#allocation5 + $0x50] sm:$0xff]  ;;  %v6557_v29 = vld [vmem:[%s9079_s5 + $0x8] sm:$0xff] }
  0x39   :  { %v604_v30 = vpack.c.bf16 %v588_v23, %v588_v23  ;;  %v702_v39 = vunpack.c.l.b16 %v605_v31  ;;  %v6502_v45 = vpack.c.b16 %v750_v37, %v749_v36  ;;  %v590_v51 = vmul.f32 %v6507_v47, %v569_v49  ;;  %v5678_v23 = vld [vmem:[#allocation5 + $0x98] sm:$0xff]  ;;  %v5677_v27 = vld [vmem:[#allocation5 + $0x90] sm:$0xff]  ;;  %v6552_v28 = vld [vmem:[%s9079_s5] sm:$0xff] }
  0x3a   :  { %5798 = vmatpush.bf16.msra.mxu2 %v5655_v12  ;;  %892 = vmatpush.bf16.msra.mxu0 %v5655_v12  ;;  %v568_v53 = vsel %vm563_vm0, %v557_v42, %v558_v48  ;;  %v331_v63 = vand.u32 15, %v239_v55  ;;  %v751_v2 = vunpack.c.l.b16 %v541_v57  ;;  %v752_v3 = vunpack.c.l.b16 %v542_v58  ;;  %v6570_v37 = vld [vmem:[%s9079_s5 + $0x70] sm:$0xff]  ;;  %v5667_v42 = vld [vmem:[#allocation5 + $0x40] sm:$0xff] }
  0x3b   :  { %5806 = vmatpush.bf16.msra.mxu3 %v5663_v13  ;;  %1457 = vmatpush.bf16.msra.mxu1 %v5663_v13  ;;  %v701_v38 = vunpack.c.l.b16 %v604_v30  ;;  %v606_v59 = vpack.c.bf16 %v590_v51, %v590_v51  ;;  %v607_v60 = vpack.c.bf16 %v568_v53, %v568_v53  ;;  %v559_v6 = vrot.slane %v6525_v62, 7  ;;  %v5675_v57 = vld [vmem:[#allocation5 + $0x80] sm:$0xff]  ;;  %v5709_v20 = vld [vmem:[#allocation8 + $0x10] sm:$0xff] }
  0x3c   :  { %vm447_vm3 = vcmp.ne.s32.totalorder %v331_v63, 0  ;;  %v6533_v12 = vpack.c.b16 %v752_v3, %v751_v2  ;;  %v241_v26 = vadd.s32 112, %v6454_v1  ;;  %v543_v30 = vpack.c.bf16 %v6525_v62, %v6525_v62 }
  0x3d   :  { %v6504_v46 = vpack.c.b16 %v702_v39, %v701_v38  ;;  %v703_v4 = vunpack.c.l.b16 %v606_v59  ;;  %v704_v5 = vunpack.c.l.b16 %v607_v60  ;;  %v6538_v15 = vsel %vm447_vm3, 1.0, %v6292_v19 }
  0x3e   :  { %5799 = vmatpush.bf16.msra.mxu2 %v5654_v17  ;;  %893 = vmatpush.bf16.msra.mxu0 %v5654_v17  ;;  %9082 = vst [vmem:[#allocation26_spill] sm:$0xff] %v6538_v15  ;;  %v560_v17 = vrot.slane %v6531_v7, 7  ;;  %v531_v31 = vpack.c.bf16 %v6552_v28, %v6552_v28  ;;  %v247_v53 = vand.u32 15, %v6454_v1  ;;  %v548_v59 = vrot.slane %v6557_v29, 7 }
  0x3f   :  { %5807 = vmatpush.bf16.msra.mxu3 %v5662_v18  ;;  %1458 = vmatpush.bf16.msra.mxu1 %v5662_v18  ;;  %v6535_v13 = vpack.c.b16 %v704_v5, %v703_v4  ;;  %v567_v18 = vsel %vm563_vm0, %v558_v48, %v559_v6  ;;  %v753_v48 = vunpack.c.l.b16 %v543_v30  ;;  %v545_v30 = vpack.c.bf16 %v6570_v37, %v6570_v37 }
  0x40   :  { %v592_v22 = vmul.f32 %v6538_v15, %v567_v18  ;;  %v741_v38 = vunpack.c.l.b16 %v531_v31  ;;  %vm435_vm5 = vcmp.ne.s32.totalorder %v247_v53, 0  ;;  %v5706_v18 = vld [vmem:[#allocation7 + $0xb8] sm:$0xff] }
  0x41   :  { %v6585_v58 = vsel %vm435_vm5, 1.0, %v6292_v19 }
  0x42   :  { %5800 = vmatpush.bf16.msra.mxu2 %v5653_v24  ;;  %894 = vmatpush.bf16.msra.mxu0 %v5653_v24  ;;  %v566_v24 = vsel %vm563_vm0, %v559_v6, %v560_v17  ;;  %v608_v35 = vpack.c.bf16 %v592_v22, %v592_v22  ;;  %9083 = vst [vmem:[#allocation27_spill] sm:$0xff] %v6585_v58  ;;  %v6613_v22 = vld [vmem:[%s9079_s5 + $0x18] sm:$0xff] }
  0x43   :  { %5808 = vmatpush.bf16.msra.mxu3 %v5661_v25  ;;  %1459 = vmatpush.bf16.msra.mxu1 %v5661_v25  ;;  %v5668_v25 = vld [vmem:[#allocation5 + $0x48] sm:$0xff]  ;;  %v609_v36 = vpack.c.bf16 %v566_v24, %v566_v24 }
  0x44   :  { %v705_v51 = vunpack.c.l.b16 %v608_v35 }
  0x46   :  { %5801 = vmatpush.bf16.msra.mxu2 %v5652_v32  ;;  %895 = vmatpush.bf16.msra.mxu0 %v5652_v32  ;;  %v532_v32 = vpack.c.bf16 %v6557_v29, %v6557_v29 }
  0x47   :  { %5809 = vmatpush.bf16.msra.mxu3 %v5660_v33  ;;  %1460 = vmatpush.bf16.msra.mxu1 %v5660_v33  ;;  %v544_v33 = vpack.c.bf16 %v6531_v7, %v6531_v7 }
  0x48   :  { %v742_v39 = vunpack.c.l.b16 %v532_v32 }
  0x4a   :  { %5802 = vmatpush.bf16.msra.mxu2 %v5651_v40  ;;  %896 = vmatpush.bf16.msra.mxu0 %v5651_v40  ;;  %v6575_v40 = vld [vmem:[%s9079_s5 + $0x78] sm:$0xff]  ;;  %v6577_v49 = vpack.c.b16 %v742_v39, %v741_v38  ;;  %v229_v39 = vadd.s32 16, %v6454_v1 }
  0x4b   :  { %5810 = vmatpush.bf16.msra.mxu3 %v5659_v41  ;;  %1461 = vmatpush.bf16.msra.mxu1 %v5659_v41  ;;  %v345_v41 = vand.u32 15, %v241_v26  ;;  %v562_v55 = vrot.slane %v6575_v40, 7  ;;  %v228_v26 = vadd.s32 8, %v6454_v1 }
  0x4d   :  { %917 = vmatmul.bf16.vlgmr.msra.gmra.mxu2 %v6502_v45  ;;  %897 = vmatmul.bf16.vlgmr.msra.gmra.mxu0 %v6577_v49  ;;  %vm449_vm4 = vcmp.ne.s32.totalorder %v345_v41, 0  ;;  %v254_v38 = vand.u32 15, %v228_v26  ;;  %v755_v41 = vunpack.c.l.b16 %v545_v30 }
  0x4e   :  { %1503 = vmatpush.bf16.msrb.mxu2 %v5674_v43  ;;  %1482 = vmatmul.bf16.vlgmr.msra.gmra.mxu3 %v6504_v46  ;;  %v5676_v43 = vld [vmem:[#allocation5 + $0x88] sm:$0xff]  ;;  %v6596_v2 = vsel %vm449_vm4, 1.0, %v6292_v19 }
  0x4f   :  { %1552 = vmatpush.bf16.msrb.mxu3 %v5682_v52  ;;  %v706_v52 = vunpack.c.l.b16 %v609_v36  ;;  %9084 = vst [vmem:[#allocation28_spill] sm:$0xff] %v6596_v2  ;;  %vm484_vm6 = vcmp.ne.s32.totalorder %v254_v38, 15 }
  0x51   :  { %v6592_v63 = vpack.c.b16 %v706_v52, %v705_v51  ;;  %v261_v51 = vand.u32 15, %v229_v39  ;;  %v613_v52 = vrot.slane %v6557_v29, 1 }
  0x52   :  { %1504 = vmatpush.bf16.msrb.mxu2 %v5673_v50  ;;  %v754_v50 = vunpack.c.l.b16 %v544_v33  ;;  %v546_v33 = vpack.c.bf16 %v6575_v40, %v6575_v40 }
  0x53   :  { %1553 = vmatpush.bf16.msrb.mxu3 %v5681_v56  ;;  %v547_v56 = vrot.slane %v6552_v28, 7  ;;  %vm437_vm8 = vcmp.ne.s32.totalorder %v261_v51, 0 }
  0x55   :  { %v579_v60 = vsel %vm563_vm0, %v562_v55, %v547_v56  ;;  %v578_v4 = vsel %vm563_vm0, %v547_v56, %v548_v59  ;;  %v550_v56 = vrot.slane %v6613_v22, 7 }
  0x56   :  { %1505 = vmatpush.bf16.msrb.mxu2 %v5672_v54  ;;  %v561_v54 = vrot.slane %v6570_v37, 7  ;;  %v597_v6 = vpack.c.bf16 %v578_v4, %v578_v4  ;;  %v612_v4 = vrot.slane %v6552_v28, 1 }
  0x57   :  { %1554 = vmatpush.bf16.msrb.mxu3 %v5680_v0  ;;  %v580_v0 = vmul.f32 %v6585_v58, %v579_v60  ;;  %v5710_v58 = vld [vmem:[#allocation8 + $0x18] sm:$0xff] }
  0x58   :  { %v565_v3 = vsel %vm563_vm0, %v560_v17, %v561_v54  ;;  %v694_v17 = vunpack.c.l.b16 %v597_v6  ;;  %v564_v24 = vsel %vm563_vm0, %v561_v54, %v562_v55  ;;  %v6638_v55 = vsel %vm437_vm8, 1.0, %v6292_v19 }
  0x59   :  { %v596_v5 = vpack.c.bf16 %v580_v0, %v580_v0  ;;  %v611_v36 = vpack.c.bf16 %v564_v24, %v564_v24  ;;  %9085 = vst [vmem:[#allocation29_spill] sm:$0xff] %v6638_v55  ;;  %v643_v30 = vsel %vm628_vm7, %v612_v4, %v613_v52 }
  0x5a   :  { %1506 = vmatpush.bf16.msrb.mxu2 %v5671_v61  ;;  %v6590_v61 = vpack.c.b16 %v754_v50, %v753_v48  ;;  %v661_v38 = vpack.c.bf16 %v643_v30, %v643_v30  ;;  %v5704_v30 = vld [vmem:[#allocation7 + $0xa8] sm:$0xff] }
  0x5b   :  { %1555 = vmatpush.bf16.msrb.mxu3 %v5679_v11  ;;  %v594_v11 = vmul.f32 %v6596_v2, %v565_v3  ;;  %v708_v50 = vunpack.c.l.b16 %v611_v36  ;;  %v6649_v3 = vsel %vm484_vm6, 1.0, %v6292_v19  ;;  %v5711_v2 = vld [vmem:[#allocation8 + $0x20] sm:$0xff] }
  0x5c   :  { %9088 = vst [vmem:[#allocation32_spill] sm:$0xff] %v6649_v3 }
  0x5d   :  { %922 = vmatmul.bf16.gmra.mxu2 %v6533_v12  ;;  %v610_v35 = vpack.c.bf16 %v594_v11, %v594_v11 }
  0x5e   :  { %1507 = vmatpush.bf16.msrb.mxu2 %v5670_v8  ;;  %1487 = vmatmul.bf16.gmra.mxu3 %v6535_v13  ;;  %v6605_v8 = vld [vmem:[%s9079_s5 + $0x10] sm:$0xff] }
  0x5f   :  { %1556 = vmatpush.bf16.msrb.mxu3 %v5678_v23  ;;  %v533_v23 = vpack.c.bf16 %v6605_v8, %v6605_v8  ;;  %v707_v48 = vunpack.c.l.b16 %v610_v35  ;;  %v614_v53 = vrot.slane %v6605_v8, 1  ;;  %v549_v54 = vrot.slane %v6605_v8, 7 }
  0x60   :  { %v233_v8 = vadd.s32 48, %v6454_v1 }
  0x61   :  { %v743_v31 = vunpack.c.l.b16 %v533_v23  ;;  %v6645_v29 = vpack.c.b16 %v708_v50, %v707_v48  ;;  %v576_v6 = vsel %vm563_vm0, %v549_v54, %v550_v56  ;;  %v789_v50 = vunpack.c.l.b16 %v661_v38 }
  0x62   :  { %1508 = vmatpush.bf16.msrb.mxu2 %v5669_v21  ;;  %v693_v21 = vunpack.c.l.b16 %v596_v5  ;;  %v642_v5 = vsel %vm628_vm7, %v613_v52, %v614_v53  ;;  %v599_v11 = vpack.c.bf16 %v576_v6, %v576_v6  ;;  %v538_v38 = vpack.c.bf16 %v6465_v10, %v6465_v10 }
  0x63   :  { %1557 = vmatpush.bf16.msrb.mxu3 %v5677_v27  ;;  %9087 = vst [vmem:[#allocation31_spill] sm:$0xff] %v6645_v29 }
  0x64   :  { %v6622_v27 = vpack.c.b16 %v694_v17, %v693_v21  ;;  %v646_v21 = vmul.f32 %v6649_v3, %v642_v5  ;;  %v5705_v17 = vld [vmem:[#allocation7 + $0xb0] sm:$0xff]  ;;  %v696_v24 = vunpack.c.l.b16 %v599_v11 }
  0x66   :  { %1509 = vmatpush.bf16.msrb.mxu2 %v5668_v25  ;;  %v534_v25 = vpack.c.bf16 %v6613_v22, %v6613_v22  ;;  %1462 = vmatmul.bf16.vlgmr.msra.gmra.mxu1 %v6622_v27  ;;  %v662_v39 = vpack.c.bf16 %v646_v21, %v646_v21 }
  0x67   :  { %1558 = vmatpush.bf16.msrb.mxu3 %v5676_v43  ;;  %v756_v43 = vunpack.c.l.b16 %v546_v33 }
  0x68   :  { %v744_v32 = vunpack.c.l.b16 %v534_v25  ;;  %v6669_v25 = vld [vmem:[%s9079_s5 + $0x28] sm:$0xff]  ;;  %v790_v51 = vunpack.c.l.b16 %v662_v39  ;;  %v232_v39 = vadd.s32 40, %v6454_v1 }
  0x69   :  { %v6643_v60 = vpack.c.b16 %v756_v43, %v755_v41  ;;  %v231_v43 = vadd.s32 32, %v6454_v1  ;;  %v552_v6 = vrot.slane %v6669_v25, 7 }
  0x6a   :  { %1510 = vmatpush.bf16.msrb.mxu2 %v5667_v42  ;;  %v6630_v42 = vpack.c.b16 %v744_v32, %v743_v31  ;;  %v536_v31 = vpack.c.bf16 %v6669_v25, %v6669_v25  ;;  %v230_v32 = vadd.s32 24, %v6454_v1  ;;  %v6696_v11 = vpack.c.b16 %v790_v51, %v789_v50 }
  0x6b   :  { %1559 = vmatpush.bf16.msrb.mxu3 %v5675_v57  ;;  %v577_v57 = vsel %vm563_vm0, %v548_v59, %v549_v54  ;;  %9086 = vst [vmem:[#allocation30_spill] sm:$0xff] %v6643_v60  ;;  %v275_v52 = vand.u32 15, %v231_v43  ;;  %v615_v54 = vrot.slane %v6613_v22, 1  ;;  %v748_v50 = vunpack.c.l.b16 %v538_v38  ;;  %v5703_v38 = vld [vmem:[#allocation7 + $0xa0] sm:$0xff] }
  0x6c   :  { %902 = vmatmul.bf16.gmra.mxu0 %v6630_v42  ;;  %v582_v0 = vmul.f32 %v6638_v55, %v577_v57  ;;  %v746_v36 = vunpack.c.l.b16 %v536_v31  ;;  %v268_v41 = vand.u32 15, %v230_v32  ;;  %v5725_v55 = vld [vmem:[#allocation8 + $0x90] sm:$0xff] }
  0x6d   :  { %927 = vmatmul.bf16.gmra.mxu2 %v6590_v61  ;;  %vm439_vm10 = vcmp.ne.s32.totalorder %v275_v52, 0 }
  0x6e   :  { %1492 = vmatmul.bf16.gmra.mxu3 %v6592_v63  ;;  %1895 = vmatpush.bf16.msra.mxu2 %v5706_v18  ;;  %v598_v59 = vpack.c.bf16 %v582_v0, %v582_v0  ;;  %v6661_v18 = vld [vmem:[%s9079_s5 + $0x20] sm:$0xff]  ;;  %vm486_vm9 = vcmp.ne.s32.totalorder %v268_v41, 15  ;;  %v6691_v5 = vsel %vm439_vm10, 1.0, %v6292_v19 }
  0x6f   :  { %v535_v26 = vpack.c.bf16 %v6661_v18, %v6661_v18  ;;  %v616_v57 = vrot.slane %v6661_v18, 1  ;;  %v551_v0 = vrot.slane %v6661_v18, 7  ;;  %9089 = vst [vmem:[#allocation33_spill] sm:$0xff] %v6691_v5  ;;  %v6700_v21 = vsel %vm486_vm9, 1.0, %v6292_v19 }
  0x70   :  { %v695_v23 = vunpack.c.l.b16 %v598_v59  ;;  %9090 = vst [vmem:[#allocation34_spill] sm:$0xff] %v6700_v21 }
  0x71   :  { %v745_v35 = vunpack.c.l.b16 %v535_v26  ;;  %v575_v59 = vsel %vm563_vm0, %v550_v56, %v551_v0  ;;  %v640_v18 = vsel %vm628_vm7, %v615_v54, %v616_v57  ;;  %v6709_v26 = vld [vmem:[%s9079_s5 + $0x30] sm:$0xff] }
  0x72   :  { %1896 = vmatpush.bf16.msra.mxu2 %v5705_v17  ;;  %v6680_v33 = vpack.c.b16 %v696_v24, %v695_v23  ;;  %v584_v22 = vmul.f32 %v6691_v5, %v575_v59  ;;  %v574_v17 = vsel %vm563_vm0, %v551_v0, %v552_v6  ;;  %v648_v56 = vmul.f32 %v6700_v21, %v640_v18 }
  0x73   :  { %v6684_v48 = vpack.c.b16 %v746_v36, %v745_v35  ;;  %v601_v24 = vpack.c.bf16 %v574_v17, %v574_v17  ;;  %v537_v35 = vpack.c.bf16 %v6709_v26, %v6709_v26  ;;  %v641_v36 = vsel %vm628_vm7, %v614_v53, %v615_v54 }
  0x74   :  { %v600_v23 = vpack.c.bf16 %v584_v22, %v584_v22  ;;  %v663_v51 = vpack.c.bf16 %v641_v36, %v641_v36  ;;  %v664_v52 = vpack.c.bf16 %v648_v56, %v648_v56  ;;  %v282_v0 = vand.u32 15, %v232_v39 }
  0x75   :  { %v698_v32 = vunpack.c.l.b16 %v601_v24  ;;  %v747_v43 = vunpack.c.l.b16 %v537_v35  ;;  %v289_v22 = vand.u32 15, %v233_v8  ;;  %v617_v18 = vrot.slane %v6669_v25, 1 }
  0x76   :  { %1467 = vmatmul.bf16.gmra.mxu1 %v6680_v33  ;;  %v697_v31 = vunpack.c.l.b16 %v600_v23  ;;  %1897 = vmatpush.bf16.msra.mxu2 %v5704_v30  ;;  %v791_v53 = vunpack.c.l.b16 %v663_v51  ;;  %v792_v54 = vunpack.c.l.b16 %v664_v52  ;;  %v618_v17 = vrot.slane %v6709_v26, 1 }
  0x77   :  { %v6727_v59 = vpack.c.b16 %v748_v50, %v747_v43  ;;  %v553_v23 = vrot.slane %v6709_v26, 7  ;;  %vm488_vm11 = vcmp.ne.s32.totalorder %v282_v0, 15  ;;  %vm441_vm12 = vcmp.ne.s32.totalorder %v289_v22, 0 }
  0x78   :  { %v6723_v41 = vpack.c.b16 %v698_v32, %v697_v31  ;;  %v6734_v24 = vsel %vm441_vm12, 1.0, %v6292_v19  ;;  %v6738_v30 = vpack.c.b16 %v792_v54, %v791_v53  ;;  %v6742_v25 = vsel %vm488_vm11, 1.0, %v6292_v19 }
  0x79   :  { %9091 = vst [vmem:[#allocation35_spill] sm:$0xff] %v6734_v24  ;;  %v573_v56 = vsel %vm563_vm0, %v552_v6, %v553_v23  ;;  %v638_v26 = vsel %vm628_vm7, %v617_v18, %v618_v17  ;;  %v572_v32 = vsel %vm563_vm0, %v553_v23, %v554_v14  ;;  %v639_v50 = vsel %vm628_vm7, %v616_v57, %v617_v18 }
  0x7a   :  { %v586_v31 = vmul.f32 %v6734_v24, %v573_v56  ;;  %9092 = vst [vmem:[#allocation36_spill] sm:$0xff] %v6742_v25  ;;  %v603_v36 = vpack.c.bf16 %v572_v32, %v572_v32  ;;  %v650_v6 = vmul.f32 %v6742_v25, %v638_v26  ;;  %1898 = vmatpush.bf16.msra.mxu2 %v5703_v38  ;;  %v234_v51 = vadd.s32 56, %v6454_v1  ;;  %v5702_v26 = vld [vmem:[#allocation7 + $0x98] sm:$0xff] }
  0x7b   :  { %v665_v14 = vpack.c.bf16 %v639_v50, %v639_v50  ;;  %v619_v22 = vrot.slane %v6465_v10, 1  ;;  %v620_v23 = vrot.slane %v6460_v9, 1  ;;  %v5690_v32 = vld [vmem:[#allocation7 + $0x38] sm:$0xff]  ;;  %v236_v10 = vadd.s32 72, %v6454_v1 }
  0x7c   :  { %907 = vmatmul.bf16.gmra.mxu0 %v6684_v48  ;;  %v602_v35 = vpack.c.bf16 %v586_v31, %v586_v31  ;;  %v700_v43 = vunpack.c.l.b16 %v603_v36  ;;  %v666_v0 = vpack.c.bf16 %v650_v6, %v650_v6  ;;  %v296_v8 = vand.u32 15, %v234_v51 }
  0x7d   :  { %932 = vmatmul.bf16.gmra.mxu2 %v6643_v60  ;;  %v793_v53 = vunpack.c.l.b16 %v665_v14  ;;  %v636_v18 = vsel %vm628_vm7, %v619_v22, %v620_v23  ;;  %v637_v9 = vsel %vm628_vm7, %v618_v17, %v619_v22  ;;  %1797 = vmatpush.bf16.msrb.mxu0 %v5690_v32  ;;  %v310_v6 = vand.u32 15, %v236_v10  ;;  %v5698_v32 = vld [vmem:[#allocation7 + $0x78] sm:$0xff] }
  0x7e   :  { %1497 = vmatmul.bf16.gmra.mxu3 %v6645_v29  ;;  %v699_v39 = vunpack.c.l.b16 %v602_v35  ;;  %v794_v54 = vunpack.c.l.b16 %v666_v0  ;;  %vm490_vm13 = vcmp.ne.s32.totalorder %v296_v8, 15  ;;  %1899 = vmatpush.bf16.msra.mxu2 %v5702_v26  ;;  %v667_v35 = vpack.c.bf16 %v637_v9, %v637_v9  ;;  %v5689_v9 = vld [vmem:[#allocation7 + $0x30] sm:$0xff] }
  0x7f   :  { %v6764_v57 = vsel %vm490_vm13, 1.0, %v6292_v19  ;;  %v622_v50 = vrot.slane %v6494_v34, 1  ;;  %vm492_vm14 = vcmp.ne.s32.totalorder %v310_v6, 15  ;;  %v238_v34 = vadd.s32 88, %v6454_v1  ;;  %1846 = vmatpush.bf16.msrb.mxu1 %v5698_v32  ;;  %v5688_v6 = vld [vmem:[#allocation7 + $0x28] sm:$0xff] }
  0x80   :  { %v6756_v52 = vpack.c.b16 %v700_v43, %v699_v39  ;;  %v6761_v56 = vpack.c.b16 %v794_v54, %v793_v53  ;;  %9093 = vst [vmem:[#allocation37_spill] sm:$0xff] %v6764_v57  ;;  %v652_v31 = vmul.f32 %v6764_v57, %v636_v18  ;;  %v795_v38 = vunpack.c.l.b16 %v667_v35  ;;  %v5732_v57 = vld [vmem:[#allocation11 + $0x8] sm:$0xff] }
  0x81   :  { %v621_v43 = vrot.slane %v6473_v16, 1  ;;  %v6779_v14 = vsel %vm492_vm14, 1.0, %v6292_v19  ;;  %v324_v54 = vand.u32 15, %v238_v34  ;;  %v624_v26 = vrot.slane %v6525_v62, 1  ;;  %1798 = vmatpush.bf16.msrb.mxu0 %v5689_v9  ;;  %v5687_v34 = vld [vmem:[#allocation7 + $0x20] sm:$0xff]  ;;  %v5694_v9 = vld [vmem:[#allocation7 + $0x58] sm:$0xff] }
  0x82   :  { %v668_v36 = vpack.c.bf16 %v652_v31, %v652_v31  ;;  %9094 = vst [vmem:[#allocation38_spill] sm:$0xff] %v6779_v14  ;;  %v623_v31 = vrot.slane %v6500_v44, 1 }
  0x83   :  { %v634_v17 = vsel %vm628_vm7, %v621_v43, %v622_v50  ;;  %v635_v16 = vsel %vm628_vm7, %v620_v23, %v621_v43  ;;  %vm494_vm15 = vcmp.ne.s32.totalorder %v324_v54, 15 }
  0x84   :  { %v796_v39 = vunpack.c.l.b16 %v668_v36  ;;  %v654_v0 = vmul.f32 %v6779_v14, %v634_v17  ;;  %v669_v8 = vpack.c.bf16 %v635_v16, %v635_v16  ;;  %v6794_v23 = vsel %vm494_vm15, 1.0, %v6292_v19  ;;  %v5697_v36 = vld [vmem:[#allocation7 + $0x70] sm:$0xff]  ;;  %v5696_v17 = vld [vmem:[#allocation7 + $0x68] sm:$0xff] }
  0x85   :  { %9095 = vst [vmem:[#allocation39_spill] sm:$0xff] %v6794_v23  ;;  %v632_v35 = vsel %vm628_vm7, %v623_v31, %v624_v26  ;;  %1847 = vmatpush.bf16.msrb.mxu1 %v5697_v36  ;;  %v633_v62 = vsel %vm628_vm7, %v622_v50, %v623_v31  ;;  %1799 = vmatpush.bf16.msrb.mxu0 %v5688_v6  ;;  %v625_v50 = vrot.slane %v6531_v7, 1  ;;  %v5686_v31 = vld [vmem:[#allocation7 + $0x18] sm:$0xff]  ;;  %v5693_v7 = vld [vmem:[#allocation7 + $0x50] sm:$0xff] }
  0x86   :  { %1472 = vmatmul.bf16.gmra.mxu1 %v6723_v41  ;;  %v6776_v51 = vpack.c.b16 %v796_v39, %v795_v38  ;;  %v670_v53 = vpack.c.bf16 %v654_v0, %v654_v0  ;;  %v797_v22 = vunpack.c.l.b16 %v669_v8  ;;  %v656_v44 = vmul.f32 %v6794_v23, %v632_v35  ;;  %v5701_v38 = vld [vmem:[#allocation7 + $0x90] sm:$0xff] }
  0x87   :  { %v240_v39 = vadd.s32 104, %v6454_v1  ;;  %1900 = vmatpush.bf16.msra.mxu2 %v5701_v38  ;;  %v671_v0 = vpack.c.bf16 %v633_v62, %v633_v62  ;;  %v5685_v62 = vld [vmem:[#allocation7 + $0x10] sm:$0xff]  ;;  %v631_v6 = vsel %vm628_vm7, %v624_v26, %v625_v50  ;;  %v5684_v38 = vld [vmem:[#allocation7 + $0x8] sm:$0xff]  ;;  %v627_v26 = vrot.slane %v6575_v40, 1 }
  0x88   :  { %v798_v18 = vunpack.c.l.b16 %v670_v53  ;;  %v672_v16 = vpack.c.bf16 %v656_v44, %v656_v44  ;;  %v5695_v53 = vld [vmem:[#allocation7 + $0x60] sm:$0xff]  ;;  %v5717_v14 = vld [vmem:[#allocation8 + $0x50] sm:$0xff] }
  0x89   :  { %1848 = vmatpush.bf16.msrb.mxu1 %v5696_v17  ;;  %v338_v8 = vand.u32 15, %v240_v39  ;;  %1800 = vmatpush.bf16.msrb.mxu0 %v5687_v34  ;;  %v799_v54 = vunpack.c.l.b16 %v671_v0  ;;  %v5700_v39 = vld [vmem:[#allocation7 + $0x88] sm:$0xff]  ;;  %v242_v17 = vadd.s32 120, %v6454_v1  ;;  %v673_v34 = vpack.c.bf16 %v631_v6, %v631_v6 }
  0x8a   :  { %v6791_v10 = vpack.c.b16 %v798_v18, %v797_v22  ;;  %v800_v22 = vunpack.c.l.b16 %v672_v16  ;;  %v626_v18 = vrot.slane %v6570_v37, 1  ;;  %v5692_v16 = vld [vmem:[#allocation7 + $0x48] sm:$0xff]  ;;  %v644_v40 = vsel %vm628_vm7, %v627_v26, %v612_v4 }
  0x8b   :  { %vm496_vm1 = vcmp.ne.s32.totalorder %v338_v8, 15  ;;  %1901 = vmatpush.bf16.msra.mxu2 %v5700_v39 }
  0x8c   :  { %912 = vmatmul.bf16.gmra.mxu0 %v6727_v59  ;;  %v6810_v35 = vpack.c.b16 %v800_v22, %v799_v54  ;;  %v6813_v36 = vsel %vm496_vm1, 1.0, %v6292_v19  ;;  %v630_v44 = vsel %vm628_vm7, %v625_v50, %v626_v18  ;;  %v352_v54 = vand.u32 15, %v242_v17  ;;  %v5691_v22 = vld [vmem:[#allocation7 + $0x40] sm:$0xff] }
  0x8d   :  { %1511 = vmatmul.bf16.vlgmr.msrb.gmra.mxu2 %v6577_v49  ;;  %1849 = vmatpush.bf16.msrb.mxu1 %v5695_v53  ;;  %9098 = vst [vmem:[#allocation42_spill] sm:$0xff] %v6813_v36  ;;  %v658_v37 = vmul.f32 %v6813_v36, %v630_v44  ;;  %v5683_v53 = vld [vmem:[#allocation7] sm:$0xff]  ;;  %v629_v6 = vsel %vm628_vm7, %v626_v18, %v627_v26 }
  0x8e   :  { %1560 = vmatmul.bf16.vlgmr.msrb.gmra.mxu3 %v6696_v11  ;;  %1801 = vmatpush.bf16.msrb.mxu0 %v5686_v31  ;;  %v801_v31 = vunpack.c.l.b16 %v673_v34  ;;  %vm498_vm2 = vcmp.ne.s32.totalorder %v352_v54, 15  ;;  %v5699_v44 = vld [vmem:[#allocation7 + $0x80] sm:$0xff]  ;;  %v675_v39 = vpack.c.bf16 %v629_v6, %v629_v6 }
  0x8f   :  { %v674_v8 = vpack.c.bf16 %v658_v37, %v658_v37  ;;  %1902 = vmatpush.bf16.msra.mxu2 %v5699_v44  ;;  %v6864_v54 = vld [vmem:[%s9107_s15] ss:$0 sm:$0xff] }
  0x91   :  { %1850 = vmatpush.bf16.msrb.mxu1 %v5694_v9  ;;  %v802_v9 = vunpack.c.l.b16 %v674_v8 }
  0x92   :  { %1802 = vmatpush.bf16.msrb.mxu0 %v5685_v62 }
  0x93   :  { %v6829_v62 = vpack.c.b16 %v802_v9, %v801_v31  ;;  %v5738_v31 = vld [vmem:[#allocation11 + $0x38] sm:$0xff] }
  0x94   :  { %2519 = vmatpush.bf16.msrb.mxu2 %v5738_v31 }
  0x95   :  { %1851 = vmatpush.bf16.msrb.mxu1 %v5693_v7  ;;  %v6833_v7 = vsel %vm498_vm2, 1.0, %v6292_v19  ;;  %v803_v19 = vunpack.c.l.b16 %v675_v39 }
  0x96   :  { %1477 = vmatmul.bf16.gmra.mxu1 %v6756_v52  ;;  %1803 = vmatpush.bf16.msrb.mxu0 %v5684_v38  ;;  %9101 = vst [vmem:[#allocation45_spill] sm:$0xff] %v6833_v7  ;;  %v660_v37 = vmul.f32 %v6833_v7, %v644_v40  ;;  %v5714_v40 = vld [vmem:[#allocation8 + $0x38] sm:$0xff] }
  0x97   :  { %2140 = vmatpush.bf16.msra.mxu3 %v5714_v40 }
  0x98   :  { %v676_v17 = vpack.c.bf16 %v660_v37, %v660_v37 }
  0x99   :  { %1852 = vmatpush.bf16.msrb.mxu1 %v5692_v16 }
  0x9a   :  { %1804 = vmatpush.bf16.msrb.mxu0 %v5683_v53  ;;  %v804_v16 = vunpack.c.l.b16 %v676_v17 }
  0x9c   :  { %v6849_v4 = vpack.c.b16 %v804_v16, %v803_v19  ;;  %v5722_v16 = vld [vmem:[#allocation8 + $0x78] sm:$0xff] }
  0x9d   :  { %1516 = vmatmul.bf16.gmra.mxu2 %v6630_v42  ;;  %1853 = vmatpush.bf16.msrb.mxu1 %v5691_v22 }
  0x9e   :  { %1565 = vmatmul.bf16.gmra.mxu3 %v6738_v30  ;;  %1805 = vmatmul.bf16.vlgmr.msrb.gmra.mxu0 %v6622_v27  ;;  %9104 = vst [vmem:[#allocation48_spill] sm:$0xff] %v6849_v4 }
  0x9f   :  { %2189 = vmatpush.bf16.msra.mxu0 %v5722_v16 }
  0xa6   :  { %1854 = vmatmul.bf16.vlgmr.msrb.gmra.mxu1 %v6577_v49 }
  0xad   :  { %1521 = vmatmul.bf16.gmra.mxu2 %v6684_v48 }
  0xae   :  { %1570 = vmatmul.bf16.gmra.mxu3 %v6761_v56  ;;  %1810 = vmatmul.bf16.gmra.mxu0 %v6680_v33 }
  0xb6   :  { %1859 = vmatmul.bf16.gmra.mxu1 %v6630_v42 }
  0xbd   :  { %1526 = vmatmul.bf16.gmra.mxu2 %v6727_v59 }
  0xbe   :  { %1575 = vmatmul.bf16.gmra.mxu3 %v6776_v51  ;;  %1815 = vmatmul.bf16.gmra.mxu0 %v6723_v41 }
  0xc6   :  { %1864 = vmatmul.bf16.gmra.mxu1 %v6684_v48 }
  0xca   :  { %v6876_v39 = vpop.f32.mrf.mxu0 }
  0xcb   :  { %9108 = vst [vmem:[#allocation51_spill] sm:$0xff] %v6876_v39 }
  0xcd   :  { %1531 = vmatmul.bf16.gmra.mxu2 %v6502_v45 }
  0xce   :  { %1580 = vmatmul.bf16.gmra.mxu3 %v6791_v10  ;;  %1820 = vmatmul.bf16.gmra.mxu0 %v6756_v52 }
  0xd0   :  { %v6804_v43 = vpop.f32.mrf.mxu2 }
  0xd1   :  { %9096 = vst [vmem:[#allocation40_spill] sm:$0xff] %v6804_v43  ;;  %v6871_v37 = vpop.f32.mrf.mxu3  ;;  %v5712_v43 = vld [vmem:[#allocation8 + $0x28] sm:$0xff] }
  0xd6   :  { %1869 = vmatmul.bf16.gmra.mxu1 %v6727_v59 }
  0xd8   :  { %v6808_v32 = vpop.f32.mrf.mxu2 }
  0xd9   :  { %9097 = vst [vmem:[#allocation41_spill] sm:$0xff] %v6808_v32  ;;  %v6883_v31 = vpop.f32.mrf.mxu3 }
  0xdd   :  { %1536 = vmatmul.bf16.gmra.mxu2 %v6533_v12 }
  0xde   :  { %1585 = vmatmul.bf16.gmra.mxu3 %v6810_v35  ;;  %1825 = vmatmul.bf16.gmra.mxu0 %v6504_v46 }
  0xe0   :  { %v6823_v0 = vpop.f32.mrf.mxu2 }
  0xe1   :  { %9099 = vst [vmem:[#allocation43_spill] sm:$0xff] %v6823_v0 }
  0xe3   :  { %v1463_v34 = vpop.f32.mrf.mxu1 }
  0xe4   :  { %v1464_v22 = vadd.f32 %v6864_v54, %v1463_v34  ;;  %v5730_v34 = vld [vmem:[#allocation8 + $0xb8] sm:$0xff] }
  0xe5   :  { %2238 = vmatpush.bf16.msra.mxu1 %v5730_v34  ;;  %v5729_v34 = vld [vmem:[#allocation8 + $0xb0] sm:$0xff] }
  0xe6   :  { %1874 = vmatmul.bf16.gmra.mxu1 %v6502_v45 }
  0xe8   :  { %v6827_v50 = vpop.f32.mrf.mxu2 }
  0xe9   :  { %9100 = vst [vmem:[#allocation44_spill] sm:$0xff] %v6827_v50  ;;  %2239 = vmatpush.bf16.msra.mxu1 %v5729_v34 }
  0xeb   :  { %v6859_v53 = vpop.f32.mrf.mxu1 }
  0xed   :  { %1541 = vmatmul.bf16.gmra.mxu2 %v6590_v61 }
  0xee   :  { %1590 = vmatmul.bf16.gmra.mxu3 %v6829_v62  ;;  %1830 = vmatmul.bf16.gmra.mxu0 %v6535_v13 }
  0xf0   :  { %v6844_v38 = vpop.f32.mrf.mxu2 }
  0xf1   :  { %9102 = vst [vmem:[#allocation46_spill] sm:$0xff] %v6844_v38  ;;  %v1488_v38 = vpop.f32.mrf.mxu3 }
  0xf3   :  { %v1468_v44 = vpop.f32.mrf.mxu1 }
  0xf4   :  { %v1469_v19 = vadd.f32 %v6864_v54, %v1468_v44 }
  0xf6   :  { %1879 = vmatmul.bf16.gmra.mxu1 %v6533_v12 }
  0xf8   :  { %v6847_v28 = vpop.f32.mrf.mxu2 }
  0xf9   :  { %9103 = vst [vmem:[#allocation47_spill] sm:$0xff] %v6847_v28  ;;  %v6901_v32 = vpop.f32.mrf.mxu3 }
  0xfa   :  { %9111 = vst [vmem:[#allocation54_spill] sm:$0xff] %v6901_v32 }
  0xfb   :  { %v6879_v17 = vpop.f32.mrf.mxu1 }
  0xfd   :  { %1546 = vmatmul.bf16.gmra.mxu2 %v6643_v60 }
  0xfe   :  { %1595 = vmatmul.bf16.gmra.mxu3 %v6849_v4  ;;  %1835 = vmatmul.bf16.gmra.mxu0 %v6592_v63 }
 0x100   :  { %v6854_v18 = vpop.f32.mrf.mxu2 }
 0x101   :  { %9105 = vst [vmem:[#allocation49_spill] sm:$0xff] %v6854_v18  ;;  %v5713_v18 = vld [vmem:[#allocation8 + $0x30] sm:$0xff]  ;;  %v1493_v34 = vpop.f32.mrf.mxu3 }
 0x102   :  { %2141 = vmatpush.bf16.msra.mxu3 %v5713_v18 }
 0x103   :  { %v1473_v28 = vpop.f32.mrf.mxu1 }
 0x104   :  { %v1474_v16 = vadd.f32 %v6864_v54, %v1473_v28 }
 0x106   :  { %2142 = vmatpush.bf16.msra.mxu3 %v5712_v43  ;;  %1884 = vmatmul.bf16.gmra.mxu1 %v6590_v61 }
 0x108   :  { %v6857_v8 = vpop.f32.mrf.mxu2 }
 0x109   :  { %9106 = vst [vmem:[#allocation50_spill] sm:$0xff] %v6857_v8  ;;  %v6887_v8 = vpop.f32.mrf.mxu0  ;;  %v6915_v15 = vpop.f32.mrf.mxu3 }
 0x10a   :  { %9109 = vst [vmem:[#allocation52_spill] sm:$0xff] %v6887_v8  ;;  %v5735_v8 = vld [vmem:[#allocation11 + $0x20] sm:$0xff]  ;;  %2143 = vmatpush.bf16.msra.mxu3 %v5711_v2 }
 0x10b   :  { %9114 = vst [vmem:[#allocation57_spill] sm:$0xff] %v6915_v15 }
 0x10d   :  { %1903 = vmatmul.bf16.vlgmr.msra.gmra.mxu2 %v6696_v11 }
 0x10e   :  { %2144 = vmatpush.bf16.msra.mxu3 %v5710_v58  ;;  %1840 = vmatmul.bf16.gmra.mxu0 %v6645_v29 }
 0x110   :  { %v1512_v9 = vpop.f32.mrf.mxu2 }
 0x111   :  { %v6869_v26 = vadd.f32 %v1512_v9, %v1464_v22  ;;  %v5737_v22 = vld [vmem:[#allocation11 + $0x30] sm:$0xff]  ;;  %v6893_v50 = vpop.f32.mrf.mxu0  ;;  %v1498_v2 = vpop.f32.mrf.mxu3 }
 0x112   :  { %2520 = vmatpush.bf16.msrb.mxu2 %v5737_v22  ;;  %9110 = vst [vmem:[#allocation53_spill] sm:$0xff] %v6893_v50  ;;  %v5736_v22 = vld [vmem:[#allocation11 + $0x28] sm:$0xff]  ;;  %2145 = vmatpush.bf16.msra.mxu3 %v5709_v20 }
 0x113   :  { %v5708_v20 = vld [vmem:[#allocation8 + $0x8] sm:$0xff] }
 0x116   :  { %2521 = vmatpush.bf16.msrb.mxu2 %v5736_v22  ;;  %1889 = vmatmul.bf16.gmra.mxu1 %v6643_v60 }
 0x117   :  { %2146 = vmatpush.bf16.msra.mxu3 %v5708_v20 }
 0x118   :  { %v6874_v6 = vpop.f32.mrf.mxu2 }
 0x119   :  { %v6903_v50 = vpop.f32.mrf.mxu0 }
 0x11a   :  { %9112 = vst [vmem:[#allocation55_spill] sm:$0xff] %v6903_v50  ;;  %2522 = vmatpush.bf16.msrb.mxu2 %v5735_v8  ;;  %v5719_v8 = vld [vmem:[#allocation8 + $0x60] sm:$0xff] }
 0x11d   :  { %1908 = vmatmul.bf16.gmra.mxu2 %v6738_v30 }
 0x120   :  { %v1517_v9 = vpop.f32.mrf.mxu2 }
 0x121   :  { %v6885_v40 = vadd.f32 %v1517_v9, %v1469_v19  ;;  %v5721_v19 = vld [vmem:[#allocation8 + $0x70] sm:$0xff]  ;;  %v6897_v9 = vpop.f32.mrf.mxu1  ;;  %v6911_v39 = vpop.f32.mrf.mxu0 }
 0x122   :  { %2190 = vmatpush.bf16.msra.mxu0 %v5721_v19  ;;  %9113 = vst [vmem:[#allocation56_spill] sm:$0xff] %v6911_v39 }
 0x128   :  { %v6890_v44 = vpop.f32.mrf.mxu2 }
 0x129   :  { %v1478_v19 = vpop.f32.mrf.mxu1 }
 0x12a   :  { %v1479_v22 = vadd.f32 %v6864_v54, %v1478_v19  ;;  %v6921_v19 = vpop.f32.mrf.mxu0 }
 0x12b   :  { %9115 = vst [vmem:[#allocation58_spill] sm:$0xff] %v6921_v19 }
 0x12d   :  { %1913 = vmatmul.bf16.gmra.mxu2 %v6761_v56 }
 0x130   :  { %v1522_v18 = vpop.f32.mrf.mxu2 }
 0x131   :  { %v6899_v0 = vadd.f32 %v1522_v18, %v1474_v16  ;;  %v5720_v16 = vld [vmem:[#allocation8 + $0x68] sm:$0xff]  ;;  %v6940_v58 = vpop.f32.mrf.mxu1 }
 0x132   :  { %v5728_v18 = vld [vmem:[#allocation8 + $0xa8] sm:$0xff]  ;;  %2191 = vmatpush.bf16.msra.mxu0 %v5720_v16  ;;  %v1484_v16 = vadd.f32 %v6864_v54, %v6871_v37  ;;  %v6928_v47 = vpop.f32.mrf.mxu0  ;;  %v6934_v37 = vpop.f32.mrf.mxu3 }
 0x133   :  { %2240 = vmatpush.bf16.msra.mxu1 %v5728_v18  ;;  %v5734_v18 = vld [vmem:[#allocation11 + $0x18] sm:$0xff]  ;;  %9116 = vst [vmem:[#allocation59_spill] sm:$0xff] %v6928_v47 }
 0x134   :  { %2523 = vmatpush.bf16.msrb.mxu2 %v5734_v18  ;;  %9117 = vst [vmem:[#allocation60_spill] sm:$0xff] %v6934_v37  ;;  %v5726_v18 = vld [vmem:[#allocation8 + $0x98] sm:$0xff]  ;;  %v5715_v37 = vld [vmem:[#allocation8 + $0x40] sm:$0xff] }
 0x136   :  { %2192 = vmatpush.bf16.msra.mxu0 %v5719_v8  ;;  %v1489_v8 = vadd.f32 %v6864_v54, %v1488_v38 }
 0x138   :  { %v6906_v28 = vpop.f32.mrf.mxu2 }
 0x139   :  { %v1855_v5 = vpop.f32.mrf.mxu1 }
 0x13a   :  { %v6944_v24 = vpop.f32.mrf.mxu3 }
 0x13d   :  { %1918 = vmatmul.bf16.gmra.mxu2 %v6776_v51 }
 0x140   :  { %v1527_v43 = vpop.f32.mrf.mxu2 }
 0x141   :  { %v6913_v50 = vadd.f32 %v1527_v43, %v1479_v22  ;;  %v5727_v22 = vld [vmem:[#allocation8 + $0xa0] sm:$0xff] }
 0x142   :  { %2241 = vmatpush.bf16.msra.mxu1 %v5727_v22  ;;  %v5718_v22 = vld [vmem:[#allocation8 + $0x58] sm:$0xff] }
 0x143   :  { %2193 = vmatpush.bf16.msra.mxu0 %v5718_v22  ;;  %v1494_v22 = vadd.f32 %v6864_v54, %v1493_v34  ;;  %v5707_v34 = vld [vmem:[#allocation8] sm:$0xff] }
 0x144   :  { %2147 = vmatpush.bf16.msra.mxu3 %v5707_v34 }
 0x146   :  { %2242 = vmatpush.bf16.msra.mxu1 %v5726_v18  ;;  %v6950_v18 = vpop.f32.mrf.mxu3 }
 0x147   :  { %2194 = vmatpush.bf16.msra.mxu0 %v5717_v14  ;;  %v1499_v14 = vadd.f32 %v6864_v54, %v1498_v2  ;;  %2148 = vmatmul.bf16.vlgmr.msra.gmra.mxu3 %v6622_v27  ;;  %v5731_v27 = vld [vmem:[#allocation11] sm:$0xff] }
 0x148   :  { %v6918_v7 = vpop.f32.mrf.mxu2 }
 0x14a   :  { %2243 = vmatpush.bf16.msra.mxu1 %v5725_v55  ;;  %v5716_v55 = vld [vmem:[#allocation8 + $0x48] sm:$0xff] }
 0x14b   :  { %2195 = vmatpush.bf16.msra.mxu0 %v5716_v55 }
 0x14d   :  { %1923 = vmatmul.bf16.gmra.mxu2 %v6791_v10 }
 0x14e   :  { %v6954_v25 = vpop.f32.mrf.mxu3 }
 0x14f   :  { %2196 = vmatpush.bf16.msra.mxu0 %v5715_v37 }
 0x150   :  { %v1532_v43 = vpop.f32.mrf.mxu2 }
 0x151   :  { %v6926_v39 = vadd.f32 %v1532_v43, %v1484_v16  ;;  %v5733_v16 = vld [vmem:[#allocation11 + $0x10] sm:$0xff]  ;;  %v6938_v43 = vpop.f32.mrf.mxu0 }
 0x152   :  { %9118 = vst [vmem:[#allocation61_spill] sm:$0xff] %v6938_v43  ;;  %2524 = vmatpush.bf16.msrb.mxu2 %v5733_v16  ;;  %v1857_v43 = vpop.f32.mrf.mxu1  ;;  %2197 = vmatmul.bf16.vlgmr.msra.gmra.mxu0 %v6577_v49 }
 0x156   :  { %2525 = vmatpush.bf16.msrb.mxu2 %v5732_v57  ;;  %v6963_v20 = vpop.f32.mrf.mxu3 }
 0x157   :  { %2153 = vmatmul.bf16.gmra.mxu3 %v6680_v33 }
 0x158   :  { %v6931_v19 = vpop.f32.mrf.mxu2 }
 0x159   :  { %v1806_v38 = vpop.f32.mrf.mxu0 }
 0x15a   :  { %v1860_v1 = vpop.f32.mrf.mxu1  ;;  %2526 = vmatpush.bf16.msrb.mxu2 %v5731_v27 }
 0x15d   :  { %1928 = vmatmul.bf16.gmra.mxu2 %v6810_v35 }
 0x15e   :  { %v6969_v55 = vpop.f32.mrf.mxu3 }
 0x160   :  { %v1537_v47 = vpop.f32.mrf.mxu2 }
 0x161   :  { %v6942_v36 = vadd.f32 %v1537_v47, %v1489_v8  ;;  %v1808_v8 = vpop.f32.mrf.mxu0 }
 0x162   :  { %v1862_v34 = vpop.f32.mrf.mxu1  ;;  %2202 = vmatmul.bf16.gmra.mxu0 %v6630_v42 }
 0x163   :  { %9119 = vst [vmem:[#allocation62_spill] sm:$0xff] %v6942_v36 }
 0x167   :  { %2158 = vmatmul.bf16.gmra.mxu3 %v6723_v41 }
 0x168   :  { %v6946_v23 = vpop.f32.mrf.mxu2 }
 0x169   :  { %9120 = vst [vmem:[#allocation63_spill] sm:$0xff] %v6946_v23  ;;  %v1811_v3 = vpop.f32.mrf.mxu0 }
 0x16d   :  { %1933 = vmatmul.bf16.gmra.mxu2 %v6829_v62 }
 0x170   :  { %v1542_v47 = vpop.f32.mrf.mxu2 }
 0x171   :  { %v6952_v16 = vadd.f32 %v1542_v47, %v1494_v22  ;;  %v5724_v22 = vld [vmem:[#allocation8 + $0x88] sm:$0xff] }
 0x172   :  { %2244 = vmatpush.bf16.msra.mxu1 %v5724_v22  ;;  %2207 = vmatmul.bf16.gmra.mxu0 %v6684_v48 }
 0x173   :  { %9121 = vst [vmem:[#allocation64_spill] sm:$0xff] %v6952_v16  ;;  %v1813_v16 = vpop.f32.mrf.mxu0 }
 0x177   :  { %2163 = vmatmul.bf16.gmra.mxu3 %v6756_v52  ;;  %v1567_v52 = vadd.f32 %v6954_v25, %v6885_v40  ;;  %v1476_v25 = vadd.f32 %v6864_v54, %v6897_v9  ;;  %v1572_v9 = vadd.f32 %v6969_v55, %v6899_v0  ;;  %v1481_v0 = vadd.f32 %v6864_v54, %v6940_v58 }
 0x178   :  { %v6956_v21 = vpop.f32.mrf.mxu2 }
 0x179   :  { %9122 = vst [vmem:[#allocation65_spill] sm:$0xff] %v6956_v21  ;;  %v5723_v21 = vld [vmem:[#allocation8 + $0x80] sm:$0xff] }
 0x17a   :  { %2245 = vmatpush.bf16.msra.mxu1 %v5723_v21  ;;  %v1865_v21 = vpop.f32.mrf.mxu1 }
 0x17d   :  { %1938 = vmatmul.bf16.gmra.mxu2 %v6849_v4  ;;  %2246 = vmatmul.bf16.vlgmr.msra.gmra.mxu1 %v6696_v11  ;;  %v6979_v11 = vpop.f32.mrf.mxu3 }
 0x180   :  { %v1547_v57 = vpop.f32.mrf.mxu2 }
 0x181   :  { %v6961_v47 = vadd.f32 %v1547_v57, %v1499_v14  ;;  %v6974_v14 = vld [vmem:[%s9028_s7] ss:$0 sm:$0xff]  ;;  %v1816_v57 = vpop.f32.mrf.mxu0 }
 0x182   :  { %v1807_v49 = vadd.f32 %v6974_v14, %v1806_v38  ;;  %v1809_v22 = vadd.f32 %v6974_v14, %v1808_v8  ;;  %v1867_v60 = vpop.f32.mrf.mxu1  ;;  %v1812_v42 = vadd.f32 %v6974_v14, %v1811_v3  ;;  %2212 = vmatmul.bf16.gmra.mxu0 %v6727_v59 }
 0x183   :  { %9123 = vst [vmem:[#allocation66_spill] sm:$0xff] %v6961_v47 }
 0x184   :  { %v1856_v47 = vadd.f32 %v1855_v5, %v1807_v49  ;;  %v1466_v5 = vadd.f32 %v6864_v54, %v6859_v53  ;;  %v1562_v53 = vadd.f32 %v6944_v24, %v6869_v26  ;;  %v1471_v24 = vadd.f32 %v6864_v54, %v6879_v17 }
 0x185   :  { %v6986_v38 = vpop.f32.mrf.mxu3 }
 0x186   :  { %v1577_v58 = vadd.f32 %v6986_v38, %v6913_v50  ;;  %v1486_v50 = vadd.f32 %v6864_v54, %v6883_v31 }
 0x187   :  { %2168 = vmatmul.bf16.gmra.mxu3 %v6504_v46 }
 0x188   :  { %v6966_v2 = vpop.f32.mrf.mxu2 }
 0x189   :  { %9124 = vst [vmem:[#allocation67_spill] sm:$0xff] %v6966_v2  ;;  %v1858_v2 = vadd.f32 %v1857_v43, %v1809_v22  ;;  %v1818_v15 = vpop.f32.mrf.mxu0 }
 0x18d   :  { %2251 = vmatmul.bf16.gmra.mxu1 %v6738_v30  ;;  %v1814_v30 = vadd.f32 %v6974_v14, %v1813_v16 }
 0x190   :  { %v1904_v37 = vpop.f32.mrf.mxu2 }
 0x191   :  { %v1905_v4 = vadd.f32 %v1904_v37, %v1856_v47  ;;  %v6989_v49 = vpop.f32.mrf.mxu0  ;;  %v6993_v37 = vpop.f32.mrf.mxu1 }
 0x192   :  { %2217 = vmatmul.bf16.gmra.mxu0 %v6502_v45 }
 0x197   :  { %2173 = vmatmul.bf16.gmra.mxu3 %v6535_v13 }
 0x198   :  { %v1906_v27 = vpop.f32.mrf.mxu2 }
 0x199   :  { %v1907_v36 = vadd.f32 %v1906_v27, %v1858_v2  ;;  %v1515_v2 = vadd.f32 %v6874_v6, %v1466_v5  ;;  %v1863_v27 = vadd.f32 %v1862_v34, %v1814_v30  ;;  %v7000_v6 = vpop.f32.mrf.mxu3  ;;  %v1823_v34 = vpop.f32.mrf.mxu0 }
 0x19a   :  { %v1872_v30 = vpop.f32.mrf.mxu1 }
 0x19b   :  { %v2287_v33 = vmax.f32 %v1905_v4, %v1907_v36  ;;  %v1564_v3 = vadd.f32 %v6950_v18, %v1515_v2  ;;  %v1520_v18 = vadd.f32 %v6890_v44, %v1471_v24  ;;  %v1525_v24 = vadd.f32 %v6906_v28, %v1476_v25 }
 0x19d   :  { %v2288_v23 = vrot.slane %v2287_v33, 4  ;;  %2256 = vmatmul.bf16.gmra.mxu1 %v6761_v56  ;;  %v1569_v17 = vadd.f32 %v6963_v20, %v1520_v18 }
 0x19f   :  { %v2289_v32 = vmax.f32 %v2287_v33, %v2288_v23  ;;  %v1861_v23 = vadd.f32 %v1860_v1, %v1812_v42 }
 0x1a0   :  { %v1909_v43 = vpop.f32.mrf.mxu2 }
 0x1a1   :  { %v2290_v8 = vrot.slane %v2289_v32, 2 }
 0x1a2   :  { %2222 = vmatmul.bf16.gmra.mxu0 %v6533_v12 }
 0x1a3   :  { %v2291_v47 = vmax.f32 %v2289_v32, %v2290_v8  ;;  %v1910_v8 = vadd.f32 %v1909_v43, %v1861_v23  ;;  %v7008_v43 = vpop.f32.mrf.mxu3 }
 0x1a5   :  { %v2292_v41 = vrot.slane %v2291_v47, 1 }
 0x1a7   :  { %v2293_v22 = vmax.f32 %v2291_v47, %v2292_v41  ;;  %2178 = vmatmul.bf16.gmra.mxu3 %v6592_v63  ;;  %v1582_v63 = vadd.f32 %v7008_v43, %v6926_v39  ;;  %v9126_v39 = vld [vmem:[#allocation54_spill] sm:$0xff] }
 0x1a8   :  { %v1911_v33 = vpop.f32.mrf.mxu2  ;;  %v1491_v43 = vadd.f32 %v6864_v54, %v9126_v39 }
 0x1a9   :  { %v2343_v29 = vsub.f32 %v1905_v4, %v2293_v22  ;;  %v2344_v32 = vsub.f32 %v1907_v36, %v2293_v22  ;;  %v1912_v16 = vadd.f32 %v1911_v33, %v1863_v27  ;;  %v1817_v4 = vadd.f32 %v6974_v14, %v1816_v57  ;;  %v1826_v22 = vpop.f32.mrf.mxu0 }
 0x1ab   :  { %v2431_v1 = vmul.f32 %v2343_v29, %v1562_v53  ;;  %v2432_v5 = vmul.f32 %v2344_v32, %v1564_v3  ;;  %v2294_v42 = vmax.f32 %v1910_v8, %v1912_v16  ;;  %v1819_v29 = vadd.f32 %v6974_v14, %v1818_v15  ;;  %v1875_v3 = vpop.f32.mrf.mxu1 }
 0x1ac   :  { %v1866_v2 = vadd.f32 %v1865_v21, %v1817_v4 }
 0x1ad   :  { %v2447_v47 = vpack.c.bf16 %v2432_v5, %v2431_v1  ;;  %v2295_v48 = vrot.slane %v2294_v42, 4  ;;  %v1868_v53 = vadd.f32 %v1867_v60, %v1819_v29  ;;  %2261 = vmatmul.bf16.gmra.mxu1 %v6776_v51 }
 0x1af   :  { %v2296_v41 = vmax.f32 %v2294_v42, %v2295_v48  ;;  %2527 = vmatmul.bf16.vlgmr.msrb.gmra.mxu2 %v2447_v47  ;;  %v7015_v47 = vpop.f32.mrf.mxu3 }
 0x1b0   :  { %v1914_v36 = vpop.f32.mrf.mxu2 }
 0x1b1   :  { %v2297_v56 = vrot.slane %v2296_v41, 2  ;;  %v1915_v32 = vadd.f32 %v1914_v36, %v1866_v2  ;;  %v1828_v20 = vpop.f32.mrf.mxu0 }
 0x1b2   :  { %2227 = vmatmul.bf16.gmra.mxu0 %v6590_v61 }
 0x1b3   :  { %v2298_v26 = vmax.f32 %v2296_v41, %v2297_v56  ;;  %v1824_v41 = vadd.f32 %v6974_v14, %v1823_v34 }
 0x1b5   :  { %v2299_v23 = vrot.slane %v2298_v26, 1  ;;  %v1873_v46 = vadd.f32 %v1872_v30, %v1824_v41 }
 0x1b7   :  { %v2300_v27 = vmax.f32 %v2298_v26, %v2299_v23  ;;  %v1574_v26 = vadd.f32 %v6979_v11, %v1525_v24  ;;  %v1827_v11 = vadd.f32 %v6974_v14, %v1826_v22 }
 0x1b8   :  { %v1916_v57 = vpop.f32.mrf.mxu2 }
 0x1b9   :  { %v2345_v33 = vsub.f32 %v1910_v8, %v2300_v27  ;;  %v2346_v15 = vsub.f32 %v1912_v16, %v2300_v27  ;;  %v1917_v44 = vadd.f32 %v1916_v57, %v1868_v53  ;;  %v1822_v8 = vadd.f32 %v6974_v14, %v6989_v49  ;;  %v1877_v16 = vpop.f32.mrf.mxu1  ;;  %v7029_v49 = vpop.f32.mrf.mxu3 }
 0x1ba   :  { %v1831_v28 = vpop.f32.mrf.mxu0 }
 0x1bb   :  { %v2434_v21 = vmul.f32 %v2346_v15, %v1569_v17  ;;  %v2301_v1 = vmax.f32 %v1915_v32, %v1917_v44  ;;  %v2433_v5 = vmul.f32 %v2345_v33, %v1567_v52  ;;  %v1871_v36 = vadd.f32 %v6993_v37, %v1822_v8 }
 0x1bc   :  { %v1829_v15 = vadd.f32 %v6974_v14, %v1828_v20  ;;  %v1832_v24 = vadd.f32 %v6974_v14, %v1831_v28 }
 0x1bd   :  { %v2302_v42 = vrot.slane %v2301_v1, 4  ;;  %v2448_v60 = vpack.c.bf16 %v2434_v21, %v2433_v5  ;;  %2266 = vmatmul.bf16.gmra.mxu1 %v6791_v10  ;;  %v1876_v21 = vadd.f32 %v1875_v3, %v1827_v11 }
 0x1be   :  { %v1878_v13 = vadd.f32 %v1877_v16, %v1829_v15 }
 0x1bf   :  { %v2303_v59 = vmax.f32 %v2301_v1, %v2302_v42  ;;  %2532 = vmatmul.bf16.gmra.mxu2 %v2448_v60 }
 0x1c0   :  { %v1919_v40 = vpop.f32.mrf.mxu2 }
 0x1c1   :  { %v2304_v51 = vrot.slane %v2303_v59, 2  ;;  %v1920_v34 = vadd.f32 %v1919_v40, %v1871_v36  ;;  %v1880_v53 = vpop.f32.mrf.mxu1  ;;  %v7036_v33 = vpop.f32.mrf.mxu3 }
 0x1c3   :  { %v2305_v48 = vmax.f32 %v2303_v59, %v2304_v51 }
 0x1c5   :  { %v2306_v4 = vrot.slane %v2305_v48, 1 }
 0x1c7   :  { %v2307_v56 = vmax.f32 %v2305_v48, %v2306_v4 }
 0x1c8   :  { %v1921_v29 = vpop.f32.mrf.mxu2 }
 0x1c9   :  { %v2347_v18 = vsub.f32 %v1915_v32, %v2307_v56  ;;  %v2348_v2 = vsub.f32 %v1917_v44, %v2307_v56  ;;  %v1922_v23 = vadd.f32 %v1921_v29, %v1873_v46  ;;  %v1530_v32 = vadd.f32 %v6918_v7, %v1481_v0  ;;  %v1833_v44 = vpop.f32.mrf.mxu0  ;;  %v1882_v5 = vpop.f32.mrf.mxu1  ;;  %v9125_v0 = vld [vmem:[#allocation31_spill] sm:$0xff] }
 0x1ca   :  { %v7045_v51 = vpop.f32.mrf.mxu3  ;;  %v1834_v4 = vadd.f32 %v6974_v14, %v1833_v44  ;;  %v1535_v56 = vadd.f32 %v6931_v19, %v1486_v50  ;;  %v1881_v46 = vadd.f32 %v1880_v53, %v1832_v24  ;;  %2183 = vmatmul.bf16.gmra.mxu3 %v9125_v0 }
 0x1cb   :  { %v2436_v37 = vmul.f32 %v2348_v2, %v1574_v26  ;;  %v2308_v27 = vmax.f32 %v1920_v34, %v1922_v23  ;;  %v2435_v30 = vmul.f32 %v2347_v18, %v1572_v9  ;;  %v1579_v22 = vadd.f32 %v7000_v6, %v1530_v32  ;;  %v9127_v32 = vld [vmem:[#allocation63_spill] sm:$0xff] }
 0x1cc   :  { %v1883_v18 = vadd.f32 %v1882_v5, %v1834_v4  ;;  %v1584_v31 = vadd.f32 %v7015_v47, %v1535_v56  ;;  %v1540_v44 = vadd.f32 %v9127_v32, %v1491_v43 }
 0x1cd   :  { %v2309_v45 = vrot.slane %v2308_v27, 4  ;;  %v2449_v52 = vpack.c.bf16 %v2436_v37, %v2435_v30  ;;  %2271 = vmatmul.bf16.gmra.mxu1 %v6810_v35 }
 0x1cf   :  { %v2310_v17 = vmax.f32 %v2308_v27, %v2309_v45  ;;  %2537 = vmatmul.bf16.gmra.mxu2 %v2449_v52 }
 0x1d0   :  { %v1924_v55 = vpop.f32.mrf.mxu2 }
 0x1d1   :  { %v2311_v57 = vrot.slane %v2310_v17, 2  ;;  %v1925_v40 = vadd.f32 %v1924_v55, %v1876_v21  ;;  %v1836_v12 = vpop.f32.mrf.mxu0  ;;  %v1885_v6 = vpop.f32.mrf.mxu1 }
 0x1d2   :  { %v7053_v26 = vpop.f32.mrf.mxu3  ;;  %v1837_v11 = vadd.f32 %v6974_v14, %v1836_v12 }
 0x1d3   :  { %v2312_v10 = vmax.f32 %v2310_v17, %v2311_v57 }
 0x1d5   :  { %v2313_v1 = vrot.slane %v2312_v10, 1 }
 0x1d7   :  { %v2314_v42 = vmax.f32 %v2312_v10, %v2313_v1  ;;  %v1886_v1 = vadd.f32 %v1885_v6, %v1837_v11 }
 0x1d8   :  { %v1926_v60 = vpop.f32.mrf.mxu2 }
 0x1d9   :  { %v2349_v59 = vsub.f32 %v1920_v34, %v2314_v42  ;;  %v2350_v25 = vsub.f32 %v1922_v23, %v2314_v42  ;;  %v1927_v20 = vadd.f32 %v1926_v60, %v1878_v13  ;;  %v1838_v34 = vpop.f32.mrf.mxu0  ;;  %v1887_v19 = vpop.f32.mrf.mxu1 }
 0x1da   :  { %v7063_v47 = vpop.f32.mrf.mxu3  ;;  %v1839_v15 = vadd.f32 %v6974_v14, %v1838_v34 }
 0x1db   :  { %v2438_v7 = vmul.f32 %v2350_v25, %v1579_v22  ;;  %v2315_v3 = vmax.f32 %v1925_v40, %v1927_v20  ;;  %v2437_v8 = vmul.f32 %v2349_v59, %v1577_v58  ;;  %v9128_v58 = vld [vmem:[#allocation30_spill] sm:$0xff]  ;;  %v1589_v59 = vadd.f32 %v7036_v33, %v1540_v44 }
 0x1dc   :  { %v1888_v13 = vadd.f32 %v1887_v19, %v1839_v15  ;;  %2232 = vmatmul.bf16.gmra.mxu0 %v9128_v58  ;;  %v9129_v22 = vld [vmem:[#allocation62_spill] sm:$0xff]  ;;  %v9134_v15 = vld [vmem:[#allocation60_spill] sm:$0xff] }
 0x1dd   :  { %v2316_v16 = vrot.slane %v2315_v3, 4  ;;  %v2450_v48 = vpack.c.bf16 %v2438_v7, %v2437_v8  ;;  %2276 = vmatmul.bf16.gmra.mxu1 %v6829_v62  ;;  %v1587_v60 = vadd.f32 %v7029_v49, %v9129_v22  ;;  %v9130_v8 = vld [vmem:[#allocation48_spill] sm:$0xff]  ;;  %v9131_v49 = vld [vmem:[#allocation57_spill] sm:$0xff]  ;;  %v9136_v22 = vld [vmem:[#allocation66_spill] sm:$0xff] }
 0x1de   :  { %v1496_v33 = vadd.f32 %v6864_v54, %v9131_v49 }
 0x1df   :  { %v2317_v41 = vmax.f32 %v2315_v3, %v2316_v16  ;;  %2542 = vmatmul.bf16.gmra.mxu2 %v2450_v48 }
 0x1e0   :  { %v1929_v38 = vpop.f32.mrf.mxu2 }
 0x1e1   :  { %v2318_v35 = vrot.slane %v2317_v41, 2  ;;  %v1930_v37 = vadd.f32 %v1929_v38, %v1881_v46  ;;  %v1841_v62 = vpop.f32.mrf.mxu0  ;;  %v1890_v21 = vpop.f32.mrf.mxu1 }
 0x1e2   :  { %v1598_v16 = vpop.f32.mrf.mxu3  ;;  %v1842_v4 = vadd.f32 %v6974_v14, %v1841_v62 }
 0x1e3   :  { %v2319_v36 = vmax.f32 %v2317_v41, %v2318_v35 }
 0x1e5   :  { %v2320_v9 = vrot.slane %v2319_v36, 1 }
 0x1e7   :  { %v2321_v29 = vmax.f32 %v2319_v36, %v2320_v9 }
 0x1e8   :  { %v1931_v2 = vpop.f32.mrf.mxu2 }
 0x1e9   :  { %v2351_v23 = vsub.f32 %v1925_v40, %v2321_v29  ;;  %v2352_v28 = vsub.f32 %v1927_v20, %v2321_v29  ;;  %v1932_v27 = vadd.f32 %v1931_v2, %v1883_v18  ;;  %v1843_v50 = vpop.f32.mrf.mxu0  ;;  %v1892_v24 = vpop.f32.mrf.mxu1  ;;  %v9132_v18 = vld [vmem:[#allocation65_spill] sm:$0xff]  ;;  %v1891_v2 = vadd.f32 %v1890_v21, %v1842_v4 }
 0x1ea   :  { %v2149_v46 = vpop.f32.mrf.mxu3  ;;  %v1844_v29 = vadd.f32 %v6974_v14, %v1843_v50 }
 0x1eb   :  { %v2440_v30 = vmul.f32 %v2352_v28, %v1584_v31  ;;  %v2322_v53 = vmax.f32 %v1930_v37, %v1932_v27  ;;  %v2439_v45 = vmul.f32 %v2351_v23, %v1582_v63  ;;  %v1545_v63 = vadd.f32 %v9132_v18, %v1496_v33 }
 0x1ed   :  { %v2323_v52 = vrot.slane %v2322_v53, 4  ;;  %v2451_v17 = vpack.c.bf16 %v2440_v30, %v2439_v45  ;;  %2281 = vmatmul.bf16.gmra.mxu1 %v9130_v8  ;;  %v1594_v30 = vadd.f32 %v7053_v26, %v1545_v63 }
 0x1ef   :  { %v2324_v61 = vmax.f32 %v2322_v53, %v2323_v52  ;;  %2547 = vmatmul.bf16.gmra.mxu2 %v2451_v17 }
 0x1f0   :  { %v1934_v55 = vpop.f32.mrf.mxu2 }
 0x1f1   :  { %v2325_v57 = vrot.slane %v2324_v61, 2  ;;  %v1935_v7 = vadd.f32 %v1934_v55, %v1886_v1  ;;  %v2198_v31 = vpop.f32.mrf.mxu0  ;;  %v9135_v1 = vld [vmem:[#allocation67_spill] sm:$0xff] }
 0x1f2   :  { %v2151_v0 = vpop.f32.mrf.mxu3 }
 0x1f3   :  { %v2326_v10 = vmax.f32 %v2324_v61, %v2325_v57 }
 0x1f5   :  { %v2327_v5 = vrot.slane %v2326_v10, 1 }
 0x1f7   :  { %v2328_v42 = vmax.f32 %v2326_v10, %v2327_v5 }
 0x1f8   :  { %v1936_v25 = vpop.f32.mrf.mxu2 }
 0x1f9   :  { %v2353_v40 = vsub.f32 %v1930_v37, %v2328_v42  ;;  %v2354_v20 = vsub.f32 %v1932_v27, %v2328_v42  ;;  %v1937_v3 = vadd.f32 %v1936_v25, %v1888_v13  ;;  %v1893_v37 = vadd.f32 %v1892_v24, %v1844_v29  ;;  %v9133_v27 = vld [vmem:[#allocation64_spill] sm:$0xff]  ;;  %v2200_v55 = vpop.f32.mrf.mxu0  ;;  %v5751_v29 = vld [vmem:[#allocation10 + $0x60] sm:$0xff] }
 0x1fa   :  { %v2247_v23 = vpop.f32.mrf.mxu1  ;;  %v1592_v19 = vadd.f32 %v7045_v51, %v9133_v27  ;;  %v1501_v51 = vadd.f32 %v6864_v54, %v9134_v15  ;;  %v2154_v26 = vpop.f32.mrf.mxu3  ;;  %v5750_v27 = vld [vmem:[#allocation10 + $0x58] sm:$0xff]  ;;  %v5748_v15 = vld [vmem:[#allocation10 + $0x48] sm:$0xff] }
 0x1fb   :  { %v2442_v48 = vmul.f32 %v2354_v20, %v1589_v59  ;;  %v2329_v12 = vmax.f32 %v1935_v7, %v1937_v3  ;;  %v2441_v41 = vmul.f32 %v2353_v40, %v1587_v60  ;;  %v1597_v60 = vadd.f32 %v7063_v47, %v9136_v22  ;;  %v5753_v47 = vld [vmem:[#allocation10 + $0x70] sm:$0xff] }
 0x1fc   :  { %v1550_v5 = vadd.f32 %v9135_v1, %v1501_v51 }
 0x1fd   :  { %v2330_v38 = vrot.slane %v2329_v12, 4  ;;  %v2452_v6 = vpack.c.bf16 %v2442_v48, %v2441_v41  ;;  %v7089_v41 = vld [vmem:[%s9030_s9] ss:$0 sm:$0xff] }
 0x1fe   :  { %v1599_v59 = vadd.f32 %v1598_v16, %v1550_v5  ;;  %v2150_v16 = vadd.f32 %v7089_v41, %v2149_v46  ;;  %v2155_v4 = vadd.f32 %v7089_v41, %v2154_v26 }
 0x1ff   :  { %v2331_v35 = vmax.f32 %v2329_v12, %v2330_v38  ;;  %2552 = vmatmul.bf16.gmra.mxu2 %v2452_v6  ;;  %v5754_v12 = vld [vmem:[#allocation10 + $0x78] sm:$0xff]  ;;  %v2152_v6 = vadd.f32 %v7089_v41, %v2151_v0 }
 0x200   :  { %v1939_v36 = vpop.f32.mrf.mxu2  ;;  %3437 = vmatpush.bf16.msrb.mxu0 %v5754_v12  ;;  %v2199_v49 = vadd.f32 %v2198_v31, %v2150_v16 }
 0x201   :  { %v2332_v56 = vrot.slane %v2331_v35, 2  ;;  %v1940_v17 = vadd.f32 %v1939_v36, %v1891_v2  ;;  %v2203_v21 = vpop.f32.mrf.mxu0  ;;  %v2201_v33 = vadd.f32 %v2200_v55, %v2152_v6 }
 0x202   :  { %v2249_v62 = vpop.f32.mrf.mxu1  ;;  %v2156_v20 = vpop.f32.mrf.mxu3  ;;  %v7095_v18 = vadd.f32 %v2247_v23, %v2199_v49  ;;  %v2204_v31 = vadd.f32 %v2203_v21, %v2155_v4 }
 0x203   :  { %v2333_v9 = vmax.f32 %v2331_v35, %v2332_v56  ;;  %v5752_v35 = vld [vmem:[#allocation10 + $0x68] sm:$0xff]  ;;  %v2157_v56 = vadd.f32 %v7089_v41, %v2156_v20  ;;  %v7097_v63 = vadd.f32 %v2249_v62, %v2201_v33  ;;  %v5758_v20 = vld [vmem:[#allocation10 + $0x98] sm:$0xff] }
 0x204   :  { %3438 = vmatpush.bf16.msrb.mxu0 %v5753_v47 }
 0x205   :  { %v2334_v34 = vrot.slane %v2333_v9, 1 }
 0x207   :  { %v2335_v28 = vmax.f32 %v2333_v9, %v2334_v34  ;;  %v5762_v34 = vld [vmem:[#allocation10 + $0xb8] sm:$0xff] }
 0x208   :  { %v1941_v53 = vpop.f32.mrf.mxu2  ;;  %3439 = vmatpush.bf16.msrb.mxu0 %v5752_v35  ;;  %3486 = vmatpush.bf16.msrb.mxu1 %v5762_v34  ;;  %v5757_v35 = vld [vmem:[#allocation10 + $0x90] sm:$0xff] }
 0x209   :  { %v2355_v45 = vsub.f32 %v1935_v7, %v2335_v28  ;;  %v2356_v52 = vsub.f32 %v1937_v3, %v2335_v28  ;;  %v1942_v61 = vadd.f32 %v1941_v53, %v1893_v37  ;;  %v2205_v8 = vpop.f32.mrf.mxu0 }
 0x20a   :  { %v2252_v13 = vpop.f32.mrf.mxu1  ;;  %v2159_v50 = vpop.f32.mrf.mxu3  ;;  %v2206_v37 = vadd.f32 %v2205_v8, %v2157_v56 }
 0x20b   :  { %v2444_v14 = vmul.f32 %v2356_v52, %v1594_v30  ;;  %v2336_v39 = vmax.f32 %v1940_v17, %v1942_v61  ;;  %v2443_v43 = vmul.f32 %v2355_v45, %v1592_v19  ;;  %v2160_v46 = vadd.f32 %v7089_v41, %v2159_v50  ;;  %v5761_v45 = vld [vmem:[#allocation10 + $0xb0] sm:$0xff] }
 0x20c   :  { %3440 = vmatpush.bf16.msrb.mxu0 %v5751_v29  ;;  %v2359_v19 = vmax.f32 %v7095_v18, %v7097_v63  ;;  %3487 = vmatpush.bf16.msrb.mxu1 %v5761_v45 }
 0x20d   :  { %v2337_v11 = vrot.slane %v2336_v39, 4  ;;  %v2453_v57 = vpack.c.bf16 %v2444_v14, %v2443_v43 }
 0x20e   :  { %v2360_v43 = vrot.slane %v2359_v19, 4 }
 0x20f   :  { %v2338_v10 = vmax.f32 %v2336_v39, %v2337_v11  ;;  %2557 = vmatmul.bf16.gmra.mxu2 %v2453_v57  ;;  %v5749_v39 = vld [vmem:[#allocation10 + $0x50] sm:$0xff]  ;;  %v5760_v57 = vld [vmem:[#allocation10 + $0xa8] sm:$0xff] }
 0x210   :  { %3441 = vmatpush.bf16.msrb.mxu0 %v5750_v27  ;;  %3488 = vmatpush.bf16.msrb.mxu1 %v5760_v57  ;;  %v2361_v51 = vmax.f32 %v2359_v19, %v2360_v43  ;;  %v5755_v43 = vld [vmem:[#allocation10 + $0x80] sm:$0xff] }
 0x211   :  { %v2339_v32 = vrot.slane %v2338_v10, 2  ;;  %v2208_v38 = vpop.f32.mrf.mxu0 }
 0x212   :  { %v2254_v48 = vpop.f32.mrf.mxu1  ;;  %v2161_v36 = vpop.f32.mrf.mxu3  ;;  %v2209_v53 = vadd.f32 %v2208_v38, %v2160_v46 }
 0x213   :  { %v2340_v44 = vmax.f32 %v2338_v10, %v2339_v32  ;;  %v2162_v2 = vadd.f32 %v7089_v41, %v2161_v36  ;;  %v7105_v0 = vadd.f32 %v2254_v48, %v2206_v37 }
 0x214   :  { %3442 = vmatpush.bf16.msrb.mxu0 %v5749_v39 }
 0x215   :  { %v2341_v42 = vrot.slane %v2340_v44, 1 }
 0x217   :  { %v2342_v58 = vmax.f32 %v2340_v44, %v2341_v42  ;;  %v5759_v44 = vld [vmem:[#allocation10 + $0xa0] sm:$0xff] }
 0x218   :  { %3443 = vmatpush.bf16.msrb.mxu0 %v5748_v15  ;;  %3489 = vmatpush.bf16.msrb.mxu1 %v5759_v44 }
 0x219   :  { %v2357_v25 = vsub.f32 %v1940_v17, %v2342_v58  ;;  %v2358_v40 = vsub.f32 %v1942_v61, %v2342_v58  ;;  %v2210_v9 = vpop.f32.mrf.mxu0  ;;  %v7103_v61 = vadd.f32 %v2252_v13, %v2204_v31 }
 0x21a   :  { %v2257_v24 = vpop.f32.mrf.mxu1  ;;  %v2211_v23 = vadd.f32 %v2210_v9, %v2162_v2  ;;  %v2164_v17 = vpop.f32.mrf.mxu3 }
 0x21b   :  { %v2446_v7 = vmul.f32 %v2358_v40, %v1599_v59  ;;  %v2445_v3 = vmul.f32 %v2357_v25, %v1597_v60  ;;  %v7107_v55 = vadd.f32 %v2257_v24, %v2209_v53  ;;  %v2366_v10 = vmax.f32 %v7103_v61, %v7105_v0  ;;  %v5747_v59 = vld [vmem:[#allocation10 + $0x40] sm:$0xff] }
 0x21c   :  { %v2165_v13 = vadd.f32 %v7089_v41, %v2164_v17  ;;  %v2362_v25 = vrot.slane %v2361_v51, 2  ;;  %3444 = vmatpush.bf16.msrb.mxu0 %v5747_v59  ;;  %3490 = vmatpush.bf16.msrb.mxu1 %v5758_v20 }
 0x21d   :  { %v2454_v54 = vpack.c.bf16 %v2446_v7, %v2445_v3  ;;  %v2367_v22 = vrot.slane %v2366_v10, 4 }
 0x21e   :  { %v2363_v50 = vmax.f32 %v2361_v51, %v2362_v25 }
 0x21f   :  { %2562 = vmatmul.bf16.gmra.mxu2 %v2454_v54  ;;  %v2368_v54 = vmax.f32 %v2366_v10, %v2367_v22 }
 0x220   :  { %3491 = vmatpush.bf16.msrb.mxu1 %v5757_v35  ;;  %v2364_v29 = vrot.slane %v2363_v50, 1 }
 0x221   :  { %v2213_v14 = vpop.f32.mrf.mxu0  ;;  %v2369_v56 = vrot.slane %v2368_v54, 2 }
 0x222   :  { %v2259_v28 = vpop.f32.mrf.mxu1  ;;  %v2166_v5 = vpop.f32.mrf.mxu3  ;;  %v2214_v7 = vadd.f32 %v2213_v14, %v2165_v13 }
 0x223   :  { %v7109_v11 = vadd.f32 %v2259_v28, %v2211_v23  ;;  %v2167_v58 = vadd.f32 %v7089_v41, %v2166_v5  ;;  %v5756_v28 = vld [vmem:[#allocation10 + $0x88] sm:$0xff]  ;;  %v2370_v19 = vmax.f32 %v2368_v54, %v2369_v56 }
 0x224   :  { %3492 = vmatpush.bf16.msrb.mxu1 %v5756_v28 }
 0x225   :  { %v2373_v26 = vmax.f32 %v7107_v55, %v7109_v11 }
 0x227   :  { %v2374_v40 = vrot.slane %v2373_v26, 4 }
 0x228   :  { %3493 = vmatpush.bf16.msrb.mxu1 %v5755_v43 }
 0x229   :  { %v2215_v60 = vpop.f32.mrf.mxu0  ;;  %v2375_v47 = vmax.f32 %v2373_v26, %v2374_v40  ;;  %v2371_v26 = vrot.slane %v2370_v19, 1 }
 0x22a   :  { %v2262_v62 = vpop.f32.mrf.mxu1  ;;  %v2216_v3 = vadd.f32 %v2215_v60, %v2167_v58  ;;  %v2169_v36 = vpop.f32.mrf.mxu3 }
 0x22b   :  { %v7120_v48 = vadd.f32 %v2262_v62, %v2214_v7  ;;  %v2376_v46 = vrot.slane %v2375_v47, 2  ;;  %v2170_v40 = vadd.f32 %v7089_v41, %v2169_v36 }
 0x22d   :  { %v2377_v45 = vmax.f32 %v2375_v47, %v2376_v46 }
 0x22f   :  { %v2378_v5 = vrot.slane %v2377_v45, 1 }
 0x231   :  { %v2218_v2 = vpop.f32.mrf.mxu0 }
 0x232   :  { %v2528_v30 = vpop.f32.mrf.mxu2  ;;  %v2264_v8 = vpop.f32.mrf.mxu1 }
 0x233   :  { %v5411_v52 = vmul.f32 -1.442695, %v2528_v30  ;;  %v7122_v12 = vadd.f32 %v2264_v8, %v2216_v3  ;;  %v7130_v30 = vmax.f32 %v2363_v50, %v2364_v29  ;;  %v2171_v44 = vpop.f32.mrf.mxu3  ;;  %v7153_v3 = vmax.f32 %v2370_v19, %v2371_v26 }
 0x234   :  { %v2219_v50 = vadd.f32 %v2218_v2, %v2170_v40 }
 0x235   :  { %5840 = vpow2.f32 %v5411_v52  ;;  %v2380_v24 = vmax.f32 %v7120_v48, %v7122_v12  ;;  %v2416_v13 = vsub.f32 %v7097_v63, %v7130_v30  ;;  %v7156_v63 = vmax.f32 %v2377_v45, %v2378_v5 }
 0x236   :  { %v2417_v28 = vsub.f32 %v7103_v61, %v7153_v3  ;;  %v2418_v19 = vsub.f32 %v7105_v0, %v7153_v3 }
 0x237   :  { %v2381_v9 = vrot.slane %v2380_v24, 4  ;;  %v2419_v61 = vsub.f32 %v7107_v55, %v7156_v63  ;;  %v2420_v43 = vsub.f32 %v7109_v11, %v7156_v63 }
 0x239   :  { %v2382_v31 = vmax.f32 %v2380_v24, %v2381_v9  ;;  %v2220_v60 = vpop.f32.mrf.mxu0 }
 0x23a   :  { %v2530_v32 = vpop.f32.mrf.mxu2  ;;  %v2267_v37 = vpop.f32.mrf.mxu1 }
 0x23b   :  { %v5841_v21 = vpop.eup %5840  ;;  %v5412_v1 = vmul.f32 -1.442695, %v2530_v32  ;;  %v2383_v15 = vrot.slane %v2382_v31, 2  ;;  %v7161_v56 = vadd.f32 %v2267_v37, %v2219_v50 }
 0x23c   :  { %v7115_v42 = vadd.f32 1.0, %v5841_v21  ;;  %v2415_v21 = vsub.f32 %v7095_v18, %v7130_v30  ;;  %v2172_v18 = vadd.f32 %v7089_v41, %v2171_v44 }
 0x23d   :  { %5842 = vpow2.f32 %v5412_v1  ;;  %v2384_v25 = vmax.f32 %v2382_v31, %v2383_v15 }
 0x23e   :  { %5844 = vrcp.f32 %v7115_v42  ;;  %v2643_v53 = vand.u32 2147483648, %v7115_v42  ;;  %vm2637_vm4 = vweird.f32 %v7115_v42  ;;  %v2641_v14 = vand.u32 2147483647, %v7115_v42 }
 0x240   :  { %v2644_v1 = vor.u32 1.1754944e-38, %v2643_v53  ;;  %vm2642_vm6 = vcmp.eq.f32.partialorder %v2641_v14, 8.507059e+37 }
 0x241   :  { %v2223_v14 = vpop.f32.mrf.mxu0 }
 0x242   :  { %v2533_v38 = vpop.f32.mrf.mxu2  ;;  %v2269_v8 = vpop.f32.mrf.mxu1 }
 0x243   :  { %v5843_v16 = vpop.eup %5842  ;;  %v5413_v6 = vmul.f32 -1.442695, %v2533_v38  ;;  %v2221_v38 = vadd.f32 %v2220_v60, %v2172_v18 }
 0x244   :  { %v5845_v49 = vpop.eup %5844  ;;  %v7126_v33 = vadd.f32 1.0, %v5843_v16 }
 0x245   :  { %v2633_v4 = vmul.f32 %v5845_v49, %v7115_v42  ;;  %5846 = vpow2.f32 %v5413_v6  ;;  %vm2638_vm3 = vweird.f32 %v5845_v49  ;;  %v5746_v42 = vld [vmem:[#allocation10 + $0x38] sm:$0xff]  ;;  %v7163_v9 = vadd.f32 %v2269_v8, %v2221_v38 }
 0x246   :  { %5848 = vrcp.f32 %v7126_v33  ;;  %vm7135_vm5 = vmor %vm2637_vm4, %vm2638_vm3  ;;  %v2658_v22 = vand.u32 2147483648, %v7126_v33  ;;  %3388 = vmatpush.bf16.msrb.mxu3 %v5746_v42  ;;  %v2656_v7 = vand.u32 2147483647, %v7126_v33  ;;  %vm2652_vm9 = vweird.f32 %v7126_v33 }
 0x247   :  { %v2634_v34 = vsub.f32 1.0, %v2633_v4  ;;  %v2385_v4 = vrot.slane %v2384_v25, 1  ;;  %v2387_v45 = vmax.f32 %v7161_v56, %v7163_v9 }
 0x248   :  { %v2659_v24 = vor.u32 1.1754944e-38, %v2658_v22  ;;  %vm2657_vm11 = vcmp.eq.f32.partialorder %v2656_v7, 8.507059e+37 }
 0x249   :  { %v2635_v27 = vmul.f32 %v5845_v49, %v2634_v34  ;;  %v2388_v62 = vrot.slane %v2387_v45, 4 }
 0x24a   :  { %v2535_v23 = vpop.f32.mrf.mxu2  ;;  %v7196_v44 = vpop.f32.mrf.mxu1 }
 0x24b   :  { %v5847_v52 = vpop.eup %5846  ;;  %v2636_v17 = vadd.f32 %v5845_v49, %v2635_v27  ;;  %v5414_v39 = vmul.f32 -1.442695, %v2535_v23  ;;  %v2174_v27 = vpop.f32.mrf.mxu3  ;;  %v7176_v23 = vmax.f32 %v2384_v25, %v2385_v4  ;;  %v2389_v22 = vmax.f32 %v2387_v45, %v2388_v62  ;;  %v5745_v25 = vld [vmem:[#allocation10 + $0x30] sm:$0xff] }
 0x24c   :  { %v5849_v57 = vpop.eup %5848  ;;  %v7139_v10 = vadd.f32 1.0, %v5847_v52  ;;  %3389 = vmatpush.bf16.msrb.mxu3 %v5745_v25 }
 0x24d   :  { %v2640_v51 = vsel %vm7135_vm5, %v5845_v49, %v2636_v17  ;;  %v2648_v32 = vmul.f32 %v5849_v57, %v7126_v33  ;;  %5850 = vpow2.f32 %v5414_v39  ;;  %vm2653_vm8 = vweird.f32 %v5849_v57 }
 0x24e   :  { %5852 = vrcp.f32 %v7139_v10  ;;  %v2645_v59 = vsel %vm2642_vm6, %v2644_v1, %v2640_v51  ;;  %vm2654_vm10 = vmor %vm2652_vm9, %vm2653_vm8  ;;  %v2671_v2 = vand.u32 2147483647, %v7139_v10  ;;  %v2673_v53 = vand.u32 2147483648, %v7139_v10 }
 0x24f   :  { %v2649_v58 = vsub.f32 1.0, %v2648_v32  ;;  %v2872_v16 = vmul.f32 %v2645_v59, %v2415_v21  ;;  %vm2667_vm13 = vweird.f32 %v7139_v10  ;;  %v2421_v42 = vsub.f32 %v7120_v48, %v7176_v23 }
 0x250   :  { %vm7186_vm14 = vcmp.eq.f32.partialorder %v2671_v2, 8.507059e+37  ;;  %v2674_v21 = vor.u32 1.1754944e-38, %v2673_v53 }
 0x251   :  { %v2650_v20 = vmul.f32 %v5849_v57, %v2649_v58  ;;  %v7171_v37 = vadd.f32 %v2872_v16, %v7130_v30 }
 0x252   :  { %v2538_v54 = vpop.f32.mrf.mxu2 }
 0x253   :  { %v5851_v47 = vpop.eup %5850  ;;  %v2651_v6 = vadd.f32 %v5849_v57, %v2650_v20  ;;  %v5415_v35 = vmul.f32 -1.442695, %v2538_v54  ;;  %v2904_v26 = vpack.c.bf16 %v7171_v37, %v7171_v37  ;;  %v2176_v8 = vpop.f32.mrf.mxu3  ;;  %v2984_v54 = vrot.slane %v7171_v37, 1 }
 0x254   :  { %v5853_v49 = vpop.eup %5852  ;;  %v7159_v36 = vadd.f32 1.0, %v5851_v47  ;;  %v2175_v47 = vadd.f32 %v7089_v41, %v2174_v27  ;;  %v2177_v62 = vadd.f32 %v7089_v41, %v2176_v8 }
 0x255   :  { %v2655_v33 = vsel %vm2654_vm10, %v5849_v57, %v2651_v6  ;;  %v2663_v29 = vmul.f32 %v5853_v49, %v7139_v10  ;;  %5854 = vpow2.f32 %v5415_v35  ;;  %vm2668_vm12 = vweird.f32 %v5853_v49 }
 0x256   :  { %v2660_v46 = vsel %vm2657_vm11, %v2659_v24, %v2655_v33  ;;  %5856 = vrcp.f32 %v7159_v36  ;;  %vm2669_vm15 = vmor %vm2667_vm13, %vm2668_vm12  ;;  %v2686_v1 = vand.u32 2147483647, %v7159_v36  ;;  %vm2682_vm1 = vweird.f32 %v7159_v36 }
 0x257   :  { %v2873_v34 = vmul.f32 %v2660_v46, %v2416_v13  ;;  %v2664_v31 = vsub.f32 1.0, %v2663_v29  ;;  %v2688_v59 = vand.u32 2147483648, %v7159_v36  ;;  %v3112_v20 = vunpack.c.l.b16 %v2904_v26  ;;  %v2274_v26 = vpop.f32.mrf.mxu1 }
 0x258   :  { %vm7215_vm2 = vcmp.eq.f32.partialorder %v2686_v1, 8.507059e+37  ;;  %v2390_v35 = vrot.slane %v2389_v22, 2  ;;  %v2920_v46 = vrot.slane %v7171_v37, 7  ;;  %v9146_v1 = vld [vmem:[#allocation32_spill] sm:$0xff] }
 0x259   :  { %v2665_v52 = vmul.f32 %v5853_v49, %v2664_v31  ;;  %v7183_v17 = vadd.f32 %v2873_v34, %v7130_v30  ;;  %v2689_v4 = vor.u32 1.1754944e-38, %v2688_v59 }
 0x25a   :  { %v2540_v57 = vpop.f32.mrf.mxu2 }
 0x25b   :  { %v5855_v15 = vpop.eup %5854  ;;  %v2666_v51 = vadd.f32 %v5853_v49, %v2665_v52  ;;  %v5416_v32 = vmul.f32 -1.442695, %v2540_v57  ;;  %v2905_v30 = vpack.c.bf16 %v7183_v17, %v7183_v17  ;;  %v2985_v50 = vrot.slane %v7183_v17, 1  ;;  %v220_v52 = vld [vmem:[%s9179_s24 + $0x50] sm:$0xff] }
 0x25c   :  { %v7198_v10 = vpop.eup %5856  ;;  %v7202_v5 = vadd.f32 1.0, %v5855_v15  ;;  %v2224_v57 = vadd.f32 %v2223_v14, %v2175_v47 }
 0x25d   :  { %v2670_v13 = vsel %vm2669_vm15, %v5853_v49, %v2666_v51  ;;  %v2678_v58 = vmul.f32 %v7198_v10, %v7159_v36  ;;  %5858 = vpow2.f32 %v5416_v32  ;;  %v3113_v7 = vunpack.c.l.b16 %v2905_v30  ;;  %v2225_v49 = vpop.f32.mrf.mxu0 }
 0x25e   :  { %v2675_v60 = vsel %vm7186_vm14, %v2674_v21, %v2670_v13  ;;  %5860 = vrcp.f32 %v7202_v5  ;;  %vm2683_vm3 = vweird.f32 %v7198_v10  ;;  %v2701_v33 = vand.u32 2147483647, %v7202_v5 }
 0x25f   :  { %v2874_v40 = vmul.f32 %v2675_v60, %v2417_v28  ;;  %v2679_v18 = vsub.f32 1.0, %v2678_v58  ;;  %v3128_v24 = vpack.c.b16 %v3113_v7, %v3112_v20  ;;  %v2703_v34 = vand.u32 2147483648, %v7202_v5  ;;  %vm2684_vm4 = vmor %vm2682_vm1, %vm2683_vm3  ;;  %v7255_v60 = vpop.f32.mrf.mxu3 }
 0x260   :  { %v3014_v39 = vsel %vm628_vm7, %v2984_v54, %v2985_v50  ;;  %v2391_v51 = vmax.f32 %v2389_v22, %v2390_v35  ;;  %vm2697_vm5 = vweird.f32 %v7202_v5  ;;  %vm7247_vm6 = vcmp.eq.f32.partialorder %v2701_v33, 8.507059e+37 }
 0x261   :  { %v7221_v16 = vadd.f32 %v2874_v40, %v7153_v3  ;;  %v2680_v6 = vmul.f32 %v7198_v10, %v2679_v18  ;;  %3445 = vmatmul.bf16.vlgmr.msrb.gmra.mxu0 %v3128_v24  ;;  %v2921_v30 = vrot.slane %v7183_v17, 7  ;;  %v3032_v58 = vpack.c.bf16 %v3014_v39, %v3014_v39 }
 0x262   :  { %v2543_v29 = vpop.f32.mrf.mxu2  ;;  %v2704_v36 = vor.u32 1.1754944e-38, %v2703_v34  ;;  %v7260_v25 = vadd.f32 %v7196_v44, %v2224_v57  ;;  %v2226_v40 = vadd.f32 %v2225_v49, %v2177_v62  ;;  %v2392_v20 = vrot.slane %v2391_v51, 1 }
 0x263   :  { %v5859_v2 = vpop.eup %5858  ;;  %v5417_v28 = vmul.f32 -1.442695, %v2543_v29  ;;  %v2986_v31 = vrot.slane %v7221_v16, 1  ;;  %v2681_v27 = vadd.f32 %v7198_v10, %v2680_v6  ;;  %v7275_v44 = vsel %vm563_vm0, %v2920_v46, %v2921_v30 }
 0x264   :  { %v5861_v53 = vpop.eup %5860  ;;  %v7230_v45 = vadd.f32 1.0, %v5859_v2  ;;  %v7267_v47 = vadd.f32 %v2274_v26, %v2226_v40  ;;  %v3160_v35 = vunpack.c.l.b16 %v3032_v58  ;;  %v2422_v39 = vsub.f32 %v7122_v12, %v7176_v23 }
 0x265   :  { %v2693_v15 = vmul.f32 %v5861_v53, %v7202_v5  ;;  %5862 = vpow2.f32 %v5417_v28  ;;  %v3013_v32 = vsel %vm628_vm7, %v2985_v50, %v2986_v31  ;;  %v2685_v22 = vsel %vm2684_vm4, %v7198_v10, %v2681_v27  ;;  %v7277_v0 = vpop.f32.mrf.mxu0 }
 0x266   :  { %5864 = vrcp.f32 %v7230_v45  ;;  %v3017_v13 = vmul.f32 %v9146_v1, %v3013_v32  ;;  %v2690_v59 = vsel %vm7215_vm2, %v2689_v4, %v2685_v22  ;;  %vm2698_vm8 = vweird.f32 %v5861_v53 }
 0x267   :  { %v2694_v21 = vsub.f32 1.0, %v2693_v15  ;;  %v2875_v50 = vmul.f32 %v2690_v59, %v2418_v19  ;;  %v2906_v10 = vpack.c.bf16 %v7221_v16, %v7221_v16  ;;  %vm2699_vm9 = vmor %vm2697_vm5, %vm2698_vm8  ;;  %v2718_v4 = vand.u32 2147483648, %v7230_v45 }
 0x268   :  { %v3033_v7 = vpack.c.bf16 %v3017_v13, %v3017_v13  ;;  %v2394_v2 = vmax.f32 %v7260_v25, %v7267_v47  ;;  %v7294_v27 = vmax.f32 %v2391_v51, %v2392_v20  ;;  %vm2712_vm10 = vweird.f32 %v7230_v45  ;;  %v7305_v51 = vpop.f32.mrf.mxu1 }
 0x269   :  { %v2695_v18 = vmul.f32 %v5861_v53, %v2694_v21  ;;  %v7288_v29 = vadd.f32 %v2875_v50, %v7153_v3  ;;  %v5744_v3 = vld [vmem:[#allocation10 + $0x28] sm:$0xff]  ;;  %v2719_v32 = vor.u32 1.1754944e-38, %v2718_v4  ;;  %v3114_v26 = vunpack.c.l.b16 %v2906_v10 }
 0x26a   :  { %v2545_v8 = vpop.f32.mrf.mxu2  ;;  %v3161_v49 = vunpack.c.l.b16 %v3033_v7  ;;  %3390 = vmatpush.bf16.msrb.mxu3 %v5744_v3  ;;  %v2395_v14 = vrot.slane %v2394_v2, 4  ;;  %v2423_v13 = vsub.f32 %v7161_v56, %v7294_v27  ;;  %v2424_v59 = vsub.f32 %v7163_v9, %v7294_v27 }
 0x26b   :  { %v5863_v38 = vpop.eup %5862  ;;  %v2696_v6 = vadd.f32 %v5861_v53, %v2695_v18  ;;  %v5418_v24 = vmul.f32 -1.442695, %v2545_v8  ;;  %v2907_v15 = vpack.c.bf16 %v7288_v29, %v7288_v29  ;;  %v2987_v22 = vrot.slane %v7288_v29, 1 }
 0x26c   :  { %v7279_v19 = vpop.eup %5864  ;;  %v7285_v33 = vadd.f32 1.0, %v5863_v38  ;;  %v3176_v62 = vpack.c.b16 %v3161_v49, %v3160_v35  ;;  %v2396_v18 = vmax.f32 %v2394_v2, %v2395_v14  ;;  %v2180_v2 = vadd.f32 %v7089_v41, %v7255_v60 }
 0x26d   :  { %v2700_v34 = vsel %vm2699_vm9, %v5861_v53, %v2696_v6  ;;  %v2708_v28 = vmul.f32 %v7279_v19, %v7230_v45  ;;  %5866 = vpow2.f32 %v5418_v24  ;;  %v2716_v53 = vand.u32 2147483647, %v7230_v45 }
 0x26e   :  { %v2705_v5 = vsel %vm7247_vm6, %v2704_v36, %v2700_v34  ;;  %5868 = vrcp.f32 %v7285_v33  ;;  %3494 = vmatmul.bf16.vlgmr.msrb.gmra.mxu1 %v3176_v62  ;;  %v3115_v58 = vunpack.c.l.b16 %v2907_v15  ;;  %v2181_v36 = vpop.f32.mrf.mxu3  ;;  %vm2713_vm11 = vweird.f32 %v7279_v19  ;;  %v2230_v34 = vpop.f32.mrf.mxu0 }
 0x26f   :  { %v2709_v57 = vsub.f32 1.0, %v2708_v28  ;;  %v2876_v21 = vmul.f32 %v2705_v5, %v2419_v61  ;;  %v2731_v20 = vand.u32 2147483647, %v7285_v33  ;;  %v2733_v38 = vand.u32 2147483648, %v7285_v33  ;;  %vm2714_vm13 = vmor %vm2712_vm10, %vm2713_vm11 }
 0x270   :  { %v3129_v7 = vpack.c.b16 %v3115_v58, %v3114_v26  ;;  %vm7326_vm12 = vcmp.eq.f32.partialorder %v2716_v53, 8.507059e+37  ;;  %v3012_v4 = vsel %vm628_vm7, %v2986_v31, %v2987_v22  ;;  %vm2727_vm14 = vweird.f32 %v7285_v33  ;;  %v9151_v53 = vld [vmem:[#allocation34_spill] sm:$0xff]  ;;  %v2279_v58 = vpop.f32.mrf.mxu1 }
 0x271   :  { %v2710_v1 = vmul.f32 %v7279_v19, %v2709_v57  ;;  %v7318_v55 = vadd.f32 %v2876_v21, %v7156_v63  ;;  %v2397_v28 = vrot.slane %v2396_v18, 2  ;;  %v2182_v5 = vadd.f32 %v7089_v41, %v2181_v36 }
 0x272   :  { %v2548_v40 = vpop.f32.mrf.mxu2  ;;  %3450 = vmatmul.bf16.gmra.mxu0 %v3129_v7  ;;  %vm7344_vm15 = vcmp.eq.f32.partialorder %v2731_v20, 8.507059e+37  ;;  %v2734_v60 = vor.u32 1.1754944e-38, %v2733_v38  ;;  %v3034_v15 = vpack.c.bf16 %v3012_v4, %v3012_v4 }
 0x273   :  { %v5867_v61 = vpop.eup %5866  ;;  %v5419_v8 = vmul.f32 -1.442695, %v2548_v40  ;;  %v2711_v50 = vadd.f32 %v7279_v19, %v2710_v1  ;;  %v2988_v24 = vrot.slane %v7318_v55, 1  ;;  %v2229_v1 = vadd.f32 %v7277_v0, %v2180_v2 }
 0x274   :  { %v5869_v10 = vpop.eup %5868  ;;  %v7323_v6 = vadd.f32 1.0, %v5867_v61  ;;  %v2231_v61 = vadd.f32 %v2230_v34, %v2182_v5  ;;  %v3162_v34 = vunpack.c.l.b16 %v3034_v15 }
 0x275   :  { %v2723_v49 = vmul.f32 %v5869_v10, %v7285_v33  ;;  %5870 = vpow2.f32 %v5419_v8  ;;  %v3011_v31 = vsel %vm628_vm7, %v2987_v22, %v2988_v24  ;;  %v2715_v45 = vsel %vm2714_vm13, %v7279_v19, %v2711_v50 }
 0x276   :  { %5872 = vrcp.f32 %v7323_v6  ;;  %v3019_v62 = vmul.f32 %v9151_v53, %v3011_v31  ;;  %v2720_v26 = vsel %vm7326_vm12, %v2719_v32, %v2715_v45  ;;  %vm2728_vm1 = vweird.f32 %v5869_v10  ;;  %v2184_v11 = vpop.f32.mrf.mxu3 }
 0x277   :  { %v2724_v3 = vsub.f32 1.0, %v2723_v49  ;;  %v2877_v21 = vmul.f32 %v2720_v26, %v2420_v43  ;;  %v2398_v22 = vmax.f32 %v2396_v18, %v2397_v28  ;;  %v2908_v19 = vpack.c.bf16 %v7318_v55, %v7318_v55  ;;  %vm2729_vm2 = vmor %vm2727_vm14, %vm2728_vm1  ;;  %v5743_v28 = vld [vmem:[#allocation10 + $0x20] sm:$0xff] }
 0x278   :  { %v3035_v40 = vpack.c.bf16 %v3019_v62, %v3019_v62  ;;  %v2748_v32 = vand.u32 2147483648, %v7323_v6  ;;  %v7374_v38 = vadd.f32 %v7305_v51, %v2229_v1  ;;  %v7376_v35 = vadd.f32 %v2279_v58, %v2231_v61  ;;  %3391 = vmatpush.bf16.msrb.mxu3 %v5743_v28  ;;  %v2282_v61 = vpop.f32.mrf.mxu1 }
 0x279   :  { %v2725_v14 = vmul.f32 %v5869_v10, %v2724_v3  ;;  %v7364_v50 = vadd.f32 %v2877_v21, %v7156_v63  ;;  %v2746_v4 = vand.u32 2147483647, %v7323_v6  ;;  %v2399_v33 = vrot.slane %v2398_v22, 1  ;;  %v2233_v3 = vpop.f32.mrf.mxu0 }
 0x27a   :  { %v2550_v36 = vpop.f32.mrf.mxu2  ;;  %v3163_v18 = vunpack.c.l.b16 %v3035_v40  ;;  %vm2742_vm3 = vweird.f32 %v7323_v6  ;;  %v2749_v51 = vor.u32 1.1754944e-38, %v2748_v32  ;;  %v3116_v53 = vunpack.c.l.b16 %v2908_v19 }
 0x27b   :  { %v5871_v20 = vpop.eup %5870  ;;  %v2726_v7 = vadd.f32 %v5869_v10, %v2725_v14  ;;  %v5420_v8 = vmul.f32 -1.442695, %v2550_v36  ;;  %v2909_v45 = vpack.c.bf16 %v7364_v50, %v7364_v50  ;;  %v2401_v57 = vmax.f32 %v7374_v38, %v7376_v35 }
 0x27c   :  { %v7366_v43 = vpop.eup %5872  ;;  %v7371_v0 = vadd.f32 1.0, %v5871_v20  ;;  %v3177_v31 = vpack.c.b16 %v3163_v18, %v3162_v34  ;;  %v2989_v15 = vrot.slane %v7364_v50, 1  ;;  %vm7395_vm4 = vcmp.eq.f32.partialorder %v2746_v4, 8.507059e+37 }
 0x27d   :  { %v2730_v49 = vsel %vm2729_vm2, %v5869_v10, %v2726_v7  ;;  %v2738_v63 = vmul.f32 %v7366_v43, %v7323_v6  ;;  %5874 = vpow2.f32 %v5420_v8  ;;  %v2922_v10 = vrot.slane %v7221_v16, 7 }
 0x27e   :  { %v2735_v2 = vsel %vm7344_vm15, %v2734_v60, %v2730_v49  ;;  %5876 = vrcp.f32 %v7371_v0  ;;  %vm2743_vm5 = vweird.f32 %v7366_v43  ;;  %v7400_v14 = vmax.f32 %v2398_v22, %v2399_v33  ;;  %3499 = vmatmul.bf16.gmra.mxu1 %v3177_v31  ;;  %v2186_v4 = vpop.f32.mrf.mxu3 }
 0x27f   :  { %v2739_v5 = vsub.f32 1.0, %v2738_v63  ;;  %v2878_v62 = vmul.f32 %v2735_v2, %v2421_v42  ;;  %v3117_v21 = vunpack.c.l.b16 %v2909_v45  ;;  %v2402_v58 = vrot.slane %v2401_v57, 4  ;;  %vm2744_vm8 = vmor %vm2742_vm3, %vm2743_vm5  ;;  %v9156_v45 = vld [vmem:[#allocation36_spill] sm:$0xff] }
 0x280   :  { %v2761_v40 = vand.u32 2147483647, %v7371_v0  ;;  %v3010_v42 = vsel %vm628_vm7, %v2988_v24, %v2989_v15  ;;  %v2763_v49 = vand.u32 2147483648, %v7371_v0  ;;  %vm2757_vm6 = vweird.f32 %v7371_v0 }
 0x281   :  { %v2740_v60 = vmul.f32 %v7366_v43, %v2739_v5  ;;  %v7404_v48 = vadd.f32 %v2878_v62, %v7176_v23  ;;  %v3130_v7 = vpack.c.b16 %v3117_v21, %v3116_v53  ;;  %v2403_v32 = vmax.f32 %v2401_v57, %v2402_v58  ;;  %v2235_v21 = vpop.f32.mrf.mxu0 }
 0x282   :  { %v2553_v1 = vpop.f32.mrf.mxu2  ;;  %v2425_v24 = vsub.f32 %v7260_v25, %v7400_v14  ;;  %v2185_v2 = vadd.f32 %v7089_v41, %v2184_v11  ;;  %v3036_v5 = vpack.c.bf16 %v3010_v42, %v3010_v42  ;;  %vm7429_vm9 = vcmp.eq.f32.partialorder %v2761_v40, 8.507059e+37 }
 0x283   :  { %v5875_v36 = vpop.eup %5874  ;;  %v5421_v19 = vmul.f32 -1.442695, %v2553_v1  ;;  %v2741_v8 = vadd.f32 %v7366_v43, %v2740_v60  ;;  %v2990_v63 = vrot.slane %v7404_v48, 1  ;;  %3455 = vmatmul.bf16.gmra.mxu0 %v3130_v7  ;;  %v2404_v34 = vrot.slane %v2403_v32, 2 }
 0x284   :  { %v5877_v20 = vpop.eup %5876  ;;  %v7410_v22 = vadd.f32 1.0, %v5875_v36  ;;  %v2187_v57 = vadd.f32 %v7089_v41, %v2186_v4  ;;  %v2764_v60 = vor.u32 1.1754944e-38, %v2763_v49  ;;  %v2234_v40 = vadd.f32 %v2233_v3, %v2185_v2  ;;  %v2284_v49 = vpop.f32.mrf.mxu1  ;;  %v5742_v2 = vld [vmem:[#allocation10 + $0x18] sm:$0xff] }
 0x285   :  { %v2753_v18 = vmul.f32 %v5877_v20, %v7371_v0  ;;  %5878 = vpow2.f32 %v5421_v19  ;;  %v3009_v28 = vsel %vm628_vm7, %v2989_v15, %v2990_v63  ;;  %v2745_v11 = vsel %vm2744_vm8, %v7366_v43, %v2741_v8  ;;  %3392 = vmatpush.bf16.msrb.mxu3 %v5742_v2 }
 0x286   :  { %5880 = vrcp.f32 %v7410_v22  ;;  %v3021_v53 = vmul.f32 %v9156_v45, %v3009_v28  ;;  %vm2758_vm10 = vweird.f32 %v5877_v20  ;;  %v2750_v62 = vsel %vm7395_vm4, %v2749_v51, %v2745_v11 }
 0x287   :  { %v2754_v33 = vsub.f32 1.0, %v2753_v18  ;;  %v2776_v15 = vand.u32 2147483647, %v7410_v22  ;;  %v2879_v36 = vmul.f32 %v2750_v62, %v2422_v39  ;;  %v2405_v41 = vmax.f32 %v2403_v32, %v2404_v34  ;;  %vm2759_vm11 = vmor %vm2757_vm6, %vm2758_vm10 }
 0x288   :  { %v3037_v58 = vpack.c.bf16 %v3021_v53, %v3021_v53  ;;  %v3164_v7 = vunpack.c.l.b16 %v3036_v5  ;;  %v2236_v12 = vadd.f32 %v2235_v21, %v2187_v57  ;;  %v2910_v32 = vpack.c.bf16 %v7404_v48, %v7404_v48 }
 0x289   :  { %v2755_v6 = vmul.f32 %v5877_v20, %v2754_v33  ;;  %v7450_v18 = vadd.f32 %v2879_v36, %v7176_v23  ;;  %v2426_v4 = vsub.f32 %v7267_v47, %v7400_v14  ;;  %v7461_v23 = vadd.f32 %v2282_v61, %v2234_v40 }
 0x28a   :  { %v2555_v1 = vpop.f32.mrf.mxu2  ;;  %v3165_v26 = vunpack.c.l.b16 %v3037_v58  ;;  %vm2772_vm12 = vweird.f32 %v7410_v22  ;;  %v2778_v33 = vand.u32 2147483648, %v7410_v22  ;;  %vm7465_vm13 = vcmp.eq.f32.partialorder %v2776_v15, 8.507059e+37 }
 0x28b   :  { %v5879_v19 = vpop.eup %5878  ;;  %v2756_v43 = vadd.f32 %v5877_v20, %v2755_v6  ;;  %v5422_v42 = vmul.f32 -1.442695, %v2555_v1  ;;  %v2911_v5 = vpack.c.bf16 %v7450_v18, %v7450_v18  ;;  %v7471_v31 = vadd.f32 %v2284_v49, %v2236_v12  ;;  %v9161_v49 = vld [vmem:[#allocation37_spill] sm:$0xff] }
 0x28c   :  { %v7442_v8 = vpop.eup %5880  ;;  %v7447_v51 = vadd.f32 1.0, %v5879_v19  ;;  %v3178_v34 = vpack.c.b16 %v3165_v26, %v3164_v7  ;;  %v2406_v53 = vrot.slane %v2405_v41, 1  ;;  %v3118_v11 = vunpack.c.l.b16 %v2910_v32 }
 0x28d   :  { %v2760_v39 = vsel %vm2759_vm11, %v5877_v20, %v2756_v43  ;;  %v2768_v3 = vmul.f32 %v7442_v8, %v7410_v22  ;;  %5882 = vpow2.f32 %v5422_v42  ;;  %vm2773_vm14 = vweird.f32 %v7442_v8 }
 0x28e   :  { %v2765_v0 = vsel %vm7429_vm9, %v2764_v60, %v2760_v39  ;;  %5884 = vrcp.f32 %v7447_v51  ;;  %3504 = vmatmul.bf16.gmra.mxu1 %v3178_v34  ;;  %v3119_v57 = vunpack.c.l.b16 %v2911_v5  ;;  %v2408_v60 = vmax.f32 %v7461_v23, %v7471_v31  ;;  %vm2774_vm15 = vmor %vm2772_vm12, %vm2773_vm14 }
 0x28f   :  { %v2769_v20 = vsub.f32 1.0, %v2768_v3  ;;  %v2880_v61 = vmul.f32 %v2765_v0, %v2423_v13  ;;  %v2991_v21 = vrot.slane %v7450_v18, 1  ;;  %v2791_v13 = vand.u32 2147483647, %v7447_v51 }
 0x290   :  { %v2949_v58 = vsel %vm563_vm0, %v2921_v30, %v2922_v10  ;;  %v3131_v19 = vpack.c.b16 %v3119_v57, %v3118_v11  ;;  %v2409_v43 = vrot.slane %v2408_v60, 4  ;;  %v2793_v26 = vand.u32 2147483648, %v7447_v51 }
 0x291   :  { %v2770_v45 = vmul.f32 %v7442_v8, %v2769_v20  ;;  %v7481_v62 = vadd.f32 %v2880_v61, %v7294_v27  ;;  %v3008_v17 = vsel %vm628_vm7, %v2990_v63, %v2991_v21  ;;  %v2779_v12 = vor.u32 1.1754944e-38, %v2778_v33 }
 0x292   :  { %v2558_v6 = vpop.f32.mrf.mxu2  ;;  %v7502_v30 = vmax.f32 %v2405_v41, %v2406_v53  ;;  %v2923_v39 = vrot.slane %v7288_v29, 7  ;;  %vm2787_vm1 = vweird.f32 %v7447_v51  ;;  %v2410_v32 = vmax.f32 %v2408_v60, %v2409_v43 }
 0x293   :  { %v5883_v15 = vpop.eup %5882  ;;  %v2771_v56 = vadd.f32 %v7442_v8, %v2770_v45  ;;  %v5423_v1 = vmul.f32 -1.442695, %v2558_v6  ;;  %v2992_v42 = vrot.slane %v7481_v62, 1  ;;  %3460 = vmatmul.bf16.gmra.mxu0 %v3131_v19  ;;  %vm7514_vm2 = vcmp.eq.f32.partialorder %v2791_v13, 8.507059e+37  ;;  %v5741_v19 = vld [vmem:[#allocation10 + $0x10] sm:$0xff] }
 0x294   :  { %v5885_v36 = vpop.eup %5884  ;;  %v7492_v40 = vadd.f32 1.0, %v5883_v15  ;;  %v3038_v2 = vpack.c.bf16 %v3008_v17, %v3008_v17  ;;  %v2794_v33 = vor.u32 1.1754944e-38, %v2793_v26  ;;  %v2427_v5 = vsub.f32 %v7374_v38, %v7502_v30  ;;  %3393 = vmatpush.bf16.msrb.mxu3 %v5741_v19 }
 0x295   :  { %v2783_v7 = vmul.f32 %v5885_v36, %v7447_v51  ;;  %5886 = vpow2.f32 %v5423_v1  ;;  %v3007_v63 = vsel %vm628_vm7, %v2991_v21, %v2992_v42  ;;  %v2775_v20 = vsel %vm2774_vm15, %v7442_v8, %v2771_v56 }
 0x296   :  { %5888 = vrcp.f32 %v7492_v40  ;;  %v3023_v0 = vmul.f32 %v9161_v49, %v3007_v63  ;;  %vm2788_vm3 = vweird.f32 %v5885_v36  ;;  %v2780_v34 = vsel %vm7465_vm13, %v2779_v12, %v2775_v20 }
 0x297   :  { %v2784_v3 = vsub.f32 1.0, %v2783_v7  ;;  %v2881_v53 = vmul.f32 %v2780_v34, %v2424_v59  ;;  %v7533_v8 = vsel %vm563_vm0, %v2922_v10, %v2923_v39  ;;  %v2808_v57 = vand.u32 2147483648, %v7492_v40  ;;  %vm2789_vm4 = vmor %vm2787_vm1, %vm2788_vm3 }
 0x298   :  { %v3039_v45 = vpack.c.bf16 %v3023_v0, %v3023_v0  ;;  %v2411_v60 = vrot.slane %v2410_v32, 2  ;;  %v3166_v59 = vunpack.c.l.b16 %v3038_v2  ;;  %v2912_v13 = vpack.c.bf16 %v7481_v62, %v7481_v62 }
 0x299   :  { %v2785_v22 = vmul.f32 %v5885_v36, %v2784_v3  ;;  %v7541_v16 = vadd.f32 %v2881_v53, %v7294_v27  ;;  %vm2802_vm5 = vweird.f32 %v7492_v40  ;;  %v2428_v51 = vsub.f32 %v7376_v35, %v7502_v30  ;;  %v9162_v3 = vld [vmem:[#allocation29_spill] sm:$0xff] }
 0x29a   :  { %v2560_v61 = vpop.f32.mrf.mxu2  ;;  %v3167_v15 = vunpack.c.l.b16 %v3039_v45  ;;  %v2412_v43 = vmax.f32 %v2410_v32, %v2411_v60  ;;  %v2954_v63 = vmul.f32 %v9162_v3, %v2949_v58  ;;  %v2809_v49 = vor.u32 1.1754944e-38, %v2808_v57  ;;  %v5740_v45 = vld [vmem:[#allocation10 + $0x8] sm:$0xff] }
 0x29b   :  { %v5887_v11 = vpop.eup %5886  ;;  %v2786_v28 = vadd.f32 %v5885_v36, %v2785_v22  ;;  %v5424_v6 = vmul.f32 -1.442695, %v2560_v61  ;;  %v2913_v26 = vpack.c.bf16 %v7541_v16, %v7541_v16  ;;  %v2993_v12 = vrot.slane %v7541_v16, 1  ;;  %3394 = vmatpush.bf16.msrb.mxu3 %v5740_v45 }
 0x29c   :  { %v5889_v21 = vpop.eup %5888  ;;  %v7538_v9 = vadd.f32 1.0, %v5887_v11  ;;  %v3179_v7 = vpack.c.b16 %v3167_v15, %v3166_v59  ;;  %v3120_v0 = vunpack.c.l.b16 %v2912_v13  ;;  %v2413_v34 = vrot.slane %v2412_v43, 1 }
 0x29d   :  { %v2790_v56 = vsel %vm2789_vm4, %v5885_v36, %v2786_v28  ;;  %v2798_v10 = vmul.f32 %v5889_v21, %v7492_v40  ;;  %5890 = vpow2.f32 %v5424_v6  ;;  %v2806_v36 = vand.u32 2147483647, %v7492_v40 }
 0x29e   :  { %v2795_v1 = vsel %vm7514_vm2, %v2794_v33, %v2790_v56  ;;  %5892 = vrcp.f32 %v7538_v9  ;;  %vm2803_vm6 = vweird.f32 %v5889_v21  ;;  %v2821_v2 = vand.u32 2147483647, %v7538_v9  ;;  %3509 = vmatmul.bf16.gmra.mxu1 %v3179_v7  ;;  %v5739_v56 = vld [vmem:[#allocation10] sm:$0xff] }
 0x29f   :  { %v2799_v27 = vsub.f32 1.0, %v2798_v10  ;;  %v2882_v17 = vmul.f32 %v2795_v1, %v2425_v24  ;;  %v2823_v32 = vand.u32 2147483648, %v7538_v9  ;;  %v3121_v20 = vunpack.c.l.b16 %v2913_v26  ;;  %vm7572_vm8 = vmor %vm2802_vm5, %vm2803_vm6  ;;  %3395 = vmatpush.bf16.msrb.mxu3 %v5739_v56 }
 0x2a0   :  { %v3006_v58 = vsel %vm628_vm7, %v2992_v42, %v2993_v12  ;;  %v2970_v60 = vpack.c.bf16 %v2954_v63, %v2954_v63  ;;  %v2971_v40 = vpack.c.bf16 %v7533_v8, %v7533_v8  ;;  %vm2807_vm9 = vcmp.eq.f32.partialorder %v2806_v36, 8.507059e+37  ;;  %v9167_v8 = vld [vmem:[#allocation38_spill] sm:$0xff] }
 0x2a1   :  { %v2800_v41 = vmul.f32 %v5889_v21, %v2799_v27  ;;  %v7563_v33 = vadd.f32 %v2882_v17, %v7400_v14  ;;  %v3132_v57 = vpack.c.b16 %v3121_v20, %v3120_v0  ;;  %vm2817_vm10 = vweird.f32 %v7538_v9 }
 0x2a2   :  { %v2563_v22 = vpop.f32.mrf.mxu2  ;;  %v3040_v15 = vpack.c.bf16 %v3006_v58, %v3006_v58  ;;  %vm7586_vm11 = vcmp.eq.f32.partialorder %v2821_v2, 8.507059e+37  ;;  %v2824_v19 = vor.u32 1.1754944e-38, %v2823_v32  ;;  %v7592_v27 = vmax.f32 %v2412_v43, %v2413_v34 }
 0x2a3   :  { %v5891_v25 = vpop.eup %5890  ;;  %v2801_v24 = vadd.f32 %v5889_v21, %v2800_v41  ;;  %v5425_v61 = vmul.f32 -1.442695, %v2563_v22  ;;  %v2994_v6 = vrot.slane %v7563_v33, 1  ;;  %3465 = vmatmul.bf16.gmra.mxu0 %v3132_v57  ;;  %v7598_v17 = vunpack.c.l.b16 %v2970_v60 }
 0x2a4   :  { %v5893_v53 = vpop.eup %5892  ;;  %v7576_v28 = vadd.f32 1.0, %v5891_v25  ;;  %v7600_v3 = vunpack.c.l.b16 %v2971_v40  ;;  %v2914_v47 = vpack.c.bf16 %v7563_v33, %v7563_v33  ;;  %v2924_v11 = vrot.slane %v7318_v55, 7 }
 0x2a5   :  { %v2813_v59 = vmul.f32 %v5893_v53, %v7538_v9  ;;  %5894 = vpow2.f32 %v5425_v61  ;;  %v2805_v42 = vsel %vm7572_vm8, %v5889_v21, %v2801_v24  ;;  %v3005_v21 = vsel %vm628_vm7, %v2993_v12, %v2994_v6 }
 0x2a6   :  { %5896 = vrcp.f32 %v7576_v28  ;;  %v2810_v1 = vsel %vm2807_vm9, %v2809_v49, %v2805_v42  ;;  %v3025_v36 = vmul.f32 %v9167_v8, %v3005_v21  ;;  %vm2818_vm12 = vweird.f32 %v5893_v53  ;;  %v9170_v8 = vld [vmem:[#allocation33_spill] sm:$0xff] }
 0x2a7   :  { %v2814_v10 = vsub.f32 1.0, %v2813_v59  ;;  %v2883_v7 = vmul.f32 %v2810_v1, %v2426_v4  ;;  %v2836_v63 = vand.u32 2147483647, %v7576_v28  ;;  %v3168_v49 = vunpack.c.l.b16 %v3040_v15  ;;  %vm2819_vm13 = vmor %vm2817_vm10, %vm2818_vm12 }
 0x2a8   :  { %v3041_v41 = vpack.c.bf16 %v3025_v36, %v3025_v36  ;;  %v3081_v4 = vpack.c.b16 %v7600_v3, %v7598_v17  ;;  %v2925_v24 = vrot.slane %v7364_v50, 7  ;;  %v2429_v9 = vsub.f32 %v7461_v23, %v7592_v27  ;;  %v221_v3 = vld [vmem:[%s9179_s24 + $0x58] sm:$0xff] }
 0x2a9   :  { %v2815_v26 = vmul.f32 %v5893_v53, %v2814_v10  ;;  %v7604_v43 = vadd.f32 %v2883_v7, %v7400_v14  ;;  %v2838_v60 = vand.u32 2147483648, %v7576_v28  ;;  %vm2832_vm14 = vweird.f32 %v7576_v28 }
 0x2aa   :  { %v2565_v12 = vpop.f32.mrf.mxu2  ;;  %v3169_v25 = vunpack.c.l.b16 %v3041_v41  ;;  %v3122_v59 = vunpack.c.l.b16 %v2914_v47  ;;  %v2946_v40 = vsel %vm563_vm0, %v2924_v11, %v2925_v24  ;;  %vm7633_vm1 = vcmp.eq.f32.partialorder %v2836_v63, 8.507059e+37 }
 0x2ab   :  { %v5895_v0 = vpop.eup %5894  ;;  %v2816_v2 = vadd.f32 %v5893_v53, %v2815_v26  ;;  %v5426_v32 = vmul.f32 -1.442695, %v2565_v12  ;;  %v2915_v14 = vpack.c.bf16 %v7604_v43, %v7604_v43  ;;  %v2995_v58 = vrot.slane %v7604_v43, 1 }
 0x2ac   :  { %v5897_v20 = vpop.eup %5896  ;;  %v7613_v22 = vadd.f32 1.0, %v5895_v0  ;;  %v3180_v50 = vpack.c.b16 %v3169_v25, %v3168_v49  ;;  %v2947_v38 = vsel %vm563_vm0, %v2923_v39, %v2924_v11  ;;  %v2973_v7 = vpack.c.bf16 %v2946_v40, %v2946_v40 }
 0x2ad   :  { %v2820_v34 = vsel %vm2819_vm13, %v5893_v53, %v2816_v2  ;;  %v2828_v61 = vmul.f32 %v5897_v20, %v7576_v28  ;;  %5898 = vpow2.f32 %v5426_v32  ;;  %v3123_v53 = vunpack.c.l.b16 %v2915_v14 }
 0x2ae   :  { %v2825_v45 = vsel %vm7586_vm11, %v2824_v19, %v2820_v34  ;;  %5900 = vrcp.f32 %v7613_v22  ;;  %vm2833_vm15 = vweird.f32 %v5897_v20  ;;  %v3004_v55 = vsel %vm628_vm7, %v2994_v6, %v2995_v58  ;;  %3514 = vmatmul.bf16.gmra.mxu1 %v3180_v50 }
 0x2af   :  { %v2829_v57 = vsub.f32 1.0, %v2828_v61  ;;  %v2884_v42 = vmul.f32 %v2825_v45, %v2427_v5  ;;  %v2853_v10 = vand.u32 2147483648, %v7613_v22  ;;  %v3133_v13 = vpack.c.b16 %v3123_v53, %v3122_v59  ;;  %vm7650_vm2 = vmor %vm2832_vm14, %vm2833_vm15  ;;  %v9174_v53 = vld [vmem:[#allocation35_spill] sm:$0xff] }
 0x2b0   :  { %v2839_v19 = vor.u32 1.1754944e-38, %v2838_v60  ;;  %v2956_v36 = vmul.f32 %v9170_v8, %v2947_v38  ;;  %v3042_v12 = vpack.c.bf16 %v3004_v55, %v3004_v55  ;;  %v2926_v39 = vrot.slane %v7404_v48, 7 }
 0x2b1   :  { %v2830_v15 = vmul.f32 %v5897_v20, %v2829_v57  ;;  %v7641_v21 = vadd.f32 %v2884_v42, %v7502_v30  ;;  %v2927_v2 = vrot.slane %v7450_v18, 7  ;;  %vm2847_vm3 = vweird.f32 %v7613_v22  ;;  %v9173_v18 = vld [vmem:[#allocation39_spill] sm:$0xff] }
 0x2b2   :  { %v2972_v0 = vpack.c.bf16 %v2956_v36, %v2956_v36  ;;  %v2851_v28 = vand.u32 2147483647, %v7613_v22  ;;  %v2854_v32 = vor.u32 1.1754944e-38, %v2853_v10  ;;  %v7671_v25 = vunpack.c.l.b16 %v2973_v7 }
 0x2b3   :  { %v5899_v5 = vpop.eup %5898  ;;  %v2831_v1 = vadd.f32 %v5897_v20, %v2830_v15  ;;  %v2996_v29 = vrot.slane %v7641_v21, 1  ;;  %3470 = vmatmul.bf16.gmra.mxu0 %v3133_v13  ;;  %v3170_v34 = vunpack.c.l.b16 %v3042_v12  ;;  %v2944_v57 = vsel %vm563_vm0, %v2926_v39, %v2927_v2 }
 0x2b4   :  { %v5901_v26 = vpop.eup %5900  ;;  %v7654_v63 = vadd.f32 1.0, %v5899_v5  ;;  %v7677_v11 = vunpack.c.l.b16 %v2972_v0  ;;  %v2975_v42 = vpack.c.bf16 %v2944_v57, %v2944_v57  ;;  %v2916_v35 = vpack.c.bf16 %v7641_v21, %v7641_v21  ;;  %v9175_v0 = vld [vmem:[#allocation24_spill] sm:$0xff] }
 0x2b5   :  { %v2843_v41 = vmul.f32 %v5901_v26, %v7613_v22  ;;  %v2835_v49 = vsel %vm7650_vm2, %v5897_v20, %v2831_v1  ;;  %v3003_v48 = vsel %vm628_vm7, %v2995_v58, %v2996_v29  ;;  %vm2848_vm4 = vweird.f32 %v5901_v26 }
 0x2b6   :  { %5902 = vrcp.f32 %v7654_v63  ;;  %v2840_v20 = vsel %vm7633_vm1, %v2839_v19, %v2835_v49  ;;  %v3027_v14 = vmul.f32 %v9173_v18, %v3003_v48  ;;  %v2945_v58 = vsel %vm563_vm0, %v2925_v24, %v2926_v39  ;;  %vm2849_vm5 = vmor %vm2847_vm3, %vm2848_vm4 }
 0x2b7   :  { %v2844_v47 = vsub.f32 1.0, %v2843_v41  ;;  %v2885_v61 = vmul.f32 %v2840_v20, %v2428_v51  ;;  %v2958_v59 = vmul.f32 %v9174_v53, %v2945_v58  ;;  %v3082_v51 = vpack.c.b16 %v7671_v25, %v7677_v11  ;;  %v219_v25 = vld [vmem:[%s9179_s24 + $0x48] sm:$0xff]  ;;  %v222_v11 = vld [vmem:[%s9179_s24 + $0x60] sm:$0xff] }
 0x2b8   :  { %v3043_v60 = vpack.c.bf16 %v3027_v14, %v3027_v14  ;;  %v2928_v15 = vrot.slane %v7481_v62, 7  ;;  %v2929_v10 = vrot.slane %v7541_v16, 7  ;;  %vm2852_vm6 = vcmp.eq.f32.partialorder %v2851_v28, 8.507059e+37 }
 0x2b9   :  { %v2845_v45 = vmul.f32 %v5901_v26, %v2844_v47  ;;  %v7684_v50 = vadd.f32 %v2885_v61, %v7502_v30  ;;  %v2974_v55 = vpack.c.bf16 %v2958_v59, %v2958_v59  ;;  %v7699_v5 = vunpack.c.l.b16 %v2975_v42 }
 0x2ba   :  { %v3171_v24 = vunpack.c.l.b16 %v3043_v60  ;;  %v2866_v62 = vand.u32 2147483647, %v7654_v63  ;;  %v2868_v36 = vand.u32 2147483648, %v7654_v63  ;;  %v3124_v16 = vunpack.c.l.b16 %v2916_v35 }
 0x2bb   :  { %v2846_v40 = vadd.f32 %v5901_v26, %v2845_v45  ;;  %v2917_v30 = vpack.c.bf16 %v7684_v50, %v7684_v50  ;;  %v7706_v6 = vunpack.c.l.b16 %v2974_v55  ;;  %v2942_v12 = vsel %vm563_vm0, %v2928_v15, %v2929_v10  ;;  %v9176_v45 = vld [vmem:[#allocation42_spill] sm:$0xff] }
 0x2bc   :  { %v5903_v56 = vpop.eup %5902  ;;  %v3181_v19 = vpack.c.b16 %v3171_v24, %v3170_v34  ;;  %v2943_v39 = vsel %vm563_vm0, %v2927_v2, %v2928_v15  ;;  %v2930_v47 = vrot.slane %v7563_v33, 7  ;;  %v2430_v48 = vsub.f32 %v7471_v31, %v7592_v27  ;;  %v9177_v15 = vld [vmem:[#allocation25_spill] sm:$0xff] }
 0x2bd   :  { %v2850_v13 = vsel %vm2849_vm5, %v5901_v26, %v2846_v40  ;;  %v2858_v38 = vmul.f32 %v5903_v56, %v7654_v63  ;;  %v3125_v8 = vunpack.c.l.b16 %v2917_v30  ;;  %v2997_v26 = vrot.slane %v7684_v50, 1 }
 0x2be   :  { %v2855_v1 = vsel %vm2852_vm6, %v2854_v32, %v2850_v13  ;;  %vm2863_vm8 = vweird.f32 %v5903_v56  ;;  %v3083_v23 = vpack.c.b16 %v7699_v5, %v7706_v6  ;;  %3519 = vmatmul.bf16.gmra.mxu1 %v3181_v19  ;;  %v2960_v28 = vmul.f32 %v9175_v0, %v2943_v39  ;;  %v9184_v5 = vld [vmem:[#allocation51_spill] sm:$0xff] }
 0x2bf   :  { %v2859_v22 = vsub.f32 1.0, %v2858_v38  ;;  %v2886_v7 = vmul.f32 %v2855_v1, %v2429_v9  ;;  %v3134_v9 = vpack.c.b16 %v3125_v8, %v3124_v16  ;;  %v2977_v32 = vpack.c.bf16 %v2942_v12, %v2942_v12 }
 0x2c0   :  { %vm2862_vm9 = vweird.f32 %v7654_v63  ;;  %v2869_v18 = vor.u32 1.1754944e-38, %v2868_v36  ;;  %v2976_v14 = vpack.c.bf16 %v2960_v28, %v2960_v28  ;;  %v2941_v61 = vsel %vm563_vm0, %v2929_v10, %v2930_v47  ;;  %v210_v28 = vld [vmem:[%s9179_s24] sm:$0xff] }
 0x2c1   :  { %v2860_v41 = vmul.f32 %v5903_v56, %v2859_v22  ;;  %v7714_v49 = vadd.f32 %v2886_v7, %v7592_v27  ;;  %vm2864_vm10 = vmor %vm2862_vm9, %vm2863_vm8  ;;  %v7724_v34 = vunpack.c.l.b16 %v2977_v32  ;;  %vm2867_vm11 = vcmp.eq.f32.partialorder %v2866_v62, 8.507059e+37  ;;  %v9178_v22 = vld [vmem:[#allocation27_spill] sm:$0xff] }
 0x2c2   :  { %v3002_v31 = vsel %vm628_vm7, %v2996_v29, %v2997_v26  ;;  %v7735_v60 = vunpack.c.l.b16 %v2976_v14  ;;  %v2962_v24 = vmul.f32 %v9177_v15, %v2941_v61  ;;  %v2931_v29 = vrot.slane %v7604_v43, 7  ;;  %v9181_v14 = vld [vmem:[#allocation26_spill] sm:$0xff] }
 0x2c3   :  { %v2861_v20 = vadd.f32 %v5903_v56, %v2860_v41  ;;  %v2998_v2 = vrot.slane %v7714_v49, 1  ;;  %3475 = vmatmul.bf16.gmra.mxu0 %v3134_v9  ;;  %v3044_v59 = vpack.c.bf16 %v3002_v31, %v3002_v31  ;;  %v2918_v13 = vpack.c.bf16 %v7714_v49, %v7714_v49 }
 0x2c4   :  { %v3084_v40 = vpack.c.b16 %v7724_v34, %v7735_v60  ;;  %v2940_v38 = vsel %vm563_vm0, %v2930_v47, %v2931_v29  ;;  %v2969_v43 = vpack.c.bf16 %v7275_v44, %v7275_v44  ;;  %v2978_v62 = vpack.c.bf16 %v2962_v24, %v2962_v24 }
 0x2c5   :  { %v3001_v33 = vsel %vm628_vm7, %v2997_v26, %v2998_v2  ;;  %v2865_v63 = vsel %vm2864_vm10, %v5903_v56, %v2861_v20  ;;  %v3172_v10 = vunpack.c.l.b16 %v3044_v59  ;;  %v6293_v7 = vmov 0  }
 0x2c6   :  { %v3029_v57 = vmul.f32 %v9176_v45, %v3001_v33  ;;  %v2870_v58 = vsel %vm2867_vm11, %v2869_v18, %v2865_v63  ;;  %5827 = vset.pattern.permute.xlu0 %v6293_v7  ;;  %5828 = vset.pattern.permute.xlu1 %v6293_v7  ;;  %v2979_v16 = vpack.c.bf16 %v2940_v38, %v2940_v38  ;;  %v3126_v26 = vunpack.c.l.b16 %v2918_v13  ;;  %v212_v63 = vld [vmem:[%s9179_s24 + $0x10] sm:$0xff]  ;;  %v9182_v13 = vld [vmem:[#allocation28_spill] sm:$0xff] }
 0x2c7   :  { %v2887_v53 = vmul.f32 %v2870_v58, %v2430_v48  ;;  %5829 = vset.pattern.permute.xlu2 %v6293_v7  ;;  %v7765_v44 = vunpack.c.l.b16 %v2978_v62  ;;  %v3065_v0 = vunpack.c.l.b16 %v2969_v43  ;;  %v2932_v32 = vrot.slane %v7641_v21, 7  ;;  %3569 = vperm.xlu0 %5827, %v210_v28   ;;  %v211_v21 = vld [vmem:[%s9179_s24 + $0x8] sm:$0xff] }
 0x2c8   :  { %v3045_v42 = vpack.c.bf16 %v3029_v57, %v3029_v57  ;;  %v7767_v39 = vunpack.c.l.b16 %v2979_v16  ;;  %v2933_v45 = vrot.slane %v7684_v50, 7  ;;  %3579 = vperm.xlu1 %5828, %v212_v63   ;;  %v213_v50 = vld [vmem:[%s9179_s24 + $0x18] sm:$0xff]  ;;  %v9188_v28 = vld [vmem:[#allocation56_spill] sm:$0xff] }
 0x2c9   :  { %v7740_v35 = vadd.f32 %v2887_v53, %v7592_v27  ;;  %v2939_v20 = vsel %vm563_vm0, %v2931_v29, %v2932_v32  ;;  %v2934_v29 = vrot.slane %v7714_v49, 7  ;;  %v217_v49 = vld [vmem:[%s9179_s24 + $0x38] sm:$0xff] }
 0x2ca   :  { %v3173_v30 = vunpack.c.l.b16 %v3045_v42  ;;  %v3085_v37 = vpack.c.b16 %v7767_v39, %v7765_v44  ;;  %v2964_v61 = vmul.f32 %v9181_v14, %v2939_v20  ;;  %v9189_v14 = vld [vmem:[#allocation58_spill] sm:$0xff] }
 0x2cb   :  { %v2919_v56 = vpack.c.bf16 %v7740_v35, %v7740_v35  ;;  %v2935_v55 = vrot.slane %v7740_v35, 7  ;;  %v2999_v1 = vrot.slane %v7740_v35, 1  ;;  %v214_v35 = vld [vmem:[%s9179_s24 + $0x20] sm:$0xff] }
 0x2cc   :  { %v3182_v19 = vpack.c.b16 %v3173_v30, %v3172_v10  ;;  %v2980_v57 = vpack.c.bf16 %v2964_v61, %v2964_v61  ;;  %v216_v10 = vld [vmem:[%s9179_s24 + $0x30] sm:$0xff]  ;;  %3589 = vperm.xlu2 %5829, %v214_v35  }
 0x2cd   :  { %v2951_v27 = vsel %vm563_vm0, %v2935_v55, %v2920_v46  ;;  %v3127_v8 = vunpack.c.l.b16 %v2919_v56  ;;  %v3015_v46 = vsel %vm628_vm7, %v2999_v1, %v2984_v54  ;;  %v9180_v54 = vld [vmem:[#allocation45_spill] sm:$0xff]  ;;  %v3000_v18 = vsel %vm628_vm7, %v2998_v2, %v2999_v1 }
 0x2ce   :  { %v2952_v36 = vmul.f32 %v9178_v22, %v2951_v27  ;;  %3524 = vmatmul.bf16.gmra.mxu1 %v3182_v19  ;;  %v3031_v48 = vmul.f32 %v9180_v54, %v3015_v46  ;;  %v3046_v31 = vpack.c.bf16 %v3000_v18, %v3000_v18  ;;  %v2938_v2 = vsel %vm563_vm0, %v2932_v32, %v2933_v45  ;;  %v218_v19 = vld [vmem:[%s9179_s24 + $0x40] sm:$0xff] }
 0x2cf   :  { %v3135_v41 = vpack.c.b16 %v3127_v8, %v3126_v26  ;;  %3574 = vperm.xlu0 %5827, %v211_v21   ;;  %v2981_v53 = vpack.c.bf16 %v2938_v2, %v2938_v2  ;;  %v3076_v42 = vunpack.c.l.b16 %v2980_v57  ;;  %v2937_v56 = vsel %vm563_vm0, %v2933_v45, %v2934_v29  ;;  %v9185_v8 = vld [vmem:[#allocation52_spill] sm:$0xff] }
 0x2d0   :  { %v2968_v12 = vpack.c.bf16 %v2952_v36, %v2952_v36  ;;  %v3047_v33 = vpack.c.bf16 %v3031_v48, %v3031_v48  ;;  %v3174_v59 = vunpack.c.l.b16 %v3046_v31  ;;  %3584 = vperm.xlu1 %5828, %v213_v50   ;;  %v2966_v38 = vmul.f32 %v9182_v13, %v2937_v56 }
 0x2d1   :  { %v3077_v15 = vunpack.c.l.b16 %v2981_v53  ;;  %v2936_v43 = vsel %vm563_vm0, %v2934_v29, %v2935_v55  ;;  %v215_v55 = vld [vmem:[%s9179_s24 + $0x28] sm:$0xff] }
 0x2d2   :  { %v3064_v9 = vunpack.c.l.b16 %v2968_v12  ;;  %v3175_v58 = vunpack.c.l.b16 %v3047_v33  ;;  %v2982_v27 = vpack.c.bf16 %v2966_v38, %v2966_v38  ;;  %v2983_v17 = vpack.c.bf16 %v2936_v43, %v2936_v43  ;;  %v9187_v12 = vld [vmem:[#allocation55_spill] sm:$0xff] }
 0x2d3   :  { %3480 = vmatmul.bf16.gmra.mxu0 %v3135_v41  ;;  %v3086_v30 = vpack.c.b16 %v3077_v15, %v3076_v42  ;;  %v7894_v43 = vld [vmem:[%s9032_s11] ss:$0 sm:$0xff] }
 0x2d4   :  { %v3080_v47 = vpack.c.b16 %v3065_v0, %v3064_v9  ;;  %v3183_v24 = vpack.c.b16 %v3175_v58, %v3174_v59  ;;  %v3079_v1 = vunpack.c.l.b16 %v2983_v17  ;;  %3594 = vperm.xlu2 %5829, %v215_v55  }
 0x2d6   :  { %3396 = vmatmul.bf16.vlgmr.msrb.gmra.mxu3 %v3080_v47 }
 0x2d7   :  { %3599 = vperm.xlu0 %5827, %v216_v10  }
 0x2d8   :  { %3604 = vperm.xlu1 %5828, %v217_v49  }
 0x2dc   :  { %3614 = vperm.xlu2 %5829, %v219_v25  }
 0x2de   :  { %3529 = vmatmul.bf16.gmra.mxu1 %v3183_v24  ;;  %v3446_v18 = vpop.f32.mrf.mxu0  ;;  %v9192_v24 = vld [vmem:[#allocation59_spill] sm:$0xff] }
 0x2df   :  { %3624 = vperm.xlu0 %5827, %v221_v3  }
 0x2e0   :  { %3609 = vperm.xlu1 %5828, %v218_v19  }
 0x2e4   :  { %3629 = vperm.xlu2 %5829, %v222_v11  }
 0x2e6   :  { %3401 = vmatmul.bf16.gmra.mxu3 %v3081_v4  ;;  %v3078_v4 = vunpack.c.l.b16 %v2982_v27  ;;  %v7878_v29 = vpop.f32.mrf.mxu0 }
 0x2e8   :  { %v3087_v62 = vpack.c.b16 %v3079_v1, %v3078_v4  ;;  %3619 = vperm.xlu1 %5828, %v220_v52  }
 0x2eb   :  { %v3495_v33 = vpop.f32.mrf.mxu1 }
 0x2f3   :  { %v7882_v10 = vpop.f32.mrf.mxu1 }
 0x2f6   :  { %3406 = vmatmul.bf16.gmra.mxu3 %v3082_v51  ;;  %v7843_v51 = vld [vmem:[%s9183_s10] ss:$0 sm:$0xff] }
 0x2f7   :  { %v899_v6 = vadd.f32 %v7843_v51, %v9184_v5  ;;  %v901_v22 = vadd.f32 %v7843_v51, %v9185_v8  ;;  %v906_v46 = vadd.f32 %v7843_v51, %v9187_v12  ;;  %v909_v32 = vadd.f32 %v7843_v51, %v9188_v28 }
 0x2f8   :  { %v911_v61 = vadd.f32 %v7843_v51, %v9189_v14 }
 0x2f9   :  { %v5076_v34 = vmul.f32 -1.442695, %v901_v22  ;;  %v5078_v39 = vmul.f32 -1.442695, %v906_v46  ;;  %v5079_v48 = vmul.f32 -1.442695, %v909_v32 }
 0x2fa   :  { %v5080_v45 = vmul.f32 -1.442695, %v911_v61 }
 0x306   :  { %3411 = vmatmul.bf16.gmra.mxu3 %v3083_v23  ;;  %v5075_v23 = vmul.f32 -1.442695, %v899_v6 }
 0x308   :  { %5904 = vpow2.f32 %v5075_v23  ;;  %v9195_v23 = vld [vmem:[#allocation61_spill] sm:$0xff] }
 0x309   :  { %5906 = vpow2.f32 %v5076_v34  ;;  %v916_v8 = vadd.f32 %v7843_v51, %v9195_v23 }
 0x30e   :  { %v5905_v60 = vpop.eup %5904 }
 0x30f   :  { %v986_v7 = vadd.f32 1.0, %v5905_v60  ;;  %v5907_v26 = vpop.eup %5906 }
 0x310   :  { %v7853_v44 = vadd.f32 1.0, %v5907_v26  ;;  %v7921_v26 = vpop.f32.mrf.mxu1 }
 0x311   :  { %5908 = vrcp.f32 %v986_v7  ;;  %vm1007_vm0 = vweird.f32 %v986_v7  ;;  %v1013_v57 = vand.u32 2147483648, %v986_v7  ;;  %v1011_v2 = vand.u32 2147483647, %v986_v7 }
 0x312   :  { %vm1022_vm14 = vweird.f32 %v7853_v44  ;;  %v1028_v4 = vand.u32 2147483648, %v7853_v44  ;;  %v1026_v52 = vand.u32 2147483647, %v7853_v44 }
 0x313   :  { %v1014_v50 = vor.u32 1.1754944e-38, %v1013_v57  ;;  %vm1012_vm13 = vcmp.eq.f32.partialorder %v1011_v2, 8.507059e+37 }
 0x314   :  { %v1029_v22 = vor.u32 1.1754944e-38, %v1028_v4  ;;  %vm1027_vm2 = vcmp.eq.f32.partialorder %v1026_v52, 8.507059e+37 }
 0x316   :  { %3416 = vmatmul.bf16.gmra.mxu3 %v3084_v40  ;;  %v9186_v40 = vld [vmem:[#allocation53_spill] sm:$0xff] }
 0x317   :  { %v904_v36 = vadd.f32 %v7843_v51, %v9186_v40  ;;  %v5909_v41 = vpop.eup %5908 }
 0x318   :  { %v1003_v0 = vmul.f32 %v5909_v41, %v986_v7  ;;  %vm1008_vm7 = vweird.f32 %v5909_v41 }
 0x319   :  { %v5077_v16 = vmul.f32 -1.442695, %v904_v36  ;;  %vm7872_vm12 = vmor %vm1007_vm0, %vm1008_vm7  ;;  %v7917_v36 = vpop.f32.mrf.mxu0 }
 0x31a   :  { %v1004_v54 = vsub.f32 1.0, %v1003_v0 }
 0x31b   :  { %5910 = vpow2.f32 %v5077_v16 }
 0x31c   :  { %5912 = vrcp.f32 %v7853_v44  ;;  %v1005_v63 = vmul.f32 %v5909_v41, %v1004_v54  ;;  %v9196_v54 = vld [vmem:[#allocation40_spill] sm:$0xff] }
 0x31d   :  { %5914 = vpow2.f32 %v5078_v39  ;;  %v5082_v39 = vmul.f32 -1.442695, %v916_v8 }
 0x31e   :  { %v1006_v58 = vadd.f32 %v5909_v41, %v1005_v63 }
 0x320   :  { %v1010_v13 = vsel %vm7872_vm12, %v5909_v41, %v1006_v58 }
 0x321   :  { %v5911_v9 = vpop.eup %5910  ;;  %v1015_v3 = vsel %vm1012_vm13, %v1014_v50, %v1010_v13 }
 0x322   :  { %v7860_v47 = vpop.eup %5912  ;;  %v1242_v5 = vpack.c.bf16 %v1015_v3, %v1015_v3 }
 0x323   :  { %v5915_v20 = vpop.eup %5914  ;;  %v1018_v31 = vmul.f32 %v7860_v47, %v7853_v44  ;;  %vm1023_vm15 = vweird.f32 %v7860_v47 }
 0x324   :  { %v7867_v21 = vadd.f32 1.0, %v5915_v20  ;;  %vm7904_vm1 = vmor %vm1022_vm14, %vm1023_vm15  ;;  %v3535_v46 = vunpack.c.l.bf16 %v1242_v5  ;;  %v9201_v5 = vld [vmem:[#allocation41_spill] sm:$0xff] }
 0x325   :  { %v1019_v53 = vsub.f32 1.0, %v1018_v31  ;;  %v921_v23 = vadd.f32 %v7843_v51, %v9201_v5 }
 0x326   :  { %3421 = vmatmul.bf16.gmra.mxu3 %v3085_v37  ;;  %v7858_v37 = vadd.f32 1.0, %v5911_v9  ;;  %vm1052_vm6 = vweird.f32 %v7867_v21 }
 0x327   :  { %v1020_v38 = vmul.f32 %v7860_v47, %v1019_v53 }
 0x328   :  { %5916 = vrcp.f32 %v7858_v37  ;;  %vm1037_vm3 = vweird.f32 %v7858_v37  ;;  %v1043_v9 = vand.u32 2147483648, %v7858_v37  ;;  %v1041_v32 = vand.u32 2147483647, %v7858_v37 }
 0x329   :  { %5918 = vpow2.f32 %v5079_v48  ;;  %v1021_v19 = vadd.f32 %v7860_v47, %v1020_v38  ;;  %v919_v48 = vadd.f32 %v7843_v51, %v9196_v54  ;;  %v3453_v38 = vpop.f32.mrf.mxu0 }
 0x32a   :  { %5920 = vrcp.f32 %v7867_v21  ;;  %vm1042_vm9 = vcmp.eq.f32.partialorder %v1041_v32, 8.507059e+37 }
 0x32b   :  { %5922 = vpow2.f32 %v5080_v45  ;;  %v1025_v60 = vsel %vm7904_vm1, %v7860_v47, %v1021_v19  ;;  %v6034_v45 = vld [vmem:[%s9079_s5] sm:$0xff]  ;;  %v5083_v4 = vmul.f32 -1.442695, %v919_v48 }
 0x32c   :  { %v1030_v41 = vsel %vm1027_vm2, %v1029_v22, %v1025_v60 }
 0x32d   :  { %v1243_v63 = vpack.c.bf16 %v1030_v41, %v1030_v41 }
 0x32e   :  { %v7870_v59 = vpop.eup %5916 }
 0x32f   :  { %v5919_v15 = vpop.eup %5918  ;;  %v1033_v56 = vmul.f32 %v7870_v59, %v7858_v37  ;;  %vm1038_vm4 = vweird.f32 %v7870_v59  ;;  %v1044_v37 = vor.u32 1.1754944e-38, %v1043_v9  ;;  %v3536_v50 = vunpack.c.l.bf16 %v1243_v63 }
 0x330   :  { %v7887_v49 = vadd.f32 1.0, %v5919_v15  ;;  %v7889_v27 = vpop.eup %5920  ;;  %vm7933_vm5 = vmor %vm1037_vm3, %vm1038_vm4  ;;  %v1058_v15 = vand.u32 2147483648, %v7867_v21 }
 0x331   :  { %v5923_v1 = vpop.eup %5922  ;;  %v1048_v35 = vmul.f32 %v7889_v27, %v7867_v21  ;;  %vm1053_vm8 = vweird.f32 %v7889_v27  ;;  %v3456_v54 = vpop.f32.mrf.mxu0 }
 0x332   :  { %5924 = vrcp.f32 %v7887_v49  ;;  %v7909_v6 = vadd.f32 1.0, %v5923_v1  ;;  %vm7965_vm10 = vmor %vm1052_vm6, %vm1053_vm8  ;;  %v3502_v1 = vpop.f32.mrf.mxu1  ;;  %vm1067_vm0 = vweird.f32 %v7887_v49  ;;  %v1073_v41 = vand.u32 2147483648, %v7887_v49 }
 0x333   :  { %v1049_v16 = vsub.f32 1.0, %v1048_v35  ;;  %v1059_v35 = vor.u32 1.1754944e-38, %v1058_v15  ;;  %v1071_v32 = vand.u32 2147483647, %v7887_v49 }
 0x334   :  { %v1074_v63 = vor.u32 1.1754944e-38, %v1073_v41  ;;  %vm1082_vm14 = vweird.f32 %v7909_v6 }
 0x335   :  { %v1050_v14 = vmul.f32 %v7889_v27, %v1049_v16  ;;  %vm1072_vm13 = vcmp.eq.f32.partialorder %v1071_v32, 8.507059e+37 }
 0x336   :  { %3426 = vmatmul.bf16.gmra.mxu3 %v3086_v30  ;;  %v914_v30 = vadd.f32 %v7843_v51, %v9192_v24 }
 0x337   :  { %v1051_v42 = vadd.f32 %v7889_v27, %v1050_v14 }
 0x338   :  { %v5081_v17 = vmul.f32 -1.442695, %v914_v30  ;;  %v7925_v44 = vpop.eup %5924 }
 0x339   :  { %v7919_v7 = vpop.permute.xlu0 %3569  ;;  %v1063_v61 = vmul.f32 %v7925_v44, %v7887_v49  ;;  %vm1068_vm7 = vweird.f32 %v7925_v44 }
 0x33a   :  { %5926 = vpow2.f32 %v5081_v17  ;;  %vm8006_vm12 = vmor %vm1067_vm0, %vm1068_vm7 }
 0x33b   :  { %5928 = vrcp.f32 %v7909_v6  ;;  %v1064_v13 = vsub.f32 1.0, %v1063_v61  ;;  %v3505_v61 = vpop.f32.mrf.mxu1 }
 0x33c   :  { %5930 = vpow2.f32 %v5082_v39 }
 0x33d   :  { %v1065_v8 = vmul.f32 %v7925_v44, %v1064_v13 }
 0x340   :  { %v5927_v47 = vpop.eup %5926 }
 0x341   :  { %v7953_v53 = vadd.f32 1.0, %v5927_v47  ;;  %v7957_v24 = vpop.eup %5928  ;;  %v7970_v17 = vpop.permute.xlu0 %3574 }
 0x342   :  { %v5931_v19 = vpop.eup %5930  ;;  %vm1083_vm15 = vweird.f32 %v7957_v24 }
 0x343   :  { %5932 = vrcp.f32 %v7953_v53  ;;  %v7983_v22 = vadd.f32 1.0, %v5931_v19  ;;  %vm8033_vm1 = vmor %vm1082_vm14, %vm1083_vm15  ;;  %vm1097_vm3 = vweird.f32 %v7953_v53  ;;  %v1103_v41 = vand.u32 2147483648, %v7953_v53 }
 0x344   :  { %5934 = vpow2.f32 %v5083_v4  ;;  %v1101_v32 = vand.u32 2147483647, %v7953_v53 }
 0x345   :  { %5936 = vrcp.f32 %v7983_v22  ;;  %vm1112_vm8 = vweird.f32 %v7983_v22  ;;  %v1116_v13 = vand.u32 2147483647, %v7983_v22 }
 0x346   :  { %3431 = vmatmul.bf16.gmra.mxu3 %v3087_v62  ;;  %v1034_v62 = vsub.f32 1.0, %v1033_v56  ;;  %v1056_v56 = vand.u32 2147483647, %v7867_v21  ;;  %v1055_v21 = vsel %vm7965_vm10, %v7889_v27, %v1051_v42  ;;  %vm1102_vm6 = vcmp.eq.f32.partialorder %v1101_v32, 8.507059e+37 }
 0x348   :  { %v1035_v40 = vmul.f32 %v7870_v59, %v1034_v62  ;;  %vm1057_vm11 = vcmp.eq.f32.partialorder %v1056_v56, 8.507059e+37  ;;  %v1086_v56 = vand.u32 2147483647, %v7909_v6 }
 0x349   :  { %v7998_v9 = vpop.eup %5932 }
 0x34a   :  { %v1036_v28 = vadd.f32 %v7870_v59, %v1035_v40  ;;  %v1060_v40 = vsel %vm1057_vm11, %v1059_v35, %v1055_v21  ;;  %v5935_v14 = vpop.eup %5934  ;;  %v1093_v49 = vmul.f32 %v7998_v9, %v7953_v53  ;;  %vm1087_vm2 = vcmp.eq.f32.partialorder %v1086_v56, 8.507059e+37  ;;  %v6038_v53 = vld [vmem:[%s9079_s5 + $0x20] sm:$0xff] }
 0x34b   :  { %v8026_v42 = vadd.f32 1.0, %v5935_v14  ;;  %vm1098_vm4 = vweird.f32 %v7998_v9  ;;  %v1104_v14 = vor.u32 1.1754944e-38, %v1103_v41  ;;  %vm1117_vm11 = vcmp.eq.f32.partialorder %v1116_v13, 8.507059e+37 }
 0x34c   :  { %v1040_v2 = vsel %vm7933_vm5, %v7870_v59, %v1036_v28  ;;  %v1066_v28 = vadd.f32 %v7925_v44, %v1065_v8  ;;  %vm8068_vm5 = vmor %vm1097_vm3, %vm1098_vm4 }
 0x34d   :  { %v1045_v3 = vsel %vm1042_vm9, %v1044_v37, %v1040_v2  ;;  %vm1127_vm7 = vweird.f32 %v8026_v42  ;;  %v1133_v32 = vand.u32 2147483648, %v8026_v42 }
 0x34e   :  { %v1070_v37 = vsel %vm8006_vm12, %v7925_v44, %v1066_v28 }
 0x34f   :  { %v1075_v59 = vsel %vm1072_vm13, %v1074_v63, %v1070_v37 }
 0x359   :  { %v3397_v55 = vpop.f32.mrf.mxu3 }
 0x35a   :  { %v3398_v11 = vadd.f32 %v7894_v43, %v3397_v55 }
 0x35c   :  { %v3447_v34 = vadd.f32 %v3446_v18, %v3398_v11  ;;  %v1244_v11 = vpack.c.bf16 %v1045_v3, %v1045_v3  ;;  %v1094_v3 = vsub.f32 1.0, %v1093_v49 }
 0x35e   :  { %v3496_v12 = vadd.f32 %v3495_v33, %v3447_v34  ;;  %v6035_v34 = vld [vmem:[%s9079_s5 + $0x8] sm:$0xff] }
 0x360   :  { %v3551_v0 = vmul.f32 %v3535_v46, %v3496_v12  ;;  %v3537_v46 = vunpack.c.l.bf16 %v1244_v11  ;;  %v3507_v11 = vpop.f32.mrf.mxu1 }
 0x361   :  { %v3399_v20 = vpop.f32.mrf.mxu3 }
 0x362   :  { %v3647_v33 = vmul.f32 %v7919_v7, %v3551_v0  ;;  %v3400_v31 = vadd.f32 %v7894_v43, %v3399_v20  ;;  %v5084_v0 = vmul.f32 -1.442695, %v921_v23  ;;  %v1245_v20 = vpack.c.bf16 %v1060_v40, %v1060_v40  ;;  %v6037_v40 = vld [vmem:[%s9079_s5 + $0x18] sm:$0xff] }
 0x363   :  { %v1095_v23 = vmul.f32 %v7998_v9, %v1094_v3 }
 0x364   :  { %v7947_v57 = vadd.f32 %v6034_v45, %v3647_v33  ;;  %v3449_v58 = vadd.f32 %v7878_v29, %v3400_v31  ;;  %5938 = vpow2.f32 %v5084_v0  ;;  %v6036_v45 = vld [vmem:[%s9079_s5 + $0x10] sm:$0xff]  ;;  %v3538_v15 = vunpack.c.l.bf16 %v1245_v20 }
 0x365   :  { %5940 = vrcp.f32 %v8026_v42  ;;  %v1096_v28 = vadd.f32 %v7998_v9, %v1095_v23 }
 0x366   :  { %3681 = vadd.xlane.f32.xlu0 %v7947_v57  ;;  %v3736_v30 = vmul.f32 %v7947_v57, %v7947_v57  ;;  %v3498_v29 = vadd.f32 %v7882_v10, %v3449_v58  ;;  %v1078_v10 = vmul.f32 %v7957_v24, %v7909_v6 }
 0x367   :  { %v1100_v63 = vsel %vm8068_vm5, %v7998_v9, %v1096_v28  ;;  %v1118_v9 = vand.u32 2147483648, %v7983_v22  ;;  %v8124_v28 = vpop.permute.xlu0 %3599 }
 0x368   :  { %3752 = vadd.xlane.f32.xlu2 %v3736_v30  ;;  %v3552_v62 = vmul.f32 %v3536_v50, %v3498_v29  ;;  %v1079_v16 = vsub.f32 1.0, %v1078_v10  ;;  %v1088_v29 = vand.u32 2147483648, %v7909_v6  ;;  %v1246_v10 = vpack.c.bf16 %v1075_v59, %v1075_v59 }
 0x369   :  { %v3402_v52 = vpop.f32.mrf.mxu3 }
 0x36a   :  { %v3648_v55 = vmul.f32 %v7970_v17, %v3552_v62  ;;  %v3403_v25 = vadd.f32 %v7894_v43, %v3402_v52  ;;  %v1080_v18 = vmul.f32 %v7957_v24, %v1079_v16  ;;  %v1089_v52 = vor.u32 1.1754944e-38, %v1088_v29 }
 0x36c   :  { %v7988_v27 = vadd.f32 %v6035_v34, %v3648_v55  ;;  %v3452_v60 = vadd.f32 %v7917_v36, %v3403_v25  ;;  %v8000_v36 = vpop.permute.xlu1 %3579  ;;  %v1081_v30 = vadd.f32 %v7957_v24, %v1080_v18  ;;  %v3458_v25 = vpop.f32.mrf.mxu0  ;;  %v3539_v34 = vunpack.c.l.bf16 %v1246_v10 }
 0x36e   :  { %v3501_v12 = vadd.f32 %v7921_v26, %v3452_v60  ;;  %3683 = vadd.xlane.f32.xlu1 %v7988_v27  ;;  %v3737_v39 = vmul.f32 %v7988_v27, %v7988_v27  ;;  %v1085_v35 = vsel %vm8033_vm1, %v7957_v24, %v1081_v30 }
 0x36f   :  { %v1090_v60 = vsel %vm1087_vm2, %v1089_v52, %v1085_v35 }
 0x370   :  { %v3553_v47 = vmul.f32 %v3537_v46, %v3501_v12  ;;  %3754 = vadd.xlane.f32.xlu2 %v3737_v39  ;;  %v8062_v39 = vpop.permute.xlu2 %3589  ;;  %v1247_v26 = vpack.c.bf16 %v1090_v60, %v1090_v60 }
 0x371   :  { %v3404_v48 = vpop.f32.mrf.mxu3 }
 0x372   :  { %v3649_v33 = vmul.f32 %v8000_v36, %v3553_v47  ;;  %v3405_v31 = vadd.f32 %v7894_v43, %v3404_v48  ;;  %v3540_v37 = vunpack.c.l.bf16 %v1247_v26 }
 0x374   :  { %v8022_v58 = vadd.f32 %v6036_v45, %v3649_v33  ;;  %v3454_v2 = vadd.f32 %v3453_v38, %v3405_v31  ;;  %v8037_v38 = vpop.eup %5936  ;;  %v3461_v49 = vpop.f32.mrf.mxu0 }
 0x375   :  { %v5939_v62 = vpop.eup %5938  ;;  %v1108_v55 = vmul.f32 %v8037_v38, %v7983_v22  ;;  %v3510_v45 = vpop.f32.mrf.mxu1  ;;  %vm1113_vm9 = vweird.f32 %v8037_v38 }
 0x376   :  { %v3503_v44 = vadd.f32 %v3502_v1, %v3454_v2  ;;  %v3738_v50 = vmul.f32 %v8022_v58, %v8022_v58  ;;  %v8041_v1 = vpop.permute.xlu1 %3584  ;;  %v8051_v8 = vadd.f32 1.0, %v5939_v62  ;;  %v8060_v12 = vpop.eup %5940  ;;  %vm8102_vm10 = vmor %vm1112_vm8, %vm1113_vm9  ;;  %v6041_v62 = vld [vmem:[%s9079_s5 + $0x38] sm:$0xff] }
 0x377   :  { %v1109_v46 = vsub.f32 1.0, %v1108_v55  ;;  %v1123_v18 = vmul.f32 %v8060_v12, %v8026_v42  ;;  %v6039_v55 = vld [vmem:[%s9079_s5 + $0x28] sm:$0xff]  ;;  %vm1128_vm0 = vweird.f32 %v8060_v12 }
 0x378   :  { %v3554_v4 = vmul.f32 %v3538_v15, %v3503_v44  ;;  %3756 = vadd.xlane.f32.xlu0 %v3738_v50  ;;  %3685 = vadd.xlane.f32.xlu2 %v8022_v58  ;;  %5942 = vrcp.f32 %v8051_v8  ;;  %v1105_v44 = vsel %vm1102_vm6, %v1104_v14, %v1100_v63  ;;  %v8098_v3 = vpop.permute.xlu2 %3594  ;;  %vm1129_vm12 = vmor %vm1127_vm7, %vm1128_vm0  ;;  %vm1142_vm15 = vweird.f32 %v8051_v8 }
 0x379   :  { %v3407_v19 = vpop.f32.mrf.mxu3  ;;  %v1124_v29 = vsub.f32 1.0, %v1123_v18  ;;  %v1248_v10 = vpack.c.bf16 %v1105_v44, %v1105_v44  ;;  %v6040_v18 = vld [vmem:[%s9079_s5 + $0x30] sm:$0xff] }
 0x37a   :  { %v3650_v6 = vmul.f32 %v8041_v1, %v3554_v4  ;;  %v3408_v21 = vadd.f32 %v7894_v43, %v3407_v19 }
 0x37b   :  { %v1125_v35 = vmul.f32 %v8060_v12, %v1124_v29  ;;  %v3541_v23 = vunpack.c.l.bf16 %v1248_v10  ;;  %v1148_v29 = vand.u32 2147483648, %v8051_v8 }
 0x37c   :  { %v3457_v5 = vadd.f32 %v3456_v54, %v3408_v21  ;;  %v8056_v16 = vadd.f32 %v6037_v40, %v3650_v6  ;;  %v1119_v21 = vor.u32 1.1754944e-38, %v1118_v9  ;;  %v3463_v60 = vpop.f32.mrf.mxu0 }
 0x37e   :  { %v3506_v24 = vadd.f32 %v3505_v61, %v3457_v5  ;;  %v1110_v61 = vmul.f32 %v8037_v38, %v1109_v46  ;;  %v3739_v30 = vmul.f32 %v8056_v16, %v8056_v16  ;;  %v8094_v50 = vpop.eup %5942  ;;  %v3512_v46 = vpop.f32.mrf.mxu1 }
 0x37f   :  { %v1138_v6 = vmul.f32 %v8094_v50, %v8051_v8  ;;  %vm1143_vm14 = vweird.f32 %v8094_v50 }
 0x380   :  { %v3555_v0 = vmul.f32 %v3539_v34, %v3506_v24  ;;  %3687 = vadd.xlane.f32.xlu2 %v8056_v16  ;;  %v1111_v56 = vadd.f32 %v8037_v38, %v1110_v61  ;;  %vm1144_vm1 = vmor %vm1142_vm15, %vm1143_vm14 }
 0x381   :  { %v3409_v47 = vpop.f32.mrf.mxu3  ;;  %v1139_v24 = vsub.f32 1.0, %v1138_v6 }
 0x382   :  { %v3651_v48 = vmul.f32 %v8062_v39, %v3555_v0  ;;  %v3410_v20 = vadd.f32 %v7894_v43, %v3409_v47  ;;  %v1126_v0 = vadd.f32 %v8060_v12, %v1125_v35 }
 0x384   :  { %v8081_v33 = vadd.f32 %v6038_v53, %v3651_v48  ;;  %v3459_v31 = vadd.f32 %v3458_v25, %v3410_v20  ;;  %v1131_v48 = vand.u32 2147483647, %v8026_v42  ;;  %v1130_v61 = vsel %vm1129_vm12, %v8060_v12, %v1126_v0  ;;  %v8140_v42 = vpop.permute.xlu1 %3604 }
 0x385   :  { %v1140_v53 = vmul.f32 %v8094_v50, %v1139_v24  ;;  %v6042_v24 = vld [vmem:[%s9079_s5 + $0x40] sm:$0xff] }
 0x386   :  { %v3508_v2 = vadd.f32 %v3507_v11, %v3459_v31  ;;  %3689 = vadd.xlane.f32.xlu1 %v8081_v33  ;;  %v3740_v15 = vmul.f32 %v8081_v33, %v8081_v33  ;;  %v1115_v11 = vsel %vm8102_vm10, %v8037_v38, %v1111_v56  ;;  %v1134_v31 = vor.u32 1.1754944e-38, %v1133_v32  ;;  %v3515_v13 = vpop.f32.mrf.mxu1 }
 0x387   :  { %v1120_v40 = vsel %vm1117_vm11, %v1119_v21, %v1115_v11  ;;  %vm1132_vm13 = vcmp.eq.f32.partialorder %v1131_v48, 8.507059e+37  ;;  %v1146_v56 = vand.u32 2147483647, %v8051_v8  ;;  %v9210_v8 = vld [vmem:[#allocation43_spill] sm:$0xff] }
 0x388   :  { %v3556_v59 = vmul.f32 %v3540_v37, %v3508_v2  ;;  %3760 = vadd.xlane.f32.xlu0 %v3740_v15  ;;  %3758 = vadd.xlane.f32.xlu2 %v3739_v30  ;;  %v1249_v47 = vpack.c.bf16 %v1120_v40, %v1120_v40  ;;  %v1141_v15 = vadd.f32 %v8094_v50, %v1140_v53  ;;  %v3466_v30 = vpop.f32.mrf.mxu0  ;;  %v6043_v53 = vld [vmem:[%s9079_s5 + $0x48] sm:$0xff] }
 0x389   :  { %v3412_v4 = vpop.f32.mrf.mxu3  ;;  %vm1147_vm2 = vcmp.eq.f32.partialorder %v1146_v56, 8.507059e+37 }
 0x38a   :  { %v3652_v19 = vmul.f32 %v8098_v3, %v3556_v59  ;;  %v3413_v52 = vadd.f32 %v7894_v43, %v3412_v4  ;;  %v1145_v10 = vsel %vm1144_vm1, %v8094_v50, %v1141_v15 }
 0x38c   :  { %v8114_v22 = vadd.f32 %v6039_v55, %v3652_v19  ;;  %v3462_v25 = vadd.f32 %v3461_v49, %v3413_v52  ;;  %v3542_v49 = vunpack.c.l.bf16 %v1249_v47  ;;  %v1149_v52 = vor.u32 1.1754944e-38, %v1148_v29  ;;  %v8158_v11 = vpop.permute.xlu1 %3609 }
 0x38e   :  { %v3511_v5 = vadd.f32 %v3510_v45, %v3462_v25  ;;  %v3741_v34 = vmul.f32 %v8114_v22, %v8114_v22  ;;  %v1135_v45 = vsel %vm1132_vm13, %v1134_v31, %v1130_v61  ;;  %v1150_v35 = vsel %vm1147_vm2, %v1149_v52, %v1145_v10  ;;  %v3517_v0 = vpop.f32.mrf.mxu1  ;;  %v224_v52 = vld [vmem:[%s9179_s24 + $0x70] sm:$0xff] }
 0x38f   :  { %v1250_v44 = vpack.c.bf16 %v1135_v45, %v1135_v45  ;;  %v924_v25 = vadd.f32 %v7843_v51, %v9210_v8 }
 0x390   :  { %v3557_v41 = vmul.f32 %v3541_v23, %v3511_v5  ;;  %3762 = vadd.xlane.f32.xlu0 %v3741_v34  ;;  %3691 = vadd.xlane.f32.xlu2 %v8114_v22  ;;  %v1251_v23 = vpack.c.bf16 %v1150_v35, %v1150_v35  ;;  %v3468_v50 = vpop.f32.mrf.mxu0 }
 0x391   :  { %v3414_v38 = vpop.f32.mrf.mxu3  ;;  %v3543_v21 = vunpack.c.l.bf16 %v1250_v44 }
 0x392   :  { %v3415_v26 = vadd.f32 %v7894_v43, %v3414_v38  ;;  %v3653_v54 = vmul.f32 %v8124_v28, %v3557_v41  ;;  %v5085_v41 = vmul.f32 -1.442695, %v924_v25  ;;  %v223_v38 = vld [vmem:[%s9179_s24 + $0x68] sm:$0xff]  ;;  %v3544_v47 = vunpack.c.l.bf16 %v1251_v23 }
 0x394   :  { %v3464_v20 = vadd.f32 %v3463_v60, %v3415_v26  ;;  %v8134_v14 = vadd.f32 %v6040_v18, %v3653_v54  ;;  %v9211_v26 = vld [vmem:[#allocation44_spill] sm:$0xff]  ;;  %5944 = vpow2.f32 %v5085_v41 }
 0x395   :  { %v926_v54 = vadd.f32 %v7843_v51, %v9211_v26 }
 0x396   :  { %v3513_v63 = vadd.f32 %v3512_v46, %v3464_v20  ;;  %v3742_v37 = vmul.f32 %v8134_v14, %v8134_v14  ;;  %v8173_v20 = vpop.permute.xlu2 %3614 }
 0x397   :  { %v5086_v61 = vmul.f32 -1.442695, %v926_v54  ;;  %v3520_v54 = vpop.f32.mrf.mxu1 }
 0x398   :  { %v3558_v2 = vmul.f32 %v3542_v49, %v3513_v63  ;;  %3764 = vadd.xlane.f32.xlu1 %v3742_v37  ;;  %v9212_v37 = vld [vmem:[#allocation46_spill] sm:$0xff] }
 0x399   :  { %v3417_v12 = vpop.f32.mrf.mxu3  ;;  %5946 = vpow2.f32 %v5086_v61  ;;  %v929_v45 = vadd.f32 %v7843_v51, %v9212_v37 }
 0x39a   :  { %v3418_v9 = vadd.f32 %v7894_v43, %v3417_v12  ;;  %v3654_v59 = vmul.f32 %v8140_v42, %v3558_v2  ;;  %v5945_v49 = vpop.eup %5944 }
 0x39b   :  { %v996_v2 = vadd.f32 1.0, %v5945_v49  ;;  %v5087_v15 = vmul.f32 -1.442695, %v929_v45 }
 0x39c   :  { %v3467_v4 = vadd.f32 %v3466_v30, %v3418_v9  ;;  %v8152_v19 = vadd.f32 %v6041_v62, %v3654_v59  ;;  %v6294_v9 = vmov 128.0  }
 0x39d   :  { %5948 = vrcp.f32 %v996_v2  ;;  %vm1157_vm4 = vweird.f32 %v996_v2 }
 0x39e   :  { %v3516_v6 = vadd.f32 %v3515_v13, %v3467_v4  ;;  %3695 = vadd.xlane.f32.xlu0 %v8152_v19  ;;  %5950 = vpow2.f32 %v5087_v15  ;;  %v225_v13 = vld [vmem:[%s9179_s24 + $0x78] sm:$0xff]  ;;  %v8215_v49 = vpop.permute.xlu2 %3629 }
 0x39f   :  { %v5947_v30 = vpop.eup %5946 }
 0x3a0   :  { %v3559_v55 = vmul.f32 %v3543_v21, %v3516_v6  ;;  %v8186_v12 = vadd.f32 1.0, %v5947_v30  ;;  %v5583_v30 = vld [vmem:[#allocation13 + $0x78] sm:$0xf0] }
 0x3a1   :  { %v3419_v5 = vpop.f32.mrf.mxu3 }
 0x3a2   :  { %v3420_v34 = vadd.f32 %v7894_v43, %v3419_v5  ;;  %v3655_v60 = vmul.f32 %v8158_v11, %v3559_v55  ;;  %5952 = vrcp.f32 %v8186_v12  ;;  %vm1172_vm9 = vweird.f32 %v8186_v12 }
 0x3a3   :  { %v5949_v29 = vpop.eup %5948  ;;  %5954 = vrcp.f32 %v6294_v9 }
 0x3a4   :  { %v3469_v40 = vadd.f32 %v3468_v50, %v3420_v34  ;;  %v8165_v46 = vadd.f32 %v6042_v24, %v3655_v60  ;;  %v5951_v44 = vpop.eup %5950  ;;  %v1153_v59 = vmul.f32 %v5949_v29, %v996_v2  ;;  %vm1158_vm3 = vweird.f32 %v5949_v29  ;;  %v9213_v34 = vld [vmem:[#allocation47_spill] sm:$0xff] }
 0x3a5   :  { %v8189_v56 = vadd.f32 1.0, %v5951_v44  ;;  %v931_v60 = vadd.f32 %v7843_v51, %v9213_v34  ;;  %v1163_v50 = vand.u32 2147483648, %v996_v2  ;;  %v1161_v24 = vand.u32 2147483647, %v996_v2  ;;  %vm1159_vm5 = vmor %vm1157_vm4, %vm1158_vm3 }
 0x3a6   :  { %v3518_v32 = vadd.f32 %v3517_v0, %v3469_v40  ;;  %3697 = vadd.xlane.f32.xlu0 %v8165_v46  ;;  %v1154_v62 = vsub.f32 1.0, %v1153_v59  ;;  %v3471_v40 = vpop.f32.mrf.mxu0  ;;  %v1178_v2 = vand.u32 2147483648, %v8186_v12 }
 0x3a7   :  { %5956 = vrcp.f32 %v8189_v56  ;;  %v5088_v26 = vmul.f32 -1.442695, %v931_v60  ;;  %vm1162_vm6 = vcmp.eq.f32.partialorder %v1161_v24, 8.507059e+37  ;;  %vm1187_vm12 = vweird.f32 %v8189_v56 }
 0x3a8   :  { %v3560_v48 = vmul.f32 %v3544_v47, %v3518_v32  ;;  %3634 = vperm.xlu2 %5829, %v223_v38   ;;  %v8194_v4 = vpop.eup %5952  ;;  %v1155_v21 = vmul.f32 %v5949_v29, %v1154_v62 }
 0x3a9   :  { %v5955_v10 = vpop.eup %5954  ;;  %v1168_v6 = vmul.f32 %v8194_v4, %v8186_v12  ;;  %v3422_v35 = vpop.f32.mrf.mxu3  ;;  %vm1173_vm8 = vweird.f32 %v8194_v4  ;;  %5958 = vpow2.f32 %v5088_v26 }
 0x3aa   :  { %v3656_v18 = vmul.f32 %v8173_v20, %v3560_v48  ;;  %v3714_v55 = vmul.f32 128.0, %v5955_v10  ;;  %v1156_v5 = vadd.f32 %v5949_v29, %v1155_v21  ;;  %v3423_v32 = vadd.f32 %v7894_v43, %v3422_v35  ;;  %vm8219_vm11 = vmor %vm1172_vm9, %vm1173_vm8  ;;  %v8233_v35 = vpop.permute.xlu1 %3619 }
 0x3ab   :  { %v1169_v8 = vsub.f32 1.0, %v1168_v6  ;;  %v1164_v48 = vor.u32 1.1754944e-38, %v1163_v50  ;;  %vm3718_vm10 = vweird.f32 %v5955_v10  ;;  %v3743_v6 = vmul.f32 %v8152_v19, %v8152_v19 }
 0x3ac   :  { %v8179_v31 = vadd.f32 %v6043_v53, %v3656_v18  ;;  %v3715_v23 = vsub.f32 1.0, %v3714_v55  ;;  %v1160_v38 = vsel %vm1159_vm5, %v5949_v29, %v1156_v5  ;;  %v8210_v18 = vpop.permute.xlu0 %3624  ;;  %v3472_v37 = vadd.f32 %v3471_v40, %v3423_v32 }
 0x3ad   :  { %v8202_v25 = vpop.eup %5956  ;;  %v1170_v0 = vmul.f32 %v8194_v4, %v1169_v8  ;;  %v1165_v53 = vsel %vm1162_vm6, %v1164_v48, %v1160_v38  ;;  %v1176_v29 = vand.u32 2147483647, %v8186_v12  ;;  %v1179_v21 = vor.u32 1.1754944e-38, %v1178_v2 }
 0x3ae   :  { %3699 = vadd.xlane.f32.xlu1 %v8179_v31  ;;  %v3745_v63 = vmul.f32 %v8179_v31, %v8179_v31  ;;  %v1183_v41 = vmul.f32 %v8202_v25, %v8189_v56  ;;  %v3716_v47 = vmul.f32 %v5955_v10, %v3715_v23  ;;  %v1252_v15 = vpack.c.bf16 %v1165_v53, %v1165_v53  ;;  %v3473_v59 = vpop.f32.mrf.mxu0  ;;  %v3522_v23 = vpop.f32.mrf.mxu1  ;;  %v5581_v53 = vld [vmem:[#allocation13 + $0x70] sm:$0xf] }
 0x3af   :  { %vm1177_vm0 = vcmp.eq.f32.partialorder %v1176_v29, 8.507059e+37  ;;  %v1191_v12 = vand.u32 2147483647, %v8189_v56  ;;  %v5959_v5 = vpop.eup %5958  ;;  %vm1188_vm7 = vweird.f32 %v8202_v25  ;;  %v3744_v2 = vmul.f32 %v8165_v46, %v8165_v46  ;;  %v5573_v29 = vld [vmem:[#allocation13 + $0x60] sm:$0xf] }
 0x3b0   :  { %3770 = vadd.xlane.f32.xlu0 %v3745_v63  ;;  %v1184_v61 = vsub.f32 1.0, %v1183_v41  ;;  %v1171_v63 = vadd.f32 %v8194_v4, %v1170_v0  ;;  %v3717_v45 = vadd.f32 %v5955_v10, %v3716_v47  ;;  %v3545_v55 = vunpack.c.l.bf16 %v1252_v15  ;;  %vm8248_vm13 = vmor %vm1187_vm12, %vm1188_vm7 }
 0x3b1   :  { %v3424_v51 = vpop.f32.mrf.mxu3  ;;  %v8246_v32 = vadd.f32 1.0, %v5959_v5  ;;  %vm8252_vm14 = vcmp.eq.f32.partialorder %v1191_v12, 8.507059e+37 }
 0x3b2   :  { %v1175_v44 = vsel %vm8219_vm11, %v8194_v4, %v1171_v63  ;;  %v1185_v9 = vmul.f32 %v8202_v25, %v1184_v61  ;;  %v3425_v62 = vadd.f32 %v7894_v43, %v3424_v51  ;;  %v1193_v4 = vand.u32 2147483648, %v8189_v56  ;;  %v5778_v63 = vld [vmem:[#allocation13 + $0x74] sm:$0xf0] }
 0x3b3   :  { %v1180_v34 = vsel %vm1177_vm0, %v1179_v21, %v1175_v44  ;;  %v5582_v15 = vor.u32 %v5778_v63, %v5581_v53  ;;  %v5776_v44 = vld [vmem:[#allocation13 + $0x64] sm:$0xf0]  ;;  %v5774_v53 = vld [vmem:[#allocation13 + $0x54] sm:$0xf0]  ;;  %vm1202_vm4 = vweird.f32 %v8246_v32 }
 0x3b4   :  { %v3474_v40 = vadd.f32 %v3473_v59, %v3425_v62  ;;  %v1253_v47 = vpack.c.bf16 %v1180_v34, %v1180_v34  ;;  %v1194_v48 = vor.u32 1.1754944e-38, %v1193_v4  ;;  %v5575_v62 = vld [vmem:[#allocation13 + $0x68] sm:$0xf0]  ;;  %v5574_v12 = vor.u32 %v5776_v44, %v5573_v29 }
 0x3b5   :  { %4188 = vmatpush.bf16.msra.mxu2 %v5582_v15  ;;  %v5557_v15 = vld [vmem:[#allocation13 + $0x40] sm:$0xf] }
 0x3b9   :  { %v3427_v24 = vpop.f32.mrf.mxu3  ;;  %4189 = vmatpush.bf16.msra.mxu2 %v5574_v12  ;;  %v5559_v12 = vld [vmem:[#allocation13 + $0x48] sm:$0xf0] }
 0x3ba   :  { %v3428_v51 = vadd.f32 %v7894_v43, %v3427_v24  ;;  %v3476_v43 = vpop.f32.mrf.mxu0 }
 0x3bc   :  { %v3477_v4 = vadd.f32 %v3476_v43, %v3428_v51 }
 0x3c4   :  { %3644 = vperm.xlu0 %5827, %v225_v13   ;;  %v3521_v13 = vadd.f32 %v3520_v54, %v3472_v37  ;;  %v5777_v37 = vld [vmem:[#allocation13 + $0x74] sm:$0xf] }
 0x3c6   :  { %v3561_v50 = vmul.f32 %v3545_v55, %v3521_v13  ;;  %v5586_v13 = vor.u32 %v5777_v37, %v5583_v30 }
 0x3c7   :  { %3639 = vperm.xlu1 %5828, %v224_v52   ;;  %v8229_v52 = vsel %vm3718_vm10, %v5955_v10, %v3717_v45  ;;  %v1186_v10 = vadd.f32 %v8202_v25, %v1185_v9  ;;  %v3523_v45 = vadd.f32 %v3522_v23, %v3474_v40 }
 0x3c8   :  { %v3657_v9 = vmul.f32 %v8233_v35, %v3561_v50  ;;  %4237 = vmatpush.bf16.msra.mxu3 %v5586_v13  ;;  %v5771_v13 = vld [vmem:[#allocation13 + $0x44] sm:$0xf] }
 0x3c9   :  { %v1190_v56 = vsel %vm8248_vm13, %v8202_v25, %v1186_v10  ;;  %v5775_v25 = vld [vmem:[#allocation13 + $0x64] sm:$0xf]  ;;  %v6044_v10 = vld [vmem:[%s9079_s5 + $0x50] sm:$0xff] }
 0x3ca   :  { %v1195_v21 = vsel %vm8252_vm14, %v1194_v48, %v1190_v56  ;;  %v5578_v5 = vor.u32 %v5775_v25, %v5575_v62  ;;  %v8274_v50 = vadd.f32 %v6044_v10, %v3657_v9  ;;  %v5772_v9 = vld [vmem:[#allocation13 + $0x44] sm:$0xf0] }
 0x3cb   :  { %v1254_v40 = vpack.c.bf16 %v1195_v21, %v1195_v21 }
 0x3cc   :  { %4238 = vmatpush.bf16.msra.mxu3 %v5578_v5  ;;  %v3746_v26 = vmul.f32 %v8274_v50, %v8274_v50  ;;  %v5562_v5 = vor.u32 %v5771_v13, %v5559_v12  ;;  %v6046_v13 = vld [vmem:[%s9079_s5 + $0x60] sm:$0xff] }
 0x3cd   :  { %v3547_v56 = vunpack.c.l.bf16 %v1254_v40 }
 0x3d1   :  { %3693 = vadd.xlane.f32.xlu2 %v8134_v14 }
 0x3d9   :  { %v3682_v8 = vpop.xlane.xlu0 %3681  ;;  %3766 = vadd.xlane.f32.xlu2 %v3743_v6  ;;  %v3546_v6 = vunpack.c.l.bf16 %v1253_v47 }
 0x3da   :  { %v8240_v60 = vmul.f32 %v8229_v52, %v3682_v8 }
 0x3db   :  { %v3753_v41 = vpop.xlane.xlu2 %3752  ;;  %v3562_v23 = vmul.f32 %v3546_v6, %v3523_v45  ;;  %v5773_v45 = vld [vmem:[#allocation13 + $0x54] sm:$0xf]  ;;  %v6045_v6 = vld [vmem:[%s9079_s5 + $0x58] sm:$0xff] }
 0x3dc   :  { %v3800_v0 = vmul.f32 %v8240_v60, %v8240_v60  ;;  %v3784_v38 = vmul.f32 %v3753_v41, %v8229_v52 }
 0x3dd   :  { %v3658_v54 = vmul.f32 %v8210_v18, %v3562_v23  ;;  %v5549_v23 = vld [vmem:[#allocation13 + $0x30] sm:$0xf] }
 0x3de   :  { %v3816_v61 = vsub.f32 %v3784_v38, %v3800_v0  ;;  %v3525_v0 = vpop.f32.mrf.mxu1 }
 0x3df   :  { %v3526_v38 = vadd.f32 %v3525_v0, %v3477_v4  ;;  %v8296_v21 = vadd.f32 %v6045_v6, %v3658_v54 }
 0x3e0   :  { %v8263_v59 = vadd.f32 1e-05, %v3816_v61  ;;  %v5565_v61 = vld [vmem:[#allocation13 + $0x50] sm:$0xf] }
 0x3e1   :  { %v3684_v55 = vpop.xlane.xlu1 %3683  ;;  %3768 = vadd.xlane.f32.xlu2 %v3744_v2  ;;  %v5566_v37 = vor.u32 %v5774_v53, %v5565_v61  ;;  %v5567_v2 = vld [vmem:[#allocation13 + $0x58] sm:$0xf0]  ;;  %v3563_v29 = vmul.f32 %v3547_v56, %v3526_v38  ;;  %v3747_v54 = vmul.f32 %v8296_v21, %v8296_v21 }
 0x3e2   :  { %5960 = vrsqrt.f32 %v8263_v59  ;;  %v8269_v8 = vmul.f32 %v8229_v52, %v3684_v55  ;;  %v5570_v44 = vor.u32 %v5773_v45, %v5567_v2  ;;  %v5558_v55 = vor.u32 %v5772_v9, %v5557_v15  ;;  %v5768_v45 = vld [vmem:[#allocation13 + $0x24] sm:$0xf0]  ;;  %v5767_v15 = vld [vmem:[#allocation13 + $0x24] sm:$0xf] }
 0x3e3   :  { %v3755_v34 = vpop.xlane.xlu2 %3754  ;;  %5962 = vrcp.f32 %v8246_v32  ;;  %4190 = vmatpush.bf16.msra.mxu2 %v5566_v37  ;;  %v5541_v37 = vld [vmem:[#allocation13 + $0x20] sm:$0xf]  ;;  %vm3870_vm1 = vweird.f32 %v8263_v59 }
 0x3e4   :  { %v3801_v24 = vmul.f32 %v8269_v8, %v8269_v8  ;;  %v3785_v41 = vmul.f32 %v3755_v34, %v8229_v52  ;;  %4239 = vmatpush.bf16.msra.mxu3 %v5570_v44  ;;  %v5770_v34 = vld [vmem:[#allocation13 + $0x34] sm:$0xf0] }
 0x3e5   :  { %v5550_v56 = vor.u32 %v5770_v34, %v5549_v23  ;;  %v5766_v23 = vld [vmem:[#allocation13 + $0x14] sm:$0xf0] }
 0x3e6   :  { %v3817_v47 = vsub.f32 %v3785_v41, %v3801_v24  ;;  %v5769_v24 = vld [vmem:[#allocation13 + $0x34] sm:$0xf]  ;;  %v5551_v41 = vld [vmem:[#allocation13 + $0x38] sm:$0xf0] }
 0x3e7   :  { %4191 = vmatpush.bf16.msra.mxu2 %v5558_v55  ;;  %v5542_v55 = vor.u32 %v5768_v45, %v5541_v37  ;;  %v3832_v37 = vsub.f32 %v7947_v57, %v8240_v60  ;;  %v5763_v57 = vld [vmem:[#allocation13 + $0x4] sm:$0xf]  ;;  %v5527_v60 = vld [vmem:[#allocation13 + $0x8] sm:$0xf0] }
 0x3e8   :  { %v8283_v48 = vpop.eup %5960  ;;  %v8285_v51 = vadd.f32 1e-05, %v3817_v47  ;;  %v3659_v47 = vmul.f32 %v8215_v49, %v3563_v29  ;;  %4240 = vmatpush.bf16.msra.mxu3 %v5562_v5  ;;  %v5543_v29 = vld [vmem:[#allocation13 + $0x28] sm:$0xf0]  ;;  %v5533_v5 = vld [vmem:[#allocation13 + $0x10] sm:$0xf] }
 0x3e9   :  { %v3865_v63 = vmul.f32 %v8283_v48, %v8263_v59  ;;  %3772 = vadd.xlane.f32.xlu2 %v3746_v26  ;;  %v8289_v30 = vpop.eup %5962  ;;  %vm3871_vm15 = vweird.f32 %v8283_v48  ;;  %v5546_v12 = vor.u32 %v5767_v15, %v5543_v29  ;;  %v5764_v15 = vld [vmem:[#allocation13 + $0x4] sm:$0xf0] }
 0x3ea   :  { %5964 = vrsqrt.f32 %v8285_v51  ;;  %v1198_v10 = vmul.f32 %v8289_v30, %v8246_v32  ;;  %vm8335_vm2 = vmor %vm3870_vm1, %vm3871_vm15  ;;  %vm1203_vm5 = vweird.f32 %v8289_v30  ;;  %vm3880_vm6 = vweird.f32 %v8285_v51 }
 0x3eb   :  { %v3866_v25 = vmul.f32 %v8283_v48, %v3865_v63  ;;  %v3757_v62 = vpop.xlane.xlu0 %3756  ;;  %v3686_v43 = vpop.xlane.xlu2 %3685  ;;  %v5554_v63 = vor.u32 %v5769_v24, %v5551_v41  ;;  %4192 = vmatpush.bf16.msra.mxu2 %v5550_v56  ;;  %v6047_v41 = vld [vmem:[%s9183_s10] ss:$0 sm:$0xff]  ;;  %vm8382_vm9 = vmor %vm1202_vm4, %vm1203_vm5 }
 0x3ec   :  { %v8299_v4 = vmul.f32 %v8229_v52, %v3686_v43  ;;  %v3786_v0 = vmul.f32 %v3757_v62, %v8229_v52  ;;  %v1199_v44 = vsub.f32 1.0, %v1198_v10  ;;  %v5765_v10 = vld [vmem:[#allocation13 + $0x14] sm:$0xf] }
 0x3ed   :  { %v3867_v40 = vmul.f32 0.5, %v3866_v25  ;;  %v8320_v25 = vadd.f32 %v6046_v13, %v3659_v47  ;;  %4241 = vmatpush.bf16.msra.mxu3 %v5554_v63  ;;  %v9221_v47 = vld [vmem:[#allocation50_spill] sm:$0xff]  ;;  %v5534_v63 = vor.u32 %v5766_v23, %v5533_v5 }
 0x3ee   :  { %v3802_v38 = vmul.f32 %v8299_v4, %v8299_v4  ;;  %3703 = vadd.xlane.f32.xlu0 %v8296_v21  ;;  %v1200_v24 = vmul.f32 %v8289_v30, %v1199_v44 }
 0x3ef   :  { %v3868_v26 = vsub.f32 1.5, %v3867_v40  ;;  %v5535_v40 = vld [vmem:[#allocation13 + $0x18] sm:$0xf0]  ;;  %v3748_v59 = vmul.f32 %v8320_v25, %v8320_v25  ;;  %4193 = vmatpush.bf16.msra.mxu2 %v5542_v55 }
 0x3f0   :  { %v8310_v61 = vpop.eup %5964  ;;  %v3818_v53 = vsub.f32 %v3786_v0, %v3802_v38  ;;  %v9220_v0 = vld [vmem:[#allocation49_spill] sm:$0xff]  ;;  %v5538_v45 = vor.u32 %v5765_v10, %v5535_v40  ;;  %v1201_v13 = vadd.f32 %v8289_v30, %v1200_v24  ;;  %v1208_v24 = vand.u32 2147483648, %v8246_v32 }
 0x3f1   :  { %v3875_v2 = vmul.f32 %v8310_v61, %v8285_v51  ;;  %3701 = vadd.xlane.f32.xlu1 %v8274_v50  ;;  %3774 = vadd.xlane.f32.xlu2 %v3747_v54  ;;  %v3869_v62 = vmul.f32 %v8283_v48, %v3868_v26  ;;  %v934_v38 = vadd.f32 %v6047_v41, %v9220_v0  ;;  %vm3881_vm3 = vweird.f32 %v8310_v61 }
 0x3f2   :  { %v8315_v9 = vadd.f32 1e-05, %v3818_v53  ;;  %v936_v26 = vadd.f32 %v6047_v41, %v9221_v47  ;;  %4242 = vmatpush.bf16.msra.mxu3 %v5546_v12  ;;  %v3833_v51 = vsub.f32 %v7988_v27, %v8269_v8  ;;  %vm3882_vm8 = vmor %vm3880_vm6, %vm3881_vm3  ;;  %v1206_v12 = vand.u32 2147483647, %v8246_v32  ;;  %v3429_v27 = vpop.f32.mrf.mxu3 }
 0x3f3   :  { %v3876_v43 = vmul.f32 %v8310_v61, %v3875_v2  ;;  %v3688_v6 = vpop.xlane.xlu2 %3687  ;;  %v3873_v56 = vsel %vm8335_vm2, %v8283_v48, %v3869_v62  ;;  %v5525_v2 = vld [vmem:[#allocation13] sm:$0xf]  ;;  %4194 = vmatpush.bf16.msra.mxu2 %v5534_v63  ;;  %v5530_v47 = vor.u32 %v5763_v57, %v5527_v60  ;;  %v5089_v57 = vmul.f32 -1.442695, %v934_v38 }
 0x3f4   :  { %5966 = vrsqrt.f32 %v8315_v9  ;;  %v8352_v48 = vmul.f32 %v8229_v52, %v3688_v6  ;;  %v4024_v55 = vmul.f32 %v3873_v56, %v3832_v37  ;;  %v5526_v40 = vor.u32 %v5764_v15, %v5525_v2 }
 0x3f5   :  { %v3877_v34 = vmul.f32 0.5, %v3876_v43  ;;  %v8361_v43 = vld [vmem:[%s9034_s13] ss:$0 sm:$0xff]  ;;  %v5090_v54 = vmul.f32 -1.442695, %v936_v26  ;;  %vm1207_vm10 = vcmp.eq.f32.partialorder %v1206_v12, 8.507059e+37  ;;  %vm3890_vm0 = vweird.f32 %v8315_v9 }
 0x3f6   :  { %4243 = vmatpush.bf16.msra.mxu3 %v5538_v45  ;;  %v4043_v63 = vmul.f32 %v8361_v43, %v4024_v55  ;;  %v8398_v26 = vld [vmem:[%s9032_s11] ss:$0 sm:$0xff]  ;;  %v3478_v55 = vpop.f32.mrf.mxu0 }
 0x3f7   :  { %v3878_v53 = vsub.f32 1.5, %v3877_v34  ;;  %v3430_v2 = vadd.f32 %v8398_v26, %v3429_v27  ;;  %4195 = vmatpush.bf16.msra.mxu2 %v5526_v40  ;;  %5968 = vpow2.f32 %v5090_v54  ;;  %v3527_v27 = vpop.f32.mrf.mxu1 }
 0x3f9   :  { %v3879_v29 = vmul.f32 %v8310_v61, %v3878_v53  ;;  %3776 = vadd.xlane.f32.xlu1 %v3748_v59  ;;  %v3690_v44 = vpop.xlane.xlu1 %3689  ;;  %3705 = vadd.xlane.f32.xlu2 %v8320_v25  ;;  %v3803_v59 = vmul.f32 %v8352_v48, %v8352_v48  ;;  %v1205_v53 = vsel %vm8382_vm9, %v8289_v30, %v1201_v13  ;;  %v8406_v30 = vld [vmem:[%s9035_s14] ss:$0 sm:$0xff] }
 0x3fa   :  { %v8356_v62 = vpop.eup %5966  ;;  %v8368_v6 = vmul.f32 %v8229_v52, %v3690_v44  ;;  %4244 = vmatpush.bf16.msra.mxu3 %v5530_v47 }
 0x3fb   :  { %v3883_v5 = vsel %vm3882_vm8, %v8310_v61, %v3879_v29  ;;  %v3885_v23 = vmul.f32 %v8356_v62, %v8315_v9  ;;  %v3761_v34 = vpop.xlane.xlu0 %3760  ;;  %v3759_v10 = vpop.xlane.xlu2 %3758  ;;  %v1209_v29 = vor.u32 1.1754944e-38, %v1208_v24  ;;  %vm3891_vm11 = vweird.f32 %v8356_v62  ;;  %v6049_v9 = vld [vmem:[%s9079_s5 + $0x68] sm:$0xff] }
 0x3fc   :  { %v4025_v8 = vmul.f32 %v3883_v5, %v3833_v51  ;;  %v3804_v41 = vmul.f32 %v8368_v6, %v8368_v6  ;;  %v3788_v0 = vmul.f32 %v3761_v34, %v8229_v52  ;;  %v3787_v56 = vmul.f32 %v3759_v10, %v8229_v52  ;;  %vm3892_vm7 = vmor %vm3890_vm0, %vm3891_vm11 }
 0x3fd   :  { %v3886_v32 = vmul.f32 %v8356_v62, %v3885_v23  ;;  %v1210_v13 = vsel %vm1207_vm10, %v1209_v29, %v1205_v53  ;;  %v8410_v5 = vadd.f32 %v8406_v30, %v4043_v63  ;;  %v3479_v34 = vadd.f32 %v3478_v55, %v3430_v2  ;;  %v5969_v47 = vpop.eup %5968 }
 0x3fe   :  { %v4044_v37 = vmul.f32 %v8361_v43, %v4025_v8  ;;  %v3820_v45 = vsub.f32 %v3788_v0, %v3804_v41  ;;  %v3819_v15 = vsub.f32 %v3787_v56, %v3803_v59  ;;  %v1255_v24 = vpack.c.bf16 %v1210_v13, %v1210_v13 }
 0x3ff   :  { %v3887_v51 = vmul.f32 0.5, %v3886_v32  ;;  %v3528_v61 = vadd.f32 %v3527_v27, %v3479_v34  ;;  %v8429_v2 = vadd.f32 1.0, %v5969_v47 }
 0x400   :  { %v8401_v44 = vadd.f32 1e-05, %v3820_v45  ;;  %v3851_v60 = vadd.f32 1e-05, %v3819_v15  ;;  %v8413_v23 = vadd.f32 %v8406_v30, %v4044_v37  ;;  %v3548_v53 = vunpack.c.l.bf16 %v1255_v24 }
 0x401   :  { %v3888_v8 = vsub.f32 1.5, %v3887_v51  ;;  %vm1232_vm8 = vweird.f32 %v8429_v2 }
 0x402   :  { %5970 = vrsqrt.f32 %v8401_v44  ;;  %v4078_v38 = vpack.c.bf16 %v8413_v23, %v8410_v5  ;;  %v3564_v15 = vmul.f32 %v3548_v53, %v3528_v61  ;;  %vm3900_vm13 = vweird.f32 %v3851_v60 }
 0x403   :  { %5972 = vrsqrt.f32 %v3851_v60  ;;  %v3763_v10 = vpop.xlane.xlu0 %3762  ;;  %v3692_v40 = vpop.xlane.xlu2 %3691  ;;  %v3889_v63 = vmul.f32 %v8356_v62, %v3888_v8  ;;  %vm3910_vm3 = vweird.f32 %v8401_v44 }
 0x404   :  { %v8416_v12 = vmul.f32 %v8229_v52, %v3692_v40  ;;  %5974 = vpow2.f32 %v5089_v57  ;;  %v3789_v41 = vmul.f32 %v3763_v10, %v8229_v52  ;;  %4196 = vmatmul.bf16.vlgmr.msra.gmra.mxu2 %v4078_v38  ;;  %4245 = vmatmul.bf16.vlgmr.msra.gmra.mxu3 %v4078_v38  ;;  %v3834_v38 = vsub.f32 %v8022_v58, %v8299_v4 }
 0x405   :  { %v3893_v51 = vsel %vm3892_vm7, %v8356_v62, %v3889_v63  ;;  %v3835_v58 = vsub.f32 %v8056_v16, %v8352_v48 }
 0x406   :  { %v3805_v0 = vmul.f32 %v8416_v12, %v8416_v12  ;;  %v4026_v8 = vmul.f32 %v3893_v51, %v3834_v38  ;;  %v3432_v38 = vpop.f32.mrf.mxu3 }
 0x408   :  { %v8423_v54 = vpop.eup %5970  ;;  %v3821_v59 = vsub.f32 %v3789_v41, %v3805_v0 }
 0x409   :  { %v5973_v56 = vpop.eup %5972  ;;  %v3905_v37 = vmul.f32 %v8423_v54, %v8401_v44  ;;  %vm3911_vm1 = vweird.f32 %v8423_v54 }
 0x40a   :  { %v3895_v32 = vmul.f32 %v5973_v56, %v3851_v60  ;;  %v3853_v45 = vadd.f32 1e-05, %v3821_v59  ;;  %v5975_v57 = vpop.eup %5974  ;;  %vm3901_vm12 = vweird.f32 %v5973_v56  ;;  %v4045_v59 = vmul.f32 %v8361_v43, %v4026_v8  ;;  %vm3912_vm5 = vmor %vm3910_vm3, %vm3911_vm1 }
 0x40b   :  { %v8431_v29 = vpop.permute.xlu2 %3634  ;;  %v3906_v34 = vmul.f32 %v8423_v54, %v3905_v37  ;;  %v8437_v40 = vadd.f32 1.0, %v5975_v57  ;;  %vm3902_vm14 = vmor %vm3900_vm13, %vm3901_vm12 }
 0x40c   :  { %9226 = vst [vmem:[#allocation31_spill] sm:$0xff] %v8431_v29  ;;  %v3896_v13 = vmul.f32 %v5973_v56, %v3895_v32  ;;  %5976 = vrsqrt.f32 %v3853_v45  ;;  %v3660_v55 = vmul.f32 %v8431_v29, %v3564_v15  ;;  %vm3920_vm2 = vweird.f32 %v3853_v45 }
 0x40d   :  { %5978 = vrcp.f32 %v8429_v2  ;;  %v3907_v41 = vmul.f32 0.5, %v3906_v34  ;;  %vm1217_vm11 = vweird.f32 %v8437_v40 }
 0x40e   :  { %v3897_v10 = vmul.f32 0.5, %v3896_v13  ;;  %v8445_v24 = vadd.f32 %v6049_v9, %v3660_v55  ;;  %5980 = vrcp.f32 %v8437_v40 }
 0x40f   :  { %v3908_v37 = vsub.f32 1.5, %v3907_v41 }
 0x410   :  { %v3898_v27 = vsub.f32 1.5, %v3897_v10  ;;  %3707 = vadd.xlane.f32.xlu2 %v8445_v24  ;;  %v3749_v15 = vmul.f32 %v8445_v24, %v8445_v24 }
 0x411   :  { %v3909_v55 = vmul.f32 %v8423_v54, %v3908_v37  ;;  %v8474_v9 = vpop.xlane.xlu0 %3695 }
 0x412   :  { %v5977_v62 = vpop.eup %5976  ;;  %v3899_v0 = vmul.f32 %v5973_v56, %v3898_v27  ;;  %v3837_v27 = vsub.f32 %v8114_v22, %v8416_v12  ;;  %v3530_v22 = vpop.f32.mrf.mxu1 }
 0x413   :  { %v3915_v4 = vmul.f32 %v5977_v62, %v3853_v45  ;;  %v8451_v61 = vpop.eup %5978  ;;  %vm3921_vm15 = vweird.f32 %v5977_v62  ;;  %v3913_v41 = vsel %vm3912_vm5, %v8423_v54, %v3909_v55  ;;  %v3434_v54 = vpop.f32.mrf.mxu3 }
 0x414   :  { %v3903_v47 = vsel %vm3902_vm14, %v5973_v56, %v3899_v0  ;;  %v1228_v57 = vmul.f32 %v8451_v61, %v8429_v2  ;;  %v8459_v16 = vpop.eup %5980  ;;  %v8462_v56 = vadd.f32 %v8406_v30, %v4045_v59  ;;  %vm3922_vm4 = vmor %vm3920_vm2, %vm3921_vm15  ;;  %v3836_v0 = vsub.f32 %v8081_v33, %v8368_v6  ;;  %v3481_v59 = vpop.f32.mrf.mxu0 }
 0x415   :  { %v3916_v53 = vmul.f32 %v5977_v62, %v3915_v4  ;;  %v4027_v63 = vmul.f32 %v3903_v47, %v3835_v58  ;;  %v1213_v10 = vmul.f32 %v8459_v16, %v8437_v40  ;;  %vm1233_vm6 = vweird.f32 %v8451_v61 }
 0x416   :  { %v1229_v45 = vsub.f32 1.0, %v1228_v57  ;;  %v4028_v47 = vmul.f32 %v3913_v41, %v3836_v0  ;;  %v1238_v33 = vand.u32 2147483648, %v8429_v2  ;;  %vm8495_vm9 = vmor %vm1232_vm8, %vm1233_vm6  ;;  %vm1218_vm10 = vweird.f32 %v8459_v16 }
 0x417   :  { %v3917_v32 = vmul.f32 0.5, %v3916_v53  ;;  %v4046_v60 = vmul.f32 %v8361_v43, %v4027_v63  ;;  %v1214_v4 = vsub.f32 1.0, %v1213_v10  ;;  %v3435_v57 = vadd.f32 %v8398_v26, %v3434_v54  ;;  %vm1219_vm7 = vmor %vm1217_vm11, %vm1218_vm10 }
 0x418   :  { %3778 = vadd.xlane.f32.xlu2 %v3749_v15  ;;  %v1230_v44 = vmul.f32 %v8451_v61, %v1229_v45  ;;  %v4047_v12 = vmul.f32 %v8361_v43, %v4028_v47  ;;  %v1221_v10 = vand.u32 2147483647, %v8437_v40  ;;  %v3433_v45 = vadd.f32 %v8398_v26, %v3432_v38 }
 0x419   :  { %v3918_v48 = vsub.f32 1.5, %v3917_v32  ;;  %v8465_v13 = vadd.f32 %v8406_v30, %v4046_v60  ;;  %v1215_v63 = vmul.f32 %v8459_v16, %v1214_v4  ;;  %v8487_v37 = vpop.xlane.xlu0 %3697  ;;  %v1236_v32 = vand.u32 2147483647, %v8429_v2 }
 0x41a   :  { %v8503_v55 = vadd.f32 %v8406_v30, %v4047_v12  ;;  %v1223_v2 = vand.u32 2147483648, %v8437_v40  ;;  %vm1222_vm12 = vcmp.eq.f32.partialorder %v1221_v10, 8.507059e+37  ;;  %v3532_v40 = vpop.f32.mrf.mxu1 }
 0x41b   :  { %v3919_v51 = vmul.f32 %v5977_v62, %v3918_v48  ;;  %v4079_v34 = vpack.c.bf16 %v8465_v13, %v8462_v56  ;;  %v1216_v60 = vadd.f32 %v8459_v16, %v1215_v63  ;;  %v3765_v48 = vpop.xlane.xlu1 %3764  ;;  %vm1237_vm0 = vcmp.eq.f32.partialorder %v1236_v32, 8.507059e+37 }
 0x41d   :  { %v3923_v8 = vsel %vm3922_vm4, %v5977_v62, %v3919_v51  ;;  %4201 = vmatmul.bf16.gmra.mxu2 %v4079_v34  ;;  %4250 = vmatmul.bf16.gmra.mxu3 %v4079_v34  ;;  %v1231_v62 = vadd.f32 %v8451_v61, %v1230_v44  ;;  %v1239_v34 = vor.u32 1.1754944e-38, %v1238_v33  ;;  %v1220_v0 = vsel %vm1219_vm7, %v8459_v16, %v1216_v60  ;;  %v6050_v60 = vld [vmem:[%s9079_s5 + $0x78] sm:$0xff] }
 0x41e   :  { %v4029_v58 = vmul.f32 %v3923_v8, %v3837_v27  ;;  %v3483_v8 = vpop.f32.mrf.mxu0 }
 0x41f   :  { %v1235_v51 = vsel %vm8495_vm9, %v8451_v61, %v1231_v62  ;;  %v1224_v61 = vor.u32 1.1754944e-38, %v1223_v2 }
 0x420   :  { %v4048_v53 = vmul.f32 %v8361_v43, %v4029_v58  ;;  %v1240_v41 = vsel %vm1237_vm0, %v1239_v34, %v1235_v51  ;;  %v3484_v58 = vadd.f32 %v3483_v8, %v3435_v57 }
 0x421   :  { %v1257_v47 = vpack.c.bf16 %v1240_v41, %v1240_v41  ;;  %v1225_v44 = vsel %vm1222_vm12, %v1224_v61, %v1220_v0  ;;  %v3790_v41 = vmul.f32 %v3765_v48, %v8229_v52 }
 0x422   :  { %v8491_v6 = vadd.f32 %v8406_v30, %v4048_v53  ;;  %v3482_v53 = vadd.f32 %v3481_v59, %v3433_v45  ;;  %v3533_v63 = vadd.f32 %v3532_v40, %v3484_v58  ;;  %v1256_v62 = vpack.c.bf16 %v1225_v44, %v1225_v44 }
 0x423   :  { %v3771_v4 = vpop.xlane.xlu0 %3770  ;;  %v3700_v12 = vpop.xlane.xlu1 %3699  ;;  %v3550_v54 = vunpack.c.l.bf16 %v1257_v47  ;;  %v8548_v58 = vmul.f32 %v8229_v52, %v8474_v9  ;;  %v8558_v9 = vmul.f32 %v8229_v52, %v8487_v37 }
 0x424   :  { %v4080_v27 = vpack.c.bf16 %v8491_v6, %v8503_v55  ;;  %v3531_v33 = vadd.f32 %v3530_v22, %v3482_v53  ;;  %v3549_v38 = vunpack.c.l.bf16 %v1256_v62  ;;  %v6051_v22 = vld [vmem:[%s9079_s5 + $0x70] sm:$0xff]  ;;  %v8541_v45 = vmul.f32 %v8229_v52, %v3700_v12 }
 0x425   :  { %v3566_v32 = vmul.f32 %v3550_v54, %v3533_v63  ;;  %v3793_v44 = vmul.f32 %v3771_v4, %v8229_v52  ;;  %v3807_v63 = vmul.f32 %v8548_v58, %v8548_v58 }
 0x426   :  { %v3565_v15 = vmul.f32 %v3549_v38, %v3531_v33  ;;  %v3809_v47 = vmul.f32 %v8541_v45, %v8541_v45 }
 0x428   :  { %v3825_v12 = vsub.f32 %v3793_v44, %v3809_v47 }
 0x42a   :  { %v8560_v33 = vadd.f32 1e-05, %v3825_v12 }
 0x42c   :  { %vm3960_vm9 = vweird.f32 %v8560_v33 }
 0x42d   :  { %4206 = vmatmul.bf16.gmra.mxu2 %v4080_v27  ;;  %4255 = vmatmul.bf16.gmra.mxu3 %v4080_v27 }
 0x436   :  { %v8515_v26 = vpop.permute.xlu0 %3644 }
 0x437   :  { %9229 = vst [vmem:[#allocation54_spill] sm:$0xff] %v8515_v26  ;;  %v3662_v16 = vmul.f32 %v8515_v26, %v3566_v32 }
 0x439   :  { %v8521_v57 = vadd.f32 %v6050_v60, %v3662_v16  ;;  %v8523_v51 = vpop.permute.xlu1 %3639  ;;  %v3808_v16 = vmul.f32 %v8558_v9, %v8558_v9 }
 0x43a   :  { %9230 = vst [vmem:[#allocation63_spill] sm:$0xff] %v8523_v51  ;;  %v3661_v59 = vmul.f32 %v8523_v51, %v3565_v15  ;;  %v5786_v51 = vld [vmem:[#allocation14 + $0x38] sm:$0xff] }
 0x43b   :  { %3711 = vadd.xlane.f32.xlu1 %v8521_v57  ;;  %v3751_v27 = vmul.f32 %v8521_v57, %v8521_v57  ;;  %4466 = vmatpush.bf16.msra.mxu0 %v5786_v51  ;;  %v5784_v51 = vld [vmem:[#allocation14 + $0x28] sm:$0xff] }
 0x43c   :  { %v8530_v2 = vadd.f32 %v6051_v22, %v3661_v59 }
 0x43e   :  { %3709 = vadd.xlane.f32.xlu0 %v8530_v2  ;;  %v3750_v34 = vmul.f32 %v8530_v2, %v8530_v2 }
 0x440   :  { %3780 = vadd.xlane.f32.xlu2 %v3750_v34 }
 0x444   :  { %v3694_v10 = vpop.xlane.xlu2 %3693 }
 0x445   :  { %v8538_v8 = vmul.f32 %v8229_v52, %v3694_v10 }
 0x446   :  { %3782 = vadd.xlane.f32.xlu0 %v3751_v27 }
 0x447   :  { %v3806_v0 = vmul.f32 %v8538_v8, %v8538_v8 }
 0x449   :  { %v3822_v61 = vsub.f32 %v3790_v41, %v3806_v0 }
 0x44b   :  { %v3854_v40 = vadd.f32 1e-05, %v3822_v61 }
 0x44c   :  { %v3767_v53 = vpop.xlane.xlu2 %3766 }
 0x44d   :  { %5982 = vrsqrt.f32 %v3854_v40  ;;  %v3791_v48 = vmul.f32 %v3767_v53, %v8229_v52  ;;  %vm3930_vm14 = vweird.f32 %v3854_v40 }
 0x44f   :  { %v3823_v62 = vsub.f32 %v3791_v48, %v3807_v63 }
 0x451   :  { %v3855_v54 = vadd.f32 1e-05, %v3823_v62 }
 0x453   :  { %v5983_v32 = vpop.eup %5982  ;;  %5984 = vrsqrt.f32 %v3855_v54  ;;  %vm3940_vm2 = vweird.f32 %v3855_v54 }
 0x454   :  { %v3925_v4 = vmul.f32 %v5983_v32, %v3854_v40  ;;  %v3769_v38 = vpop.xlane.xlu2 %3768  ;;  %5986 = vrsqrt.f32 %v8560_v33  ;;  %vm3931_vm13 = vweird.f32 %v5983_v32  ;;  %v3838_v40 = vsub.f32 %v8134_v14, %v8538_v8 }
 0x455   :  { %v3792_v15 = vmul.f32 %v3769_v38, %v8229_v52  ;;  %vm8575_vm15 = vmor %vm3930_vm14, %vm3931_vm13 }
 0x456   :  { %v3926_v60 = vmul.f32 %v5983_v32, %v3925_v4 }
 0x457   :  { %v3824_v59 = vsub.f32 %v3792_v15, %v3808_v16 }
 0x458   :  { %v3927_v22 = vmul.f32 0.5, %v3926_v60 }
 0x459   :  { %v5985_v34 = vpop.eup %5984  ;;  %v8566_v37 = vadd.f32 1e-05, %v3824_v59 }
 0x45a   :  { %v3935_v10 = vmul.f32 %v5985_v34, %v3855_v54  ;;  %v3928_v27 = vsub.f32 1.5, %v3927_v22  ;;  %v8569_v41 = vpop.eup %5986  ;;  %vm3941_vm1 = vweird.f32 %v5985_v34 }
 0x45b   :  { %5988 = vrsqrt.f32 %v8566_v37  ;;  %v3955_v44 = vmul.f32 %v8569_v41, %v8560_v33  ;;  %vm3942_vm3 = vmor %vm3940_vm2, %vm3941_vm1  ;;  %vm3961_vm5 = vweird.f32 %v8569_v41  ;;  %vm3950_vm6 = vweird.f32 %v8566_v37 }
 0x45c   :  { %v3936_v0 = vmul.f32 %v5985_v34, %v3935_v10  ;;  %v3773_v61 = vpop.xlane.xlu2 %3772  ;;  %v3929_v53 = vmul.f32 %v5983_v32, %v3928_v27  ;;  %vm8637_vm10 = vmor %vm3960_vm9, %vm3961_vm5 }
 0x45d   :  { %v3956_v15 = vmul.f32 %v8569_v41, %v3955_v44  ;;  %v3794_v54 = vmul.f32 %v3773_v61, %v8229_v52  ;;  %v5785_v61 = vld [vmem:[#allocation14 + $0x30] sm:$0xff] }
 0x45e   :  { %v3937_v47 = vmul.f32 0.5, %v3936_v0  ;;  %v3933_v60 = vsel %vm8575_vm15, %v5983_v32, %v3929_v53  ;;  %v3839_v32 = vsub.f32 %v8152_v19, %v8548_v58  ;;  %4467 = vmatpush.bf16.msra.mxu0 %v5785_v61 }
 0x45f   :  { %v4030_v44 = vmul.f32 %v3933_v60, %v3838_v40  ;;  %v3957_v8 = vmul.f32 0.5, %v3956_v15 }
 0x460   :  { %v3938_v63 = vsub.f32 1.5, %v3937_v47 }
 0x461   :  { %v8573_v48 = vpop.eup %5988  ;;  %v3704_v12 = vpop.xlane.xlu0 %3703  ;;  %v4049_v29 = vmul.f32 %v8361_v43, %v4030_v44  ;;  %v3958_v19 = vsub.f32 1.5, %v3957_v8 }
 0x462   :  { %v3939_v4 = vmul.f32 %v5985_v34, %v3938_v63  ;;  %v3945_v38 = vmul.f32 %v8573_v48, %v8566_v37  ;;  %v8582_v16 = vmul.f32 %v8229_v52, %v3704_v12  ;;  %vm3951_vm4 = vweird.f32 %v8573_v48  ;;  %4468 = vmatpush.bf16.msra.mxu0 %v5784_v51 }
 0x463   :  { %v8612_v40 = vadd.f32 %v8406_v30, %v4049_v29  ;;  %vm8620_vm8 = vmor %vm3950_vm6, %vm3951_vm4 }
 0x464   :  { %v3946_v59 = vmul.f32 %v8573_v48, %v3945_v38  ;;  %v3811_v22 = vmul.f32 %v8582_v16, %v8582_v16  ;;  %v3702_v10 = vpop.xlane.xlu1 %3701  ;;  %v3775_v27 = vpop.xlane.xlu2 %3774  ;;  %v3943_v53 = vsel %vm3942_vm3, %v5985_v34, %v3939_v4  ;;  %v5793_v4 = vld [vmem:[#allocation14 + $0x70] sm:$0xff] }
 0x465   :  { %v8593_v0 = vmul.f32 %v8229_v52, %v3702_v10  ;;  %v3795_v47 = vmul.f32 %v3775_v27, %v8229_v52  ;;  %v4031_v10 = vmul.f32 %v3943_v53, %v3839_v32  ;;  %v5794_v27 = vld [vmem:[#allocation14 + $0x78] sm:$0xff]  ;;  %v5781_v32 = vld [vmem:[#allocation14 + $0x10] sm:$0xff] }
 0x466   :  { %v3947_v14 = vmul.f32 0.5, %v3946_v59  ;;  %4515 = vmatpush.bf16.msra.mxu1 %v5794_v27 }
 0x467   :  { %v3810_v63 = vmul.f32 %v8593_v0, %v8593_v0  ;;  %v3827_v12 = vsub.f32 %v3795_v47, %v3811_v22  ;;  %v4050_v34 = vmul.f32 %v8361_v43, %v4031_v10  ;;  %v3959_v22 = vmul.f32 %v8569_v41, %v3958_v19  ;;  %v5792_v47 = vld [vmem:[#allocation14 + $0x68] sm:$0xff] }
 0x468   :  { %v3948_v62 = vsub.f32 1.5, %v3947_v14  ;;  %v3840_v14 = vsub.f32 %v8165_v46, %v8558_v9  ;;  %v3841_v46 = vsub.f32 %v8179_v31, %v8541_v45 }
 0x469   :  { %v3826_v38 = vsub.f32 %v3794_v54, %v3810_v63  ;;  %v8601_v26 = vadd.f32 1e-05, %v3827_v12  ;;  %v8615_v59 = vadd.f32 %v8406_v30, %v4050_v34  ;;  %v5783_v63 = vld [vmem:[#allocation14 + $0x20] sm:$0xff] }
 0x46a   :  { %v3949_v15 = vmul.f32 %v8573_v48, %v3948_v62  ;;  %4516 = vmatpush.bf16.msra.mxu1 %v5793_v4  ;;  %v5791_v12 = vld [vmem:[#allocation14 + $0x60] sm:$0xff]  ;;  %4469 = vmatpush.bf16.msra.mxu0 %v5783_v63  ;;  %v5782_v4 = vld [vmem:[#allocation14 + $0x18] sm:$0xff] }
 0x46b   :  { %v8604_v58 = vadd.f32 1e-05, %v3826_v38  ;;  %5990 = vrsqrt.f32 %v8601_v26  ;;  %v4081_v29 = vpack.c.bf16 %v8615_v59, %v8612_v40  ;;  %vm3980_vm13 = vweird.f32 %v8601_v26 }
 0x46c   :  { %v3706_v60 = vpop.xlane.xlu2 %3705  ;;  %v3953_v53 = vsel %vm8620_vm8, %v8573_v48, %v3949_v15  ;;  %v3963_v48 = vsel %vm8637_vm10, %v8569_v41, %v3959_v22  ;;  %v3777_v38 = vpop.xlane.xlu1 %3776  ;;  %v5790_v15 = vld [vmem:[#allocation14 + $0x58] sm:$0xff] }
 0x46d   :  { %5992 = vrsqrt.f32 %v8604_v58  ;;  %v8633_v37 = vmul.f32 %v8229_v52, %v3706_v60  ;;  %4211 = vmatmul.bf16.gmra.mxu2 %v4081_v29  ;;  %4260 = vmatmul.bf16.gmra.mxu3 %v4081_v29  ;;  %v4032_v10 = vmul.f32 %v3953_v53, %v3840_v14  ;;  %v4033_v34 = vmul.f32 %v3963_v48, %v3841_v46  ;;  %v5789_v29 = vld [vmem:[#allocation14 + $0x50] sm:$0xff] }
 0x46e   :  { %4517 = vmatpush.bf16.msra.mxu1 %v5792_v47  ;;  %v3796_v41 = vmul.f32 %v3777_v38, %v8229_v52  ;;  %4470 = vmatpush.bf16.msra.mxu0 %v5782_v4  ;;  %vm3970_vm0 = vweird.f32 %v8604_v58  ;;  %v3842_v46 = vsub.f32 %v8274_v50, %v8593_v0 }
 0x46f   :  { %v3812_v27 = vmul.f32 %v8633_v37, %v8633_v37  ;;  %v4051_v31 = vmul.f32 %v8361_v43, %v4032_v10  ;;  %v4052_v51 = vmul.f32 %v8361_v43, %v4033_v34  ;;  %v5780_v10 = vld [vmem:[#allocation14 + $0x8] sm:$0xff] }
 0x471   :  { %v8626_v44 = vpop.eup %5990  ;;  %v3828_v45 = vsub.f32 %v3796_v41, %v3812_v27  ;;  %v8656_v53 = vadd.f32 %v8406_v30, %v4051_v31  ;;  %v5788_v27 = vld [vmem:[#allocation14 + $0x48] sm:$0xff] }
 0x472   :  { %v3975_v54 = vmul.f32 %v8626_v44, %v8601_v26  ;;  %4518 = vmatpush.bf16.msra.mxu1 %v5791_v12  ;;  %vm3981_vm7 = vweird.f32 %v8626_v44  ;;  %4471 = vmatpush.bf16.msra.mxu0 %v5781_v32  ;;  %v5779_v26 = vld [vmem:[#allocation14] sm:$0xff] }
 0x473   :  { %v5993_v33 = vpop.eup %5992  ;;  %v8658_v8 = vadd.f32 1e-05, %v3828_v45  ;;  %vm3982_vm14 = vmor %vm3980_vm13, %vm3981_vm7 }
 0x474   :  { %v3965_v9 = vmul.f32 %v5993_v33, %v8604_v58  ;;  %v3976_v62 = vmul.f32 %v8626_v44, %v3975_v54  ;;  %vm3971_vm11 = vweird.f32 %v5993_v33  ;;  %v8661_v54 = vadd.f32 %v8406_v30, %v4052_v51 }
 0x475   :  { %vm3972_vm12 = vmor %vm3970_vm0, %vm3971_vm11  ;;  %5994 = vrsqrt.f32 %v8658_v8  ;;  %vm3990_vm1 = vweird.f32 %v8658_v8 }
 0x476   :  { %v3966_v19 = vmul.f32 %v5993_v33, %v3965_v9  ;;  %v3977_v61 = vmul.f32 0.5, %v3976_v62  ;;  %4519 = vmatpush.bf16.msra.mxu1 %v5790_v15  ;;  %v4082_v63 = vpack.c.bf16 %v8661_v54, %v8656_v53  ;;  %v3843_v9 = vsub.f32 %v8296_v21, %v8582_v16  ;;  %4472 = vmatpush.bf16.msra.mxu0 %v5780_v10 }
 0x478   :  { %v3967_v60 = vmul.f32 0.5, %v3966_v19  ;;  %v3978_v47 = vsub.f32 1.5, %v3977_v61  ;;  %v5787_v19 = vld [vmem:[#allocation14 + $0x40] sm:$0xff] }
 0x47a   :  { %v3968_v22 = vsub.f32 1.5, %v3967_v60  ;;  %v3979_v48 = vmul.f32 %v8626_v44, %v3978_v47  ;;  %4520 = vmatpush.bf16.msra.mxu1 %v5789_v29  ;;  %4473 = vmatpush.bf16.msra.mxu0 %v5779_v26 }
 0x47b   :  { %v5995_v34 = vpop.eup %5994 }
 0x47c   :  { %v3969_v14 = vmul.f32 %v5993_v33, %v3968_v22  ;;  %v3983_v58 = vsel %vm3982_vm14, %v8626_v44, %v3979_v48  ;;  %v4102_v44 = vld [vmem:[%s9037_s16] sm:$0x3]  ;;  %v3985_v16 = vmul.f32 %v5995_v34, %v8658_v8  ;;  %vm3991_vm15 = vweird.f32 %v5995_v34 }
 0x47d   :  { %4216 = vmatmul.bf16.gmra.mxu2 %v4082_v63  ;;  %4265 = vmatmul.bf16.gmra.mxu3 %v4082_v63  ;;  %v8682_v4 = vperm.slane %v4102_v44, 0  ;;  %v8684_v15 = vperm.slane %v4102_v44, 1  ;;  %vm3992_vm2 = vmor %vm3990_vm1, %vm3991_vm15 }
 0x47e   :  { %v3973_v12 = vsel %vm3972_vm12, %v5993_v33, %v3969_v14  ;;  %v4035_v33 = vmul.f32 %v3983_v58, %v3843_v9  ;;  %4521 = vmatpush.bf16.msra.mxu1 %v5788_v27  ;;  %v3986_v51 = vmul.f32 %v5995_v34, %v3985_v16 }
 0x47f   :  { %v4034_v62 = vmul.f32 %v3973_v12, %v3842_v46 }
 0x480   :  { %v4054_v41 = vmul.f32 %v8361_v43, %v4035_v33  ;;  %v3987_v58 = vmul.f32 0.5, %v3986_v51 }
 0x481   :  { %v4053_v50 = vmul.f32 %v8361_v43, %v4034_v62 }
 0x482   :  { %4522 = vmatpush.bf16.msra.mxu1 %v5787_v19  ;;  %v8691_v47 = vadd.f32 %v8406_v30, %v4054_v41  ;;  %v3988_v26 = vsub.f32 1.5, %v3987_v58 }
 0x483   :  { %v3708_v38 = vpop.xlane.xlu2 %3707  ;;  %v8687_v31 = vadd.f32 %v8406_v30, %v4053_v50 }
 0x484   :  { %v3733_v0 = vmul.f32 %v8229_v52, %v3708_v38 }
 0x485   :  { %v4083_v48 = vpack.c.bf16 %v8691_v47, %v8687_v31 }
 0x486   :  { %v3813_v45 = vmul.f32 %v3733_v0, %v3733_v0 }
 0x487   :  { %v4197_v61 = vpop.f32.mrf.mxu2  ;;  %v4246_v21 = vpop.f32.mrf.mxu3 }
 0x488   :  { %v4198_v29 = vadd.f32 %v4197_v61, %v8682_v4  ;;  %v4247_v14 = vadd.f32 %v4246_v21, %v8684_v15  ;;  %v3989_v61 = vmul.f32 %v5995_v34, %v3988_v26 }
 0x48a   :  { %v4286_v38 = vmax.f32 %v4198_v29, 0.0  ;;  %v4287_v10 = vmax.f32 %v4247_v14, 0.0  ;;  %v3993_v41 = vsel %vm3992_vm2, %v5995_v34, %v3989_v61 }
 0x48b   :  { %v3779_v60 = vpop.xlane.xlu2 %3778 }
 0x48c   :  { %v3797_v22 = vmul.f32 %v3779_v60, %v8229_v52 }
 0x48d   :  { %4221 = vmatmul.bf16.gmra.mxu2 %v4083_v48  ;;  %4270 = vmatmul.bf16.gmra.mxu3 %v4083_v48  ;;  %v3845_v48 = vsub.f32 %v8445_v24, %v3733_v0 }
 0x48e   :  { %v3829_v32 = vsub.f32 %v3797_v22, %v3813_v45  ;;  %v3844_v45 = vsub.f32 %v8320_v25, %v8633_v37 }
 0x48f   :  { %v4199_v12 = vpop.f32.mrf.mxu2  ;;  %v4248_v46 = vpop.f32.mrf.mxu3 }
 0x490   :  { %v3861_v63 = vadd.f32 1e-05, %v3829_v32  ;;  %v4200_v9 = vadd.f32 %v4199_v12, %v8682_v4  ;;  %v4249_v62 = vadd.f32 %v4248_v46, %v8684_v15  ;;  %v4036_v29 = vmul.f32 %v3993_v41, %v3844_v45 }
 0x492   :  { %5996 = vrsqrt.f32 %v3861_v63  ;;  %v4288_v27 = vmax.f32 %v4200_v9, 0.0  ;;  %v4289_v33 = vmax.f32 %v4249_v62, 0.0  ;;  %vm4000_vm4 = vweird.f32 %v3861_v63 }
 0x493   :  { %v4055_v8 = vmul.f32 %v8361_v43, %v4036_v29 }
 0x494   :  { %v4318_v19 = vpack.c.bf16 %v4288_v27, %v4286_v38  ;;  %v4319_v50 = vpack.c.bf16 %v4289_v33, %v4287_v10 }
 0x496   :  { %4474 = vmatmul.bf16.vlgmr.msra.gmra.mxu0 %v4318_v19  ;;  %4523 = vmatmul.bf16.vlgmr.msra.gmra.mxu1 %v4319_v50 }
 0x498   :  { %v5997_v44 = vpop.eup %5996 }
 0x499   :  { %v3995_v21 = vmul.f32 %v5997_v44, %v3861_v63  ;;  %vm4001_vm3 = vweird.f32 %v5997_v44  ;;  %v8710_v63 = vadd.f32 %v8406_v30, %v4055_v8 }
 0x49a   :  { %vm4002_vm5 = vmor %vm4000_vm4, %vm4001_vm3 }
 0x49b   :  { %v3996_v16 = vmul.f32 %v5997_v44, %v3995_v21 }
 0x49d   :  { %v3997_v60 = vmul.f32 0.5, %v3996_v16 }
 0x49f   :  { %v3998_v22 = vsub.f32 1.5, %v3997_v60 }
 0x4a0   :  { %v4202_v51 = vpop.f32.mrf.mxu2  ;;  %v4251_v32 = vpop.f32.mrf.mxu3 }
 0x4a1   :  { %v3999_v14 = vmul.f32 %v5997_v44, %v3998_v22  ;;  %v4203_v34 = vadd.f32 %v4202_v51, %v8682_v4  ;;  %v4252_v58 = vadd.f32 %v4251_v32, %v8684_v15 }
 0x4a3   :  { %v4003_v12 = vsel %vm4002_vm5, %v5997_v44, %v3999_v14  ;;  %v4290_v0 = vmax.f32 %v4203_v34, 0.0  ;;  %v4291_v10 = vmax.f32 %v4252_v58, 0.0 }
 0x4a4   :  { %v4037_v46 = vmul.f32 %v4003_v12, %v3845_v48 }
 0x4a6   :  { %v4056_v25 = vmul.f32 %v8361_v43, %v4037_v46 }
 0x4a8   :  { %v4204_v37 = vpop.f32.mrf.mxu2  ;;  %v4253_v9 = vpop.f32.mrf.mxu3  ;;  %v8713_v24 = vadd.f32 %v8406_v30, %v4056_v25 }
 0x4a9   :  { %v4205_v62 = vadd.f32 %v4204_v37, %v8682_v4  ;;  %v4254_v38 = vadd.f32 %v4253_v9, %v8684_v15 }
 0x4aa   :  { %v4084_v26 = vpack.c.bf16 %v8713_v24, %v8710_v63 }
 0x4ab   :  { %v4292_v27 = vmax.f32 %v4205_v62, 0.0  ;;  %v4293_v33 = vmax.f32 %v4254_v38, 0.0 }
 0x4ac   :  { %4226 = vmatmul.bf16.gmra.mxu2 %v4084_v26  ;;  %4275 = vmatmul.bf16.gmra.mxu3 %v4084_v26 }
 0x4ad   :  { %v4320_v19 = vpack.c.bf16 %v4292_v27, %v4290_v0  ;;  %v4321_v50 = vpack.c.bf16 %v4293_v33, %v4291_v10 }
 0x4ae   :  { %v3712_v41 = vpop.xlane.xlu1 %3711 }
 0x4af   :  { %4479 = vmatmul.bf16.gmra.mxu0 %v4320_v19  ;;  %4528 = vmatmul.bf16.gmra.mxu1 %v4321_v50  ;;  %v3735_v51 = vmul.f32 %v8229_v52, %v3712_v41 }
 0x4b0   :  { %v4207_v44 = vpop.f32.mrf.mxu2  ;;  %v4256_v61 = vpop.f32.mrf.mxu3 }
 0x4b1   :  { %v3710_v21 = vpop.xlane.xlu0 %3709  ;;  %v4208_v29 = vadd.f32 %v4207_v44, %v8682_v4  ;;  %v4257_v14 = vadd.f32 %v4256_v61, %v8684_v15  ;;  %v3815_v25 = vmul.f32 %v3735_v51, %v3735_v51 }
 0x4b2   :  { %v3734_v16 = vmul.f32 %v8229_v52, %v3710_v21 }
 0x4b3   :  { %v3781_v60 = vpop.xlane.xlu2 %3780  ;;  %v4294_v9 = vmax.f32 %v4208_v29, 0.0  ;;  %v4295_v62 = vmax.f32 %v4257_v14, 0.0 }
 0x4b4   :  { %v3814_v45 = vmul.f32 %v3734_v16, %v3734_v16  ;;  %v3798_v22 = vmul.f32 %v3781_v60, %v8229_v52  ;;  %v3846_v14 = vsub.f32 %v8530_v2, %v3734_v16 }
 0x4b6   :  { %v3830_v32 = vsub.f32 %v3798_v22, %v3814_v45 }
 0x4b8   :  { %v3862_v48 = vadd.f32 1e-05, %v3830_v32  ;;  %v4209_v12 = vpop.f32.mrf.mxu2  ;;  %v4258_v8 = vpop.f32.mrf.mxu3 }
 0x4b9   :  { %v4210_v46 = vadd.f32 %v4209_v12, %v8682_v4  ;;  %v4259_v34 = vadd.f32 %v4258_v8, %v8684_v15  ;;  %v3783_v58 = vpop.xlane.xlu0 %3782 }
 0x4ba   :  { %5998 = vrsqrt.f32 %v3862_v48  ;;  %v3799_v37 = vmul.f32 %v3783_v58, %v8229_v52  ;;  %vm4010_vm8 = vweird.f32 %v3862_v48 }
 0x4bb   :  { %v4296_v38 = vmax.f32 %v4210_v46, 0.0  ;;  %v4297_v0 = vmax.f32 %v4259_v34, 0.0  ;;  %v3847_v34 = vsub.f32 %v8521_v57, %v3735_v51 }
 0x4bc   :  { %v3831_v10 = vsub.f32 %v3799_v37, %v3815_v25 }
 0x4bd   :  { %v4322_v27 = vpack.c.bf16 %v4296_v38, %v4294_v9  ;;  %v4323_v33 = vpack.c.bf16 %v4297_v0, %v4295_v62 }
 0x4be   :  { %v3863_v26 = vadd.f32 1e-05, %v3831_v10 }
 0x4bf   :  { %4484 = vmatmul.bf16.gmra.mxu0 %v4322_v27  ;;  %4533 = vmatmul.bf16.gmra.mxu1 %v4323_v33 }
 0x4c0   :  { %v5999_v19 = vpop.eup %5998  ;;  %6000 = vrsqrt.f32 %v3863_v26  ;;  %vm4020_vm11 = vweird.f32 %v3863_v26 }
 0x4c1   :  { %v4005_v50 = vmul.f32 %v5999_v19, %v3862_v48  ;;  %vm4011_vm6 = vweird.f32 %v5999_v19 }
 0x4c2   :  { %vm4012_vm9 = vmor %vm4010_vm8, %vm4011_vm6 }
 0x4c3   :  { %v4006_v44 = vmul.f32 %v5999_v19, %v4005_v50 }
 0x4c5   :  { %v4007_v61 = vmul.f32 0.5, %v4006_v44 }
 0x4c6   :  { %v6001_v21 = vpop.eup %6000 }
 0x4c7   :  { %v4008_v41 = vsub.f32 1.5, %v4007_v61  ;;  %v4015_v60 = vmul.f32 %v6001_v21, %v3863_v26  ;;  %vm4021_vm10 = vweird.f32 %v6001_v21 }
 0x4c8   :  { %vm4022_vm0 = vmor %vm4020_vm11, %vm4021_vm10 }
 0x4c9   :  { %v4009_v45 = vmul.f32 %v5999_v19, %v4008_v41  ;;  %v4016_v22 = vmul.f32 %v6001_v21, %v4015_v60 }
 0x4cb   :  { %v4013_v32 = vsel %vm4012_vm9, %v5999_v19, %v4009_v45  ;;  %v4017_v29 = vmul.f32 0.5, %v4016_v22 }
 0x4cc   :  { %v4038_v8 = vmul.f32 %v4013_v32, %v3846_v14 }
 0x4cd   :  { %v4018_v12 = vsub.f32 1.5, %v4017_v29 }
 0x4ce   :  { %v4057_v37 = vmul.f32 %v8361_v43, %v4038_v8 }
 0x4cf   :  { %v4019_v46 = vmul.f32 %v6001_v21, %v4018_v12 }
 0x4d0   :  { %v8730_v9 = vadd.f32 %v8406_v30, %v4057_v37 }
 0x4d1   :  { %v4023_v58 = vsel %vm4022_vm0, %v6001_v21, %v4019_v46 }
 0x4d2   :  { %v4039_v25 = vmul.f32 %v4023_v58, %v3847_v34 }
 0x4d4   :  { %v4058_v48 = vmul.f32 %v8361_v43, %v4039_v25  ;;  %v8748_v25 = vld [vmem:[%s9039_s18] ss:$0 sm:$0xff] }
 0x4d6   :  { %v8733_v62 = vadd.f32 %v8406_v30, %v4058_v48 }
 0x4d8   :  { %v4085_v2 = vpack.c.bf16 %v8733_v62, %v8730_v9 }
 0x4da   :  { %4231 = vmatmul.bf16.gmra.mxu2 %v4085_v2  ;;  %4280 = vmatmul.bf16.gmra.mxu3 %v4085_v2 }
 0x4f0   :  { %v4212_v16 = vpop.f32.mrf.mxu2  ;;  %v4261_v57 = vpop.f32.mrf.mxu3 }
 0x4f1   :  { %v4213_v51 = vadd.f32 %v4212_v16, %v8682_v4  ;;  %v4262_v38 = vadd.f32 %v4261_v57, %v8684_v15 }
 0x4f3   :  { %v4298_v33 = vmax.f32 %v4213_v51, 0.0  ;;  %v4299_v30 = vmax.f32 %v4262_v38, 0.0 }
 0x4f8   :  { %v4214_v0 = vpop.f32.mrf.mxu2  ;;  %v4263_v10 = vpop.f32.mrf.mxu3 }
 0x4f9   :  { %v4215_v43 = vadd.f32 %v4214_v0, %v8682_v4  ;;  %v4264_v27 = vadd.f32 %v4263_v10, %v8684_v15 }
 0x4fb   :  { %v4300_v26 = vmax.f32 %v4215_v43, 0.0  ;;  %v4301_v19 = vmax.f32 %v4264_v27, 0.0 }
 0x4fd   :  { %v4324_v50 = vpack.c.bf16 %v4300_v26, %v4298_v33  ;;  %v4325_v44 = vpack.c.bf16 %v4301_v19, %v4299_v30 }
 0x4ff   :  { %4489 = vmatmul.bf16.gmra.mxu0 %v4324_v50  ;;  %4538 = vmatmul.bf16.gmra.mxu1 %v4325_v44 }
 0x500   :  { %v4217_v61 = vpop.f32.mrf.mxu2  ;;  %v4266_v21 = vpop.f32.mrf.mxu3 }
 0x501   :  { %v4218_v41 = vadd.f32 %v4217_v61, %v8682_v4  ;;  %v4267_v60 = vadd.f32 %v4266_v21, %v8684_v15 }
 0x503   :  { %v4302_v14 = vmax.f32 %v4218_v41, 0.0  ;;  %v4303_v12 = vmax.f32 %v4267_v60, 0.0 }
 0x508   :  { %v4219_v45 = vpop.f32.mrf.mxu2  ;;  %v4268_v22 = vpop.f32.mrf.mxu3 }
 0x509   :  { %v4220_v32 = vadd.f32 %v4219_v45, %v8682_v4  ;;  %v4269_v29 = vadd.f32 %v4268_v22, %v8684_v15 }
 0x50b   :  { %v4304_v8 = vmax.f32 %v4220_v32, 0.0  ;;  %v4305_v46 = vmax.f32 %v4269_v29, 0.0 }
 0x50d   :  { %v4326_v34 = vpack.c.bf16 %v4304_v8, %v4302_v14  ;;  %v4327_v58 = vpack.c.bf16 %v4305_v46, %v4303_v12 }
 0x50f   :  { %4494 = vmatmul.bf16.gmra.mxu0 %v4326_v34  ;;  %4543 = vmatmul.bf16.gmra.mxu1 %v4327_v58 }
 0x510   :  { %v4222_v37 = vpop.f32.mrf.mxu2  ;;  %v4271_v48 = vpop.f32.mrf.mxu3 }
 0x511   :  { %v4223_v0 = vadd.f32 %v4222_v37, %v8682_v4  ;;  %v4272_v10 = vadd.f32 %v4271_v48, %v8684_v15 }
 0x513   :  { %v4475_v2 = vpop.f32.mrf.mxu0  ;;  %v4524_v16 = vpop.f32.mrf.mxu1  ;;  %v4306_v44 = vmax.f32 %v4223_v0, 0.0  ;;  %v4307_v61 = vmax.f32 %v4272_v10, 0.0 }
 0x514   :  { %v4476_v57 = vadd.f32 %v8748_v25, %v4475_v2 }
 0x516   :  { %v4525_v51 = vadd.f32 %v4524_v16, %v4476_v57 }
 0x518   :  { %v4564_v38 = vmul.f32 %v4525_v51, %v7919_v7  ;;  %v4224_v43 = vpop.f32.mrf.mxu2  ;;  %v4273_v27 = vpop.f32.mrf.mxu3 }
 0x519   :  { %v4225_v30 = vadd.f32 %v4224_v43, %v8682_v4  ;;  %v4274_v26 = vadd.f32 %v4273_v27, %v8684_v15 }
 0x51a   :  { %v8755_v33 = vadd.f32 %v4564_v38, %v8410_v5 }
 0x51b   :  { %v4477_v19 = vpop.f32.mrf.mxu0  ;;  %v4308_v21 = vmax.f32 %v4225_v30, 0.0  ;;  %v4309_v41 = vmax.f32 %v4274_v26, 0.0  ;;  %v4526_v60 = vpop.f32.mrf.mxu1 }
 0x51c   :  { %v4478_v50 = vadd.f32 %v8748_v25, %v4477_v19  ;;  %4598 = vadd.xlane.f32.xlu1 %v8755_v33  ;;  %v4646_v7 = vmul.f32 %v8755_v33, %v8755_v33 }
 0x51d   :  { %v4328_v5 = vpack.c.bf16 %v4308_v21, %v4306_v44  ;;  %v4329_v22 = vpack.c.bf16 %v4309_v41, %v4307_v61 }
 0x51e   :  { %v4527_v45 = vadd.f32 %v4526_v60, %v4478_v50  ;;  %4662 = vadd.xlane.f32.xlu2 %v4646_v7 }
 0x51f   :  { %4499 = vmatmul.bf16.gmra.mxu0 %v4328_v5  ;;  %4548 = vmatmul.bf16.gmra.mxu1 %v4329_v22 }
 0x520   :  { %v4565_v32 = vmul.f32 %v4527_v45, %v7970_v17 }
 0x522   :  { %v8765_v29 = vadd.f32 %v4565_v32, %v8413_v23 }
 0x524   :  { %v4647_v14 = vmul.f32 %v8765_v29, %v8765_v29 }
 0x526   :  { %4664 = vadd.xlane.f32.xlu0 %v4647_v14  ;;  %4600 = vadd.xlane.f32.xlu2 %v8765_v29 }
 0x52c   :  { %v4480_v12 = vpop.f32.mrf.mxu0  ;;  %v4529_v8 = vpop.f32.mrf.mxu1 }
 0x52d   :  { %v4481_v46 = vadd.f32 %v8748_v25, %v4480_v12 }
 0x52f   :  { %v4530_v34 = vadd.f32 %v4529_v8, %v4481_v46  ;;  %v4227_v58 = vpop.f32.mrf.mxu2  ;;  %v4276_v37 = vpop.f32.mrf.mxu3 }
 0x530   :  { %v4228_v51 = vadd.f32 %v4227_v58, %v8682_v4  ;;  %v4277_v38 = vadd.f32 %v4276_v37, %v8684_v15 }
 0x531   :  { %v4566_v17 = vmul.f32 %v4530_v34, %v8000_v36 }
 0x532   :  { %v4310_v30 = vmax.f32 %v4228_v51, 0.0  ;;  %v4311_v26 = vmax.f32 %v4277_v38, 0.0 }
 0x533   :  { %v8773_v48 = vadd.f32 %v4566_v17, %v8462_v56 }
 0x534   :  { %v4482_v23 = vpop.f32.mrf.mxu0  ;;  %v4531_v2 = vpop.f32.mrf.mxu1 }
 0x535   :  { %v4483_v16 = vadd.f32 %v8748_v25, %v4482_v23  ;;  %4602 = vadd.xlane.f32.xlu0 %v8773_v48  ;;  %v4648_v57 = vmul.f32 %v8773_v48, %v8773_v48 }
 0x537   :  { %v4532_v0 = vadd.f32 %v4531_v2, %v4483_v16  ;;  %4666 = vadd.xlane.f32.xlu1 %v4648_v57  ;;  %v4229_v10 = vpop.f32.mrf.mxu2  ;;  %v4278_v36 = vpop.f32.mrf.mxu3 }
 0x538   :  { %v4230_v43 = vadd.f32 %v4229_v10, %v8682_v4  ;;  %v4279_v27 = vadd.f32 %v4278_v36, %v8684_v15 }
 0x539   :  { %v4567_v56 = vmul.f32 %v4532_v0, %v8041_v1 }
 0x53a   :  { %v4312_v19 = vmax.f32 %v4230_v43, 0.0  ;;  %v4313_v50 = vmax.f32 %v4279_v27, 0.0 }
 0x53b   :  { %v8785_v7 = vadd.f32 %v4567_v56, %v8465_v13 }
 0x53c   :  { %v4485_v44 = vpop.f32.mrf.mxu0  ;;  %v4534_v61 = vpop.f32.mrf.mxu1  ;;  %v4330_v21 = vpack.c.bf16 %v4312_v19, %v4310_v30  ;;  %v4331_v41 = vpack.c.bf16 %v4313_v50, %v4311_v26 }
 0x53d   :  { %v4486_v60 = vadd.f32 %v8748_v25, %v4485_v44  ;;  %v4649_v1 = vmul.f32 %v8785_v7, %v8785_v7 }
 0x53e   :  { %4504 = vmatmul.bf16.gmra.mxu0 %v4330_v21  ;;  %4553 = vmatmul.bf16.gmra.mxu1 %v4331_v41 }
 0x53f   :  { %v4535_v45 = vadd.f32 %v4534_v61, %v4486_v60  ;;  %4604 = vadd.xlane.f32.xlu1 %v8785_v7  ;;  %4668 = vadd.xlane.f32.xlu2 %v4649_v1 }
 0x541   :  { %v4568_v5 = vmul.f32 %v4535_v45, %v8062_v39 }
 0x543   :  { %v8793_v13 = vadd.f32 %v4568_v5, %v8503_v55 }
 0x544   :  { %v4487_v22 = vpop.f32.mrf.mxu0  ;;  %v4536_v12 = vpop.f32.mrf.mxu1 }
 0x545   :  { %v4488_v32 = vadd.f32 %v8748_v25, %v4487_v22  ;;  %v4650_v14 = vmul.f32 %v8793_v13, %v8793_v13 }
 0x547   :  { %v4537_v8 = vadd.f32 %v4536_v12, %v4488_v32  ;;  %4670 = vadd.xlane.f32.xlu0 %v4650_v14  ;;  %4606 = vadd.xlane.f32.xlu2 %v8793_v13 }
 0x549   :  { %v4569_v46 = vmul.f32 %v4537_v8, %v8098_v3 }
 0x54b   :  { %v8801_v34 = vadd.f32 %v4569_v46, %v8491_v6 }
 0x54d   :  { %v4651_v39 = vmul.f32 %v8801_v34, %v8801_v34 }
 0x54f   :  { %4672 = vadd.xlane.f32.xlu1 %v4651_v39  ;;  %4608 = vadd.xlane.f32.xlu0 %v8801_v34 }
 0x55d   :  { %v4232_v55 = vpop.f32.mrf.mxu2  ;;  %v4281_v58 = vpop.f32.mrf.mxu3 }
 0x55e   :  { %v4233_v37 = vadd.f32 %v4232_v55, %v8682_v4  ;;  %v4282_v17 = vadd.f32 %v4281_v58, %v8684_v15 }
 0x560   :  { %v4314_v6 = vmax.f32 %v4233_v37, 0.0  ;;  %v4315_v57 = vmax.f32 %v4282_v17, 0.0 }
 0x565   :  { %v4234_v23 = vpop.f32.mrf.mxu2  ;;  %v4283_v2 = vpop.f32.mrf.mxu3 }
 0x566   :  { %v4235_v16 = vadd.f32 %v4234_v23, %v8682_v4  ;;  %v4284_v3 = vadd.f32 %v4283_v2, %v8684_v15 }
 0x568   :  { %v4316_v51 = vmax.f32 %v4235_v16, 0.0  ;;  %v4317_v38 = vmax.f32 %v4284_v3, 0.0 }
 0x56a   :  { %v4332_v0 = vpack.c.bf16 %v4316_v51, %v4314_v6  ;;  %v4333_v10 = vpack.c.bf16 %v4317_v38, %v4315_v57 }
 0x56c   :  { %4509 = vmatmul.bf16.gmra.mxu0 %v4332_v0  ;;  %4558 = vmatmul.bf16.gmra.mxu1 %v4333_v10 }
 0x57c   :  { %v4490_v36 = vpop.f32.mrf.mxu0  ;;  %v4539_v56 = vpop.f32.mrf.mxu1 }
 0x57d   :  { %v4491_v43 = vadd.f32 %v8748_v25, %v4490_v36 }
 0x57f   :  { %v4540_v27 = vadd.f32 %v4539_v56, %v4491_v43 }
 0x581   :  { %v4570_v30 = vmul.f32 %v4540_v27, %v8124_v28 }
 0x583   :  { %v8813_v26 = vadd.f32 %v4570_v30, %v8612_v40 }
 0x584   :  { %v4492_v4 = vpop.f32.mrf.mxu0  ;;  %v4541_v15 = vpop.f32.mrf.mxu1 }
 0x585   :  { %v4493_v19 = vadd.f32 %v8748_v25, %v4492_v4  ;;  %4610 = vadd.xlane.f32.xlu1 %v8813_v26  ;;  %v4652_v50 = vmul.f32 %v8813_v26, %v8813_v26 }
 0x587   :  { %v4542_v44 = vadd.f32 %v4541_v15, %v4493_v19  ;;  %4674 = vadd.xlane.f32.xlu2 %v4652_v50 }
 0x589   :  { %v4571_v61 = vmul.f32 %v4542_v44, %v8140_v42 }
 0x58b   :  { %v8821_v21 = vadd.f32 %v4571_v61, %v8615_v59 }
 0x58c   :  { %v4495_v28 = vpop.f32.mrf.mxu0  ;;  %v4544_v41 = vpop.f32.mrf.mxu1 }
 0x58d   :  { %v4496_v40 = vadd.f32 %v8748_v25, %v4495_v28  ;;  %v4653_v1 = vmul.f32 %v8821_v21, %v8821_v21 }
 0x58f   :  { %v4599_v60 = vpop.xlane.xlu1 %4598  ;;  %v4545_v5 = vadd.f32 %v4544_v41, %v4496_v40  ;;  %4676 = vadd.xlane.f32.xlu0 %v4653_v1  ;;  %4612 = vadd.xlane.f32.xlu2 %v8821_v21 }
 0x590   :  { %v8827_v45 = vmul.f32 %v4599_v60, %v8229_v52 }
 0x591   :  { %v4663_v22 = vpop.xlane.xlu2 %4662  ;;  %v4572_v32 = vmul.f32 %v4545_v5, %v8158_v11 }
 0x592   :  { %v4710_v42 = vmul.f32 %v8827_v45, %v8827_v45  ;;  %v4694_v59 = vmul.f32 %v4663_v22, %v8229_v52 }
 0x593   :  { %v8835_v12 = vadd.f32 %v4572_v32, %v8656_v53 }
 0x594   :  { %v4726_v14 = vsub.f32 %v4694_v59, %v4710_v42  ;;  %v4497_v46 = vpop.f32.mrf.mxu0  ;;  %v4546_v39 = vpop.f32.mrf.mxu1 }
 0x595   :  { %v4498_v55 = vadd.f32 %v8748_v25, %v4497_v46  ;;  %v4654_v58 = vmul.f32 %v8835_v12, %v8835_v12 }
 0x596   :  { %v4758_v8 = vadd.f32 1e-05, %v4726_v14 }
 0x597   :  { %v4547_v37 = vadd.f32 %v4546_v39, %v4498_v55  ;;  %4614 = vadd.xlane.f32.xlu0 %v8835_v12  ;;  %4678 = vadd.xlane.f32.xlu1 %v4654_v58 }
 0x598   :  { %6002 = vrsqrt.f32 %v4758_v8  ;;  %vm4780_vm12 = vweird.f32 %v4758_v8 }
 0x599   :  { %v4665_v17 = vpop.xlane.xlu0 %4664  ;;  %v4601_v23 = vpop.xlane.xlu2 %4600  ;;  %v4573_v53 = vmul.f32 %v4547_v37, %v8173_v20 }
 0x59a   :  { %v8842_v11 = vmul.f32 %v4601_v23, %v8229_v52  ;;  %v4695_v2 = vmul.f32 %v4665_v17, %v8229_v52 }
 0x59b   :  { %v8849_v3 = vadd.f32 %v4573_v53, %v8661_v54 }
 0x59c   :  { %v4711_v16 = vmul.f32 %v8842_v11, %v8842_v11  ;;  %v4500_v51 = vpop.f32.mrf.mxu0  ;;  %v4549_v38 = vpop.f32.mrf.mxu1 }
 0x59d   :  { %v4501_v10 = vadd.f32 %v8748_v25, %v4500_v51  ;;  %v4655_v36 = vmul.f32 %v8849_v3, %v8849_v3 }
 0x59e   :  { %v6003_v6 = vpop.eup %6002  ;;  %v4727_v57 = vsub.f32 %v4695_v2, %v4711_v16 }
 0x59f   :  { %v4775_v0 = vmul.f32 %v6003_v6, %v4758_v8  ;;  %v4550_v43 = vadd.f32 %v4549_v38, %v4501_v10  ;;  %4680 = vadd.xlane.f32.xlu2 %v4655_v36  ;;  %4616 = vadd.xlane.f32.xlu1 %v8849_v3  ;;  %vm4781_vm7 = vweird.f32 %v6003_v6 }
 0x5a0   :  { %v4759_v56 = vadd.f32 1e-05, %v4727_v57  ;;  %vm4782_vm13 = vmor %vm4780_vm12, %vm4781_vm7 }
 0x5a1   :  { %v4776_v20 = vmul.f32 %v6003_v6, %v4775_v0  ;;  %v4574_v54 = vmul.f32 %v4550_v43, %v8233_v35  ;;  %v4742_v35 = vsub.f32 %v8755_v33, %v8827_v45  ;;  %v8879_v33 = vld [vmem:[%s9041_s20] ss:$0 sm:$0xff] }
 0x5a2   :  { %6004 = vrsqrt.f32 %v4759_v56  ;;  %vm4790_vm15 = vweird.f32 %v4759_v56 }
 0x5a3   :  { %v4777_v27 = vmul.f32 0.5, %v4776_v20  ;;  %v8857_v15 = vadd.f32 %v4574_v54, %v8687_v31  ;;  %v8870_v31 = vld [vmem:[%s9040_s19] ss:$0 sm:$0xff]  ;;  %s6295_s19 = smov [#allocation16]  }
 0x5a4   :  { %v4502_v19 = vpop.f32.mrf.mxu0  ;;  %v4551_v60 = vpop.f32.mrf.mxu1  ;;  %s5008_s20 = sshll.u32 %s6295_s19, 4  ;;  %s5009_s20 = int_to_ptr.vmem [resolvable:$true] %s5008_s20 }
 0x5a5   :  { %v4778_v30 = vsub.f32 1.5, %v4777_v27  ;;  %v4503_v61 = vadd.f32 %v8748_v25, %v4502_v19  ;;  %v4656_v28 = vmul.f32 %v8857_v15, %v8857_v15 }
 0x5a7   :  { %v4779_v44 = vmul.f32 %v6003_v6, %v4778_v30  ;;  %v4552_v59 = vadd.f32 %v4551_v60, %v4503_v61  ;;  %4618 = vadd.xlane.f32.xlu2 %v8857_v15  ;;  %4682 = vadd.xlane.f32.xlu0 %v4656_v28 }
 0x5a8   :  { %v4603_v4 = vpop.xlane.xlu0 %4602  ;;  %v6005_v40 = vpop.eup %6004 }
 0x5a9   :  { %v8860_v50 = vmul.f32 %v4603_v4, %v8229_v52  ;;  %v4783_v22 = vsel %vm4782_vm13, %v6003_v6, %v4779_v44  ;;  %v4785_v42 = vmul.f32 %v6005_v40, %v4759_v56  ;;  %v4575_v8 = vmul.f32 %v4552_v59, %v8210_v18 }
 0x5aa   :  { %v4667_v41 = vpop.xlane.xlu1 %4666  ;;  %v4934_v45 = vmul.f32 %v4783_v22, %v4742_v35  ;;  %vm4791_vm14 = vweird.f32 %v6005_v40 }
 0x5ab   :  { %v4712_v1 = vmul.f32 %v8860_v50, %v8860_v50  ;;  %v4696_v5 = vmul.f32 %v4667_v41, %v8229_v52  ;;  %v4786_v14 = vmul.f32 %v6005_v40, %v4785_v42  ;;  %v8884_v58 = vadd.f32 %v4575_v8, %v8691_v47  ;;  %vm4792_vm1 = vmor %vm4790_vm15, %vm4791_vm14 }
 0x5ac   :  { %v4953_v46 = vmul.f32 %v8870_v31, %v4934_v45  ;;  %v4743_v47 = vsub.f32 %v8765_v29, %v8842_v11 }
 0x5ad   :  { %v4728_v32 = vsub.f32 %v4696_v5, %v4712_v1  ;;  %v4787_v55 = vmul.f32 0.5, %v4786_v14  ;;  %v4657_v23 = vmul.f32 %v8884_v58, %v8884_v58  ;;  %v4744_v5 = vsub.f32 %v8773_v48, %v8860_v50 }
 0x5ae   :  { %v4972_v37 = vadd.f32 %v8879_v33, %v4953_v46 }
 0x5af   :  { %v4760_v39 = vadd.f32 1e-05, %v4728_v32  ;;  %v4788_v17 = vsub.f32 1.5, %v4787_v55  ;;  %4684 = vadd.xlane.f32.xlu1 %v4657_v23  ;;  %4620 = vadd.xlane.f32.xlu0 %v8884_v58 }
 0x5b0   :  { %4988 = vst [vmem:[#allocation16] sm:$0xff] %v4972_v37 }
 0x5b1   :  { %6006 = vrsqrt.f32 %v4760_v39  ;;  %v4789_v16 = vmul.f32 %v6005_v40, %v4788_v17  ;;  %vm4800_vm3 = vweird.f32 %v4760_v39 }
 0x5b2   :  { %v4605_v53 = vpop.xlane.xlu1 %4604  ;;  %v4669_v2 = vpop.xlane.xlu2 %4668 }
 0x5b3   :  { %v8890_v18 = vmul.f32 %v4605_v53, %v8229_v52  ;;  %v4697_v57 = vmul.f32 %v4669_v2, %v8229_v52  ;;  %v4793_v51 = vsel %vm4792_vm1, %v6005_v40, %v4789_v16 }
 0x5b4   :  { %v4935_v0 = vmul.f32 %v4793_v51, %v4743_v47 }
 0x5b5   :  { %v4713_v6 = vmul.f32 %v8890_v18, %v8890_v18 }
 0x5b6   :  { %v4954_v20 = vmul.f32 %v8870_v31, %v4935_v0  ;;  %v4745_v0 = vsub.f32 %v8785_v7, %v8890_v18 }
 0x5b7   :  { %v6007_v38 = vpop.eup %6006  ;;  %v4729_v10 = vsub.f32 %v4697_v57, %v4713_v6 }
 0x5b8   :  { %v4795_v36 = vmul.f32 %v6007_v38, %v4760_v39  ;;  %v4973_v30 = vadd.f32 %v8879_v33, %v4954_v20  ;;  %vm4801_vm2 = vweird.f32 %v6007_v38 }
 0x5b9   :  { %v4761_v56 = vadd.f32 1e-05, %v4729_v10  ;;  %vm4802_vm4 = vmor %vm4800_vm3, %vm4801_vm2 }
 0x5ba   :  { %v4796_v43 = vmul.f32 %v6007_v38, %v4795_v36  ;;  %v4671_v27 = vpop.xlane.xlu0 %4670  ;;  %v4607_v54 = vpop.xlane.xlu2 %4606  ;;  %4989 = vst [vmem:[#allocation16 + $0x8] sm:$0xff] %v4973_v30  ;;  %v9237_v36 = vld [vmem:[#allocation31_spill] sm:$0xff] }
 0x5bb   :  { %6008 = vrsqrt.f32 %v4761_v56  ;;  %v8901_v11 = vmul.f32 %v4607_v54, %v8229_v52  ;;  %v4505_v4 = vpop.f32.mrf.mxu0  ;;  %v4554_v19 = vpop.f32.mrf.mxu1  ;;  %v4698_v61 = vmul.f32 %v4671_v27, %v8229_v52  ;;  %vm4810_vm6 = vweird.f32 %v4761_v56 }
 0x5bc   :  { %v4797_v29 = vmul.f32 0.5, %v4796_v43  ;;  %v4506_v41 = vadd.f32 %v8748_v25, %v4505_v4 }
 0x5bd   :  { %v4714_v28 = vmul.f32 %v8901_v11, %v8901_v11 }
 0x5be   :  { %v4798_v44 = vsub.f32 1.5, %v4797_v29  ;;  %v4555_v60 = vadd.f32 %v4554_v19, %v4506_v41 }
 0x5bf   :  { %v4730_v35 = vsub.f32 %v4698_v61, %v4714_v28  ;;  %v4746_v61 = vsub.f32 %v8793_v13, %v8901_v11 }
 0x5c0   :  { %v4799_v40 = vmul.f32 %v6007_v38, %v4798_v44  ;;  %v4576_v8 = vmul.f32 %v4555_v60, %v8215_v49 }
 0x5c1   :  { %v6009_v1 = vpop.eup %6008  ;;  %v4762_v59 = vadd.f32 1e-05, %v4730_v35 }
 0x5c2   :  { %v4803_v22 = vsel %vm4802_vm4, %v6007_v38, %v4799_v40  ;;  %v4805_v42 = vmul.f32 %v6009_v1, %v4761_v56  ;;  %v4673_v45 = vpop.xlane.xlu1 %4672  ;;  %v4609_v32 = vpop.xlane.xlu0 %4608  ;;  %v8914_v48 = vadd.f32 %v4576_v8, %v8710_v63  ;;  %vm4811_vm5 = vweird.f32 %v6009_v1 }
 0x5c3   :  { %v4936_v14 = vmul.f32 %v4803_v22, %v4744_v5  ;;  %v4635_v46 = vmul.f32 %v4609_v32, %v8229_v52  ;;  %6010 = vrsqrt.f32 %v4762_v59  ;;  %v4699_v37 = vmul.f32 %v4673_v45, %v8229_v52  ;;  %v4507_v23 = vpop.f32.mrf.mxu0  ;;  %v4556_v49 = vpop.f32.mrf.mxu1  ;;  %vm4812_vm8 = vmor %vm4810_vm6, %vm4811_vm5 }
 0x5c4   :  { %v4806_v55 = vmul.f32 %v6009_v1, %v4805_v42  ;;  %v4508_v53 = vadd.f32 %v8748_v25, %v4507_v23  ;;  %4622 = vadd.xlane.f32.xlu1 %v8914_v48  ;;  %v4658_v47 = vmul.f32 %v8914_v48, %v8914_v48  ;;  %vm4820_vm10 = vweird.f32 %v4762_v59 }
 0x5c5   :  { %v4955_v39 = vmul.f32 %v8870_v31, %v4936_v14  ;;  %v4715_v17 = vmul.f32 %v4635_v46, %v4635_v46  ;;  %v4747_v22 = vsub.f32 %v8801_v34, %v4635_v46 }
 0x5c6   :  { %v4807_v50 = vmul.f32 0.5, %v4806_v55  ;;  %v4557_v57 = vadd.f32 %v4556_v49, %v4508_v53  ;;  %4686 = vadd.xlane.f32.xlu2 %v4658_v47  ;;  %v9238_v55 = vld [vmem:[#allocation63_spill] sm:$0xff] }
 0x5c7   :  { %v4974_v2 = vadd.f32 %v8879_v33, %v4955_v39  ;;  %v4731_v16 = vsub.f32 %v4699_v37, %v4715_v17 }
 0x5c8   :  { %v4808_v6 = vsub.f32 1.5, %v4807_v50  ;;  %v4577_v20 = vmul.f32 %v4557_v57, %v9237_v36  ;;  %v9239_v50 = vld [vmem:[#allocation54_spill] sm:$0xff] }
 0x5c9   :  { %4990 = vst [vmem:[#allocation16 + $0x10] sm:$0xff] %v4974_v2  ;;  %v4763_v51 = vadd.f32 1e-05, %v4731_v16  ;;  %v6011_v63 = vpop.eup %6010 }
 0x5ca   :  { %v4809_v38 = vmul.f32 %v6009_v1, %v4808_v6  ;;  %v4815_v10 = vmul.f32 %v6011_v63, %v4762_v59  ;;  %v8926_v4 = vadd.f32 %v4577_v20, %v8713_v24  ;;  %vm4821_vm9 = vweird.f32 %v6011_v63 }
 0x5cb   :  { %6012 = vrsqrt.f32 %v4763_v51  ;;  %vm4822_vm11 = vmor %vm4820_vm10, %vm4821_vm9  ;;  %vm4830_vm7 = vweird.f32 %v4763_v51 }
 0x5cc   :  { %v4813_v43 = vsel %vm4812_vm8, %v6009_v1, %v4809_v38  ;;  %v4816_v54 = vmul.f32 %v6011_v63, %v4815_v10  ;;  %v4659_v16 = vmul.f32 %v8926_v4, %v8926_v4 }
 0x5cd   :  { %v4937_v27 = vmul.f32 %v4813_v43, %v4745_v0 }
 0x5ce   :  { %v4817_v29 = vmul.f32 0.5, %v4816_v54  ;;  %4624 = vadd.xlane.f32.xlu2 %v8926_v4 }
 0x5cf   :  { %v4956_v30 = vmul.f32 %v8870_v31, %v4937_v27 }
 0x5d0   :  { %v4818_v44 = vsub.f32 1.5, %v4817_v29 }
 0x5d1   :  { %v6013_v19 = vpop.eup %6012  ;;  %v4975_v56 = vadd.f32 %v8879_v33, %v4956_v30 }
 0x5d2   :  { %v4825_v7 = vmul.f32 %v6013_v19, %v4763_v51  ;;  %v4819_v18 = vmul.f32 %v6011_v63, %v4818_v44  ;;  %vm4831_vm0 = vweird.f32 %v6013_v19 }
 0x5d3   :  { %4991 = vst [vmem:[#allocation16 + $0x18] sm:$0xff] %v4975_v56  ;;  %vm4832_vm12 = vmor %vm4830_vm7, %vm4831_vm0 }
 0x5d4   :  { %v4826_v28 = vmul.f32 %v6013_v19, %v4825_v7  ;;  %v4823_v41 = vsel %vm4822_vm11, %v6011_v63, %v4819_v18 }
 0x5d5   :  { %v4938_v40 = vmul.f32 %v4823_v41, %v4746_v61 }
 0x5d6   :  { %v4827_v24 = vmul.f32 0.5, %v4826_v28 }
 0x5d7   :  { %v4957_v35 = vmul.f32 %v8870_v31, %v4938_v40 }
 0x5d8   :  { %v4828_v60 = vsub.f32 1.5, %v4827_v24 }
 0x5d9   :  { %v4976_v1 = vadd.f32 %v8879_v33, %v4957_v35 }
 0x5da   :  { %v4829_v5 = vmul.f32 %v6013_v19, %v4828_v60 }
 0x5db   :  { %4992 = vst [vmem:[#allocation16 + $0x20] sm:$0xff] %v4976_v1 }
 0x5dc   :  { %v4833_v42 = vsel %vm4832_vm12, %v6013_v19, %v4829_v5 }
 0x5dd   :  { %v4939_v59 = vmul.f32 %v4833_v42, %v4747_v22 }
 0x5df   :  { %v4958_v13 = vmul.f32 %v8870_v31, %v4939_v59 }
 0x5e1   :  { %v4977_v11 = vadd.f32 %v8879_v33, %v4958_v13 }
 0x5e3   :  { %4993 = vst [vmem:[#allocation16 + $0x28] sm:$0xff] %v4977_v11 }
 0x5e9   :  { %v4510_v45 = vpop.f32.mrf.mxu0  ;;  %v4559_v32 = vpop.f32.mrf.mxu1 }
 0x5ea   :  { %v4511_v14 = vadd.f32 %v8748_v25, %v4510_v45 }
 0x5ec   :  { %v4560_v8 = vadd.f32 %v4559_v32, %v4511_v14 }
 0x5ee   :  { %v4578_v39 = vmul.f32 %v4560_v8, %v9238_v55 }
 0x5f0   :  { %v8940_v37 = vadd.f32 %v4578_v39, %v8730_v9 }
 0x5f1   :  { %v4512_v34 = vpop.f32.mrf.mxu0  ;;  %v4561_v17 = vpop.f32.mrf.mxu1 }
 0x5f2   :  { %v4513_v46 = vadd.f32 %v8748_v25, %v4512_v34  ;;  %4626 = vadd.xlane.f32.xlu0 %v8940_v37 }
 0x5f4   :  { %v4562_v23 = vadd.f32 %v4561_v17, %v4513_v46 }
 0x5f6   :  { %v4579_v53 = vmul.f32 %v4562_v23, %v9239_v50 }
 0x5f8   :  { %v8946_v2 = vadd.f32 %v4579_v53, %v8733_v62  ;;  %v4611_v9 = vpop.xlane.xlu1 %4610  ;;  %v4660_v62 = vmul.f32 %v8940_v37, %v8940_v37 }
 0x5f9   :  { %v4636_v49 = vmul.f32 %v4611_v9, %v8229_v52 }
 0x5fa   :  { %4628 = vadd.xlane.f32.xlu1 %v8946_v2  ;;  %4688 = vadd.xlane.f32.xlu0 %v4659_v16  ;;  %v4661_v25 = vmul.f32 %v8946_v2, %v8946_v2  ;;  %v4675_v47 = vpop.xlane.xlu2 %4674 }
 0x5fb   :  { %v4716_v6 = vmul.f32 %v4636_v49, %v4636_v49  ;;  %v4700_v57 = vmul.f32 %v4675_v47, %v8229_v52  ;;  %v4748_v35 = vsub.f32 %v8813_v26, %v4636_v49 }
 0x5fc   :  { %4692 = vadd.xlane.f32.xlu2 %v4661_v25 }
 0x5fd   :  { %v4732_v51 = vsub.f32 %v4700_v57, %v4716_v6 }
 0x5ff   :  { %v4764_v63 = vadd.f32 1e-05, %v4732_v51 }
 0x601   :  { %6014 = vrsqrt.f32 %v4764_v63  ;;  %vm4840_vm14 = vweird.f32 %v4764_v63 }
 0x602   :  { %4690 = vadd.xlane.f32.xlu1 %v4660_v62  ;;  %v4677_v38 = vpop.xlane.xlu0 %4676  ;;  %v4613_v0 = vpop.xlane.xlu2 %4612 }
 0x603   :  { %v4637_v10 = vmul.f32 %v4613_v0, %v8229_v52  ;;  %v4701_v36 = vmul.f32 %v4677_v38, %v8229_v52 }
 0x605   :  { %v4717_v20 = vmul.f32 %v4637_v10, %v4637_v10  ;;  %v4749_v16 = vsub.f32 %v8821_v21, %v4637_v10 }
 0x607   :  { %v6015_v43 = vpop.eup %6014  ;;  %v4733_v27 = vsub.f32 %v4701_v36, %v4717_v20 }
 0x608   :  { %v4835_v54 = vmul.f32 %v6015_v43, %v4764_v63  ;;  %vm4841_vm13 = vweird.f32 %v6015_v43 }
 0x609   :  { %v4765_v30 = vadd.f32 1e-05, %v4733_v27  ;;  %vm4842_vm15 = vmor %vm4840_vm14, %vm4841_vm13 }
 0x60a   :  { %v4836_v29 = vmul.f32 %v6015_v43, %v4835_v54  ;;  %v4615_v19 = vpop.xlane.xlu0 %4614  ;;  %v4679_v56 = vpop.xlane.xlu1 %4678 }
 0x60b   :  { %6016 = vrsqrt.f32 %v4765_v30  ;;  %v8960_v44 = vmul.f32 %v4615_v19, %v8229_v52  ;;  %v4702_v61 = vmul.f32 %v4679_v56, %v8229_v52  ;;  %vm4850_vm2 = vweird.f32 %v4765_v30 }
 0x60c   :  { %v4837_v7 = vmul.f32 0.5, %v4836_v29 }
 0x60d   :  { %v4718_v18 = vmul.f32 %v8960_v44, %v8960_v44  ;;  %v4750_v54 = vsub.f32 %v8835_v12, %v8960_v44 }
 0x60e   :  { %v4838_v28 = vsub.f32 1.5, %v4837_v7 }
 0x60f   :  { %v4734_v41 = vsub.f32 %v4702_v61, %v4718_v18 }
 0x610   :  { %v4839_v40 = vmul.f32 %v6015_v43, %v4838_v28 }
 0x611   :  { %v6017_v24 = vpop.eup %6016  ;;  %v4766_v60 = vadd.f32 1e-05, %v4734_v41 }
 0x612   :  { %v4843_v1 = vsel %vm4842_vm15, %v6015_v43, %v4839_v40  ;;  %v4845_v5 = vmul.f32 %v6017_v24, %v4765_v30  ;;  %v4617_v22 = vpop.xlane.xlu1 %4616  ;;  %v4681_v42 = vpop.xlane.xlu2 %4680  ;;  %vm4851_vm1 = vweird.f32 %v6017_v24 }
 0x613   :  { %v4940_v59 = vmul.f32 %v4843_v1, %v4748_v35  ;;  %6018 = vrsqrt.f32 %v4766_v60  ;;  %v8967_v13 = vmul.f32 %v4617_v22, %v8229_v52  ;;  %v4703_v14 = vmul.f32 %v4681_v42, %v8229_v52  ;;  %vm4852_vm3 = vmor %vm4850_vm2, %vm4851_vm1 }
 0x614   :  { %v4846_v11 = vmul.f32 %v6017_v24, %v4845_v5  ;;  %vm4860_vm5 = vweird.f32 %v4766_v60 }
 0x615   :  { %v4959_v45 = vmul.f32 %v8870_v31, %v4940_v59  ;;  %v4719_v32 = vmul.f32 %v8967_v13, %v8967_v13  ;;  %v4751_v1 = vsub.f32 %v8849_v3, %v8967_v13 }
 0x616   :  { %v4847_v26 = vmul.f32 0.5, %v4846_v11 }
 0x617   :  { %v4978_v8 = vadd.f32 %v8879_v33, %v4959_v45  ;;  %v4735_v55 = vsub.f32 %v4703_v14, %v4719_v32 }
 0x618   :  { %v4848_v39 = vsub.f32 1.5, %v4847_v26 }
 0x619   :  { %v6019_v34 = vpop.eup %6018  ;;  %4994 = vst [vmem:[#allocation16 + $0x30] sm:$0xff] %v4978_v8  ;;  %v4767_v46 = vadd.f32 1e-05, %v4735_v55 }
 0x61a   :  { %v4849_v17 = vmul.f32 %v6017_v24, %v4848_v39  ;;  %v4855_v23 = vmul.f32 %v6019_v34, %v4766_v60  ;;  %v4683_v50 = vpop.xlane.xlu0 %4682  ;;  %v4619_v53 = vpop.xlane.xlu2 %4618  ;;  %vm4861_vm4 = vweird.f32 %v6019_v34 }
 0x61b   :  { %6020 = vrsqrt.f32 %v4767_v46  ;;  %v4640_v9 = vmul.f32 %v4619_v53, %v8229_v52  ;;  %v4704_v6 = vmul.f32 %v4683_v50, %v8229_v52  ;;  %vm4862_vm6 = vmor %vm4860_vm5, %vm4861_vm4  ;;  %vm4870_vm9 = vweird.f32 %v4767_v46 }
 0x61c   :  { %v4853_v49 = vsel %vm4852_vm3, %v6017_v24, %v4849_v17  ;;  %v4856_v25 = vmul.f32 %v6019_v34, %v4855_v23 }
 0x61d   :  { %v4941_v47 = vmul.f32 %v4853_v49, %v4749_v16  ;;  %v4720_v57 = vmul.f32 %v4640_v9, %v4640_v9  ;;  %v4752_v55 = vsub.f32 %v8857_v15, %v4640_v9 }
 0x61e   :  { %v4857_v62 = vmul.f32 0.5, %v4856_v25 }
 0x61f   :  { %v4960_v51 = vmul.f32 %v8870_v31, %v4941_v47  ;;  %v4736_v63 = vsub.f32 %v4704_v6, %v4720_v57 }
 0x620   :  { %v4858_v38 = vsub.f32 1.5, %v4857_v62 }
 0x621   :  { %v6021_v0 = vpop.eup %6020  ;;  %v4979_v36 = vadd.f32 %v8879_v33, %v4960_v51  ;;  %v4768_v21 = vadd.f32 1e-05, %v4736_v63 }
 0x622   :  { %v4859_v10 = vmul.f32 %v6019_v34, %v4858_v38  ;;  %v4865_v20 = vmul.f32 %v6021_v0, %v4767_v46  ;;  %v4685_v43 = vpop.xlane.xlu1 %4684  ;;  %v4621_v27 = vpop.xlane.xlu0 %4620  ;;  %vm4871_vm8 = vweird.f32 %v6021_v0 }
 0x623   :  { %4995 = vst [vmem:[#allocation16 + $0x38] sm:$0xff] %v4979_v36  ;;  %6022 = vrsqrt.f32 %v4768_v21  ;;  %v4641_v30 = vmul.f32 %v4621_v27, %v8229_v52  ;;  %v4705_v7 = vmul.f32 %v4685_v43, %v8229_v52  ;;  %vm4872_vm10 = vmor %vm4870_vm9, %vm4871_vm8  ;;  %vm4880_vm0 = vweird.f32 %v4768_v21 }
 0x624   :  { %v4863_v29 = vsel %vm4862_vm6, %v6019_v34, %v4859_v10  ;;  %v4866_v19 = vmul.f32 %v6021_v0, %v4865_v20 }
 0x625   :  { %v4942_v56 = vmul.f32 %v4863_v29, %v4750_v54  ;;  %v4721_v18 = vmul.f32 %v4641_v30, %v4641_v30  ;;  %v4753_v9 = vsub.f32 %v8884_v58, %v4641_v30 }
 0x626   :  { %v4867_v61 = vmul.f32 0.5, %v4866_v19 }
 0x627   :  { %v4961_v28 = vmul.f32 %v8870_v31, %v4942_v56  ;;  %v4737_v41 = vsub.f32 %v4705_v7, %v4721_v18 }
 0x628   :  { %v4868_v40 = vsub.f32 1.5, %v4867_v61 }
 0x629   :  { %v6023_v24 = vpop.eup %6022  ;;  %v4980_v35 = vadd.f32 %v8879_v33, %v4961_v28  ;;  %v4769_v12 = vadd.f32 1e-05, %v4737_v41 }
 0x62a   :  { %v4869_v44 = vmul.f32 %v6021_v0, %v4868_v40  ;;  %v4875_v60 = vmul.f32 %v6023_v24, %v4768_v21  ;;  %vm4881_vm11 = vweird.f32 %v6023_v24 }
 0x62b   :  { %4996 = vst [vmem:[#allocation16 + $0x40] sm:$0xff] %v4980_v35  ;;  %6024 = vrsqrt.f32 %v4769_v12  ;;  %vm4882_vm7 = vmor %vm4880_vm0, %vm4881_vm11  ;;  %vm4890_vm13 = vweird.f32 %v4769_v12 }
 0x62c   :  { %v4873_v5 = vsel %vm4872_vm10, %v6021_v0, %v4869_v44  ;;  %v4876_v22 = vmul.f32 %v6023_v24, %v4875_v60 }
 0x62d   :  { %v4943_v42 = vmul.f32 %v4873_v5, %v4751_v1 }
 0x62e   :  { %v4877_v59 = vmul.f32 0.5, %v4876_v22 }
 0x62f   :  { %v4962_v11 = vmul.f32 %v8870_v31, %v4943_v42 }
 0x630   :  { %v4878_v45 = vsub.f32 1.5, %v4877_v59 }
 0x631   :  { %v6025_v32 = vpop.eup %6024  ;;  %v4981_v14 = vadd.f32 %v8879_v33, %v4962_v11 }
 0x632   :  { %v4879_v26 = vmul.f32 %v6023_v24, %v4878_v45  ;;  %v4885_v8 = vmul.f32 %v6025_v32, %v4769_v12  ;;  %vm4891_vm12 = vweird.f32 %v6025_v32 }
 0x633   :  { %4997 = vst [vmem:[#allocation16 + $0x48] sm:$0xff] %v4981_v14  ;;  %vm4892_vm14 = vmor %vm4890_vm13, %vm4891_vm12 }
 0x634   :  { %v4883_v3 = vsel %vm4882_vm7, %v6023_v24, %v4879_v26  ;;  %v4886_v13 = vmul.f32 %v6025_v32, %v4885_v8 }
 0x635   :  { %v4944_v39 = vmul.f32 %v4883_v3, %v4752_v55 }
 0x636   :  { %v4887_v46 = vmul.f32 0.5, %v4886_v13 }
 0x637   :  { %v4623_v34 = vpop.xlane.xlu1 %4622  ;;  %v4963_v23 = vmul.f32 %v8870_v31, %v4944_v39 }
 0x638   :  { %v4642_v17 = vmul.f32 %v4623_v34, %v8229_v52  ;;  %v4888_v53 = vsub.f32 1.5, %v4887_v46 }
 0x639   :  { %v4687_v50 = vpop.xlane.xlu2 %4686  ;;  %v4982_v25 = vadd.f32 %v8879_v33, %v4963_v23 }
 0x63a   :  { %v4722_v16 = vmul.f32 %v4642_v17, %v4642_v17  ;;  %v4706_v49 = vmul.f32 %v4687_v50, %v8229_v52  ;;  %v4889_v47 = vmul.f32 %v6025_v32, %v4888_v53  ;;  %v4754_v58 = vsub.f32 %v8914_v48, %v4642_v17 }
 0x63b   :  { %4998 = vst [vmem:[#allocation16 + $0x50] sm:$0xff] %v4982_v25 }
 0x63c   :  { %v4738_v15 = vsub.f32 %v4706_v49, %v4722_v16  ;;  %v4893_v6 = vsel %vm4892_vm14, %v6025_v32, %v4889_v47 }
 0x63d   :  { %v4945_v62 = vmul.f32 %v4893_v6, %v4753_v9 }
 0x63e   :  { %v4770_v57 = vadd.f32 1e-05, %v4738_v15 }
 0x63f   :  { %v4964_v51 = vmul.f32 %v8870_v31, %v4945_v62 }
 0x640   :  { %6026 = vrsqrt.f32 %v4770_v57  ;;  %vm4900_vm1 = vweird.f32 %v4770_v57 }
 0x641   :  { %v4983_v63 = vadd.f32 %v8879_v33, %v4964_v51  ;;  %v4625_v19 = vpop.xlane.xlu2 %4624 }
 0x642   :  { %v4643_v56 = vmul.f32 %v4625_v19, %v8229_v52 }
 0x643   :  { %4999 = vst [vmem:[#allocation16 + $0x58] sm:$0xff] %v4983_v63 }
 0x644   :  { %v4723_v61 = vmul.f32 %v4643_v56, %v4643_v56 }
 0x646   :  { %v6027_v38 = vpop.eup %6026 }
 0x647   :  { %v4895_v0 = vmul.f32 %v6027_v38, %v4770_v57  ;;  %vm4901_vm15 = vweird.f32 %v6027_v38 }
 0x648   :  { %vm4902_vm2 = vmor %vm4900_vm1, %vm4901_vm15 }
 0x649   :  { %v4896_v36 = vmul.f32 %v6027_v38, %v4895_v0 }
 0x64b   :  { %v4897_v21 = vmul.f32 0.5, %v4896_v36 }
 0x64d   :  { %v4898_v10 = vsub.f32 1.5, %v4897_v21 }
 0x64f   :  { %v4899_v20 = vmul.f32 %v6027_v38, %v4898_v10 }
 0x651   :  { %v4903_v43 = vsel %vm4902_vm2, %v6027_v38, %v4899_v20 }
 0x652   :  { %v4946_v27 = vmul.f32 %v4903_v43, %v4754_v58 }
 0x654   :  { %v4965_v54 = vmul.f32 %v8870_v31, %v4946_v27 }
 0x656   :  { %v4984_v30 = vadd.f32 %v8879_v33, %v4965_v54 }
 0x658   :  { %5000 = vst [vmem:[#allocation16 + $0x60] sm:$0xff] %v4984_v30 }
 0x665   :  { %v4627_v29 = vpop.xlane.xlu0 %4626 }
 0x666   :  { %v4644_v40 = vmul.f32 %v4627_v29, %v8229_v52 }
 0x668   :  { %v4724_v1 = vmul.f32 %v4644_v40, %v4644_v40  ;;  %v4756_v62 = vsub.f32 %v8940_v37, %v4644_v40 }
 0x66d   :  { %v4629_v7 = vpop.xlane.xlu1 %4628  ;;  %v4689_v18 = vpop.xlane.xlu0 %4688 }
 0x66e   :  { %v4645_v28 = vmul.f32 %v4629_v7, %v8229_v52  ;;  %v4707_v41 = vmul.f32 %v4689_v18, %v8229_v52 }
 0x66f   :  { %v4693_v12 = vpop.xlane.xlu2 %4692 }
 0x670   :  { %v4739_v48 = vsub.f32 %v4707_v41, %v4723_v61  ;;  %v4725_v24 = vmul.f32 %v4645_v28, %v4645_v28  ;;  %v4709_v44 = vmul.f32 %v4693_v12, %v8229_v52  ;;  %v4757_v9 = vsub.f32 %v8946_v2, %v4645_v28 }
 0x672   :  { %v4771_v35 = vadd.f32 1e-05, %v4739_v48  ;;  %v4741_v5 = vsub.f32 %v4709_v44, %v4725_v24 }
 0x674   :  { %6028 = vrsqrt.f32 %v4771_v35  ;;  %v4773_v42 = vadd.f32 1e-05, %v4741_v5  ;;  %vm4910_vm4 = vweird.f32 %v4771_v35 }
 0x675   :  { %v4691_v60 = vpop.xlane.xlu1 %4690 }
 0x676   :  { %v4708_v22 = vmul.f32 %v4691_v60, %v8229_v52  ;;  %6030 = vrsqrt.f32 %v4773_v42  ;;  %v4755_v52 = vsub.f32 %v8926_v4, %v4643_v56  ;;  %vm4930_vm8 = vweird.f32 %v4773_v42 }
 0x678   :  { %v4740_v59 = vsub.f32 %v4708_v22, %v4724_v1 }
 0x67a   :  { %v6029_v11 = vpop.eup %6028  ;;  %v4772_v45 = vadd.f32 1e-05, %v4740_v59 }
 0x67b   :  { %v4905_v32 = vmul.f32 %v6029_v11, %v4771_v35  ;;  %vm4911_vm3 = vweird.f32 %v6029_v11 }
 0x67c   :  { %6032 = vrsqrt.f32 %v4772_v45  ;;  %v6031_v8 = vpop.eup %6030  ;;  %vm4912_vm5 = vmor %vm4910_vm4, %vm4911_vm3  ;;  %vm4920_vm11 = vweird.f32 %v4772_v45 }
 0x67d   :  { %v4906_v14 = vmul.f32 %v6029_v11, %v4905_v32  ;;  %v4925_v3 = vmul.f32 %v6031_v8, %v4773_v42  ;;  %vm4931_vm6 = vweird.f32 %v6031_v8 }
 0x67e   :  { %vm4932_vm10 = vmor %vm4930_vm8, %vm4931_vm6 }
 0x67f   :  { %v4907_v26 = vmul.f32 0.5, %v4906_v14  ;;  %v4926_v34 = vmul.f32 %v6031_v8, %v4925_v3 }
 0x681   :  { %v4908_v55 = vsub.f32 1.5, %v4907_v26  ;;  %v4927_v23 = vmul.f32 0.5, %v4926_v34 }
 0x682   :  { %v6033_v13 = vpop.eup %6032 }
 0x683   :  { %v4909_v39 = vmul.f32 %v6029_v11, %v4908_v55  ;;  %v4915_v46 = vmul.f32 %v6033_v13, %v4772_v45  ;;  %v4928_v16 = vsub.f32 1.5, %v4927_v23  ;;  %vm4921_vm9 = vweird.f32 %v6033_v13 }
 0x684   :  { %vm4922_vm0 = vmor %vm4920_vm11, %vm4921_vm9 }
 0x685   :  { %v4913_v17 = vsel %vm4912_vm5, %v6029_v11, %v4909_v39  ;;  %v4916_v50 = vmul.f32 %v6033_v13, %v4915_v46  ;;  %v4929_v47 = vmul.f32 %v6031_v8, %v4928_v16 }
 0x686   :  { %v4947_v53 = vmul.f32 %v4913_v17, %v4755_v52 }
 0x687   :  { %v4917_v49 = vmul.f32 0.5, %v4916_v50  ;;  %v4933_v4 = vsel %vm4932_vm10, %v6031_v8, %v4929_v47 }
 0x688   :  { %v4966_v25 = vmul.f32 %v8870_v31, %v4947_v53  ;;  %v4949_v51 = vmul.f32 %v4933_v4, %v4757_v9 }
 0x689   :  { %v4918_v15 = vsub.f32 1.5, %v4917_v49 }
 0x68a   :  { %v4985_v6 = vadd.f32 %v8879_v33, %v4966_v25  ;;  %v4968_v38 = vmul.f32 %v8870_v31, %v4949_v51 }
 0x68b   :  { %v4919_v57 = vmul.f32 %v6033_v13, %v4918_v15 }
 0x68c   :  { %5001 = vst [vmem:[#allocation16 + $0x68] sm:$0xff] %v4985_v6  ;;  %v4987_v2 = vadd.f32 %v8879_v33, %v4968_v38 }
 0x68d   :  { %v4923_v63 = vsel %vm4922_vm0, %v6033_v13, %v4919_v57 }
 0x68e   :  { %v4948_v0 = vmul.f32 %v4923_v63, %v4756_v62  ;;  %5003 = vst [vmem:[#allocation16 + $0x78] sm:$0xff] %v4987_v2 }
 0x690   :  { %v4967_v36 = vmul.f32 %v8870_v31, %v4948_v0 }
 0x692   :  { %v4986_v37 = vadd.f32 %v8879_v33, %v4967_v36 }
 0x694   :  { %5002 = vst [vmem:[#allocation16 + $0x70] sm:$0xff] %v4986_v37 }
 0x695   :  { %5016 = dma.vmem_to_hbm [thread:$0]  %s5009_s20, 2048, %s5011_s2, [#allocation4], %s6289_s22, %s6289_s22, %s6290_s1  }
 0x696   :  { %6278 = dma.done.wait [#allocation4], 2048  }
 0x697   :  { %6279 = vsyncadd [#allocation4], 4294965248 }
 0x698   :  { %5021 = vsyncpa [#allocation3], 1 }
 0x699   :  { %5022 = vsyncpa [#allocation6], 1 }
 0x69a   :  { %5023 = vsyncpa [#allocation9], 1 }
 0x69b   :  { %5024 = vsyncpa [#allocation12], 1 }
 0x69c   :  { %5025 = vsyncpa [#allocation15], 1 }
 0x69d   :  { %5026 = vsyncpa [#allocation4], 1 }

// kernel: tpu_custom_call.1
= control target key start
LH: loop header
LB: loop body
LE: loop exit
PB: predicated region body
PF: predicated region fallthrough
CT: control target
= control target key end

     0   :  { %s9021_s0 = inlined_call_operand.vmem [shape: f32[8,16,128], index: 0, kind: input, shape index: {}]   ;;  %s9022_s1 = inlined_call_operand.vmem [shape: f32[8,16,1], index: 1, kind: input, shape index: {}]   ;;  %s9023_s2 = inlined_call_operand.hbm [shape: bf16[128,128], index: 2, kind: input, shape index: {}]   ;;  %s9024_s3 = inlined_call_operand.vmem [shape: f32[1,128], index: 3, kind: input, shape index: {}]   ;;  %s9025_s4 = inlined_call_operand.hbm [shape: bf16[384,128], index: 4, kind: input, shape index: {}]   ;;  %s9026_s5 = inlined_call_operand.vmem [shape: f32[1,128], index: 5, kind: input, shape index: {}]   ;;  %s9027_s6 = inlined_call_operand.hbm [shape: bf16[384,128], index: 6, kind: input, shape index: {}]   ;;  %s9028_s7 = inlined_call_operand.vmem [shape: f32[1,128], index: 7, kind: input, shape index: {}]   ;;  %s9029_s8 = inlined_call_operand.hbm [shape: bf16[384,128], index: 8, kind: input, shape index: {}]   ;;  %s9030_s9 = inlined_call_operand.vmem [shape: f32[1,128], index: 9, kind: input, shape index: {}]   ;;  %s9031_s10 = inlined_call_operand.hbm [shape: bf16[384,128], index: 10, kind: input, shape index: {}]   ;;  %s9032_s11 = inlined_call_operand.vmem [shape: f32[1,128], index: 11, kind: input, shape index: {}]   ;;  %s9033_s12 = inlined_call_operand.hbm [shape: bf16[128,128], index: 12, kind: input, shape index: {}]   ;;  %s9034_s13 = inlined_call_operand.vmem [shape: f32[1,128], index: 13, kind: input, shape index: {}]   ;;  %s9035_s14 = inlined_call_operand.vmem [shape: f32[1,128], index: 14, kind: input, shape index: {}]   ;;  %s9036_s15 = inlined_call_operand.hbm [shape: bf16[128,256], index: 15, kind: input, shape index: {}]   ;;  %s9037_s16 = inlined_call_operand.vmem [shape: f32[1,256], index: 16, kind: input, shape index: {}]   ;;  %s9038_s17 = inlined_call_operand.hbm [shape: bf16[256,128], index: 17, kind: input, shape index: {}]   ;;  %s9039_s18 = inlined_call_operand.vmem [shape: f32[1,128], index: 18, kind: input, shape index: {}]   ;;  %s9040_s19 = inlined_call_operand.vmem [shape: f32[1,128], index: 19, kind: input, shape index: {}]   ;;  %s9041_s20 = inlined_call_operand.vmem [shape: f32[1,128], index: 20, kind: input, shape index: {}]   ;;  %s9042_s21 = inlined_call_operand.hbm [shape: f32[8,16,128], index: 21, kind: output, shape index: {}]  }
   0x1   :  { %9070 = sst [smem:[#allocation68_spill]] %s9021_s0 }
   0x2   :  { %9071 = sst [smem:[#allocation69_spill]] %s9022_s1 }
   0x3   :  { %9072 = sst [smem:[#allocation70_spill]] %s9023_s2 }
   0x4   :  { %9073 = sst [smem:[#allocation71_spill]] %s9024_s3 }
   0x5   :  { %9074 = sst [smem:[#allocation72_spill]] %s9025_s4 }
   0x6   :  { %9075 = sst [smem:[#allocation73_spill]] %s9026_s5 }
   0x7   :  { %26 = vsyncpa [#allocation3], 0 }
   0x8   :  { %27 = vsyncpa [#allocation6], 0 }
   0x9   :  { %28 = vsyncpa [#allocation9], 0 }
   0xa   :  { %29 = vsyncpa [#allocation12], 0 }
   0xb   :  { %30 = vsyncpa [#allocation15], 0 }
   0xc   :  { %31 = vsyncpa [#allocation4], 0  ;;  %s9076_s26 = sld [smem:[#allocation72_spill]]  ;;  %s6280_s3 = smov [#allocation5]  }
   0xd   :  { %s57_s28 = sshll.u32 %s6280_s3, 4  ;;  %s85_s4 = sshll.u32 %s9029_s8, 4  ;;  %s58_s28 = int_to_ptr.vmem [resolvable:$true] %s57_s28  ;;  %s86_s4 = int_to_ptr.hbm [resolvable:$true] %s85_s4 }
   0xe   :  { %s6281_s30 = smov 64   ;;  %s6282_s5 = smov 4  }
   0xf   :  { %s6283_s22 = smov [#allocation8]   ;;  %s115_s2 = sshll.u32 %s9033_s12, 4  ;;  %s116_s2 = int_to_ptr.hbm [resolvable:$true] %s115_s2 }
  0x10   :  { %s87_s23 = sshll.u32 %s6283_s22, 4  ;;  %s6284_s29 = smov [#allocation11]   ;;  %s88_s23 = int_to_ptr.vmem [resolvable:$true] %s87_s23 }
  0x11   :  { %93 = dma.hbm_to_vmem [thread:$0]  %s86_s4, 3072, %s88_s23, [#allocation9], %s6281_s30, %s6281_s30, %s6282_s5  }
  0x12   :  { %s55_s27 = sshll.u32 %s9076_s26, 4  ;;  %s9077_s26 = sld [smem:[#allocation70_spill]]  ;;  %s56_s27 = int_to_ptr.hbm [resolvable:$true] %s55_s27 }
  0x13   :  { %63 = dma.hbm_to_vmem [thread:$0]  %s56_s27, 3072, %s58_s28, [#allocation6], %s6281_s30, %s6281_s30, %s6282_s5  }
  0x14   :  { %s117_s0 = sshll.u32 %s6284_s29, 4  ;;  %s6285_s27 = smov [#allocation2]   ;;  %s118_s0 = int_to_ptr.vmem [resolvable:$true] %s117_s0 }
  0x15   :  { %123 = dma.hbm_to_vmem [thread:$0]  %s116_s2, 1024, %s118_s0, [#allocation12], %s6281_s30, %s6281_s30, %s6282_s5  }
  0x16   :  { %s42_s12 = sshll.u32 %s6285_s27, 4  ;;  %s70_s1 = sshll.u32 %s9027_s6, 4  ;;  %s43_s12 = int_to_ptr.vmem [resolvable:$true] %s42_s12  ;;  %s71_s1 = int_to_ptr.hbm [resolvable:$true] %s70_s1 }
  0x17   :  { %s100_s24 = sshll.u32 %s9031_s10, 4  ;;  %s6286_s8 = smov [#allocation7]   ;;  %s101_s24 = int_to_ptr.hbm [resolvable:$true] %s100_s24 }
  0x18   :  { %s40_s3 = sshll.u32 %s9077_s26, 4  ;;  %s72_s25 = sshll.u32 %s6286_s8, 4  ;;  %s41_s3 = int_to_ptr.hbm [resolvable:$true] %s40_s3  ;;  %s73_s25 = int_to_ptr.vmem [resolvable:$true] %s72_s25 }
  0x19   :  { %48 = dma.hbm_to_vmem [thread:$0]  %s41_s3, 1024, %s43_s12, [#allocation3], %s6281_s30, %s6281_s30, %s6282_s5  }
  0x1a   :  { %78 = dma.hbm_to_vmem [thread:$0]  %s71_s1, 3072, %s73_s25, [#allocation6], %s6281_s30, %s6281_s30, %s6282_s5  }
  0x1b   :  { %s6287_s2 = smov [#allocation10]   ;;  %s132_s0 = sshll.u32 %s9036_s15, 4  ;;  %s133_s0 = int_to_ptr.hbm [resolvable:$true] %s132_s0 }
  0x1c   :  { %s102_s6 = sshll.u32 %s6287_s2, 4  ;;  %s6288_s10 = smov [#allocation13]   ;;  %s103_s6 = int_to_ptr.vmem [resolvable:$true] %s102_s6 }
  0x1d   :  { %108 = dma.hbm_to_vmem [thread:$0]  %s101_s24, 3072, %s103_s6, [#allocation9], %s6281_s30, %s6281_s30, %s6282_s5  }
  0x1e   :  { %s134_s3 = sshll.u32 %s6288_s10, 4  ;;  %s147_s28 = sshll.u32 %s9038_s17, 4  ;;  %s135_s3 = int_to_ptr.vmem [resolvable:$true] %s134_s3  ;;  %s148_s28 = int_to_ptr.hbm [resolvable:$true] %s147_s28 }
  0x1f   :  { %s6289_s22 = smov 128   ;;  %s6290_s1 = smov 8  }
  0x20   :  { %140 = dma.hbm_to_vmem [thread:$0]  %s133_s0, 2048, %s135_s3, [#allocation12], %s6289_s22, %s6289_s22, %s6290_s1  }
  0x21   :  { %s6291_s15 = smov [#allocation14]  }
  0x22   :  { %s149_s4 = sshll.u32 %s6291_s15, 4  ;;  %s150_s4 = int_to_ptr.vmem [resolvable:$true] %s149_s4 }
  0x23   :  { %155 = dma.hbm_to_vmem [thread:$0]  %s148_s28, 2048, %s150_s4, [#allocation15], %s6281_s30, %s6281_s30, %s6282_s5  }
  0x24   :  { %6268 = dma.done.wait [#allocation3], 1024  }
  0x25   :  { %6269 = vsyncadd [#allocation3], 4294966272 }
  0x26   :  { %6270 = dma.done.wait [#allocation6], 6144  }
  0x27   :  { %6271 = vsyncadd [#allocation6], 4294961152 }
  0x28   :  { %6272 = dma.done.wait [#allocation9], 6144  }
  0x29   :  { %6273 = vsyncadd [#allocation9], 4294961152 }
  0x2a   :  { %6274 = dma.done.wait [#allocation12], 3072  }
  0x2b   :  { %6275 = vsyncadd [#allocation12], 4294964224 }
  0x2c   :  { %6276 = dma.done.wait [#allocation15], 2048  }
  0x2d   :  { %6277 = vsyncadd [#allocation15], 4294965248  ;;  %v226_v0 = vlaneseq  ;;  %v5658_v2 = vld [vmem:[#allocation2 + $0x38] sm:$0xff]  ;;  %v5657_v4 = vld [vmem:[#allocation2 + $0x30] sm:$0xff]  ;;  %s9079_s5 = sld [smem:[#allocation68_spill]]  ;;  %v6292_v19 = vmov 0.0  }
  0x2e   :  { %v5666_v3 = vld [vmem:[#allocation5 + $0x38] sm:$0xff]  ;;  %5795 = vmatpush.bf16.msra.mxu2 %v5658_v2  ;;  %v5665_v5 = vld [vmem:[#allocation5 + $0x30] sm:$0xff]  ;;  %889 = vmatpush.bf16.msra.mxu0 %v5658_v2  ;;  %v5656_v7 = vld [vmem:[#allocation2 + $0x28] sm:$0xff]  ;;  %s9107_s15 = sld [smem:[#allocation73_spill]]  ;;  %s5010_s2 = sshll.u32 %s9042_s21, 4  ;;  %s5011_s2 = int_to_ptr.hbm [resolvable:$true] %s5010_s2 }
  0x2f   :  { %v6454_v1 = vshrl.u32 %v226_v0, 7  ;;  %5803 = vmatpush.bf16.msra.mxu3 %v5666_v3  ;;  %1454 = vmatpush.bf16.msra.mxu1 %v5666_v3  ;;  %v5664_v8 = vld [vmem:[#allocation5 + $0x28] sm:$0xff]  ;;  %v5655_v12 = vld [vmem:[#allocation2 + $0x20] sm:$0xff]  ;;  %v5654_v17 = vld [vmem:[#allocation2 + $0x18] sm:$0xff]  ;;  %s9179_s24 = sld [smem:[#allocation69_spill]] }
  0x30   :  { %v5663_v13 = vld [vmem:[#allocation5 + $0x20] sm:$0xff]  ;;  %v5662_v18 = vld [vmem:[#allocation5 + $0x18] sm:$0xff]  ;;  %v5653_v24 = vld [vmem:[#allocation2 + $0x10] sm:$0xff]  ;;  %s9183_s10 = sld [smem:[#allocation71_spill]] }
  0x31   :  { %9078 = vst [vmem:[#allocation23_spill] sm:$0xff] %v6454_v1  ;;  %v235_v6 = vadd.s32 64, %v6454_v1  ;;  %vm563_vm0 = vcmp.lt.s32.totalorder %v6454_v1, 1  ;;  %v5661_v25 = vld [vmem:[#allocation5 + $0x10] sm:$0xff]  ;;  %v237_v27 = vadd.s32 80, %v6454_v1  ;;  %v5652_v32 = vld [vmem:[#allocation2 + $0x8] sm:$0xff] }
  0x32   :  { %5796 = vmatpush.bf16.msra.mxu2 %v5657_v4  ;;  %890 = vmatpush.bf16.msra.mxu0 %v5657_v4  ;;  %v5660_v33 = vld [vmem:[#allocation5 + $0x8] sm:$0xff]  ;;  %v5651_v40 = vld [vmem:[#allocation2] sm:$0xff]  ;;  %v5674_v43 = vld [vmem:[#allocation5 + $0x78] sm:$0xff]  ;;  %v239_v55 = vadd.s32 96, %v6454_v1  ;;  %vm628_vm7 = vcmp.lt.s32.totalorder %v6454_v1, 7 }
  0x33   :  { %5804 = vmatpush.bf16.msra.mxu3 %v5665_v5  ;;  %v6460_v9 = vld [vmem:[%s9079_s5 + $0x40] sm:$0xff]  ;;  %v6465_v10 = vld [vmem:[%s9079_s5 + $0x38] sm:$0xff]  ;;  %v303_v11 = vand.u32 15, %v235_v6  ;;  %1455 = vmatpush.bf16.msra.mxu1 %v5665_v5  ;;  %v6473_v16 = vld [vmem:[%s9079_s5 + $0x48] sm:$0xff]  ;;  %v317_v35 = vand.u32 15, %v237_v27 }
  0x34   :  { %v554_v14 = vrot.slane %v6465_v10, 7  ;;  %v555_v15 = vrot.slane %v6460_v9, 7  ;;  %v556_v21 = vrot.slane %v6473_v16, 7  ;;  %v539_v28 = vpack.c.bf16 %v6460_v9, %v6460_v9  ;;  %v6494_v34 = vld [vmem:[%s9079_s5 + $0x50] sm:$0xff]  ;;  %v5659_v41 = vld [vmem:[#allocation5] sm:$0xff]  ;;  %v6500_v44 = vld [vmem:[%s9079_s5 + $0x58] sm:$0xff] }
  0x35   :  { %vm443_vm1 = vcmp.ne.s32.totalorder %v303_v11, 0  ;;  %v540_v29 = vpack.c.bf16 %v6473_v16, %v6473_v16  ;;  %v557_v42 = vrot.slane %v6494_v34, 7  ;;  %vm445_vm2 = vcmp.ne.s32.totalorder %v317_v35, 0  ;;  %v5673_v50 = vld [vmem:[#allocation5 + $0x70] sm:$0xff]  ;;  %v5682_v52 = vld [vmem:[#allocation5 + $0xb8] sm:$0xff]  ;;  %v5672_v54 = vld [vmem:[#allocation5 + $0x68] sm:$0xff] }
  0x36   :  { %5797 = vmatpush.bf16.msra.mxu2 %v5656_v7  ;;  %891 = vmatpush.bf16.msra.mxu0 %v5656_v7  ;;  %v6476_v20 = vsel %vm443_vm1, 1.0, %v6292_v19  ;;  %v571_v22 = vsel %vm563_vm0, %v554_v14, %v555_v15  ;;  %v570_v26 = vsel %vm563_vm0, %v555_v15, %v556_v21  ;;  %v749_v36 = vunpack.c.l.b16 %v539_v28  ;;  %v5681_v56 = vld [vmem:[#allocation5 + $0xb0] sm:$0xff]  ;;  %v5671_v61 = vld [vmem:[#allocation5 + $0x60] sm:$0xff]  ;;  %v5680_v0 = vld [vmem:[#allocation5 + $0xa8] sm:$0xff] }
  0x37   :  { %5805 = vmatpush.bf16.msra.mxu3 %v5664_v8  ;;  %1456 = vmatpush.bf16.msra.mxu1 %v5664_v8  ;;  %9080 = vst [vmem:[#allocation24_spill] sm:$0xff] %v6476_v20  ;;  %v588_v23 = vmul.f32 %v6476_v20, %v571_v22  ;;  %v605_v31 = vpack.c.bf16 %v570_v26, %v570_v26  ;;  %v750_v37 = vunpack.c.l.b16 %v540_v29  ;;  %v6507_v47 = vsel %vm445_vm2, 1.0, %v6292_v19  ;;  %v6525_v62 = vld [vmem:[%s9079_s5 + $0x60] sm:$0xff]  ;;  %v6531_v7 = vld [vmem:[%s9079_s5 + $0x68] sm:$0xff]  ;;  %v5670_v8 = vld [vmem:[#allocation5 + $0x58] sm:$0xff] }
  0x38   :  { %9081 = vst [vmem:[#allocation25_spill] sm:$0xff] %v6507_v47  ;;  %v558_v48 = vrot.slane %v6500_v44, 7  ;;  %v569_v49 = vsel %vm563_vm0, %v556_v21, %v557_v42  ;;  %v541_v57 = vpack.c.bf16 %v6494_v34, %v6494_v34  ;;  %v542_v58 = vpack.c.bf16 %v6500_v44, %v6500_v44  ;;  %v5679_v11 = vld [vmem:[#allocation5 + $0xa0] sm:$0xff]  ;;  %v5669_v21 = vld [vmem:[#allocation5 + $0x50] sm:$0xff]  ;;  %v6557_v29 = vld [vmem:[%s9079_s5 + $0x8] sm:$0xff] }
  0x39   :  { %v604_v30 = vpack.c.bf16 %v588_v23, %v588_v23  ;;  %v702_v39 = vunpack.c.l.b16 %v605_v31  ;;  %v6502_v45 = vpack.c.b16 %v750_v37, %v749_v36  ;;  %v590_v51 = vmul.f32 %v6507_v47, %v569_v49  ;;  %v5678_v23 = vld [vmem:[#allocation5 + $0x98] sm:$0xff]  ;;  %v5677_v27 = vld [vmem:[#allocation5 + $0x90] sm:$0xff]  ;;  %v6552_v28 = vld [vmem:[%s9079_s5] sm:$0xff] }
  0x3a   :  { %5798 = vmatpush.bf16.msra.mxu2 %v5655_v12  ;;  %892 = vmatpush.bf16.msra.mxu0 %v5655_v12  ;;  %v568_v53 = vsel %vm563_vm0, %v557_v42, %v558_v48  ;;  %v331_v63 = vand.u32 15, %v239_v55  ;;  %v751_v2 = vunpack.c.l.b16 %v541_v57  ;;  %v752_v3 = vunpack.c.l.b16 %v542_v58  ;;  %v6570_v37 = vld [vmem:[%s9079_s5 + $0x70] sm:$0xff]  ;;  %v5667_v42 = vld [vmem:[#allocation5 + $0x40] sm:$0xff] }
  0x3b   :  { %5806 = vmatpush.bf16.msra.mxu3 %v5663_v13  ;;  %1457 = vmatpush.bf16.msra.mxu1 %v5663_v13  ;;  %v701_v38 = vunpack.c.l.b16 %v604_v30  ;;  %v606_v59 = vpack.c.bf16 %v590_v51, %v590_v51  ;;  %v607_v60 = vpack.c.bf16 %v568_v53, %v568_v53  ;;  %v559_v6 = vrot.slane %v6525_v62, 7  ;;  %v5675_v57 = vld [vmem:[#allocation5 + $0x80] sm:$0xff]  ;;  %v5709_v20 = vld [vmem:[#allocation8 + $0x10] sm:$0xff] }
  0x3c   :  { %vm447_vm3 = vcmp.ne.s32.totalorder %v331_v63, 0  ;;  %v6533_v12 = vpack.c.b16 %v752_v3, %v751_v2  ;;  %v241_v26 = vadd.s32 112, %v6454_v1  ;;  %v543_v30 = vpack.c.bf16 %v6525_v62, %v6525_v62 }
  0x3d   :  { %v6504_v46 = vpack.c.b16 %v702_v39, %v701_v38  ;;  %v703_v4 = vunpack.c.l.b16 %v606_v59  ;;  %v704_v5 = vunpack.c.l.b16 %v607_v60  ;;  %v6538_v15 = vsel %vm447_vm3, 1.0, %v6292_v19 }
  0x3e   :  { %5799 = vmatpush.bf16.msra.mxu2 %v5654_v17  ;;  %893 = vmatpush.bf16.msra.mxu0 %v5654_v17  ;;  %9082 = vst [vmem:[#allocation26_spill] sm:$0xff] %v6538_v15  ;;  %v560_v17 = vrot.slane %v6531_v7, 7  ;;  %v531_v31 = vpack.c.bf16 %v6552_v28, %v6552_v28  ;;  %v247_v53 = vand.u32 15, %v6454_v1  ;;  %v548_v59 = vrot.slane %v6557_v29, 7 }
  0x3f   :  { %5807 = vmatpush.bf16.msra.mxu3 %v5662_v18  ;;  %1458 = vmatpush.bf16.msra.mxu1 %v5662_v18  ;;  %v6535_v13 = vpack.c.b16 %v704_v5, %v703_v4  ;;  %v567_v18 = vsel %vm563_vm0, %v558_v48, %v559_v6  ;;  %v753_v48 = vunpack.c.l.b16 %v543_v30  ;;  %v545_v30 = vpack.c.bf16 %v6570_v37, %v6570_v37 }
  0x40   :  { %v592_v22 = vmul.f32 %v6538_v15, %v567_v18  ;;  %v741_v38 = vunpack.c.l.b16 %v531_v31  ;;  %vm435_vm5 = vcmp.ne.s32.totalorder %v247_v53, 0  ;;  %v5706_v18 = vld [vmem:[#allocation7 + $0xb8] sm:$0xff] }
  0x41   :  { %v6585_v58 = vsel %vm435_vm5, 1.0, %v6292_v19 }
  0x42   :  { %5800 = vmatpush.bf16.msra.mxu2 %v5653_v24  ;;  %894 = vmatpush.bf16.msra.mxu0 %v5653_v24  ;;  %v566_v24 = vsel %vm563_vm0, %v559_v6, %v560_v17  ;;  %v608_v35 = vpack.c.bf16 %v592_v22, %v592_v22  ;;  %9083 = vst [vmem:[#allocation27_spill] sm:$0xff] %v6585_v58  ;;  %v6613_v22 = vld [vmem:[%s9079_s5 + $0x18] sm:$0xff] }
  0x43   :  { %5808 = vmatpush.bf16.msra.mxu3 %v5661_v25  ;;  %1459 = vmatpush.bf16.msra.mxu1 %v5661_v25  ;;  %v5668_v25 = vld [vmem:[#allocation5 + $0x48] sm:$0xff]  ;;  %v609_v36 = vpack.c.bf16 %v566_v24, %v566_v24 }
  0x44   :  { %v705_v51 = vunpack.c.l.b16 %v608_v35 }
  0x46   :  { %5801 = vmatpush.bf16.msra.mxu2 %v5652_v32  ;;  %895 = vmatpush.bf16.msra.mxu0 %v5652_v32  ;;  %v532_v32 = vpack.c.bf16 %v6557_v29, %v6557_v29 }
  0x47   :  { %5809 = vmatpush.bf16.msra.mxu3 %v5660_v33  ;;  %1460 = vmatpush.bf16.msra.mxu1 %v5660_v33  ;;  %v544_v33 = vpack.c.bf16 %v6531_v7, %v6531_v7 }
  0x48   :  { %v742_v39 = vunpack.c.l.b16 %v532_v32 }
  0x4a   :  { %5802 = vmatpush.bf16.msra.mxu2 %v5651_v40  ;;  %896 = vmatpush.bf16.msra.mxu0 %v5651_v40  ;;  %v6575_v40 = vld [vmem:[%s9079_s5 + $0x78] sm:$0xff]  ;;  %v6577_v49 = vpack.c.b16 %v742_v39, %v741_v38  ;;  %v229_v39 = vadd.s32 16, %v6454_v1 }
  0x4b   :  { %5810 = vmatpush.bf16.msra.mxu3 %v5659_v41  ;;  %1461 = vmatpush.bf16.msra.mxu1 %v5659_v41  ;;  %v345_v41 = vand.u32 15, %v241_v26  ;;  %v562_v55 = vrot.slane %v6575_v40, 7  ;;  %v228_v26 = vadd.s32 8, %v6454_v1 }
  0x4d   :  { %917 = vmatmul.bf16.vlgmr.msra.gmra.mxu2 %v6502_v45  ;;  %897 = vmatmul.bf16.vlgmr.msra.gmra.mxu0 %v6577_v49  ;;  %vm449_vm4 = vcmp.ne.s32.totalorder %v345_v41, 0  ;;  %v254_v38 = vand.u32 15, %v228_v26  ;;  %v755_v41 = vunpack.c.l.b16 %v545_v30 }
  0x4e   :  { %1503 = vmatpush.bf16.msrb.mxu2 %v5674_v43  ;;  %1482 = vmatmul.bf16.vlgmr.msra.gmra.mxu3 %v6504_v46  ;;  %v5676_v43 = vld [vmem:[#allocation5 + $0x88] sm:$0xff]  ;;  %v6596_v2 = vsel %vm449_vm4, 1.0, %v6292_v19 }
  0x4f   :  { %1552 = vmatpush.bf16.msrb.mxu3 %v5682_v52  ;;  %v706_v52 = vunpack.c.l.b16 %v609_v36  ;;  %9084 = vst [vmem:[#allocation28_spill] sm:$0xff] %v6596_v2  ;;  %vm484_vm6 = vcmp.ne.s32.totalorder %v254_v38, 15 }
  0x51   :  { %v6592_v63 = vpack.c.b16 %v706_v52, %v705_v51  ;;  %v261_v51 = vand.u32 15, %v229_v39  ;;  %v613_v52 = vrot.slane %v6557_v29, 1 }
  0x52   :  { %1504 = vmatpush.bf16.msrb.mxu2 %v5673_v50  ;;  %v754_v50 = vunpack.c.l.b16 %v544_v33  ;;  %v546_v33 = vpack.c.bf16 %v6575_v40, %v6575_v40 }
  0x53   :  { %1553 = vmatpush.bf16.msrb.mxu3 %v5681_v56  ;;  %v547_v56 = vrot.slane %v6552_v28, 7  ;;  %vm437_vm8 = vcmp.ne.s32.totalorder %v261_v51, 0 }
  0x55   :  { %v579_v60 = vsel %vm563_vm0, %v562_v55, %v547_v56  ;;  %v578_v4 = vsel %vm563_vm0, %v547_v56, %v548_v59  ;;  %v550_v56 = vrot.slane %v6613_v22, 7 }
  0x56   :  { %1505 = vmatpush.bf16.msrb.mxu2 %v5672_v54  ;;  %v561_v54 = vrot.slane %v6570_v37, 7  ;;  %v597_v6 = vpack.c.bf16 %v578_v4, %v578_v4  ;;  %v612_v4 = vrot.slane %v6552_v28, 1 }
  0x57   :  { %1554 = vmatpush.bf16.msrb.mxu3 %v5680_v0  ;;  %v580_v0 = vmul.f32 %v6585_v58, %v579_v60  ;;  %v5710_v58 = vld [vmem:[#allocation8 + $0x18] sm:$0xff] }
  0x58   :  { %v565_v3 = vsel %vm563_vm0, %v560_v17, %v561_v54  ;;  %v694_v17 = vunpack.c.l.b16 %v597_v6  ;;  %v564_v24 = vsel %vm563_vm0, %v561_v54, %v562_v55  ;;  %v6638_v55 = vsel %vm437_vm8, 1.0, %v6292_v19 }
  0x59   :  { %v596_v5 = vpack.c.bf16 %v580_v0, %v580_v0  ;;  %v611_v36 = vpack.c.bf16 %v564_v24, %v564_v24  ;;  %9085 = vst [vmem:[#allocation29_spill] sm:$0xff] %v6638_v55  ;;  %v643_v30 = vsel %vm628_vm7, %v612_v4, %v613_v52 }
  0x5a   :  { %1506 = vmatpush.bf16.msrb.mxu2 %v5671_v61  ;;  %v6590_v61 = vpack.c.b16 %v754_v50, %v753_v48  ;;  %v661_v38 = vpack.c.bf16 %v643_v30, %v643_v30  ;;  %v5704_v30 = vld [vmem:[#allocation7 + $0xa8] sm:$0xff] }
  0x5b   :  { %1555 = vmatpush.bf16.msrb.mxu3 %v5679_v11  ;;  %v594_v11 = vmul.f32 %v6596_v2, %v565_v3  ;;  %v708_v50 = vunpack.c.l.b16 %v611_v36  ;;  %v6649_v3 = vsel %vm484_vm6, 1.0, %v6292_v19  ;;  %v5711_v2 = vld [vmem:[#allocation8 + $0x20] sm:$0xff] }
  0x5c   :  { %9088 = vst [vmem:[#allocation32_spill] sm:$0xff] %v6649_v3 }
  0x5d   :  { %922 = vmatmul.bf16.gmra.mxu2 %v6533_v12  ;;  %v610_v35 = vpack.c.bf16 %v594_v11, %v594_v11 }
  0x5e   :  { %1507 = vmatpush.bf16.msrb.mxu2 %v5670_v8  ;;  %1487 = vmatmul.bf16.gmra.mxu3 %v6535_v13  ;;  %v6605_v8 = vld [vmem:[%s9079_s5 + $0x10] sm:$0xff] }
  0x5f   :  { %1556 = vmatpush.bf16.msrb.mxu3 %v5678_v23  ;;  %v533_v23 = vpack.c.bf16 %v6605_v8, %v6605_v8  ;;  %v707_v48 = vunpack.c.l.b16 %v610_v35  ;;  %v614_v53 = vrot.slane %v6605_v8, 1  ;;  %v549_v54 = vrot.slane %v6605_v8, 7 }
  0x60   :  { %v233_v8 = vadd.s32 48, %v6454_v1 }
  0x61   :  { %v743_v31 = vunpack.c.l.b16 %v533_v23  ;;  %v6645_v29 = vpack.c.b16 %v708_v50, %v707_v48  ;;  %v576_v6 = vsel %vm563_vm0, %v549_v54, %v550_v56  ;;  %v789_v50 = vunpack.c.l.b16 %v661_v38 }
  0x62   :  { %1508 = vmatpush.bf16.msrb.mxu2 %v5669_v21  ;;  %v693_v21 = vunpack.c.l.b16 %v596_v5  ;;  %v642_v5 = vsel %vm628_vm7, %v613_v52, %v614_v53  ;;  %v599_v11 = vpack.c.bf16 %v576_v6, %v576_v6  ;;  %v538_v38 = vpack.c.bf16 %v6465_v10, %v6465_v10 }
  0x63   :  { %1557 = vmatpush.bf16.msrb.mxu3 %v5677_v27  ;;  %9087 = vst [vmem:[#allocation31_spill] sm:$0xff] %v6645_v29 }
  0x64   :  { %v6622_v27 = vpack.c.b16 %v694_v17, %v693_v21  ;;  %v646_v21 = vmul.f32 %v6649_v3, %v642_v5  ;;  %v5705_v17 = vld [vmem:[#allocation7 + $0xb0] sm:$0xff]  ;;  %v696_v24 = vunpack.c.l.b16 %v599_v11 }
  0x66   :  { %1509 = vmatpush.bf16.msrb.mxu2 %v5668_v25  ;;  %v534_v25 = vpack.c.bf16 %v6613_v22, %v6613_v22  ;;  %1462 = vmatmul.bf16.vlgmr.msra.gmra.mxu1 %v6622_v27  ;;  %v662_v39 = vpack.c.bf16 %v646_v21, %v646_v21 }
  0x67   :  { %1558 = vmatpush.bf16.msrb.mxu3 %v5676_v43  ;;  %v756_v43 = vunpack.c.l.b16 %v546_v33 }
  0x68   :  { %v744_v32 = vunpack.c.l.b16 %v534_v25  ;;  %v6669_v25 = vld [vmem:[%s9079_s5 + $0x28] sm:$0xff]  ;;  %v790_v51 = vunpack.c.l.b16 %v662_v39  ;;  %v232_v39 = vadd.s32 40, %v6454_v1 }
  0x69   :  { %v6643_v60 = vpack.c.b16 %v756_v43, %v755_v41  ;;  %v231_v43 = vadd.s32 32, %v6454_v1  ;;  %v552_v6 = vrot.slane %v6669_v25, 7 }
  0x6a   :  { %1510 = vmatpush.bf16.msrb.mxu2 %v5667_v42  ;;  %v6630_v42 = vpack.c.b16 %v744_v32, %v743_v31  ;;  %v536_v31 = vpack.c.bf16 %v6669_v25, %v6669_v25  ;;  %v230_v32 = vadd.s32 24, %v6454_v1  ;;  %v6696_v11 = vpack.c.b16 %v790_v51, %v789_v50 }
  0x6b   :  { %1559 = vmatpush.bf16.msrb.mxu3 %v5675_v57  ;;  %v577_v57 = vsel %vm563_vm0, %v548_v59, %v549_v54  ;;  %9086 = vst [vmem:[#allocation30_spill] sm:$0xff] %v6643_v60  ;;  %v275_v52 = vand.u32 15, %v231_v43  ;;  %v615_v54 = vrot.slane %v6613_v22, 1  ;;  %v748_v50 = vunpack.c.l.b16 %v538_v38  ;;  %v5703_v38 = vld [vmem:[#allocation7 + $0xa0] sm:$0xff] }
  0x6c   :  { %902 = vmatmul.bf16.gmra.mxu0 %v6630_v42  ;;  %v582_v0 = vmul.f32 %v6638_v55, %v577_v57  ;;  %v746_v36 = vunpack.c.l.b16 %v536_v31  ;;  %v268_v41 = vand.u32 15, %v230_v32  ;;  %v5725_v55 = vld [vmem:[#allocation8 + $0x90] sm:$0xff] }
  0x6d   :  { %927 = vmatmul.bf16.gmra.mxu2 %v6590_v61  ;;  %vm439_vm10 = vcmp.ne.s32.totalorder %v275_v52, 0 }
  0x6e   :  { %1492 = vmatmul.bf16.gmra.mxu3 %v6592_v63  ;;  %1895 = vmatpush.bf16.msra.mxu2 %v5706_v18  ;;  %v598_v59 = vpack.c.bf16 %v582_v0, %v582_v0  ;;  %v6661_v18 = vld [vmem:[%s9079_s5 + $0x20] sm:$0xff]  ;;  %vm486_vm9 = vcmp.ne.s32.totalorder %v268_v41, 15  ;;  %v6691_v5 = vsel %vm439_vm10, 1.0, %v6292_v19 }
  0x6f   :  { %v535_v26 = vpack.c.bf16 %v6661_v18, %v6661_v18  ;;  %v616_v57 = vrot.slane %v6661_v18, 1  ;;  %v551_v0 = vrot.slane %v6661_v18, 7  ;;  %9089 = vst [vmem:[#allocation33_spill] sm:$0xff] %v6691_v5  ;;  %v6700_v21 = vsel %vm486_vm9, 1.0, %v6292_v19 }
  0x70   :  { %v695_v23 = vunpack.c.l.b16 %v598_v59  ;;  %9090 = vst [vmem:[#allocation34_spill] sm:$0xff] %v6700_v21 }
  0x71   :  { %v745_v35 = vunpack.c.l.b16 %v535_v26  ;;  %v575_v59 = vsel %vm563_vm0, %v550_v56, %v551_v0  ;;  %v640_v18 = vsel %vm628_vm7, %v615_v54, %v616_v57  ;;  %v6709_v26 = vld [vmem:[%s9079_s5 + $0x30] sm:$0xff] }
  0x72   :  { %1896 = vmatpush.bf16.msra.mxu2 %v5705_v17  ;;  %v6680_v33 = vpack.c.b16 %v696_v24, %v695_v23  ;;  %v584_v22 = vmul.f32 %v6691_v5, %v575_v59  ;;  %v574_v17 = vsel %vm563_vm0, %v551_v0, %v552_v6  ;;  %v648_v56 = vmul.f32 %v6700_v21, %v640_v18 }
  0x73   :  { %v6684_v48 = vpack.c.b16 %v746_v36, %v745_v35  ;;  %v601_v24 = vpack.c.bf16 %v574_v17, %v574_v17  ;;  %v537_v35 = vpack.c.bf16 %v6709_v26, %v6709_v26  ;;  %v641_v36 = vsel %vm628_vm7, %v614_v53, %v615_v54 }
  0x74   :  { %v600_v23 = vpack.c.bf16 %v584_v22, %v584_v22  ;;  %v663_v51 = vpack.c.bf16 %v641_v36, %v641_v36  ;;  %v664_v52 = vpack.c.bf16 %v648_v56, %v648_v56  ;;  %v282_v0 = vand.u32 15, %v232_v39 }
  0x75   :  { %v698_v32 = vunpack.c.l.b16 %v601_v24  ;;  %v747_v43 = vunpack.c.l.b16 %v537_v35  ;;  %v289_v22 = vand.u32 15, %v233_v8  ;;  %v617_v18 = vrot.slane %v6669_v25, 1 }
  0x76   :  { %1467 = vmatmul.bf16.gmra.mxu1 %v6680_v33  ;;  %v697_v31 = vunpack.c.l.b16 %v600_v23  ;;  %1897 = vmatpush.bf16.msra.mxu2 %v5704_v30  ;;  %v791_v53 = vunpack.c.l.b16 %v663_v51  ;;  %v792_v54 = vunpack.c.l.b16 %v664_v52  ;;  %v618_v17 = vrot.slane %v6709_v26, 1 }
  0x77   :  { %v6727_v59 = vpack.c.b16 %v748_v50, %v747_v43  ;;  %v553_v23 = vrot.slane %v6709_v26, 7  ;;  %vm488_vm11 = vcmp.ne.s32.totalorder %v282_v0, 15  ;;  %vm441_vm12 = vcmp.ne.s32.totalorder %v289_v22, 0 }
  0x78   :  { %v6723_v41 = vpack.c.b16 %v698_v32, %v697_v31  ;;  %v6734_v24 = vsel %vm441_vm12, 1.0, %v6292_v19  ;;  %v6738_v30 = vpack.c.b16 %v792_v54, %v791_v53  ;;  %v6742_v25 = vsel %vm488_vm11, 1.0, %v6292_v19 }
  0x79   :  { %9091 = vst [vmem:[#allocation35_spill] sm:$0xff] %v6734_v24  ;;  %v573_v56 = vsel %vm563_vm0, %v552_v6, %v553_v23  ;;  %v638_v26 = vsel %vm628_vm7, %v617_v18, %v618_v17  ;;  %v572_v32 = vsel %vm563_vm0, %v553_v23, %v554_v14  ;;  %v639_v50 = vsel %vm628_vm7, %v616_v57, %v617_v18 }
  0x7a   :  { %v586_v31 = vmul.f32 %v6734_v24, %v573_v56  ;;  %9092 = vst [vmem:[#allocation36_spill] sm:$0xff] %v6742_v25  ;;  %v603_v36 = vpack.c.bf16 %v572_v32, %v572_v32  ;;  %v650_v6 = vmul.f32 %v6742_v25, %v638_v26  ;;  %1898 = vmatpush.bf16.msra.mxu2 %v5703_v38  ;;  %v234_v51 = vadd.s32 56, %v6454_v1  ;;  %v5702_v26 = vld [vmem:[#allocation7 + $0x98] sm:$0xff] }
  0x7b   :  { %v665_v14 = vpack.c.bf16 %v639_v50, %v639_v50  ;;  %v619_v22 = vrot.slane %v6465_v10, 1  ;;  %v620_v23 = vrot.slane %v6460_v9, 1  ;;  %v5690_v32 = vld [vmem:[#allocation7 + $0x38] sm:$0xff]  ;;  %v236_v10 = vadd.s32 72, %v6454_v1 }
  0x7c   :  { %907 = vmatmul.bf16.gmra.mxu0 %v6684_v48  ;;  %v602_v35 = vpack.c.bf16 %v586_v31, %v586_v31  ;;  %v700_v43 = vunpack.c.l.b16 %v603_v36  ;;  %v666_v0 = vpack.c.bf16 %v650_v6, %v650_v6  ;;  %v296_v8 = vand.u32 15, %v234_v51 }
  0x7d   :  { %932 = vmatmul.bf16.gmra.mxu2 %v6643_v60  ;;  %v793_v53 = vunpack.c.l.b16 %v665_v14  ;;  %v636_v18 = vsel %vm628_vm7, %v619_v22, %v620_v23  ;;  %v637_v9 = vsel %vm628_vm7, %v618_v17, %v619_v22  ;;  %1797 = vmatpush.bf16.msrb.mxu0 %v5690_v32  ;;  %v310_v6 = vand.u32 15, %v236_v10  ;;  %v5698_v32 = vld [vmem:[#allocation7 + $0x78] sm:$0xff] }
  0x7e   :  { %1497 = vmatmul.bf16.gmra.mxu3 %v6645_v29  ;;  %v699_v39 = vunpack.c.l.b16 %v602_v35  ;;  %v794_v54 = vunpack.c.l.b16 %v666_v0  ;;  %vm490_vm13 = vcmp.ne.s32.totalorder %v296_v8, 15  ;;  %1899 = vmatpush.bf16.msra.mxu2 %v5702_v26  ;;  %v667_v35 = vpack.c.bf16 %v637_v9, %v637_v9  ;;  %v5689_v9 = vld [vmem:[#allocation7 + $0x30] sm:$0xff] }
  0x7f   :  { %v6764_v57 = vsel %vm490_vm13, 1.0, %v6292_v19  ;;  %v622_v50 = vrot.slane %v6494_v34, 1  ;;  %vm492_vm14 = vcmp.ne.s32.totalorder %v310_v6, 15  ;;  %v238_v34 = vadd.s32 88, %v6454_v1  ;;  %1846 = vmatpush.bf16.msrb.mxu1 %v5698_v32  ;;  %v5688_v6 = vld [vmem:[#allocation7 + $0x28] sm:$0xff] }
  0x80   :  { %v6756_v52 = vpack.c.b16 %v700_v43, %v699_v39  ;;  %v6761_v56 = vpack.c.b16 %v794_v54, %v793_v53  ;;  %9093 = vst [vmem:[#allocation37_spill] sm:$0xff] %v6764_v57  ;;  %v652_v31 = vmul.f32 %v6764_v57, %v636_v18  ;;  %v795_v38 = vunpack.c.l.b16 %v667_v35  ;;  %v5732_v57 = vld [vmem:[#allocation11 + $0x8] sm:$0xff] }
  0x81   :  { %v621_v43 = vrot.slane %v6473_v16, 1  ;;  %v6779_v14 = vsel %vm492_vm14, 1.0, %v6292_v19  ;;  %v324_v54 = vand.u32 15, %v238_v34  ;;  %v624_v26 = vrot.slane %v6525_v62, 1  ;;  %1798 = vmatpush.bf16.msrb.mxu0 %v5689_v9  ;;  %v5687_v34 = vld [vmem:[#allocation7 + $0x20] sm:$0xff]  ;;  %v5694_v9 = vld [vmem:[#allocation7 + $0x58] sm:$0xff] }
  0x82   :  { %v668_v36 = vpack.c.bf16 %v652_v31, %v652_v31  ;;  %9094 = vst [vmem:[#allocation38_spill] sm:$0xff] %v6779_v14  ;;  %v623_v31 = vrot.slane %v6500_v44, 1 }
  0x83   :  { %v634_v17 = vsel %vm628_vm7, %v621_v43, %v622_v50  ;;  %v635_v16 = vsel %vm628_vm7, %v620_v23, %v621_v43  ;;  %vm494_vm15 = vcmp.ne.s32.totalorder %v324_v54, 15 }
  0x84   :  { %v796_v39 = vunpack.c.l.b16 %v668_v36  ;;  %v654_v0 = vmul.f32 %v6779_v14, %v634_v17  ;;  %v669_v8 = vpack.c.bf16 %v635_v16, %v635_v16  ;;  %v6794_v23 = vsel %vm494_vm15, 1.0, %v6292_v19  ;;  %v5697_v36 = vld [vmem:[#allocation7 + $0x70] sm:$0xff]  ;;  %v5696_v17 = vld [vmem:[#allocation7 + $0x68] sm:$0xff] }
  0x85   :  { %9095 = vst [vmem:[#allocation39_spill] sm:$0xff] %v6794_v23  ;;  %v632_v35 = vsel %vm628_vm7, %v623_v31, %v624_v26  ;;  %1847 = vmatpush.bf16.msrb.mxu1 %v5697_v36  ;;  %v633_v62 = vsel %vm628_vm7, %v622_v50, %v623_v31  ;;  %1799 = vmatpush.bf16.msrb.mxu0 %v5688_v6  ;;  %v625_v50 = vrot.slane %v6531_v7, 1  ;;  %v5686_v31 = vld [vmem:[#allocation7 + $0x18] sm:$0xff]  ;;  %v5693_v7 = vld [vmem:[#allocation7 + $0x50] sm:$0xff] }
  0x86   :  { %1472 = vmatmul.bf16.gmra.mxu1 %v6723_v41  ;;  %v6776_v51 = vpack.c.b16 %v796_v39, %v795_v38  ;;  %v670_v53 = vpack.c.bf16 %v654_v0, %v654_v0  ;;  %v797_v22 = vunpack.c.l.b16 %v669_v8  ;;  %v656_v44 = vmul.f32 %v6794_v23, %v632_v35  ;;  %v5701_v38 = vld [vmem:[#allocation7 + $0x90] sm:$0xff] }
  0x87   :  { %v240_v39 = vadd.s32 104, %v6454_v1  ;;  %1900 = vmatpush.bf16.msra.mxu2 %v5701_v38  ;;  %v671_v0 = vpack.c.bf16 %v633_v62, %v633_v62  ;;  %v5685_v62 = vld [vmem:[#allocation7 + $0x10] sm:$0xff]  ;;  %v631_v6 = vsel %vm628_vm7, %v624_v26, %v625_v50  ;;  %v5684_v38 = vld [vmem:[#allocation7 + $0x8] sm:$0xff]  ;;  %v627_v26 = vrot.slane %v6575_v40, 1 }
  0x88   :  { %v798_v18 = vunpack.c.l.b16 %v670_v53  ;;  %v672_v16 = vpack.c.bf16 %v656_v44, %v656_v44  ;;  %v5695_v53 = vld [vmem:[#allocation7 + $0x60] sm:$0xff]  ;;  %v5717_v14 = vld [vmem:[#allocation8 + $0x50] sm:$0xff] }
  0x89   :  { %1848 = vmatpush.bf16.msrb.mxu1 %v5696_v17  ;;  %v338_v8 = vand.u32 15, %v240_v39  ;;  %1800 = vmatpush.bf16.msrb.mxu0 %v5687_v34  ;;  %v799_v54 = vunpack.c.l.b16 %v671_v0  ;;  %v5700_v39 = vld [vmem:[#allocation7 + $0x88] sm:$0xff]  ;;  %v242_v17 = vadd.s32 120, %v6454_v1  ;;  %v673_v34 = vpack.c.bf16 %v631_v6, %v631_v6 }
  0x8a   :  { %v6791_v10 = vpack.c.b16 %v798_v18, %v797_v22  ;;  %v800_v22 = vunpack.c.l.b16 %v672_v16  ;;  %v626_v18 = vrot.slane %v6570_v37, 1  ;;  %v5692_v16 = vld [vmem:[#allocation7 + $0x48] sm:$0xff]  ;;  %v644_v40 = vsel %vm628_vm7, %v627_v26, %v612_v4 }
  0x8b   :  { %vm496_vm1 = vcmp.ne.s32.totalorder %v338_v8, 15  ;;  %1901 = vmatpush.bf16.msra.mxu2 %v5700_v39 }
  0x8c   :  { %912 = vmatmul.bf16.gmra.mxu0 %v6727_v59  ;;  %v6810_v35 = vpack.c.b16 %v800_v22, %v799_v54  ;;  %v6813_v36 = vsel %vm496_vm1, 1.0, %v6292_v19  ;;  %v630_v44 = vsel %vm628_vm7, %v625_v50, %v626_v18  ;;  %v352_v54 = vand.u32 15, %v242_v17  ;;  %v5691_v22 = vld [vmem:[#allocation7 + $0x40] sm:$0xff] }
  0x8d   :  { %1511 = vmatmul.bf16.vlgmr.msrb.gmra.mxu2 %v6577_v49  ;;  %1849 = vmatpush.bf16.msrb.mxu1 %v5695_v53  ;;  %9098 = vst [vmem:[#allocation42_spill] sm:$0xff] %v6813_v36  ;;  %v658_v37 = vmul.f32 %v6813_v36, %v630_v44  ;;  %v5683_v53 = vld [vmem:[#allocation7] sm:$0xff]  ;;  %v629_v6 = vsel %vm628_vm7, %v626_v18, %v627_v26 }
  0x8e   :  { %1560 = vmatmul.bf16.vlgmr.msrb.gmra.mxu3 %v6696_v11  ;;  %1801 = vmatpush.bf16.msrb.mxu0 %v5686_v31  ;;  %v801_v31 = vunpack.c.l.b16 %v673_v34  ;;  %vm498_vm2 = vcmp.ne.s32.totalorder %v352_v54, 15  ;;  %v5699_v44 = vld [vmem:[#allocation7 + $0x80] sm:$0xff]  ;;  %v675_v39 = vpack.c.bf16 %v629_v6, %v629_v6 }
  0x8f   :  { %v674_v8 = vpack.c.bf16 %v658_v37, %v658_v37  ;;  %1902 = vmatpush.bf16.msra.mxu2 %v5699_v44  ;;  %v6864_v54 = vld [vmem:[%s9107_s15] ss:$0 sm:$0xff] }
  0x91   :  { %1850 = vmatpush.bf16.msrb.mxu1 %v5694_v9  ;;  %v802_v9 = vunpack.c.l.b16 %v674_v8 }
  0x92   :  { %1802 = vmatpush.bf16.msrb.mxu0 %v5685_v62 }
  0x93   :  { %v6829_v62 = vpack.c.b16 %v802_v9, %v801_v31  ;;  %v5738_v31 = vld [vmem:[#allocation11 + $0x38] sm:$0xff] }
  0x94   :  { %2519 = vmatpush.bf16.msrb.mxu2 %v5738_v31 }
  0x95   :  { %1851 = vmatpush.bf16.msrb.mxu1 %v5693_v7  ;;  %v6833_v7 = vsel %vm498_vm2, 1.0, %v6292_v19  ;;  %v803_v19 = vunpack.c.l.b16 %v675_v39 }
  0x96   :  { %1477 = vmatmul.bf16.gmra.mxu1 %v6756_v52  ;;  %1803 = vmatpush.bf16.msrb.mxu0 %v5684_v38  ;;  %9101 = vst [vmem:[#allocation45_spill] sm:$0xff] %v6833_v7  ;;  %v660_v37 = vmul.f32 %v6833_v7, %v644_v40  ;;  %v5714_v40 = vld [vmem:[#allocation8 + $0x38] sm:$0xff] }
  0x97   :  { %2140 = vmatpush.bf16.msra.mxu3 %v5714_v40 }
  0x98   :  { %v676_v17 = vpack.c.bf16 %v660_v37, %v660_v37 }
  0x99   :  { %1852 = vmatpush.bf16.msrb.mxu1 %v5692_v16 }
  0x9a   :  { %1804 = vmatpush.bf16.msrb.mxu0 %v5683_v53  ;;  %v804_v16 = vunpack.c.l.b16 %v676_v17 }
  0x9c   :  { %v6849_v4 = vpack.c.b16 %v804_v16, %v803_v19  ;;  %v5722_v16 = vld [vmem:[#allocation8 + $0x78] sm:$0xff] }
  0x9d   :  { %1516 = vmatmul.bf16.gmra.mxu2 %v6630_v42  ;;  %1853 = vmatpush.bf16.msrb.mxu1 %v5691_v22 }
  0x9e   :  { %1565 = vmatmul.bf16.gmra.mxu3 %v6738_v30  ;;  %1805 = vmatmul.bf16.vlgmr.msrb.gmra.mxu0 %v6622_v27  ;;  %9104 = vst [vmem:[#allocation48_spill] sm:$0xff] %v6849_v4 }
  0x9f   :  { %2189 = vmatpush.bf16.msra.mxu0 %v5722_v16 }
  0xa6   :  { %1854 = vmatmul.bf16.vlgmr.msrb.gmra.mxu1 %v6577_v49 }
  0xad   :  { %1521 = vmatmul.bf16.gmra.mxu2 %v6684_v48 }
  0xae   :  { %1570 = vmatmul.bf16.gmra.mxu3 %v6761_v56  ;;  %1810 = vmatmul.bf16.gmra.mxu0 %v6680_v33 }
  0xb6   :  { %1859 = vmatmul.bf16.gmra.mxu1 %v6630_v42 }
  0xbd   :  { %1526 = vmatmul.bf16.gmra.mxu2 %v6727_v59 }
  0xbe   :  { %1575 = vmatmul.bf16.gmra.mxu3 %v6776_v51  ;;  %1815 = vmatmul.bf16.gmra.mxu0 %v6723_v41 }
  0xc6   :  { %1864 = vmatmul.bf16.gmra.mxu1 %v6684_v48 }
  0xca   :  { %v6876_v39 = vpop.f32.mrf.mxu0 }
  0xcb   :  { %9108 = vst [vmem:[#allocation51_spill] sm:$0xff] %v6876_v39 }
  0xcd   :  { %1531 = vmatmul.bf16.gmra.mxu2 %v6502_v45 }
  0xce   :  { %1580 = vmatmul.bf16.gmra.mxu3 %v6791_v10  ;;  %1820 = vmatmul.bf16.gmra.mxu0 %v6756_v52 }
  0xd0   :  { %v6804_v43 = vpop.f32.mrf.mxu2 }
  0xd1   :  { %9096 = vst [vmem:[#allocation40_spill] sm:$0xff] %v6804_v43  ;;  %v6871_v37 = vpop.f32.mrf.mxu3  ;;  %v5712_v43 = vld [vmem:[#allocation8 + $0x28] sm:$0xff] }
  0xd6   :  { %1869 = vmatmul.bf16.gmra.mxu1 %v6727_v59 }
  0xd8   :  { %v6808_v32 = vpop.f32.mrf.mxu2 }
  0xd9   :  { %9097 = vst [vmem:[#allocation41_spill] sm:$0xff] %v6808_v32  ;;  %v6883_v31 = vpop.f32.mrf.mxu3 }
  0xdd   :  { %1536 = vmatmul.bf16.gmra.mxu2 %v6533_v12 }
  0xde   :  { %1585 = vmatmul.bf16.gmra.mxu3 %v6810_v35  ;;  %1825 = vmatmul.bf16.gmra.mxu0 %v6504_v46 }
  0xe0   :  { %v6823_v0 = vpop.f32.mrf.mxu2 }
  0xe1   :  { %9099 = vst [vmem:[#allocation43_spill] sm:$0xff] %v6823_v0 }
  0xe3   :  { %v1463_v34 = vpop.f32.mrf.mxu1 }
  0xe4   :  { %v1464_v22 = vadd.f32 %v6864_v54, %v1463_v34  ;;  %v5730_v34 = vld [vmem:[#allocation8 + $0xb8] sm:$0xff] }
  0xe5   :  { %2238 = vmatpush.bf16.msra.mxu1 %v5730_v34  ;;  %v5729_v34 = vld [vmem:[#allocation8 + $0xb0] sm:$0xff] }
  0xe6   :  { %1874 = vmatmul.bf16.gmra.mxu1 %v6502_v45 }
  0xe8   :  { %v6827_v50 = vpop.f32.mrf.mxu2 }
  0xe9   :  { %9100 = vst [vmem:[#allocation44_spill] sm:$0xff] %v6827_v50  ;;  %2239 = vmatpush.bf16.msra.mxu1 %v5729_v34 }
  0xeb   :  { %v6859_v53 = vpop.f32.mrf.mxu1 }
  0xed   :  { %1541 = vmatmul.bf16.gmra.mxu2 %v6590_v61 }
  0xee   :  { %1590 = vmatmul.bf16.gmra.mxu3 %v6829_v62  ;;  %1830 = vmatmul.bf16.gmra.mxu0 %v6535_v13 }
  0xf0   :  { %v6844_v38 = vpop.f32.mrf.mxu2 }
  0xf1   :  { %9102 = vst [vmem:[#allocation46_spill] sm:$0xff] %v6844_v38  ;;  %v1488_v38 = vpop.f32.mrf.mxu3 }
  0xf3   :  { %v1468_v44 = vpop.f32.mrf.mxu1 }
  0xf4   :  { %v1469_v19 = vadd.f32 %v6864_v54, %v1468_v44 }
  0xf6   :  { %1879 = vmatmul.bf16.gmra.mxu1 %v6533_v12 }
  0xf8   :  { %v6847_v28 = vpop.f32.mrf.mxu2 }
  0xf9   :  { %9103 = vst [vmem:[#allocation47_spill] sm:$0xff] %v6847_v28  ;;  %v6901_v32 = vpop.f32.mrf.mxu3 }
  0xfa   :  { %9111 = vst [vmem:[#allocation54_spill] sm:$0xff] %v6901_v32 }
  0xfb   :  { %v6879_v17 = vpop.f32.mrf.mxu1 }
  0xfd   :  { %1546 = vmatmul.bf16.gmra.mxu2 %v6643_v60 }
  0xfe   :  { %1595 = vmatmul.bf16.gmra.mxu3 %v6849_v4  ;;  %1835 = vmatmul.bf16.gmra.mxu0 %v6592_v63 }
 0x100   :  { %v6854_v18 = vpop.f32.mrf.mxu2 }
 0x101   :  { %9105 = vst [vmem:[#allocation49_spill] sm:$0xff] %v6854_v18  ;;  %v5713_v18 = vld [vmem:[#allocation8 + $0x30] sm:$0xff]  ;;  %v1493_v34 = vpop.f32.mrf.mxu3 }
 0x102   :  { %2141 = vmatpush.bf16.msra.mxu3 %v5713_v18 }
 0x103   :  { %v1473_v28 = vpop.f32.mrf.mxu1 }
 0x104   :  { %v1474_v16 = vadd.f32 %v6864_v54, %v1473_v28 }
 0x106   :  { %2142 = vmatpush.bf16.msra.mxu3 %v5712_v43  ;;  %1884 = vmatmul.bf16.gmra.mxu1 %v6590_v61 }
 0x108   :  { %v6857_v8 = vpop.f32.mrf.mxu2 }
 0x109   :  { %9106 = vst [vmem:[#allocation50_spill] sm:$0xff] %v6857_v8  ;;  %v6887_v8 = vpop.f32.mrf.mxu0  ;;  %v6915_v15 = vpop.f32.mrf.mxu3 }
 0x10a   :  { %9109 = vst [vmem:[#allocation52_spill] sm:$0xff] %v6887_v8  ;;  %v5735_v8 = vld [vmem:[#allocation11 + $0x20] sm:$0xff]  ;;  %2143 = vmatpush.bf16.msra.mxu3 %v5711_v2 }
 0x10b   :  { %9114 = vst [vmem:[#allocation57_spill] sm:$0xff] %v6915_v15 }
 0x10d   :  { %1903 = vmatmul.bf16.vlgmr.msra.gmra.mxu2 %v6696_v11 }
 0x10e   :  { %2144 = vmatpush.bf16.msra.mxu3 %v5710_v58  ;;  %1840 = vmatmul.bf16.gmra.mxu0 %v6645_v29 }
 0x110   :  { %v1512_v9 = vpop.f32.mrf.mxu2 }
 0x111   :  { %v6869_v26 = vadd.f32 %v1512_v9, %v1464_v22  ;;  %v5737_v22 = vld [vmem:[#allocation11 + $0x30] sm:$0xff]  ;;  %v6893_v50 = vpop.f32.mrf.mxu0  ;;  %v1498_v2 = vpop.f32.mrf.mxu3 }
 0x112   :  { %2520 = vmatpush.bf16.msrb.mxu2 %v5737_v22  ;;  %9110 = vst [vmem:[#allocation53_spill] sm:$0xff] %v6893_v50  ;;  %v5736_v22 = vld [vmem:[#allocation11 + $0x28] sm:$0xff]  ;;  %2145 = vmatpush.bf16.msra.mxu3 %v5709_v20 }
 0x113   :  { %v5708_v20 = vld [vmem:[#allocation8 + $0x8] sm:$0xff] }
 0x116   :  { %2521 = vmatpush.bf16.msrb.mxu2 %v5736_v22  ;;  %1889 = vmatmul.bf16.gmra.mxu1 %v6643_v60 }
 0x117   :  { %2146 = vmatpush.bf16.msra.mxu3 %v5708_v20 }
 0x118   :  { %v6874_v6 = vpop.f32.mrf.mxu2 }
 0x119   :  { %v6903_v50 = vpop.f32.mrf.mxu0 }
 0x11a   :  { %9112 = vst [vmem:[#allocation55_spill] sm:$0xff] %v6903_v50  ;;  %2522 = vmatpush.bf16.msrb.mxu2 %v5735_v8  ;;  %v5719_v8 = vld [vmem:[#allocation8 + $0x60] sm:$0xff] }
 0x11d   :  { %1908 = vmatmul.bf16.gmra.mxu2 %v6738_v30 }
 0x120   :  { %v1517_v9 = vpop.f32.mrf.mxu2 }
 0x121   :  { %v6885_v40 = vadd.f32 %v1517_v9, %v1469_v19  ;;  %v5721_v19 = vld [vmem:[#allocation8 + $0x70] sm:$0xff]  ;;  %v6897_v9 = vpop.f32.mrf.mxu1  ;;  %v6911_v39 = vpop.f32.mrf.mxu0 }
 0x122   :  { %2190 = vmatpush.bf16.msra.mxu0 %v5721_v19  ;;  %9113 = vst [vmem:[#allocation56_spill] sm:$0xff] %v6911_v39 }
 0x128   :  { %v6890_v44 = vpop.f32.mrf.mxu2 }
 0x129   :  { %v1478_v19 = vpop.f32.mrf.mxu1 }
 0x12a   :  { %v1479_v22 = vadd.f32 %v6864_v54, %v1478_v19  ;;  %v6921_v19 = vpop.f32.mrf.mxu0 }
 0x12b   :  { %9115 = vst [vmem:[#allocation58_spill] sm:$0xff] %v6921_v19 }
 0x12d   :  { %1913 = vmatmul.bf16.gmra.mxu2 %v6761_v56 }
 0x130   :  { %v1522_v18 = vpop.f32.mrf.mxu2 }
 0x131   :  { %v6899_v0 = vadd.f32 %v1522_v18, %v1474_v16  ;;  %v5720_v16 = vld [vmem:[#allocation8 + $0x68] sm:$0xff]  ;;  %v6940_v58 = vpop.f32.mrf.mxu1 }
 0x132   :  { %v5728_v18 = vld [vmem:[#allocation8 + $0xa8] sm:$0xff]  ;;  %2191 = vmatpush.bf16.msra.mxu0 %v5720_v16  ;;  %v1484_v16 = vadd.f32 %v6864_v54, %v6871_v37  ;;  %v6928_v47 = vpop.f32.mrf.mxu0  ;;  %v6934_v37 = vpop.f32.mrf.mxu3 }
 0x133   :  { %2240 = vmatpush.bf16.msra.mxu1 %v5728_v18  ;;  %v5734_v18 = vld [vmem:[#allocation11 + $0x18] sm:$0xff]  ;;  %9116 = vst [vmem:[#allocation59_spill] sm:$0xff] %v6928_v47 }
 0x134   :  { %2523 = vmatpush.bf16.msrb.mxu2 %v5734_v18  ;;  %9117 = vst [vmem:[#allocation60_spill] sm:$0xff] %v6934_v37  ;;  %v5726_v18 = vld [vmem:[#allocation8 + $0x98] sm:$0xff]  ;;  %v5715_v37 = vld [vmem:[#allocation8 + $0x40] sm:$0xff] }
 0x136   :  { %2192 = vmatpush.bf16.msra.mxu0 %v5719_v8  ;;  %v1489_v8 = vadd.f32 %v6864_v54, %v1488_v38 }
 0x138   :  { %v6906_v28 = vpop.f32.mrf.mxu2 }
 0x139   :  { %v1855_v5 = vpop.f32.mrf.mxu1 }
 0x13a   :  { %v6944_v24 = vpop.f32.mrf.mxu3 }
 0x13d   :  { %1918 = vmatmul.bf16.gmra.mxu2 %v6776_v51 }
 0x140   :  { %v1527_v43 = vpop.f32.mrf.mxu2 }
 0x141   :  { %v6913_v50 = vadd.f32 %v1527_v43, %v1479_v22  ;;  %v5727_v22 = vld [vmem:[#allocation8 + $0xa0] sm:$0xff] }
 0x142   :  { %2241 = vmatpush.bf16.msra.mxu1 %v5727_v22  ;;  %v5718_v22 = vld [vmem:[#allocation8 + $0x58] sm:$0xff] }
 0x143   :  { %2193 = vmatpush.bf16.msra.mxu0 %v5718_v22  ;;  %v1494_v22 = vadd.f32 %v6864_v54, %v1493_v34  ;;  %v5707_v34 = vld [vmem:[#allocation8] sm:$0xff] }
 0x144   :  { %2147 = vmatpush.bf16.msra.mxu3 %v5707_v34 }
 0x146   :  { %2242 = vmatpush.bf16.msra.mxu1 %v5726_v18  ;;  %v6950_v18 = vpop.f32.mrf.mxu3 }
 0x147   :  { %2194 = vmatpush.bf16.msra.mxu0 %v5717_v14  ;;  %v1499_v14 = vadd.f32 %v6864_v54, %v1498_v2  ;;  %2148 = vmatmul.bf16.vlgmr.msra.gmra.mxu3 %v6622_v27  ;;  %v5731_v27 = vld [vmem:[#allocation11] sm:$0xff] }
 0x148   :  { %v6918_v7 = vpop.f32.mrf.mxu2 }
 0x14a   :  { %2243 = vmatpush.bf16.msra.mxu1 %v5725_v55  ;;  %v5716_v55 = vld [vmem:[#allocation8 + $0x48] sm:$0xff] }
 0x14b   :  { %2195 = vmatpush.bf16.msra.mxu0 %v5716_v55 }
 0x14d   :  { %1923 = vmatmul.bf16.gmra.mxu2 %v6791_v10 }
 0x14e   :  { %v6954_v25 = vpop.f32.mrf.mxu3 }
 0x14f   :  { %2196 = vmatpush.bf16.msra.mxu0 %v5715_v37 }
 0x150   :  { %v1532_v43 = vpop.f32.mrf.mxu2 }
 0x151   :  { %v6926_v39 = vadd.f32 %v1532_v43, %v1484_v16  ;;  %v5733_v16 = vld [vmem:[#allocation11 + $0x10] sm:$0xff]  ;;  %v6938_v43 = vpop.f32.mrf.mxu0 }
 0x152   :  { %9118 = vst [vmem:[#allocation61_spill] sm:$0xff] %v6938_v43  ;;  %2524 = vmatpush.bf16.msrb.mxu2 %v5733_v16  ;;  %v1857_v43 = vpop.f32.mrf.mxu1  ;;  %2197 = vmatmul.bf16.vlgmr.msra.gmra.mxu0 %v6577_v49 }
 0x156   :  { %2525 = vmatpush.bf16.msrb.mxu2 %v5732_v57  ;;  %v6963_v20 = vpop.f32.mrf.mxu3 }
 0x157   :  { %2153 = vmatmul.bf16.gmra.mxu3 %v6680_v33 }
 0x158   :  { %v6931_v19 = vpop.f32.mrf.mxu2 }
 0x159   :  { %v1806_v38 = vpop.f32.mrf.mxu0 }
 0x15a   :  { %v1860_v1 = vpop.f32.mrf.mxu1  ;;  %2526 = vmatpush.bf16.msrb.mxu2 %v5731_v27 }
 0x15d   :  { %1928 = vmatmul.bf16.gmra.mxu2 %v6810_v35 }
 0x15e   :  { %v6969_v55 = vpop.f32.mrf.mxu3 }
 0x160   :  { %v1537_v47 = vpop.f32.mrf.mxu2 }
 0x161   :  { %v6942_v36 = vadd.f32 %v1537_v47, %v1489_v8  ;;  %v1808_v8 = vpop.f32.mrf.mxu0 }
 0x162   :  { %v1862_v34 = vpop.f32.mrf.mxu1  ;;  %2202 = vmatmul.bf16.gmra.mxu0 %v6630_v42 }
 0x163   :  { %9119 = vst [vmem:[#allocation62_spill] sm:$0xff] %v6942_v36 }
 0x167   :  { %2158 = vmatmul.bf16.gmra.mxu3 %v6723_v41 }
 0x168   :  { %v6946_v23 = vpop.f32.mrf.mxu2 }
 0x169   :  { %9120 = vst [vmem:[#allocation63_spill] sm:$0xff] %v6946_v23  ;;  %v1811_v3 = vpop.f32.mrf.mxu0 }
 0x16d   :  { %1933 = vmatmul.bf16.gmra.mxu2 %v6829_v62 }
 0x170   :  { %v1542_v47 = vpop.f32.mrf.mxu2 }
 0x171   :  { %v6952_v16 = vadd.f32 %v1542_v47, %v1494_v22  ;;  %v5724_v22 = vld [vmem:[#allocation8 + $0x88] sm:$0xff] }
 0x172   :  { %2244 = vmatpush.bf16.msra.mxu1 %v5724_v22  ;;  %2207 = vmatmul.bf16.gmra.mxu0 %v6684_v48 }
 0x173   :  { %9121 = vst [vmem:[#allocation64_spill] sm:$0xff] %v6952_v16  ;;  %v1813_v16 = vpop.f32.mrf.mxu0 }
 0x177   :  { %2163 = vmatmul.bf16.gmra.mxu3 %v6756_v52  ;;  %v1567_v52 = vadd.f32 %v6954_v25, %v6885_v40  ;;  %v1476_v25 = vadd.f32 %v6864_v54, %v6897_v9  ;;  %v1572_v9 = vadd.f32 %v6969_v55, %v6899_v0  ;;  %v1481_v0 = vadd.f32 %v6864_v54, %v6940_v58 }
 0x178   :  { %v6956_v21 = vpop.f32.mrf.mxu2 }
 0x179   :  { %9122 = vst [vmem:[#allocation65_spill] sm:$0xff] %v6956_v21  ;;  %v5723_v21 = vld [vmem:[#allocation8 + $0x80] sm:$0xff] }
 0x17a   :  { %2245 = vmatpush.bf16.msra.mxu1 %v5723_v21  ;;  %v1865_v21 = vpop.f32.mrf.mxu1 }
 0x17d   :  { %1938 = vmatmul.bf16.gmra.mxu2 %v6849_v4  ;;  %2246 = vmatmul.bf16.vlgmr.msra.gmra.mxu1 %v6696_v11  ;;  %v6979_v11 = vpop.f32.mrf.mxu3 }
 0x180   :  { %v1547_v57 = vpop.f32.mrf.mxu2 }
 0x181   :  { %v6961_v47 = vadd.f32 %v1547_v57, %v1499_v14  ;;  %v6974_v14 = vld [vmem:[%s9028_s7] ss:$0 sm:$0xff]  ;;  %v1816_v57 = vpop.f32.mrf.mxu0 }
 0x182   :  { %v1807_v49 = vadd.f32 %v6974_v14, %v1806_v38  ;;  %v1809_v22 = vadd.f32 %v6974_v14, %v1808_v8  ;;  %v1867_v60 = vpop.f32.mrf.mxu1  ;;  %v1812_v42 = vadd.f32 %v6974_v14, %v1811_v3  ;;  %2212 = vmatmul.bf16.gmra.mxu0 %v6727_v59 }
 0x183   :  { %9123 = vst [vmem:[#allocation66_spill] sm:$0xff] %v6961_v47 }
 0x184   :  { %v1856_v47 = vadd.f32 %v1855_v5, %v1807_v49  ;;  %v1466_v5 = vadd.f32 %v6864_v54, %v6859_v53  ;;  %v1562_v53 = vadd.f32 %v6944_v24, %v6869_v26  ;;  %v1471_v24 = vadd.f32 %v6864_v54, %v6879_v17 }
 0x185   :  { %v6986_v38 = vpop.f32.mrf.mxu3 }
 0x186   :  { %v1577_v58 = vadd.f32 %v6986_v38, %v6913_v50  ;;  %v1486_v50 = vadd.f32 %v6864_v54, %v6883_v31 }
 0x187   :  { %2168 = vmatmul.bf16.gmra.mxu3 %v6504_v46 }
 0x188   :  { %v6966_v2 = vpop.f32.mrf.mxu2 }
 0x189   :  { %9124 = vst [vmem:[#allocation67_spill] sm:$0xff] %v6966_v2  ;;  %v1858_v2 = vadd.f32 %v1857_v43, %v1809_v22  ;;  %v1818_v15 = vpop.f32.mrf.mxu0 }
 0x18d   :  { %2251 = vmatmul.bf16.gmra.mxu1 %v6738_v30  ;;  %v1814_v30 = vadd.f32 %v6974_v14, %v1813_v16 }
 0x190   :  { %v1904_v37 = vpop.f32.mrf.mxu2 }
 0x191   :  { %v1905_v4 = vadd.f32 %v1904_v37, %v1856_v47  ;;  %v6989_v49 = vpop.f32.mrf.mxu0  ;;  %v6993_v37 = vpop.f32.mrf.mxu1 }
 0x192   :  { %2217 = vmatmul.bf16.gmra.mxu0 %v6502_v45 }
 0x197   :  { %2173 = vmatmul.bf16.gmra.mxu3 %v6535_v13 }
 0x198   :  { %v1906_v27 = vpop.f32.mrf.mxu2 }
 0x199   :  { %v1907_v36 = vadd.f32 %v1906_v27, %v1858_v2  ;;  %v1515_v2 = vadd.f32 %v6874_v6, %v1466_v5  ;;  %v1863_v27 = vadd.f32 %v1862_v34, %v1814_v30  ;;  %v7000_v6 = vpop.f32.mrf.mxu3  ;;  %v1823_v34 = vpop.f32.mrf.mxu0 }
 0x19a   :  { %v1872_v30 = vpop.f32.mrf.mxu1 }
 0x19b   :  { %v2287_v33 = vmax.f32 %v1905_v4, %v1907_v36  ;;  %v1564_v3 = vadd.f32 %v6950_v18, %v1515_v2  ;;  %v1520_v18 = vadd.f32 %v6890_v44, %v1471_v24  ;;  %v1525_v24 = vadd.f32 %v6906_v28, %v1476_v25 }
 0x19d   :  { %v2288_v23 = vrot.slane %v2287_v33, 4  ;;  %2256 = vmatmul.bf16.gmra.mxu1 %v6761_v56  ;;  %v1569_v17 = vadd.f32 %v6963_v20, %v1520_v18 }
 0x19f   :  { %v2289_v32 = vmax.f32 %v2287_v33, %v2288_v23  ;;  %v1861_v23 = vadd.f32 %v1860_v1, %v1812_v42 }
 0x1a0   :  { %v1909_v43 = vpop.f32.mrf.mxu2 }
 0x1a1   :  { %v2290_v8 = vrot.slane %v2289_v32, 2 }
 0x1a2   :  { %2222 = vmatmul.bf16.gmra.mxu0 %v6533_v12 }
 0x1a3   :  { %v2291_v47 = vmax.f32 %v2289_v32, %v2290_v8  ;;  %v1910_v8 = vadd.f32 %v1909_v43, %v1861_v23  ;;  %v7008_v43 = vpop.f32.mrf.mxu3 }
 0x1a5   :  { %v2292_v41 = vrot.slane %v2291_v47, 1 }
 0x1a7   :  { %v2293_v22 = vmax.f32 %v2291_v47, %v2292_v41  ;;  %2178 = vmatmul.bf16.gmra.mxu3 %v6592_v63  ;;  %v1582_v63 = vadd.f32 %v7008_v43, %v6926_v39  ;;  %v9126_v39 = vld [vmem:[#allocation54_spill] sm:$0xff] }
 0x1a8   :  { %v1911_v33 = vpop.f32.mrf.mxu2  ;;  %v1491_v43 = vadd.f32 %v6864_v54, %v9126_v39 }
 0x1a9   :  { %v2343_v29 = vsub.f32 %v1905_v4, %v2293_v22  ;;  %v2344_v32 = vsub.f32 %v1907_v36, %v2293_v22  ;;  %v1912_v16 = vadd.f32 %v1911_v33, %v1863_v27  ;;  %v1817_v4 = vadd.f32 %v6974_v14, %v1816_v57  ;;  %v1826_v22 = vpop.f32.mrf.mxu0 }
 0x1ab   :  { %v2431_v1 = vmul.f32 %v2343_v29, %v1562_v53  ;;  %v2432_v5 = vmul.f32 %v2344_v32, %v1564_v3  ;;  %v2294_v42 = vmax.f32 %v1910_v8, %v1912_v16  ;;  %v1819_v29 = vadd.f32 %v6974_v14, %v1818_v15  ;;  %v1875_v3 = vpop.f32.mrf.mxu1 }
 0x1ac   :  { %v1866_v2 = vadd.f32 %v1865_v21, %v1817_v4 }
 0x1ad   :  { %v2447_v47 = vpack.c.bf16 %v2432_v5, %v2431_v1  ;;  %v2295_v48 = vrot.slane %v2294_v42, 4  ;;  %v1868_v53 = vadd.f32 %v1867_v60, %v1819_v29  ;;  %2261 = vmatmul.bf16.gmra.mxu1 %v6776_v51 }
 0x1af   :  { %v2296_v41 = vmax.f32 %v2294_v42, %v2295_v48  ;;  %2527 = vmatmul.bf16.vlgmr.msrb.gmra.mxu2 %v2447_v47  ;;  %v7015_v47 = vpop.f32.mrf.mxu3 }
 0x1b0   :  { %v1914_v36 = vpop.f32.mrf.mxu2 }
 0x1b1   :  { %v2297_v56 = vrot.slane %v2296_v41, 2  ;;  %v1915_v32 = vadd.f32 %v1914_v36, %v1866_v2  ;;  %v1828_v20 = vpop.f32.mrf.mxu0 }
 0x1b2   :  { %2227 = vmatmul.bf16.gmra.mxu0 %v6590_v61 }
 0x1b3   :  { %v2298_v26 = vmax.f32 %v2296_v41, %v2297_v56  ;;  %v1824_v41 = vadd.f32 %v6974_v14, %v1823_v34 }
 0x1b5   :  { %v2299_v23 = vrot.slane %v2298_v26, 1  ;;  %v1873_v46 = vadd.f32 %v1872_v30, %v1824_v41 }
 0x1b7   :  { %v2300_v27 = vmax.f32 %v2298_v26, %v2299_v23  ;;  %v1574_v26 = vadd.f32 %v6979_v11, %v1525_v24  ;;  %v1827_v11 = vadd.f32 %v6974_v14, %v1826_v22 }
 0x1b8   :  { %v1916_v57 = vpop.f32.mrf.mxu2 }
 0x1b9   :  { %v2345_v33 = vsub.f32 %v1910_v8, %v2300_v27  ;;  %v2346_v15 = vsub.f32 %v1912_v16, %v2300_v27  ;;  %v1917_v44 = vadd.f32 %v1916_v57, %v1868_v53  ;;  %v1822_v8 = vadd.f32 %v6974_v14, %v6989_v49  ;;  %v1877_v16 = vpop.f32.mrf.mxu1  ;;  %v7029_v49 = vpop.f32.mrf.mxu3 }
 0x1ba   :  { %v1831_v28 = vpop.f32.mrf.mxu0 }
 0x1bb   :  { %v2434_v21 = vmul.f32 %v2346_v15, %v1569_v17  ;;  %v2301_v1 = vmax.f32 %v1915_v32, %v1917_v44  ;;  %v2433_v5 = vmul.f32 %v2345_v33, %v1567_v52  ;;  %v1871_v36 = vadd.f32 %v6993_v37, %v1822_v8 }
 0x1bc   :  { %v1829_v15 = vadd.f32 %v6974_v14, %v1828_v20  ;;  %v1832_v24 = vadd.f32 %v6974_v14, %v1831_v28 }
 0x1bd   :  { %v2302_v42 = vrot.slane %v2301_v1, 4  ;;  %v2448_v60 = vpack.c.bf16 %v2434_v21, %v2433_v5  ;;  %2266 = vmatmul.bf16.gmra.mxu1 %v6791_v10  ;;  %v1876_v21 = vadd.f32 %v1875_v3, %v1827_v11 }
 0x1be   :  { %v1878_v13 = vadd.f32 %v1877_v16, %v1829_v15 }
 0x1bf   :  { %v2303_v59 = vmax.f32 %v2301_v1, %v2302_v42  ;;  %2532 = vmatmul.bf16.gmra.mxu2 %v2448_v60 }
 0x1c0   :  { %v1919_v40 = vpop.f32.mrf.mxu2 }
 0x1c1   :  { %v2304_v51 = vrot.slane %v2303_v59, 2  ;;  %v1920_v34 = vadd.f32 %v1919_v40, %v1871_v36  ;;  %v1880_v53 = vpop.f32.mrf.mxu1  ;;  %v7036_v33 = vpop.f32.mrf.mxu3 }
 0x1c3   :  { %v2305_v48 = vmax.f32 %v2303_v59, %v2304_v51 }
 0x1c5   :  { %v2306_v4 = vrot.slane %v2305_v48, 1 }
 0x1c7   :  { %v2307_v56 = vmax.f32 %v2305_v48, %v2306_v4 }
 0x1c8   :  { %v1921_v29 = vpop.f32.mrf.mxu2 }
 0x1c9   :  { %v2347_v18 = vsub.f32 %v1915_v32, %v2307_v56  ;;  %v2348_v2 = vsub.f32 %v1917_v44, %v2307_v56  ;;  %v1922_v23 = vadd.f32 %v1921_v29, %v1873_v46  ;;  %v1530_v32 = vadd.f32 %v6918_v7, %v1481_v0  ;;  %v1833_v44 = vpop.f32.mrf.mxu0  ;;  %v1882_v5 = vpop.f32.mrf.mxu1  ;;  %v9125_v0 = vld [vmem:[#allocation31_spill] sm:$0xff] }
 0x1ca   :  { %v7045_v51 = vpop.f32.mrf.mxu3  ;;  %v1834_v4 = vadd.f32 %v6974_v14, %v1833_v44  ;;  %v1535_v56 = vadd.f32 %v6931_v19, %v1486_v50  ;;  %v1881_v46 = vadd.f32 %v1880_v53, %v1832_v24  ;;  %2183 = vmatmul.bf16.gmra.mxu3 %v9125_v0 }
 0x1cb   :  { %v2436_v37 = vmul.f32 %v2348_v2, %v1574_v26  ;;  %v2308_v27 = vmax.f32 %v1920_v34, %v1922_v23  ;;  %v2435_v30 = vmul.f32 %v2347_v18, %v1572_v9  ;;  %v1579_v22 = vadd.f32 %v7000_v6, %v1530_v32  ;;  %v9127_v32 = vld [vmem:[#allocation63_spill] sm:$0xff] }
 0x1cc   :  { %v1883_v18 = vadd.f32 %v1882_v5, %v1834_v4  ;;  %v1584_v31 = vadd.f32 %v7015_v47, %v1535_v56  ;;  %v1540_v44 = vadd.f32 %v9127_v32, %v1491_v43 }
 0x1cd   :  { %v2309_v45 = vrot.slane %v2308_v27, 4  ;;  %v2449_v52 = vpack.c.bf16 %v2436_v37, %v2435_v30  ;;  %2271 = vmatmul.bf16.gmra.mxu1 %v6810_v35 }
 0x1cf   :  { %v2310_v17 = vmax.f32 %v2308_v27, %v2309_v45  ;;  %2537 = vmatmul.bf16.gmra.mxu2 %v2449_v52 }
 0x1d0   :  { %v1924_v55 = vpop.f32.mrf.mxu2 }
 0x1d1   :  { %v2311_v57 = vrot.slane %v2310_v17, 2  ;;  %v1925_v40 = vadd.f32 %v1924_v55, %v1876_v21  ;;  %v1836_v12 = vpop.f32.mrf.mxu0  ;;  %v1885_v6 = vpop.f32.mrf.mxu1 }
 0x1d2   :  { %v7053_v26 = vpop.f32.mrf.mxu3  ;;  %v1837_v11 = vadd.f32 %v6974_v14, %v1836_v12 }
 0x1d3   :  { %v2312_v10 = vmax.f32 %v2310_v17, %v2311_v57 }
 0x1d5   :  { %v2313_v1 = vrot.slane %v2312_v10, 1 }
 0x1d7   :  { %v2314_v42 = vmax.f32 %v2312_v10, %v2313_v1  ;;  %v1886_v1 = vadd.f32 %v1885_v6, %v1837_v11 }
 0x1d8   :  { %v1926_v60 = vpop.f32.mrf.mxu2 }
 0x1d9   :  { %v2349_v59 = vsub.f32 %v1920_v34, %v2314_v42  ;;  %v2350_v25 = vsub.f32 %v1922_v23, %v2314_v42  ;;  %v1927_v20 = vadd.f32 %v1926_v60, %v1878_v13  ;;  %v1838_v34 = vpop.f32.mrf.mxu0  ;;  %v1887_v19 = vpop.f32.mrf.mxu1 }
 0x1da   :  { %v7063_v47 = vpop.f32.mrf.mxu3  ;;  %v1839_v15 = vadd.f32 %v6974_v14, %v1838_v34 }
 0x1db   :  { %v2438_v7 = vmul.f32 %v2350_v25, %v1579_v22  ;;  %v2315_v3 = vmax.f32 %v1925_v40, %v1927_v20  ;;  %v2437_v8 = vmul.f32 %v2349_v59, %v1577_v58  ;;  %v9128_v58 = vld [vmem:[#allocation30_spill] sm:$0xff]  ;;  %v1589_v59 = vadd.f32 %v7036_v33, %v1540_v44 }
 0x1dc   :  { %v1888_v13 = vadd.f32 %v1887_v19, %v1839_v15  ;;  %2232 = vmatmul.bf16.gmra.mxu0 %v9128_v58  ;;  %v9129_v22 = vld [vmem:[#allocation62_spill] sm:$0xff]  ;;  %v9134_v15 = vld [vmem:[#allocation60_spill] sm:$0xff] }
 0x1dd   :  { %v2316_v16 = vrot.slane %v2315_v3, 4  ;;  %v2450_v48 = vpack.c.bf16 %v2438_v7, %v2437_v8  ;;  %2276 = vmatmul.bf16.gmra.mxu1 %v6829_v62  ;;  %v1587_v60 = vadd.f32 %v7029_v49, %v9129_v22  ;;  %v9130_v8 = vld [vmem:[#allocation48_spill] sm:$0xff]  ;;  %v9131_v49 = vld [vmem:[#allocation57_spill] sm:$0xff]  ;;  %v9136_v22 = vld [vmem:[#allocation66_spill] sm:$0xff] }
 0x1de   :  { %v1496_v33 = vadd.f32 %v6864_v54, %v9131_v49 }
 0x1df   :  { %v2317_v41 = vmax.f32 %v2315_v3, %v2316_v16  ;;  %2542 = vmatmul.bf16.gmra.mxu2 %v2450_v48 }
 0x1e0   :  { %v1929_v38 = vpop.f32.mrf.mxu2 }
 0x1e1   :  { %v2318_v35 = vrot.slane %v2317_v41, 2  ;;  %v1930_v37 = vadd.f32 %v1929_v38, %v1881_v46  ;;  %v1841_v62 = vpop.f32.mrf.mxu0  ;;  %v1890_v21 = vpop.f32.mrf.mxu1 }
 0x1e2   :  { %v1598_v16 = vpop.f32.mrf.mxu3  ;;  %v1842_v4 = vadd.f32 %v6974_v14, %v1841_v62 }
 0x1e3   :  { %v2319_v36 = vmax.f32 %v2317_v41, %v2318_v35 }
 0x1e5   :  { %v2320_v9 = vrot.slane %v2319_v36, 1 }
 0x1e7   :  { %v2321_v29 = vmax.f32 %v2319_v36, %v2320_v9 }
 0x1e8   :  { %v1931_v2 = vpop.f32.mrf.mxu2 }
 0x1e9   :  { %v2351_v23 = vsub.f32 %v1925_v40, %v2321_v29  ;;  %v2352_v28 = vsub.f32 %v1927_v20, %v2321_v29  ;;  %v1932_v27 = vadd.f32 %v1931_v2, %v1883_v18  ;;  %v1843_v50 = vpop.f32.mrf.mxu0  ;;  %v1892_v24 = vpop.f32.mrf.mxu1  ;;  %v9132_v18 = vld [vmem:[#allocation65_spill] sm:$0xff]  ;;  %v1891_v2 = vadd.f32 %v1890_v21, %v1842_v4 }
 0x1ea   :  { %v2149_v46 = vpop.f32.mrf.mxu3  ;;  %v1844_v29 = vadd.f32 %v6974_v14, %v1843_v50 }
 0x1eb   :  { %v2440_v30 = vmul.f32 %v2352_v28, %v1584_v31  ;;  %v2322_v53 = vmax.f32 %v1930_v37, %v1932_v27  ;;  %v2439_v45 = vmul.f32 %v2351_v23, %v1582_v63  ;;  %v1545_v63 = vadd.f32 %v9132_v18, %v1496_v33 }
 0x1ed   :  { %v2323_v52 = vrot.slane %v2322_v53, 4  ;;  %v2451_v17 = vpack.c.bf16 %v2440_v30, %v2439_v45  ;;  %2281 = vmatmul.bf16.gmra.mxu1 %v9130_v8  ;;  %v1594_v30 = vadd.f32 %v7053_v26, %v1545_v63 }
 0x1ef   :  { %v2324_v61 = vmax.f32 %v2322_v53, %v2323_v52  ;;  %2547 = vmatmul.bf16.gmra.mxu2 %v2451_v17 }
 0x1f0   :  { %v1934_v55 = vpop.f32.mrf.mxu2 }
 0x1f1   :  { %v2325_v57 = vrot.slane %v2324_v61, 2  ;;  %v1935_v7 = vadd.f32 %v1934_v55, %v1886_v1  ;;  %v2198_v31 = vpop.f32.mrf.mxu0  ;;  %v9135_v1 = vld [vmem:[#allocation67_spill] sm:$0xff] }
 0x1f2   :  { %v2151_v0 = vpop.f32.mrf.mxu3 }
 0x1f3   :  { %v2326_v10 = vmax.f32 %v2324_v61, %v2325_v57 }
 0x1f5   :  { %v2327_v5 = vrot.slane %v2326_v10, 1 }
 0x1f7   :  { %v2328_v42 = vmax.f32 %v2326_v10, %v2327_v5 }
 0x1f8   :  { %v1936_v25 = vpop.f32.mrf.mxu2 }
 0x1f9   :  { %v2353_v40 = vsub.f32 %v1930_v37, %v2328_v42  ;;  %v2354_v20 = vsub.f32 %v1932_v27, %v2328_v42  ;;  %v1937_v3 = vadd.f32 %v1936_v25, %v1888_v13  ;;  %v1893_v37 = vadd.f32 %v1892_v24, %v1844_v29  ;;  %v9133_v27 = vld [vmem:[#allocation64_spill] sm:$0xff]  ;;  %v2200_v55 = vpop.f32.mrf.mxu0  ;;  %v5751_v29 = vld [vmem:[#allocation10 + $0x60] sm:$0xff] }
 0x1fa   :  { %v2247_v23 = vpop.f32.mrf.mxu1  ;;  %v1592_v19 = vadd.f32 %v7045_v51, %v9133_v27  ;;  %v1501_v51 = vadd.f32 %v6864_v54, %v9134_v15  ;;  %v2154_v26 = vpop.f32.mrf.mxu3  ;;  %v5750_v27 = vld [vmem:[#allocation10 + $0x58] sm:$0xff]  ;;  %v5748_v15 = vld [vmem:[#allocation10 + $0x48] sm:$0xff] }
 0x1fb   :  { %v2442_v48 = vmul.f32 %v2354_v20, %v1589_v59  ;;  %v2329_v12 = vmax.f32 %v1935_v7, %v1937_v3  ;;  %v2441_v41 = vmul.f32 %v2353_v40, %v1587_v60  ;;  %v1597_v60 = vadd.f32 %v7063_v47, %v9136_v22  ;;  %v5753_v47 = vld [vmem:[#allocation10 + $0x70] sm:$0xff] }
 0x1fc   :  { %v1550_v5 = vadd.f32 %v9135_v1, %v1501_v51 }
 0x1fd   :  { %v2330_v38 = vrot.slane %v2329_v12, 4  ;;  %v2452_v6 = vpack.c.bf16 %v2442_v48, %v2441_v41  ;;  %v7089_v41 = vld [vmem:[%s9030_s9] ss:$0 sm:$0xff] }
 0x1fe   :  { %v1599_v59 = vadd.f32 %v1598_v16, %v1550_v5  ;;  %v2150_v16 = vadd.f32 %v7089_v41, %v2149_v46  ;;  %v2155_v4 = vadd.f32 %v7089_v41, %v2154_v26 }
 0x1ff   :  { %v2331_v35 = vmax.f32 %v2329_v12, %v2330_v38  ;;  %2552 = vmatmul.bf16.gmra.mxu2 %v2452_v6  ;;  %v5754_v12 = vld [vmem:[#allocation10 + $0x78] sm:$0xff]  ;;  %v2152_v6 = vadd.f32 %v7089_v41, %v2151_v0 }
 0x200   :  { %v1939_v36 = vpop.f32.mrf.mxu2  ;;  %3437 = vmatpush.bf16.msrb.mxu0 %v5754_v12  ;;  %v2199_v49 = vadd.f32 %v2198_v31, %v2150_v16 }
 0x201   :  { %v2332_v56 = vrot.slane %v2331_v35, 2  ;;  %v1940_v17 = vadd.f32 %v1939_v36, %v1891_v2  ;;  %v2203_v21 = vpop.f32.mrf.mxu0  ;;  %v2201_v33 = vadd.f32 %v2200_v55, %v2152_v6 }
 0x202   :  { %v2249_v62 = vpop.f32.mrf.mxu1  ;;  %v2156_v20 = vpop.f32.mrf.mxu3  ;;  %v7095_v18 = vadd.f32 %v2247_v23, %v2199_v49  ;;  %v2204_v31 = vadd.f32 %v2203_v21, %v2155_v4 }
 0x203   :  { %v2333_v9 = vmax.f32 %v2331_v35, %v2332_v56  ;;  %v5752_v35 = vld [vmem:[#allocation10 + $0x68] sm:$0xff]  ;;  %v2157_v56 = vadd.f32 %v7089_v41, %v2156_v20  ;;  %v7097_v63 = vadd.f32 %v2249_v62, %v2201_v33  ;;  %v5758_v20 = vld [vmem:[#allocation10 + $0x98] sm:$0xff] }
 0x204   :  { %3438 = vmatpush.bf16.msrb.mxu0 %v5753_v47 }
 0x205   :  { %v2334_v34 = vrot.slane %v2333_v9, 1 }
 0x207   :  { %v2335_v28 = vmax.f32 %v2333_v9, %v2334_v34  ;;  %v5762_v34 = vld [vmem:[#allocation10 + $0xb8] sm:$0xff] }
 0x208   :  { %v1941_v53 = vpop.f32.mrf.mxu2  ;;  %3439 = vmatpush.bf16.msrb.mxu0 %v5752_v35  ;;  %3486 = vmatpush.bf16.msrb.mxu1 %v5762_v34  ;;  %v5757_v35 = vld [vmem:[#allocation10 + $0x90] sm:$0xff] }
 0x209   :  { %v2355_v45 = vsub.f32 %v1935_v7, %v2335_v28  ;;  %v2356_v52 = vsub.f32 %v1937_v3, %v2335_v28  ;;  %v1942_v61 = vadd.f32 %v1941_v53, %v1893_v37  ;;  %v2205_v8 = vpop.f32.mrf.mxu0 }
 0x20a   :  { %v2252_v13 = vpop.f32.mrf.mxu1  ;;  %v2159_v50 = vpop.f32.mrf.mxu3  ;;  %v2206_v37 = vadd.f32 %v2205_v8, %v2157_v56 }
 0x20b   :  { %v2444_v14 = vmul.f32 %v2356_v52, %v1594_v30  ;;  %v2336_v39 = vmax.f32 %v1940_v17, %v1942_v61  ;;  %v2443_v43 = vmul.f32 %v2355_v45, %v1592_v19  ;;  %v2160_v46 = vadd.f32 %v7089_v41, %v2159_v50  ;;  %v5761_v45 = vld [vmem:[#allocation10 + $0xb0] sm:$0xff] }
 0x20c   :  { %3440 = vmatpush.bf16.msrb.mxu0 %v5751_v29  ;;  %v2359_v19 = vmax.f32 %v7095_v18, %v7097_v63  ;;  %3487 = vmatpush.bf16.msrb.mxu1 %v5761_v45 }
 0x20d   :  { %v2337_v11 = vrot.slane %v2336_v39, 4  ;;  %v2453_v57 = vpack.c.bf16 %v2444_v14, %v2443_v43 }
 0x20e   :  { %v2360_v43 = vrot.slane %v2359_v19, 4 }
 0x20f   :  { %v2338_v10 = vmax.f32 %v2336_v39, %v2337_v11  ;;  %2557 = vmatmul.bf16.gmra.mxu2 %v2453_v57  ;;  %v5749_v39 = vld [vmem:[#allocation10 + $0x50] sm:$0xff]  ;;  %v5760_v57 = vld [vmem:[#allocation10 + $0xa8] sm:$0xff] }
 0x210   :  { %3441 = vmatpush.bf16.msrb.mxu0 %v5750_v27  ;;  %3488 = vmatpush.bf16.msrb.mxu1 %v5760_v57  ;;  %v2361_v51 = vmax.f32 %v2359_v19, %v2360_v43  ;;  %v5755_v43 = vld [vmem:[#allocation10 + $0x80] sm:$0xff] }
 0x211   :  { %v2339_v32 = vrot.slane %v2338_v10, 2  ;;  %v2208_v38 = vpop.f32.mrf.mxu0 }
 0x212   :  { %v2254_v48 = vpop.f32.mrf.mxu1  ;;  %v2161_v36 = vpop.f32.mrf.mxu3  ;;  %v2209_v53 = vadd.f32 %v2208_v38, %v2160_v46 }
 0x213   :  { %v2340_v44 = vmax.f32 %v2338_v10, %v2339_v32  ;;  %v2162_v2 = vadd.f32 %v7089_v41, %v2161_v36  ;;  %v7105_v0 = vadd.f32 %v2254_v48, %v2206_v37 }
 0x214   :  { %3442 = vmatpush.bf16.msrb.mxu0 %v5749_v39 }
 0x215   :  { %v2341_v42 = vrot.slane %v2340_v44, 1 }
 0x217   :  { %v2342_v58 = vmax.f32 %v2340_v44, %v2341_v42  ;;  %v5759_v44 = vld [vmem:[#allocation10 + $0xa0] sm:$0xff] }
 0x218   :  { %3443 = vmatpush.bf16.msrb.mxu0 %v5748_v15  ;;  %3489 = vmatpush.bf16.msrb.mxu1 %v5759_v44 }
 0x219   :  { %v2357_v25 = vsub.f32 %v1940_v17, %v2342_v58  ;;  %v2358_v40 = vsub.f32 %v1942_v61, %v2342_v58  ;;  %v2210_v9 = vpop.f32.mrf.mxu0  ;;  %v7103_v61 = vadd.f32 %v2252_v13, %v2204_v31 }
 0x21a   :  { %v2257_v24 = vpop.f32.mrf.mxu1  ;;  %v2211_v23 = vadd.f32 %v2210_v9, %v2162_v2  ;;  %v2164_v17 = vpop.f32.mrf.mxu3 }
 0x21b   :  { %v2446_v7 = vmul.f32 %v2358_v40, %v1599_v59  ;;  %v2445_v3 = vmul.f32 %v2357_v25, %v1597_v60  ;;  %v7107_v55 = vadd.f32 %v2257_v24, %v2209_v53  ;;  %v2366_v10 = vmax.f32 %v7103_v61, %v7105_v0  ;;  %v5747_v59 = vld [vmem:[#allocation10 + $0x40] sm:$0xff] }
 0x21c   :  { %v2165_v13 = vadd.f32 %v7089_v41, %v2164_v17  ;;  %v2362_v25 = vrot.slane %v2361_v51, 2  ;;  %3444 = vmatpush.bf16.msrb.mxu0 %v5747_v59  ;;  %3490 = vmatpush.bf16.msrb.mxu1 %v5758_v20 }
 0x21d   :  { %v2454_v54 = vpack.c.bf16 %v2446_v7, %v2445_v3  ;;  %v2367_v22 = vrot.slane %v2366_v10, 4 }
 0x21e   :  { %v2363_v50 = vmax.f32 %v2361_v51, %v2362_v25 }
 0x21f   :  { %2562 = vmatmul.bf16.gmra.mxu2 %v2454_v54  ;;  %v2368_v54 = vmax.f32 %v2366_v10, %v2367_v22 }
 0x220   :  { %3491 = vmatpush.bf16.msrb.mxu1 %v5757_v35  ;;  %v2364_v29 = vrot.slane %v2363_v50, 1 }
 0x221   :  { %v2213_v14 = vpop.f32.mrf.mxu0  ;;  %v2369_v56 = vrot.slane %v2368_v54, 2 }
 0x222   :  { %v2259_v28 = vpop.f32.mrf.mxu1  ;;  %v2166_v5 = vpop.f32.mrf.mxu3  ;;  %v2214_v7 = vadd.f32 %v2213_v14, %v2165_v13 }
 0x223   :  { %v7109_v11 = vadd.f32 %v2259_v28, %v2211_v23  ;;  %v2167_v58 = vadd.f32 %v7089_v41, %v2166_v5  ;;  %v5756_v28 = vld [vmem:[#allocation10 + $0x88] sm:$0xff]  ;;  %v2370_v19 = vmax.f32 %v2368_v54, %v2369_v56 }
 0x224   :  { %3492 = vmatpush.bf16.msrb.mxu1 %v5756_v28 }
 0x225   :  { %v2373_v26 = vmax.f32 %v7107_v55, %v7109_v11 }
 0x227   :  { %v2374_v40 = vrot.slane %v2373_v26, 4 }
 0x228   :  { %3493 = vmatpush.bf16.msrb.mxu1 %v5755_v43 }
 0x229   :  { %v2215_v60 = vpop.f32.mrf.mxu0  ;;  %v2375_v47 = vmax.f32 %v2373_v26, %v2374_v40  ;;  %v2371_v26 = vrot.slane %v2370_v19, 1 }
 0x22a   :  { %v2262_v62 = vpop.f32.mrf.mxu1  ;;  %v2216_v3 = vadd.f32 %v2215_v60, %v2167_v58  ;;  %v2169_v36 = vpop.f32.mrf.mxu3 }
 0x22b   :  { %v7120_v48 = vadd.f32 %v2262_v62, %v2214_v7  ;;  %v2376_v46 = vrot.slane %v2375_v47, 2  ;;  %v2170_v40 = vadd.f32 %v7089_v41, %v2169_v36 }
 0x22d   :  { %v2377_v45 = vmax.f32 %v2375_v47, %v2376_v46 }
 0x22f   :  { %v2378_v5 = vrot.slane %v2377_v45, 1 }
 0x231   :  { %v2218_v2 = vpop.f32.mrf.mxu0 }
 0x232   :  { %v2528_v30 = vpop.f32.mrf.mxu2  ;;  %v2264_v8 = vpop.f32.mrf.mxu1 }
 0x233   :  { %v5411_v52 = vmul.f32 -1.442695, %v2528_v30  ;;  %v7122_v12 = vadd.f32 %v2264_v8, %v2216_v3  ;;  %v7130_v30 = vmax.f32 %v2363_v50, %v2364_v29  ;;  %v2171_v44 = vpop.f32.mrf.mxu3  ;;  %v7153_v3 = vmax.f32 %v2370_v19, %v2371_v26 }
 0x234   :  { %v2219_v50 = vadd.f32 %v2218_v2, %v2170_v40 }
 0x235   :  { %5840 = vpow2.f32 %v5411_v52  ;;  %v2380_v24 = vmax.f32 %v7120_v48, %v7122_v12  ;;  %v2416_v13 = vsub.f32 %v7097_v63, %v7130_v30  ;;  %v7156_v63 = vmax.f32 %v2377_v45, %v2378_v5 }
 0x236   :  { %v2417_v28 = vsub.f32 %v7103_v61, %v7153_v3  ;;  %v2418_v19 = vsub.f32 %v7105_v0, %v7153_v3 }
 0x237   :  { %v2381_v9 = vrot.slane %v2380_v24, 4  ;;  %v2419_v61 = vsub.f32 %v7107_v55, %v7156_v63  ;;  %v2420_v43 = vsub.f32 %v7109_v11, %v7156_v63 }
 0x239   :  { %v2382_v31 = vmax.f32 %v2380_v24, %v2381_v9  ;;  %v2220_v60 = vpop.f32.mrf.mxu0 }
 0x23a   :  { %v2530_v32 = vpop.f32.mrf.mxu2  ;;  %v2267_v37 = vpop.f32.mrf.mxu1 }
 0x23b   :  { %v5841_v21 = vpop.eup %5840  ;;  %v5412_v1 = vmul.f32 -1.442695, %v2530_v32  ;;  %v2383_v15 = vrot.slane %v2382_v31, 2  ;;  %v7161_v56 = vadd.f32 %v2267_v37, %v2219_v50 }
 0x23c   :  { %v7115_v42 = vadd.f32 1.0, %v5841_v21  ;;  %v2415_v21 = vsub.f32 %v7095_v18, %v7130_v30  ;;  %v2172_v18 = vadd.f32 %v7089_v41, %v2171_v44 }
 0x23d   :  { %5842 = vpow2.f32 %v5412_v1  ;;  %v2384_v25 = vmax.f32 %v2382_v31, %v2383_v15 }
 0x23e   :  { %5844 = vrcp.f32 %v7115_v42  ;;  %v2643_v53 = vand.u32 2147483648, %v7115_v42  ;;  %vm2637_vm4 = vweird.f32 %v7115_v42  ;;  %v2641_v14 = vand.u32 2147483647, %v7115_v42 }
 0x240   :  { %v2644_v1 = vor.u32 1.1754944e-38, %v2643_v53  ;;  %vm2642_vm6 = vcmp.eq.f32.partialorder %v2641_v14, 8.507059e+37 }
 0x241   :  { %v2223_v14 = vpop.f32.mrf.mxu0 }
 0x242   :  { %v2533_v38 = vpop.f32.mrf.mxu2  ;;  %v2269_v8 = vpop.f32.mrf.mxu1 }
 0x243   :  { %v5843_v16 = vpop.eup %5842  ;;  %v5413_v6 = vmul.f32 -1.442695, %v2533_v38  ;;  %v2221_v38 = vadd.f32 %v2220_v60, %v2172_v18 }
 0x244   :  { %v5845_v49 = vpop.eup %5844  ;;  %v7126_v33 = vadd.f32 1.0, %v5843_v16 }
 0x245   :  { %v2633_v4 = vmul.f32 %v5845_v49, %v7115_v42  ;;  %5846 = vpow2.f32 %v5413_v6  ;;  %vm2638_vm3 = vweird.f32 %v5845_v49  ;;  %v5746_v42 = vld [vmem:[#allocation10 + $0x38] sm:$0xff]  ;;  %v7163_v9 = vadd.f32 %v2269_v8, %v2221_v38 }
 0x246   :  { %5848 = vrcp.f32 %v7126_v33  ;;  %vm7135_vm5 = vmor %vm2637_vm4, %vm2638_vm3  ;;  %v2658_v22 = vand.u32 2147483648, %v7126_v33  ;;  %3388 = vmatpush.bf16.msrb.mxu3 %v5746_v42  ;;  %v2656_v7 = vand.u32 2147483647, %v7126_v33  ;;  %vm2652_vm9 = vweird.f32 %v7126_v33 }
 0x247   :  { %v2634_v34 = vsub.f32 1.0, %v2633_v4  ;;  %v2385_v4 = vrot.slane %v2384_v25, 1  ;;  %v2387_v45 = vmax.f32 %v7161_v56, %v7163_v9 }
 0x248   :  { %v2659_v24 = vor.u32 1.1754944e-38, %v2658_v22  ;;  %vm2657_vm11 = vcmp.eq.f32.partialorder %v2656_v7, 8.507059e+37 }
 0x249   :  { %v2635_v27 = vmul.f32 %v5845_v49, %v2634_v34  ;;  %v2388_v62 = vrot.slane %v2387_v45, 4 }
 0x24a   :  { %v2535_v23 = vpop.f32.mrf.mxu2  ;;  %v7196_v44 = vpop.f32.mrf.mxu1 }
 0x24b   :  { %v5847_v52 = vpop.eup %5846  ;;  %v2636_v17 = vadd.f32 %v5845_v49, %v2635_v27  ;;  %v5414_v39 = vmul.f32 -1.442695, %v2535_v23  ;;  %v2174_v27 = vpop.f32.mrf.mxu3  ;;  %v7176_v23 = vmax.f32 %v2384_v25, %v2385_v4  ;;  %v2389_v22 = vmax.f32 %v2387_v45, %v2388_v62  ;;  %v5745_v25 = vld [vmem:[#allocation10 + $0x30] sm:$0xff] }
 0x24c   :  { %v5849_v57 = vpop.eup %5848  ;;  %v7139_v10 = vadd.f32 1.0, %v5847_v52  ;;  %3389 = vmatpush.bf16.msrb.mxu3 %v5745_v25 }
 0x24d   :  { %v2640_v51 = vsel %vm7135_vm5, %v5845_v49, %v2636_v17  ;;  %v2648_v32 = vmul.f32 %v5849_v57, %v7126_v33  ;;  %5850 = vpow2.f32 %v5414_v39  ;;  %vm2653_vm8 = vweird.f32 %v5849_v57 }
 0x24e   :  { %5852 = vrcp.f32 %v7139_v10  ;;  %v2645_v59 = vsel %vm2642_vm6, %v2644_v1, %v2640_v51  ;;  %vm2654_vm10 = vmor %vm2652_vm9, %vm2653_vm8  ;;  %v2671_v2 = vand.u32 2147483647, %v7139_v10  ;;  %v2673_v53 = vand.u32 2147483648, %v7139_v10 }
 0x24f   :  { %v2649_v58 = vsub.f32 1.0, %v2648_v32  ;;  %v2872_v16 = vmul.f32 %v2645_v59, %v2415_v21  ;;  %vm2667_vm13 = vweird.f32 %v7139_v10  ;;  %v2421_v42 = vsub.f32 %v7120_v48, %v7176_v23 }
 0x250   :  { %vm7186_vm14 = vcmp.eq.f32.partialorder %v2671_v2, 8.507059e+37  ;;  %v2674_v21 = vor.u32 1.1754944e-38, %v2673_v53 }
 0x251   :  { %v2650_v20 = vmul.f32 %v5849_v57, %v2649_v58  ;;  %v7171_v37 = vadd.f32 %v2872_v16, %v7130_v30 }
 0x252   :  { %v2538_v54 = vpop.f32.mrf.mxu2 }
 0x253   :  { %v5851_v47 = vpop.eup %5850  ;;  %v2651_v6 = vadd.f32 %v5849_v57, %v2650_v20  ;;  %v5415_v35 = vmul.f32 -1.442695, %v2538_v54  ;;  %v2904_v26 = vpack.c.bf16 %v7171_v37, %v7171_v37  ;;  %v2176_v8 = vpop.f32.mrf.mxu3  ;;  %v2984_v54 = vrot.slane %v7171_v37, 1 }
 0x254   :  { %v5853_v49 = vpop.eup %5852  ;;  %v7159_v36 = vadd.f32 1.0, %v5851_v47  ;;  %v2175_v47 = vadd.f32 %v7089_v41, %v2174_v27  ;;  %v2177_v62 = vadd.f32 %v7089_v41, %v2176_v8 }
 0x255   :  { %v2655_v33 = vsel %vm2654_vm10, %v5849_v57, %v2651_v6  ;;  %v2663_v29 = vmul.f32 %v5853_v49, %v7139_v10  ;;  %5854 = vpow2.f32 %v5415_v35  ;;  %vm2668_vm12 = vweird.f32 %v5853_v49 }
 0x256   :  { %v2660_v46 = vsel %vm2657_vm11, %v2659_v24, %v2655_v33  ;;  %5856 = vrcp.f32 %v7159_v36  ;;  %vm2669_vm15 = vmor %vm2667_vm13, %vm2668_vm12  ;;  %v2686_v1 = vand.u32 2147483647, %v7159_v36  ;;  %vm2682_vm1 = vweird.f32 %v7159_v36 }
 0x257   :  { %v2873_v34 = vmul.f32 %v2660_v46, %v2416_v13  ;;  %v2664_v31 = vsub.f32 1.0, %v2663_v29  ;;  %v2688_v59 = vand.u32 2147483648, %v7159_v36  ;;  %v3112_v20 = vunpack.c.l.b16 %v2904_v26  ;;  %v2274_v26 = vpop.f32.mrf.mxu1 }
 0x258   :  { %vm7215_vm2 = vcmp.eq.f32.partialorder %v2686_v1, 8.507059e+37  ;;  %v2390_v35 = vrot.slane %v2389_v22, 2  ;;  %v2920_v46 = vrot.slane %v7171_v37, 7  ;;  %v9146_v1 = vld [vmem:[#allocation32_spill] sm:$0xff] }
 0x259   :  { %v2665_v52 = vmul.f32 %v5853_v49, %v2664_v31  ;;  %v7183_v17 = vadd.f32 %v2873_v34, %v7130_v30  ;;  %v2689_v4 = vor.u32 1.1754944e-38, %v2688_v59 }
 0x25a   :  { %v2540_v57 = vpop.f32.mrf.mxu2 }
 0x25b   :  { %v5855_v15 = vpop.eup %5854  ;;  %v2666_v51 = vadd.f32 %v5853_v49, %v2665_v52  ;;  %v5416_v32 = vmul.f32 -1.442695, %v2540_v57  ;;  %v2905_v30 = vpack.c.bf16 %v7183_v17, %v7183_v17  ;;  %v2985_v50 = vrot.slane %v7183_v17, 1  ;;  %v220_v52 = vld [vmem:[%s9179_s24 + $0x50] sm:$0xff] }
 0x25c   :  { %v7198_v10 = vpop.eup %5856  ;;  %v7202_v5 = vadd.f32 1.0, %v5855_v15  ;;  %v2224_v57 = vadd.f32 %v2223_v14, %v2175_v47 }
 0x25d   :  { %v2670_v13 = vsel %vm2669_vm15, %v5853_v49, %v2666_v51  ;;  %v2678_v58 = vmul.f32 %v7198_v10, %v7159_v36  ;;  %5858 = vpow2.f32 %v5416_v32  ;;  %v3113_v7 = vunpack.c.l.b16 %v2905_v30  ;;  %v2225_v49 = vpop.f32.mrf.mxu0 }
 0x25e   :  { %v2675_v60 = vsel %vm7186_vm14, %v2674_v21, %v2670_v13  ;;  %5860 = vrcp.f32 %v7202_v5  ;;  %vm2683_vm3 = vweird.f32 %v7198_v10  ;;  %v2701_v33 = vand.u32 2147483647, %v7202_v5 }
 0x25f   :  { %v2874_v40 = vmul.f32 %v2675_v60, %v2417_v28  ;;  %v2679_v18 = vsub.f32 1.0, %v2678_v58  ;;  %v3128_v24 = vpack.c.b16 %v3113_v7, %v3112_v20  ;;  %v2703_v34 = vand.u32 2147483648, %v7202_v5  ;;  %vm2684_vm4 = vmor %vm2682_vm1, %vm2683_vm3  ;;  %v7255_v60 = vpop.f32.mrf.mxu3 }
 0x260   :  { %v3014_v39 = vsel %vm628_vm7, %v2984_v54, %v2985_v50  ;;  %v2391_v51 = vmax.f32 %v2389_v22, %v2390_v35  ;;  %vm2697_vm5 = vweird.f32 %v7202_v5  ;;  %vm7247_vm6 = vcmp.eq.f32.partialorder %v2701_v33, 8.507059e+37 }
 0x261   :  { %v7221_v16 = vadd.f32 %v2874_v40, %v7153_v3  ;;  %v2680_v6 = vmul.f32 %v7198_v10, %v2679_v18  ;;  %3445 = vmatmul.bf16.vlgmr.msrb.gmra.mxu0 %v3128_v24  ;;  %v2921_v30 = vrot.slane %v7183_v17, 7  ;;  %v3032_v58 = vpack.c.bf16 %v3014_v39, %v3014_v39 }
 0x262   :  { %v2543_v29 = vpop.f32.mrf.mxu2  ;;  %v2704_v36 = vor.u32 1.1754944e-38, %v2703_v34  ;;  %v7260_v25 = vadd.f32 %v7196_v44, %v2224_v57  ;;  %v2226_v40 = vadd.f32 %v2225_v49, %v2177_v62  ;;  %v2392_v20 = vrot.slane %v2391_v51, 1 }
 0x263   :  { %v5859_v2 = vpop.eup %5858  ;;  %v5417_v28 = vmul.f32 -1.442695, %v2543_v29  ;;  %v2986_v31 = vrot.slane %v7221_v16, 1  ;;  %v2681_v27 = vadd.f32 %v7198_v10, %v2680_v6  ;;  %v7275_v44 = vsel %vm563_vm0, %v2920_v46, %v2921_v30 }
 0x264   :  { %v5861_v53 = vpop.eup %5860  ;;  %v7230_v45 = vadd.f32 1.0, %v5859_v2  ;;  %v7267_v47 = vadd.f32 %v2274_v26, %v2226_v40  ;;  %v3160_v35 = vunpack.c.l.b16 %v3032_v58  ;;  %v2422_v39 = vsub.f32 %v7122_v12, %v7176_v23 }
 0x265   :  { %v2693_v15 = vmul.f32 %v5861_v53, %v7202_v5  ;;  %5862 = vpow2.f32 %v5417_v28  ;;  %v3013_v32 = vsel %vm628_vm7, %v2985_v50, %v2986_v31  ;;  %v2685_v22 = vsel %vm2684_vm4, %v7198_v10, %v2681_v27  ;;  %v7277_v0 = vpop.f32.mrf.mxu0 }
 0x266   :  { %5864 = vrcp.f32 %v7230_v45  ;;  %v3017_v13 = vmul.f32 %v9146_v1, %v3013_v32  ;;  %v2690_v59 = vsel %vm7215_vm2, %v2689_v4, %v2685_v22  ;;  %vm2698_vm8 = vweird.f32 %v5861_v53 }
 0x267   :  { %v2694_v21 = vsub.f32 1.0, %v2693_v15  ;;  %v2875_v50 = vmul.f32 %v2690_v59, %v2418_v19  ;;  %v2906_v10 = vpack.c.bf16 %v7221_v16, %v7221_v16  ;;  %vm2699_vm9 = vmor %vm2697_vm5, %vm2698_vm8  ;;  %v2718_v4 = vand.u32 2147483648, %v7230_v45 }
 0x268   :  { %v3033_v7 = vpack.c.bf16 %v3017_v13, %v3017_v13  ;;  %v2394_v2 = vmax.f32 %v7260_v25, %v7267_v47  ;;  %v7294_v27 = vmax.f32 %v2391_v51, %v2392_v20  ;;  %vm2712_vm10 = vweird.f32 %v7230_v45  ;;  %v7305_v51 = vpop.f32.mrf.mxu1 }
 0x269   :  { %v2695_v18 = vmul.f32 %v5861_v53, %v2694_v21  ;;  %v7288_v29 = vadd.f32 %v2875_v50, %v7153_v3  ;;  %v5744_v3 = vld [vmem:[#allocation10 + $0x28] sm:$0xff]  ;;  %v2719_v32 = vor.u32 1.1754944e-38, %v2718_v4  ;;  %v3114_v26 = vunpack.c.l.b16 %v2906_v10 }
 0x26a   :  { %v2545_v8 = vpop.f32.mrf.mxu2  ;;  %v3161_v49 = vunpack.c.l.b16 %v3033_v7  ;;  %3390 = vmatpush.bf16.msrb.mxu3 %v5744_v3  ;;  %v2395_v14 = vrot.slane %v2394_v2, 4  ;;  %v2423_v13 = vsub.f32 %v7161_v56, %v7294_v27  ;;  %v2424_v59 = vsub.f32 %v7163_v9, %v7294_v27 }
 0x26b   :  { %v5863_v38 = vpop.eup %5862  ;;  %v2696_v6 = vadd.f32 %v5861_v53, %v2695_v18  ;;  %v5418_v24 = vmul.f32 -1.442695, %v2545_v8  ;;  %v2907_v15 = vpack.c.bf16 %v7288_v29, %v7288_v29  ;;  %v2987_v22 = vrot.slane %v7288_v29, 1 }
 0x26c   :  { %v7279_v19 = vpop.eup %5864  ;;  %v7285_v33 = vadd.f32 1.0, %v5863_v38  ;;  %v3176_v62 = vpack.c.b16 %v3161_v49, %v3160_v35  ;;  %v2396_v18 = vmax.f32 %v2394_v2, %v2395_v14  ;;  %v2180_v2 = vadd.f32 %v7089_v41, %v7255_v60 }
 0x26d   :  { %v2700_v34 = vsel %vm2699_vm9, %v5861_v53, %v2696_v6  ;;  %v2708_v28 = vmul.f32 %v7279_v19, %v7230_v45  ;;  %5866 = vpow2.f32 %v5418_v24  ;;  %v2716_v53 = vand.u32 2147483647, %v7230_v45 }
 0x26e   :  { %v2705_v5 = vsel %vm7247_vm6, %v2704_v36, %v2700_v34  ;;  %5868 = vrcp.f32 %v7285_v33  ;;  %3494 = vmatmul.bf16.vlgmr.msrb.gmra.mxu1 %v3176_v62  ;;  %v3115_v58 = vunpack.c.l.b16 %v2907_v15  ;;  %v2181_v36 = vpop.f32.mrf.mxu3  ;;  %vm2713_vm11 = vweird.f32 %v7279_v19  ;;  %v2230_v34 = vpop.f32.mrf.mxu0 }
 0x26f   :  { %v2709_v57 = vsub.f32 1.0, %v2708_v28  ;;  %v2876_v21 = vmul.f32 %v2705_v5, %v2419_v61  ;;  %v2731_v20 = vand.u32 2147483647, %v7285_v33  ;;  %v2733_v38 = vand.u32 2147483648, %v7285_v33  ;;  %vm2714_vm13 = vmor %vm2712_vm10, %vm2713_vm11 }
 0x270   :  { %v3129_v7 = vpack.c.b16 %v3115_v58, %v3114_v26  ;;  %vm7326_vm12 = vcmp.eq.f32.partialorder %v2716_v53, 8.507059e+37  ;;  %v3012_v4 = vsel %vm628_vm7, %v2986_v31, %v2987_v22  ;;  %vm2727_vm14 = vweird.f32 %v7285_v33  ;;  %v9151_v53 = vld [vmem:[#allocation34_spill] sm:$0xff]  ;;  %v2279_v58 = vpop.f32.mrf.mxu1 }
 0x271   :  { %v2710_v1 = vmul.f32 %v7279_v19, %v2709_v57  ;;  %v7318_v55 = vadd.f32 %v2876_v21, %v7156_v63  ;;  %v2397_v28 = vrot.slane %v2396_v18, 2  ;;  %v2182_v5 = vadd.f32 %v7089_v41, %v2181_v36 }
 0x272   :  { %v2548_v40 = vpop.f32.mrf.mxu2  ;;  %3450 = vmatmul.bf16.gmra.mxu0 %v3129_v7  ;;  %vm7344_vm15 = vcmp.eq.f32.partialorder %v2731_v20, 8.507059e+37  ;;  %v2734_v60 = vor.u32 1.1754944e-38, %v2733_v38  ;;  %v3034_v15 = vpack.c.bf16 %v3012_v4, %v3012_v4 }
 0x273   :  { %v5867_v61 = vpop.eup %5866  ;;  %v5419_v8 = vmul.f32 -1.442695, %v2548_v40  ;;  %v2711_v50 = vadd.f32 %v7279_v19, %v2710_v1  ;;  %v2988_v24 = vrot.slane %v7318_v55, 1  ;;  %v2229_v1 = vadd.f32 %v7277_v0, %v2180_v2 }
 0x274   :  { %v5869_v10 = vpop.eup %5868  ;;  %v7323_v6 = vadd.f32 1.0, %v5867_v61  ;;  %v2231_v61 = vadd.f32 %v2230_v34, %v2182_v5  ;;  %v3162_v34 = vunpack.c.l.b16 %v3034_v15 }
 0x275   :  { %v2723_v49 = vmul.f32 %v5869_v10, %v7285_v33  ;;  %5870 = vpow2.f32 %v5419_v8  ;;  %v3011_v31 = vsel %vm628_vm7, %v2987_v22, %v2988_v24  ;;  %v2715_v45 = vsel %vm2714_vm13, %v7279_v19, %v2711_v50 }
 0x276   :  { %5872 = vrcp.f32 %v7323_v6  ;;  %v3019_v62 = vmul.f32 %v9151_v53, %v3011_v31  ;;  %v2720_v26 = vsel %vm7326_vm12, %v2719_v32, %v2715_v45  ;;  %vm2728_vm1 = vweird.f32 %v5869_v10  ;;  %v2184_v11 = vpop.f32.mrf.mxu3 }
 0x277   :  { %v2724_v3 = vsub.f32 1.0, %v2723_v49  ;;  %v2877_v21 = vmul.f32 %v2720_v26, %v2420_v43  ;;  %v2398_v22 = vmax.f32 %v2396_v18, %v2397_v28  ;;  %v2908_v19 = vpack.c.bf16 %v7318_v55, %v7318_v55  ;;  %vm2729_vm2 = vmor %vm2727_vm14, %vm2728_vm1  ;;  %v5743_v28 = vld [vmem:[#allocation10 + $0x20] sm:$0xff] }
 0x278   :  { %v3035_v40 = vpack.c.bf16 %v3019_v62, %v3019_v62  ;;  %v2748_v32 = vand.u32 2147483648, %v7323_v6  ;;  %v7374_v38 = vadd.f32 %v7305_v51, %v2229_v1  ;;  %v7376_v35 = vadd.f32 %v2279_v58, %v2231_v61  ;;  %3391 = vmatpush.bf16.msrb.mxu3 %v5743_v28  ;;  %v2282_v61 = vpop.f32.mrf.mxu1 }
 0x279   :  { %v2725_v14 = vmul.f32 %v5869_v10, %v2724_v3  ;;  %v7364_v50 = vadd.f32 %v2877_v21, %v7156_v63  ;;  %v2746_v4 = vand.u32 2147483647, %v7323_v6  ;;  %v2399_v33 = vrot.slane %v2398_v22, 1  ;;  %v2233_v3 = vpop.f32.mrf.mxu0 }
 0x27a   :  { %v2550_v36 = vpop.f32.mrf.mxu2  ;;  %v3163_v18 = vunpack.c.l.b16 %v3035_v40  ;;  %vm2742_vm3 = vweird.f32 %v7323_v6  ;;  %v2749_v51 = vor.u32 1.1754944e-38, %v2748_v32  ;;  %v3116_v53 = vunpack.c.l.b16 %v2908_v19 }
 0x27b   :  { %v5871_v20 = vpop.eup %5870  ;;  %v2726_v7 = vadd.f32 %v5869_v10, %v2725_v14  ;;  %v5420_v8 = vmul.f32 -1.442695, %v2550_v36  ;;  %v2909_v45 = vpack.c.bf16 %v7364_v50, %v7364_v50  ;;  %v2401_v57 = vmax.f32 %v7374_v38, %v7376_v35 }
 0x27c   :  { %v7366_v43 = vpop.eup %5872  ;;  %v7371_v0 = vadd.f32 1.0, %v5871_v20  ;;  %v3177_v31 = vpack.c.b16 %v3163_v18, %v3162_v34  ;;  %v2989_v15 = vrot.slane %v7364_v50, 1  ;;  %vm7395_vm4 = vcmp.eq.f32.partialorder %v2746_v4, 8.507059e+37 }
 0x27d   :  { %v2730_v49 = vsel %vm2729_vm2, %v5869_v10, %v2726_v7  ;;  %v2738_v63 = vmul.f32 %v7366_v43, %v7323_v6  ;;  %5874 = vpow2.f32 %v5420_v8  ;;  %v2922_v10 = vrot.slane %v7221_v16, 7 }
 0x27e   :  { %v2735_v2 = vsel %vm7344_vm15, %v2734_v60, %v2730_v49  ;;  %5876 = vrcp.f32 %v7371_v0  ;;  %vm2743_vm5 = vweird.f32 %v7366_v43  ;;  %v7400_v14 = vmax.f32 %v2398_v22, %v2399_v33  ;;  %3499 = vmatmul.bf16.gmra.mxu1 %v3177_v31  ;;  %v2186_v4 = vpop.f32.mrf.mxu3 }
 0x27f   :  { %v2739_v5 = vsub.f32 1.0, %v2738_v63  ;;  %v2878_v62 = vmul.f32 %v2735_v2, %v2421_v42  ;;  %v3117_v21 = vunpack.c.l.b16 %v2909_v45  ;;  %v2402_v58 = vrot.slane %v2401_v57, 4  ;;  %vm2744_vm8 = vmor %vm2742_vm3, %vm2743_vm5  ;;  %v9156_v45 = vld [vmem:[#allocation36_spill] sm:$0xff] }
 0x280   :  { %v2761_v40 = vand.u32 2147483647, %v7371_v0  ;;  %v3010_v42 = vsel %vm628_vm7, %v2988_v24, %v2989_v15  ;;  %v2763_v49 = vand.u32 2147483648, %v7371_v0  ;;  %vm2757_vm6 = vweird.f32 %v7371_v0 }
 0x281   :  { %v2740_v60 = vmul.f32 %v7366_v43, %v2739_v5  ;;  %v7404_v48 = vadd.f32 %v2878_v62, %v7176_v23  ;;  %v3130_v7 = vpack.c.b16 %v3117_v21, %v3116_v53  ;;  %v2403_v32 = vmax.f32 %v2401_v57, %v2402_v58  ;;  %v2235_v21 = vpop.f32.mrf.mxu0 }
 0x282   :  { %v2553_v1 = vpop.f32.mrf.mxu2  ;;  %v2425_v24 = vsub.f32 %v7260_v25, %v7400_v14  ;;  %v2185_v2 = vadd.f32 %v7089_v41, %v2184_v11  ;;  %v3036_v5 = vpack.c.bf16 %v3010_v42, %v3010_v42  ;;  %vm7429_vm9 = vcmp.eq.f32.partialorder %v2761_v40, 8.507059e+37 }
 0x283   :  { %v5875_v36 = vpop.eup %5874  ;;  %v5421_v19 = vmul.f32 -1.442695, %v2553_v1  ;;  %v2741_v8 = vadd.f32 %v7366_v43, %v2740_v60  ;;  %v2990_v63 = vrot.slane %v7404_v48, 1  ;;  %3455 = vmatmul.bf16.gmra.mxu0 %v3130_v7  ;;  %v2404_v34 = vrot.slane %v2403_v32, 2 }
 0x284   :  { %v5877_v20 = vpop.eup %5876  ;;  %v7410_v22 = vadd.f32 1.0, %v5875_v36  ;;  %v2187_v57 = vadd.f32 %v7089_v41, %v2186_v4  ;;  %v2764_v60 = vor.u32 1.1754944e-38, %v2763_v49  ;;  %v2234_v40 = vadd.f32 %v2233_v3, %v2185_v2  ;;  %v2284_v49 = vpop.f32.mrf.mxu1  ;;  %v5742_v2 = vld [vmem:[#allocation10 + $0x18] sm:$0xff] }
 0x285   :  { %v2753_v18 = vmul.f32 %v5877_v20, %v7371_v0  ;;  %5878 = vpow2.f32 %v5421_v19  ;;  %v3009_v28 = vsel %vm628_vm7, %v2989_v15, %v2990_v63  ;;  %v2745_v11 = vsel %vm2744_vm8, %v7366_v43, %v2741_v8  ;;  %3392 = vmatpush.bf16.msrb.mxu3 %v5742_v2 }
 0x286   :  { %5880 = vrcp.f32 %v7410_v22  ;;  %v3021_v53 = vmul.f32 %v9156_v45, %v3009_v28  ;;  %vm2758_vm10 = vweird.f32 %v5877_v20  ;;  %v2750_v62 = vsel %vm7395_vm4, %v2749_v51, %v2745_v11 }
 0x287   :  { %v2754_v33 = vsub.f32 1.0, %v2753_v18  ;;  %v2776_v15 = vand.u32 2147483647, %v7410_v22  ;;  %v2879_v36 = vmul.f32 %v2750_v62, %v2422_v39  ;;  %v2405_v41 = vmax.f32 %v2403_v32, %v2404_v34  ;;  %vm2759_vm11 = vmor %vm2757_vm6, %vm2758_vm10 }
 0x288   :  { %v3037_v58 = vpack.c.bf16 %v3021_v53, %v3021_v53  ;;  %v3164_v7 = vunpack.c.l.b16 %v3036_v5  ;;  %v2236_v12 = vadd.f32 %v2235_v21, %v2187_v57  ;;  %v2910_v32 = vpack.c.bf16 %v7404_v48, %v7404_v48 }
 0x289   :  { %v2755_v6 = vmul.f32 %v5877_v20, %v2754_v33  ;;  %v7450_v18 = vadd.f32 %v2879_v36, %v7176_v23  ;;  %v2426_v4 = vsub.f32 %v7267_v47, %v7400_v14  ;;  %v7461_v23 = vadd.f32 %v2282_v61, %v2234_v40 }
 0x28a   :  { %v2555_v1 = vpop.f32.mrf.mxu2  ;;  %v3165_v26 = vunpack.c.l.b16 %v3037_v58  ;;  %vm2772_vm12 = vweird.f32 %v7410_v22  ;;  %v2778_v33 = vand.u32 2147483648, %v7410_v22  ;;  %vm7465_vm13 = vcmp.eq.f32.partialorder %v2776_v15, 8.507059e+37 }
 0x28b   :  { %v5879_v19 = vpop.eup %5878  ;;  %v2756_v43 = vadd.f32 %v5877_v20, %v2755_v6  ;;  %v5422_v42 = vmul.f32 -1.442695, %v2555_v1  ;;  %v2911_v5 = vpack.c.bf16 %v7450_v18, %v7450_v18  ;;  %v7471_v31 = vadd.f32 %v2284_v49, %v2236_v12  ;;  %v9161_v49 = vld [vmem:[#allocation37_spill] sm:$0xff] }
 0x28c   :  { %v7442_v8 = vpop.eup %5880  ;;  %v7447_v51 = vadd.f32 1.0, %v5879_v19  ;;  %v3178_v34 = vpack.c.b16 %v3165_v26, %v3164_v7  ;;  %v2406_v53 = vrot.slane %v2405_v41, 1  ;;  %v3118_v11 = vunpack.c.l.b16 %v2910_v32 }
 0x28d   :  { %v2760_v39 = vsel %vm2759_vm11, %v5877_v20, %v2756_v43  ;;  %v2768_v3 = vmul.f32 %v7442_v8, %v7410_v22  ;;  %5882 = vpow2.f32 %v5422_v42  ;;  %vm2773_vm14 = vweird.f32 %v7442_v8 }
 0x28e   :  { %v2765_v0 = vsel %vm7429_vm9, %v2764_v60, %v2760_v39  ;;  %5884 = vrcp.f32 %v7447_v51  ;;  %3504 = vmatmul.bf16.gmra.mxu1 %v3178_v34  ;;  %v3119_v57 = vunpack.c.l.b16 %v2911_v5  ;;  %v2408_v60 = vmax.f32 %v7461_v23, %v7471_v31  ;;  %vm2774_vm15 = vmor %vm2772_vm12, %vm2773_vm14 }
 0x28f   :  { %v2769_v20 = vsub.f32 1.0, %v2768_v3  ;;  %v2880_v61 = vmul.f32 %v2765_v0, %v2423_v13  ;;  %v2991_v21 = vrot.slane %v7450_v18, 1  ;;  %v2791_v13 = vand.u32 2147483647, %v7447_v51 }
 0x290   :  { %v2949_v58 = vsel %vm563_vm0, %v2921_v30, %v2922_v10  ;;  %v3131_v19 = vpack.c.b16 %v3119_v57, %v3118_v11  ;;  %v2409_v43 = vrot.slane %v2408_v60, 4  ;;  %v2793_v26 = vand.u32 2147483648, %v7447_v51 }
 0x291   :  { %v2770_v45 = vmul.f32 %v7442_v8, %v2769_v20  ;;  %v7481_v62 = vadd.f32 %v2880_v61, %v7294_v27  ;;  %v3008_v17 = vsel %vm628_vm7, %v2990_v63, %v2991_v21  ;;  %v2779_v12 = vor.u32 1.1754944e-38, %v2778_v33 }
 0x292   :  { %v2558_v6 = vpop.f32.mrf.mxu2  ;;  %v7502_v30 = vmax.f32 %v2405_v41, %v2406_v53  ;;  %v2923_v39 = vrot.slane %v7288_v29, 7  ;;  %vm2787_vm1 = vweird.f32 %v7447_v51  ;;  %v2410_v32 = vmax.f32 %v2408_v60, %v2409_v43 }
 0x293   :  { %v5883_v15 = vpop.eup %5882  ;;  %v2771_v56 = vadd.f32 %v7442_v8, %v2770_v45  ;;  %v5423_v1 = vmul.f32 -1.442695, %v2558_v6  ;;  %v2992_v42 = vrot.slane %v7481_v62, 1  ;;  %3460 = vmatmul.bf16.gmra.mxu0 %v3131_v19  ;;  %vm7514_vm2 = vcmp.eq.f32.partialorder %v2791_v13, 8.507059e+37  ;;  %v5741_v19 = vld [vmem:[#allocation10 + $0x10] sm:$0xff] }
 0x294   :  { %v5885_v36 = vpop.eup %5884  ;;  %v7492_v40 = vadd.f32 1.0, %v5883_v15  ;;  %v3038_v2 = vpack.c.bf16 %v3008_v17, %v3008_v17  ;;  %v2794_v33 = vor.u32 1.1754944e-38, %v2793_v26  ;;  %v2427_v5 = vsub.f32 %v7374_v38, %v7502_v30  ;;  %3393 = vmatpush.bf16.msrb.mxu3 %v5741_v19 }
 0x295   :  { %v2783_v7 = vmul.f32 %v5885_v36, %v7447_v51  ;;  %5886 = vpow2.f32 %v5423_v1  ;;  %v3007_v63 = vsel %vm628_vm7, %v2991_v21, %v2992_v42  ;;  %v2775_v20 = vsel %vm2774_vm15, %v7442_v8, %v2771_v56 }
 0x296   :  { %5888 = vrcp.f32 %v7492_v40  ;;  %v3023_v0 = vmul.f32 %v9161_v49, %v3007_v63  ;;  %vm2788_vm3 = vweird.f32 %v5885_v36  ;;  %v2780_v34 = vsel %vm7465_vm13, %v2779_v12, %v2775_v20 }
 0x297   :  { %v2784_v3 = vsub.f32 1.0, %v2783_v7  ;;  %v2881_v53 = vmul.f32 %v2780_v34, %v2424_v59  ;;  %v7533_v8 = vsel %vm563_vm0, %v2922_v10, %v2923_v39  ;;  %v2808_v57 = vand.u32 2147483648, %v7492_v40  ;;  %vm2789_vm4 = vmor %vm2787_vm1, %vm2788_vm3 }
 0x298   :  { %v3039_v45 = vpack.c.bf16 %v3023_v0, %v3023_v0  ;;  %v2411_v60 = vrot.slane %v2410_v32, 2  ;;  %v3166_v59 = vunpack.c.l.b16 %v3038_v2  ;;  %v2912_v13 = vpack.c.bf16 %v7481_v62, %v7481_v62 }
 0x299   :  { %v2785_v22 = vmul.f32 %v5885_v36, %v2784_v3  ;;  %v7541_v16 = vadd.f32 %v2881_v53, %v7294_v27  ;;  %vm2802_vm5 = vweird.f32 %v7492_v40  ;;  %v2428_v51 = vsub.f32 %v7376_v35, %v7502_v30  ;;  %v9162_v3 = vld [vmem:[#allocation29_spill] sm:$0xff] }
 0x29a   :  { %v2560_v61 = vpop.f32.mrf.mxu2  ;;  %v3167_v15 = vunpack.c.l.b16 %v3039_v45  ;;  %v2412_v43 = vmax.f32 %v2410_v32, %v2411_v60  ;;  %v2954_v63 = vmul.f32 %v9162_v3, %v2949_v58  ;;  %v2809_v49 = vor.u32 1.1754944e-38, %v2808_v57  ;;  %v5740_v45 = vld [vmem:[#allocation10 + $0x8] sm:$0xff] }
 0x29b   :  { %v5887_v11 = vpop.eup %5886  ;;  %v2786_v28 = vadd.f32 %v5885_v36, %v2785_v22  ;;  %v5424_v6 = vmul.f32 -1.442695, %v2560_v61  ;;  %v2913_v26 = vpack.c.bf16 %v7541_v16, %v7541_v16  ;;  %v2993_v12 = vrot.slane %v7541_v16, 1  ;;  %3394 = vmatpush.bf16.msrb.mxu3 %v5740_v45 }
 0x29c   :  { %v5889_v21 = vpop.eup %5888  ;;  %v7538_v9 = vadd.f32 1.0, %v5887_v11  ;;  %v3179_v7 = vpack.c.b16 %v3167_v15, %v3166_v59  ;;  %v3120_v0 = vunpack.c.l.b16 %v2912_v13  ;;  %v2413_v34 = vrot.slane %v2412_v43, 1 }
 0x29d   :  { %v2790_v56 = vsel %vm2789_vm4, %v5885_v36, %v2786_v28  ;;  %v2798_v10 = vmul.f32 %v5889_v21, %v7492_v40  ;;  %5890 = vpow2.f32 %v5424_v6  ;;  %v2806_v36 = vand.u32 2147483647, %v7492_v40 }
 0x29e   :  { %v2795_v1 = vsel %vm7514_vm2, %v2794_v33, %v2790_v56  ;;  %5892 = vrcp.f32 %v7538_v9  ;;  %vm2803_vm6 = vweird.f32 %v5889_v21  ;;  %v2821_v2 = vand.u32 2147483647, %v7538_v9  ;;  %3509 = vmatmul.bf16.gmra.mxu1 %v3179_v7  ;;  %v5739_v56 = vld [vmem:[#allocation10] sm:$0xff] }
 0x29f   :  { %v2799_v27 = vsub.f32 1.0, %v2798_v10  ;;  %v2882_v17 = vmul.f32 %v2795_v1, %v2425_v24  ;;  %v2823_v32 = vand.u32 2147483648, %v7538_v9  ;;  %v3121_v20 = vunpack.c.l.b16 %v2913_v26  ;;  %vm7572_vm8 = vmor %vm2802_vm5, %vm2803_vm6  ;;  %3395 = vmatpush.bf16.msrb.mxu3 %v5739_v56 }
 0x2a0   :  { %v3006_v58 = vsel %vm628_vm7, %v2992_v42, %v2993_v12  ;;  %v2970_v60 = vpack.c.bf16 %v2954_v63, %v2954_v63  ;;  %v2971_v40 = vpack.c.bf16 %v7533_v8, %v7533_v8  ;;  %vm2807_vm9 = vcmp.eq.f32.partialorder %v2806_v36, 8.507059e+37  ;;  %v9167_v8 = vld [vmem:[#allocation38_spill] sm:$0xff] }
 0x2a1   :  { %v2800_v41 = vmul.f32 %v5889_v21, %v2799_v27  ;;  %v7563_v33 = vadd.f32 %v2882_v17, %v7400_v14  ;;  %v3132_v57 = vpack.c.b16 %v3121_v20, %v3120_v0  ;;  %vm2817_vm10 = vweird.f32 %v7538_v9 }
 0x2a2   :  { %v2563_v22 = vpop.f32.mrf.mxu2  ;;  %v3040_v15 = vpack.c.bf16 %v3006_v58, %v3006_v58  ;;  %vm7586_vm11 = vcmp.eq.f32.partialorder %v2821_v2, 8.507059e+37  ;;  %v2824_v19 = vor.u32 1.1754944e-38, %v2823_v32  ;;  %v7592_v27 = vmax.f32 %v2412_v43, %v2413_v34 }
 0x2a3   :  { %v5891_v25 = vpop.eup %5890  ;;  %v2801_v24 = vadd.f32 %v5889_v21, %v2800_v41  ;;  %v5425_v61 = vmul.f32 -1.442695, %v2563_v22  ;;  %v2994_v6 = vrot.slane %v7563_v33, 1  ;;  %3465 = vmatmul.bf16.gmra.mxu0 %v3132_v57  ;;  %v7598_v17 = vunpack.c.l.b16 %v2970_v60 }
 0x2a4   :  { %v5893_v53 = vpop.eup %5892  ;;  %v7576_v28 = vadd.f32 1.0, %v5891_v25  ;;  %v7600_v3 = vunpack.c.l.b16 %v2971_v40  ;;  %v2914_v47 = vpack.c.bf16 %v7563_v33, %v7563_v33  ;;  %v2924_v11 = vrot.slane %v7318_v55, 7 }
 0x2a5   :  { %v2813_v59 = vmul.f32 %v5893_v53, %v7538_v9  ;;  %5894 = vpow2.f32 %v5425_v61  ;;  %v2805_v42 = vsel %vm7572_vm8, %v5889_v21, %v2801_v24  ;;  %v3005_v21 = vsel %vm628_vm7, %v2993_v12, %v2994_v6 }
 0x2a6   :  { %5896 = vrcp.f32 %v7576_v28  ;;  %v2810_v1 = vsel %vm2807_vm9, %v2809_v49, %v2805_v42  ;;  %v3025_v36 = vmul.f32 %v9167_v8, %v3005_v21  ;;  %vm2818_vm12 = vweird.f32 %v5893_v53  ;;  %v9170_v8 = vld [vmem:[#allocation33_spill] sm:$0xff] }
 0x2a7   :  { %v2814_v10 = vsub.f32 1.0, %v2813_v59  ;;  %v2883_v7 = vmul.f32 %v2810_v1, %v2426_v4  ;;  %v2836_v63 = vand.u32 2147483647, %v7576_v28  ;;  %v3168_v49 = vunpack.c.l.b16 %v3040_v15  ;;  %vm2819_vm13 = vmor %vm2817_vm10, %vm2818_vm12 }
 0x2a8   :  { %v3041_v41 = vpack.c.bf16 %v3025_v36, %v3025_v36  ;;  %v3081_v4 = vpack.c.b16 %v7600_v3, %v7598_v17  ;;  %v2925_v24 = vrot.slane %v7364_v50, 7  ;;  %v2429_v9 = vsub.f32 %v7461_v23, %v7592_v27  ;;  %v221_v3 = vld [vmem:[%s9179_s24 + $0x58] sm:$0xff] }
 0x2a9   :  { %v2815_v26 = vmul.f32 %v5893_v53, %v2814_v10  ;;  %v7604_v43 = vadd.f32 %v2883_v7, %v7400_v14  ;;  %v2838_v60 = vand.u32 2147483648, %v7576_v28  ;;  %vm2832_vm14 = vweird.f32 %v7576_v28 }
 0x2aa   :  { %v2565_v12 = vpop.f32.mrf.mxu2  ;;  %v3169_v25 = vunpack.c.l.b16 %v3041_v41  ;;  %v3122_v59 = vunpack.c.l.b16 %v2914_v47  ;;  %v2946_v40 = vsel %vm563_vm0, %v2924_v11, %v2925_v24  ;;  %vm7633_vm1 = vcmp.eq.f32.partialorder %v2836_v63, 8.507059e+37 }
 0x2ab   :  { %v5895_v0 = vpop.eup %5894  ;;  %v2816_v2 = vadd.f32 %v5893_v53, %v2815_v26  ;;  %v5426_v32 = vmul.f32 -1.442695, %v2565_v12  ;;  %v2915_v14 = vpack.c.bf16 %v7604_v43, %v7604_v43  ;;  %v2995_v58 = vrot.slane %v7604_v43, 1 }
 0x2ac   :  { %v5897_v20 = vpop.eup %5896  ;;  %v7613_v22 = vadd.f32 1.0, %v5895_v0  ;;  %v3180_v50 = vpack.c.b16 %v3169_v25, %v3168_v49  ;;  %v2947_v38 = vsel %vm563_vm0, %v2923_v39, %v2924_v11  ;;  %v2973_v7 = vpack.c.bf16 %v2946_v40, %v2946_v40 }
 0x2ad   :  { %v2820_v34 = vsel %vm2819_vm13, %v5893_v53, %v2816_v2  ;;  %v2828_v61 = vmul.f32 %v5897_v20, %v7576_v28  ;;  %5898 = vpow2.f32 %v5426_v32  ;;  %v3123_v53 = vunpack.c.l.b16 %v2915_v14 }
 0x2ae   :  { %v2825_v45 = vsel %vm7586_vm11, %v2824_v19, %v2820_v34  ;;  %5900 = vrcp.f32 %v7613_v22  ;;  %vm2833_vm15 = vweird.f32 %v5897_v20  ;;  %v3004_v55 = vsel %vm628_vm7, %v2994_v6, %v2995_v58  ;;  %3514 = vmatmul.bf16.gmra.mxu1 %v3180_v50 }
 0x2af   :  { %v2829_v57 = vsub.f32 1.0, %v2828_v61  ;;  %v2884_v42 = vmul.f32 %v2825_v45, %v2427_v5  ;;  %v2853_v10 = vand.u32 2147483648, %v7613_v22  ;;  %v3133_v13 = vpack.c.b16 %v3123_v53, %v3122_v59  ;;  %vm7650_vm2 = vmor %vm2832_vm14, %vm2833_vm15  ;;  %v9174_v53 = vld [vmem:[#allocation35_spill] sm:$0xff] }
 0x2b0   :  { %v2839_v19 = vor.u32 1.1754944e-38, %v2838_v60  ;;  %v2956_v36 = vmul.f32 %v9170_v8, %v2947_v38  ;;  %v3042_v12 = vpack.c.bf16 %v3004_v55, %v3004_v55  ;;  %v2926_v39 = vrot.slane %v7404_v48, 7 }
 0x2b1   :  { %v2830_v15 = vmul.f32 %v5897_v20, %v2829_v57  ;;  %v7641_v21 = vadd.f32 %v2884_v42, %v7502_v30  ;;  %v2927_v2 = vrot.slane %v7450_v18, 7  ;;  %vm2847_vm3 = vweird.f32 %v7613_v22  ;;  %v9173_v18 = vld [vmem:[#allocation39_spill] sm:$0xff] }
 0x2b2   :  { %v2972_v0 = vpack.c.bf16 %v2956_v36, %v2956_v36  ;;  %v2851_v28 = vand.u32 2147483647, %v7613_v22  ;;  %v2854_v32 = vor.u32 1.1754944e-38, %v2853_v10  ;;  %v7671_v25 = vunpack.c.l.b16 %v2973_v7 }
 0x2b3   :  { %v5899_v5 = vpop.eup %5898  ;;  %v2831_v1 = vadd.f32 %v5897_v20, %v2830_v15  ;;  %v2996_v29 = vrot.slane %v7641_v21, 1  ;;  %3470 = vmatmul.bf16.gmra.mxu0 %v3133_v13  ;;  %v3170_v34 = vunpack.c.l.b16 %v3042_v12  ;;  %v2944_v57 = vsel %vm563_vm0, %v2926_v39, %v2927_v2 }
 0x2b4   :  { %v5901_v26 = vpop.eup %5900  ;;  %v7654_v63 = vadd.f32 1.0, %v5899_v5  ;;  %v7677_v11 = vunpack.c.l.b16 %v2972_v0  ;;  %v2975_v42 = vpack.c.bf16 %v2944_v57, %v2944_v57  ;;  %v2916_v35 = vpack.c.bf16 %v7641_v21, %v7641_v21  ;;  %v9175_v0 = vld [vmem:[#allocation24_spill] sm:$0xff] }
 0x2b5   :  { %v2843_v41 = vmul.f32 %v5901_v26, %v7613_v22  ;;  %v2835_v49 = vsel %vm7650_vm2, %v5897_v20, %v2831_v1  ;;  %v3003_v48 = vsel %vm628_vm7, %v2995_v58, %v2996_v29  ;;  %vm2848_vm4 = vweird.f32 %v5901_v26 }
 0x2b6   :  { %5902 = vrcp.f32 %v7654_v63  ;;  %v2840_v20 = vsel %vm7633_vm1, %v2839_v19, %v2835_v49  ;;  %v3027_v14 = vmul.f32 %v9173_v18, %v3003_v48  ;;  %v2945_v58 = vsel %vm563_vm0, %v2925_v24, %v2926_v39  ;;  %vm2849_vm5 = vmor %vm2847_vm3, %vm2848_vm4 }
 0x2b7   :  { %v2844_v47 = vsub.f32 1.0, %v2843_v41  ;;  %v2885_v61 = vmul.f32 %v2840_v20, %v2428_v51  ;;  %v2958_v59 = vmul.f32 %v9174_v53, %v2945_v58  ;;  %v3082_v51 = vpack.c.b16 %v7671_v25, %v7677_v11  ;;  %v219_v25 = vld [vmem:[%s9179_s24 + $0x48] sm:$0xff]  ;;  %v222_v11 = vld [vmem:[%s9179_s24 + $0x60] sm:$0xff] }
 0x2b8   :  { %v3043_v60 = vpack.c.bf16 %v3027_v14, %v3027_v14  ;;  %v2928_v15 = vrot.slane %v7481_v62, 7  ;;  %v2929_v10 = vrot.slane %v7541_v16, 7  ;;  %vm2852_vm6 = vcmp.eq.f32.partialorder %v2851_v28, 8.507059e+37 }
 0x2b9   :  { %v2845_v45 = vmul.f32 %v5901_v26, %v2844_v47  ;;  %v7684_v50 = vadd.f32 %v2885_v61, %v7502_v30  ;;  %v2974_v55 = vpack.c.bf16 %v2958_v59, %v2958_v59  ;;  %v7699_v5 = vunpack.c.l.b16 %v2975_v42 }
 0x2ba   :  { %v3171_v24 = vunpack.c.l.b16 %v3043_v60  ;;  %v2866_v62 = vand.u32 2147483647, %v7654_v63  ;;  %v2868_v36 = vand.u32 2147483648, %v7654_v63  ;;  %v3124_v16 = vunpack.c.l.b16 %v2916_v35 }
 0x2bb   :  { %v2846_v40 = vadd.f32 %v5901_v26, %v2845_v45  ;;  %v2917_v30 = vpack.c.bf16 %v7684_v50, %v7684_v50  ;;  %v7706_v6 = vunpack.c.l.b16 %v2974_v55  ;;  %v2942_v12 = vsel %vm563_vm0, %v2928_v15, %v2929_v10  ;;  %v9176_v45 = vld [vmem:[#allocation42_spill] sm:$0xff] }
 0x2bc   :  { %v5903_v56 = vpop.eup %5902  ;;  %v3181_v19 = vpack.c.b16 %v3171_v24, %v3170_v34  ;;  %v2943_v39 = vsel %vm563_vm0, %v2927_v2, %v2928_v15  ;;  %v2930_v47 = vrot.slane %v7563_v33, 7  ;;  %v2430_v48 = vsub.f32 %v7471_v31, %v7592_v27  ;;  %v9177_v15 = vld [vmem:[#allocation25_spill] sm:$0xff] }
 0x2bd   :  { %v2850_v13 = vsel %vm2849_vm5, %v5901_v26, %v2846_v40  ;;  %v2858_v38 = vmul.f32 %v5903_v56, %v7654_v63  ;;  %v3125_v8 = vunpack.c.l.b16 %v2917_v30  ;;  %v2997_v26 = vrot.slane %v7684_v50, 1 }
 0x2be   :  { %v2855_v1 = vsel %vm2852_vm6, %v2854_v32, %v2850_v13  ;;  %vm2863_vm8 = vweird.f32 %v5903_v56  ;;  %v3083_v23 = vpack.c.b16 %v7699_v5, %v7706_v6  ;;  %3519 = vmatmul.bf16.gmra.mxu1 %v3181_v19  ;;  %v2960_v28 = vmul.f32 %v9175_v0, %v2943_v39  ;;  %v9184_v5 = vld [vmem:[#allocation51_spill] sm:$0xff] }
 0x2bf   :  { %v2859_v22 = vsub.f32 1.0, %v2858_v38  ;;  %v2886_v7 = vmul.f32 %v2855_v1, %v2429_v9  ;;  %v3134_v9 = vpack.c.b16 %v3125_v8, %v3124_v16  ;;  %v2977_v32 = vpack.c.bf16 %v2942_v12, %v2942_v12 }
 0x2c0   :  { %vm2862_vm9 = vweird.f32 %v7654_v63  ;;  %v2869_v18 = vor.u32 1.1754944e-38, %v2868_v36  ;;  %v2976_v14 = vpack.c.bf16 %v2960_v28, %v2960_v28  ;;  %v2941_v61 = vsel %vm563_vm0, %v2929_v10, %v2930_v47  ;;  %v210_v28 = vld [vmem:[%s9179_s24] sm:$0xff] }
 0x2c1   :  { %v2860_v41 = vmul.f32 %v5903_v56, %v2859_v22  ;;  %v7714_v49 = vadd.f32 %v2886_v7, %v7592_v27  ;;  %vm2864_vm10 = vmor %vm2862_vm9, %vm2863_vm8  ;;  %v7724_v34 = vunpack.c.l.b16 %v2977_v32  ;;  %vm2867_vm11 = vcmp.eq.f32.partialorder %v2866_v62, 8.507059e+37  ;;  %v9178_v22 = vld [vmem:[#allocation27_spill] sm:$0xff] }
 0x2c2   :  { %v3002_v31 = vsel %vm628_vm7, %v2996_v29, %v2997_v26  ;;  %v7735_v60 = vunpack.c.l.b16 %v2976_v14  ;;  %v2962_v24 = vmul.f32 %v9177_v15, %v2941_v61  ;;  %v2931_v29 = vrot.slane %v7604_v43, 7  ;;  %v9181_v14 = vld [vmem:[#allocation26_spill] sm:$0xff] }
 0x2c3   :  { %v2861_v20 = vadd.f32 %v5903_v56, %v2860_v41  ;;  %v2998_v2 = vrot.slane %v7714_v49, 1  ;;  %3475 = vmatmul.bf16.gmra.mxu0 %v3134_v9  ;;  %v3044_v59 = vpack.c.bf16 %v3002_v31, %v3002_v31  ;;  %v2918_v13 = vpack.c.bf16 %v7714_v49, %v7714_v49 }
 0x2c4   :  { %v3084_v40 = vpack.c.b16 %v7724_v34, %v7735_v60  ;;  %v2940_v38 = vsel %vm563_vm0, %v2930_v47, %v2931_v29  ;;  %v2969_v43 = vpack.c.bf16 %v7275_v44, %v7275_v44  ;;  %v2978_v62 = vpack.c.bf16 %v2962_v24, %v2962_v24 }
 0x2c5   :  { %v3001_v33 = vsel %vm628_vm7, %v2997_v26, %v2998_v2  ;;  %v2865_v63 = vsel %vm2864_vm10, %v5903_v56, %v2861_v20  ;;  %v3172_v10 = vunpack.c.l.b16 %v3044_v59  ;;  %v6293_v7 = vmov 0  }
 0x2c6   :  { %v3029_v57 = vmul.f32 %v9176_v45, %v3001_v33  ;;  %v2870_v58 = vsel %vm2867_vm11, %v2869_v18, %v2865_v63  ;;  %5827 = vset.pattern.permute.xlu0 %v6293_v7  ;;  %5828 = vset.pattern.permute.xlu1 %v6293_v7  ;;  %v2979_v16 = vpack.c.bf16 %v2940_v38, %v2940_v38  ;;  %v3126_v26 = vunpack.c.l.b16 %v2918_v13  ;;  %v212_v63 = vld [vmem:[%s9179_s24 + $0x10] sm:$0xff]  ;;  %v9182_v13 = vld [vmem:[#allocation28_spill] sm:$0xff] }
 0x2c7   :  { %v2887_v53 = vmul.f32 %v2870_v58, %v2430_v48  ;;  %5829 = vset.pattern.permute.xlu2 %v6293_v7  ;;  %v7765_v44 = vunpack.c.l.b16 %v2978_v62  ;;  %v3065_v0 = vunpack.c.l.b16 %v2969_v43  ;;  %v2932_v32 = vrot.slane %v7641_v21, 7  ;;  %3569 = vperm.xlu0 %5827, %v210_v28   ;;  %v211_v21 = vld [vmem:[%s9179_s24 + $0x8] sm:$0xff] }
 0x2c8   :  { %v3045_v42 = vpack.c.bf16 %v3029_v57, %v3029_v57  ;;  %v7767_v39 = vunpack.c.l.b16 %v2979_v16  ;;  %v2933_v45 = vrot.slane %v7684_v50, 7  ;;  %3579 = vperm.xlu1 %5828, %v212_v63   ;;  %v213_v50 = vld [vmem:[%s9179_s24 + $0x18] sm:$0xff]  ;;  %v9188_v28 = vld [vmem:[#allocation56_spill] sm:$0xff] }
 0x2c9   :  { %v7740_v35 = vadd.f32 %v2887_v53, %v7592_v27  ;;  %v2939_v20 = vsel %vm563_vm0, %v2931_v29, %v2932_v32  ;;  %v2934_v29 = vrot.slane %v7714_v49, 7  ;;  %v217_v49 = vld [vmem:[%s9179_s24 + $0x38] sm:$0xff] }
 0x2ca   :  { %v3173_v30 = vunpack.c.l.b16 %v3045_v42  ;;  %v3085_v37 = vpack.c.b16 %v7767_v39, %v7765_v44  ;;  %v2964_v61 = vmul.f32 %v9181_v14, %v2939_v20  ;;  %v9189_v14 = vld [vmem:[#allocation58_spill] sm:$0xff] }
 0x2cb   :  { %v2919_v56 = vpack.c.bf16 %v7740_v35, %v7740_v35  ;;  %v2935_v55 = vrot.slane %v7740_v35, 7  ;;  %v2999_v1 = vrot.slane %v7740_v35, 1  ;;  %v214_v35 = vld [vmem:[%s9179_s24 + $0x20] sm:$0xff] }
 0x2cc   :  { %v3182_v19 = vpack.c.b16 %v3173_v30, %v3172_v10  ;;  %v2980_v57 = vpack.c.bf16 %v2964_v61, %v2964_v61  ;;  %v216_v10 = vld [vmem:[%s9179_s24 + $0x30] sm:$0xff]  ;;  %3589 = vperm.xlu2 %5829, %v214_v35  }
 0x2cd   :  { %v2951_v27 = vsel %vm563_vm0, %v2935_v55, %v2920_v46  ;;  %v3127_v8 = vunpack.c.l.b16 %v2919_v56  ;;  %v3015_v46 = vsel %vm628_vm7, %v2999_v1, %v2984_v54  ;;  %v9180_v54 = vld [vmem:[#allocation45_spill] sm:$0xff]  ;;  %v3000_v18 = vsel %vm628_vm7, %v2998_v2, %v2999_v1 }
 0x2ce   :  { %v2952_v36 = vmul.f32 %v9178_v22, %v2951_v27  ;;  %3524 = vmatmul.bf16.gmra.mxu1 %v3182_v19  ;;  %v3031_v48 = vmul.f32 %v9180_v54, %v3015_v46  ;;  %v3046_v31 = vpack.c.bf16 %v3000_v18, %v3000_v18  ;;  %v2938_v2 = vsel %vm563_vm0, %v2932_v32, %v2933_v45  ;;  %v218_v19 = vld [vmem:[%s9179_s24 + $0x40] sm:$0xff] }
 0x2cf   :  { %v3135_v41 = vpack.c.b16 %v3127_v8, %v3126_v26  ;;  %3574 = vperm.xlu0 %5827, %v211_v21   ;;  %v2981_v53 = vpack.c.bf16 %v2938_v2, %v2938_v2  ;;  %v3076_v42 = vunpack.c.l.b16 %v2980_v57  ;;  %v2937_v56 = vsel %vm563_vm0, %v2933_v45, %v2934_v29  ;;  %v9185_v8 = vld [vmem:[#allocation52_spill] sm:$0xff] }
 0x2d0   :  { %v2968_v12 = vpack.c.bf16 %v2952_v36, %v2952_v36  ;;  %v3047_v33 = vpack.c.bf16 %v3031_v48, %v3031_v48  ;;  %v3174_v59 = vunpack.c.l.b16 %v3046_v31  ;;  %3584 = vperm.xlu1 %5828, %v213_v50   ;;  %v2966_v38 = vmul.f32 %v9182_v13, %v2937_v56 }
 0x2d1   :  { %v3077_v15 = vunpack.c.l.b16 %v2981_v53  ;;  %v2936_v43 = vsel %vm563_vm0, %v2934_v29, %v2935_v55  ;;  %v215_v55 = vld [vmem:[%s9179_s24 + $0x28] sm:$0xff] }
 0x2d2   :  { %v3064_v9 = vunpack.c.l.b16 %v2968_v12  ;;  %v3175_v58 = vunpack.c.l.b16 %v3047_v33  ;;  %v2982_v27 = vpack.c.bf16 %v2966_v38, %v2966_v38  ;;  %v2983_v17 = vpack.c.bf16 %v2936_v43, %v2936_v43  ;;  %v9187_v12 = vld [vmem:[#allocation55_spill] sm:$0xff] }
 0x2d3   :  { %3480 = vmatmul.bf16.gmra.mxu0 %v3135_v41  ;;  %v3086_v30 = vpack.c.b16 %v3077_v15, %v3076_v42  ;;  %v7894_v43 = vld [vmem:[%s9032_s11] ss:$0 sm:$0xff] }
 0x2d4   :  { %v3080_v47 = vpack.c.b16 %v3065_v0, %v3064_v9  ;;  %v3183_v24 = vpack.c.b16 %v3175_v58, %v3174_v59  ;;  %v3079_v1 = vunpack.c.l.b16 %v2983_v17  ;;  %3594 = vperm.xlu2 %5829, %v215_v55  }
 0x2d6   :  { %3396 = vmatmul.bf16.vlgmr.msrb.gmra.mxu3 %v3080_v47 }
 0x2d7   :  { %3599 = vperm.xlu0 %5827, %v216_v10  }
 0x2d8   :  { %3604 = vperm.xlu1 %5828, %v217_v49  }
 0x2dc   :  { %3614 = vperm.xlu2 %5829, %v219_v25  }
 0x2de   :  { %3529 = vmatmul.bf16.gmra.mxu1 %v3183_v24  ;;  %v3446_v18 = vpop.f32.mrf.mxu0  ;;  %v9192_v24 = vld [vmem:[#allocation59_spill] sm:$0xff] }
 0x2df   :  { %3624 = vperm.xlu0 %5827, %v221_v3  }
 0x2e0   :  { %3609 = vperm.xlu1 %5828, %v218_v19  }
 0x2e4   :  { %3629 = vperm.xlu2 %5829, %v222_v11  }
 0x2e6   :  { %3401 = vmatmul.bf16.gmra.mxu3 %v3081_v4  ;;  %v3078_v4 = vunpack.c.l.b16 %v2982_v27  ;;  %v7878_v29 = vpop.f32.mrf.mxu0 }
 0x2e8   :  { %v3087_v62 = vpack.c.b16 %v3079_v1, %v3078_v4  ;;  %3619 = vperm.xlu1 %5828, %v220_v52  }
 0x2eb   :  { %v3495_v33 = vpop.f32.mrf.mxu1 }
 0x2f3   :  { %v7882_v10 = vpop.f32.mrf.mxu1 }
 0x2f6   :  { %3406 = vmatmul.bf16.gmra.mxu3 %v3082_v51  ;;  %v7843_v51 = vld [vmem:[%s9183_s10] ss:$0 sm:$0xff] }
 0x2f7   :  { %v899_v6 = vadd.f32 %v7843_v51, %v9184_v5  ;;  %v901_v22 = vadd.f32 %v7843_v51, %v9185_v8  ;;  %v906_v46 = vadd.f32 %v7843_v51, %v9187_v12  ;;  %v909_v32 = vadd.f32 %v7843_v51, %v9188_v28 }
 0x2f8   :  { %v911_v61 = vadd.f32 %v7843_v51, %v9189_v14 }
 0x2f9   :  { %v5076_v34 = vmul.f32 -1.442695, %v901_v22  ;;  %v5078_v39 = vmul.f32 -1.442695, %v906_v46  ;;  %v5079_v48 = vmul.f32 -1.442695, %v909_v32 }
 0x2fa   :  { %v5080_v45 = vmul.f32 -1.442695, %v911_v61 }
 0x306   :  { %3411 = vmatmul.bf16.gmra.mxu3 %v3083_v23  ;;  %v5075_v23 = vmul.f32 -1.442695, %v899_v6 }
 0x308   :  { %5904 = vpow2.f32 %v5075_v23  ;;  %v9195_v23 = vld [vmem:[#allocation61_spill] sm:$0xff] }
 0x309   :  { %5906 = vpow2.f32 %v5076_v34  ;;  %v916_v8 = vadd.f32 %v7843_v51, %v9195_v23 }
 0x30e   :  { %v5905_v60 = vpop.eup %5904 }
 0x30f   :  { %v986_v7 = vadd.f32 1.0, %v5905_v60  ;;  %v5907_v26 = vpop.eup %5906 }
 0x310   :  { %v7853_v44 = vadd.f32 1.0, %v5907_v26  ;;  %v7921_v26 = vpop.f32.mrf.mxu1 }
 0x311   :  { %5908 = vrcp.f32 %v986_v7  ;;  %vm1007_vm0 = vweird.f32 %v986_v7  ;;  %v1013_v57 = vand.u32 2147483648, %v986_v7  ;;  %v1011_v2 = vand.u32 2147483647, %v986_v7 }
 0x312   :  { %vm1022_vm14 = vweird.f32 %v7853_v44  ;;  %v1028_v4 = vand.u32 2147483648, %v7853_v44  ;;  %v1026_v52 = vand.u32 2147483647, %v7853_v44 }
 0x313   :  { %v1014_v50 = vor.u32 1.1754944e-38, %v1013_v57  ;;  %vm1012_vm13 = vcmp.eq.f32.partialorder %v1011_v2, 8.507059e+37 }
 0x314   :  { %v1029_v22 = vor.u32 1.1754944e-38, %v1028_v4  ;;  %vm1027_vm2 = vcmp.eq.f32.partialorder %v1026_v52, 8.507059e+37 }
 0x316   :  { %3416 = vmatmul.bf16.gmra.mxu3 %v3084_v40  ;;  %v9186_v40 = vld [vmem:[#allocation53_spill] sm:$0xff] }
 0x317   :  { %v904_v36 = vadd.f32 %v7843_v51, %v9186_v40  ;;  %v5909_v41 = vpop.eup %5908 }
 0x318   :  { %v1003_v0 = vmul.f32 %v5909_v41, %v986_v7  ;;  %vm1008_vm7 = vweird.f32 %v5909_v41 }
 0x319   :  { %v5077_v16 = vmul.f32 -1.442695, %v904_v36  ;;  %vm7872_vm12 = vmor %vm1007_vm0, %vm1008_vm7  ;;  %v7917_v36 = vpop.f32.mrf.mxu0 }
 0x31a   :  { %v1004_v54 = vsub.f32 1.0, %v1003_v0 }
 0x31b   :  { %5910 = vpow2.f32 %v5077_v16 }
 0x31c   :  { %5912 = vrcp.f32 %v7853_v44  ;;  %v1005_v63 = vmul.f32 %v5909_v41, %v1004_v54  ;;  %v9196_v54 = vld [vmem:[#allocation40_spill] sm:$0xff] }
 0x31d   :  { %5914 = vpow2.f32 %v5078_v39  ;;  %v5082_v39 = vmul.f32 -1.442695, %v916_v8 }
 0x31e   :  { %v1006_v58 = vadd.f32 %v5909_v41, %v1005_v63 }
 0x320   :  { %v1010_v13 = vsel %vm7872_vm12, %v5909_v41, %v1006_v58 }
 0x321   :  { %v5911_v9 = vpop.eup %5910  ;;  %v1015_v3 = vsel %vm1012_vm13, %v1014_v50, %v1010_v13 }
 0x322   :  { %v7860_v47 = vpop.eup %5912  ;;  %v1242_v5 = vpack.c.bf16 %v1015_v3, %v1015_v3 }
 0x323   :  { %v5915_v20 = vpop.eup %5914  ;;  %v1018_v31 = vmul.f32 %v7860_v47, %v7853_v44  ;;  %vm1023_vm15 = vweird.f32 %v7860_v47 }
 0x324   :  { %v7867_v21 = vadd.f32 1.0, %v5915_v20  ;;  %vm7904_vm1 = vmor %vm1022_vm14, %vm1023_vm15  ;;  %v3535_v46 = vunpack.c.l.bf16 %v1242_v5  ;;  %v9201_v5 = vld [vmem:[#allocation41_spill] sm:$0xff] }
 0x325   :  { %v1019_v53 = vsub.f32 1.0, %v1018_v31  ;;  %v921_v23 = vadd.f32 %v7843_v51, %v9201_v5 }
 0x326   :  { %3421 = vmatmul.bf16.gmra.mxu3 %v3085_v37  ;;  %v7858_v37 = vadd.f32 1.0, %v5911_v9  ;;  %vm1052_vm6 = vweird.f32 %v7867_v21 }
 0x327   :  { %v1020_v38 = vmul.f32 %v7860_v47, %v1019_v53 }
 0x328   :  { %5916 = vrcp.f32 %v7858_v37  ;;  %vm1037_vm3 = vweird.f32 %v7858_v37  ;;  %v1043_v9 = vand.u32 2147483648, %v7858_v37  ;;  %v1041_v32 = vand.u32 2147483647, %v7858_v37 }
 0x329   :  { %5918 = vpow2.f32 %v5079_v48  ;;  %v1021_v19 = vadd.f32 %v7860_v47, %v1020_v38  ;;  %v919_v48 = vadd.f32 %v7843_v51, %v9196_v54  ;;  %v3453_v38 = vpop.f32.mrf.mxu0 }
 0x32a   :  { %5920 = vrcp.f32 %v7867_v21  ;;  %vm1042_vm9 = vcmp.eq.f32.partialorder %v1041_v32, 8.507059e+37 }
 0x32b   :  { %5922 = vpow2.f32 %v5080_v45  ;;  %v1025_v60 = vsel %vm7904_vm1, %v7860_v47, %v1021_v19  ;;  %v6034_v45 = vld [vmem:[%s9079_s5] sm:$0xff]  ;;  %v5083_v4 = vmul.f32 -1.442695, %v919_v48 }
 0x32c   :  { %v1030_v41 = vsel %vm1027_vm2, %v1029_v22, %v1025_v60 }
 0x32d   :  { %v1243_v63 = vpack.c.bf16 %v1030_v41, %v1030_v41 }
 0x32e   :  { %v7870_v59 = vpop.eup %5916 }
 0x32f   :  { %v5919_v15 = vpop.eup %5918  ;;  %v1033_v56 = vmul.f32 %v7870_v59, %v7858_v37  ;;  %vm1038_vm4 = vweird.f32 %v7870_v59  ;;  %v1044_v37 = vor.u32 1.1754944e-38, %v1043_v9  ;;  %v3536_v50 = vunpack.c.l.bf16 %v1243_v63 }
 0x330   :  { %v7887_v49 = vadd.f32 1.0, %v5919_v15  ;;  %v7889_v27 = vpop.eup %5920  ;;  %vm7933_vm5 = vmor %vm1037_vm3, %vm1038_vm4  ;;  %v1058_v15 = vand.u32 2147483648, %v7867_v21 }
 0x331   :  { %v5923_v1 = vpop.eup %5922  ;;  %v1048_v35 = vmul.f32 %v7889_v27, %v7867_v21  ;;  %vm1053_vm8 = vweird.f32 %v7889_v27  ;;  %v3456_v54 = vpop.f32.mrf.mxu0 }
 0x332   :  { %5924 = vrcp.f32 %v7887_v49  ;;  %v7909_v6 = vadd.f32 1.0, %v5923_v1  ;;  %vm7965_vm10 = vmor %vm1052_vm6, %vm1053_vm8  ;;  %v3502_v1 = vpop.f32.mrf.mxu1  ;;  %vm1067_vm0 = vweird.f32 %v7887_v49  ;;  %v1073_v41 = vand.u32 2147483648, %v7887_v49 }
 0x333   :  { %v1049_v16 = vsub.f32 1.0, %v1048_v35  ;;  %v1059_v35 = vor.u32 1.1754944e-38, %v1058_v15  ;;  %v1071_v32 = vand.u32 2147483647, %v7887_v49 }
 0x334   :  { %v1074_v63 = vor.u32 1.1754944e-38, %v1073_v41  ;;  %vm1082_vm14 = vweird.f32 %v7909_v6 }
 0x335   :  { %v1050_v14 = vmul.f32 %v7889_v27, %v1049_v16  ;;  %vm1072_vm13 = vcmp.eq.f32.partialorder %v1071_v32, 8.507059e+37 }
 0x336   :  { %3426 = vmatmul.bf16.gmra.mxu3 %v3086_v30  ;;  %v914_v30 = vadd.f32 %v7843_v51, %v9192_v24 }
 0x337   :  { %v1051_v42 = vadd.f32 %v7889_v27, %v1050_v14 }
 0x338   :  { %v5081_v17 = vmul.f32 -1.442695, %v914_v30  ;;  %v7925_v44 = vpop.eup %5924 }
 0x339   :  { %v7919_v7 = vpop.permute.xlu0 %3569  ;;  %v1063_v61 = vmul.f32 %v7925_v44, %v7887_v49  ;;  %vm1068_vm7 = vweird.f32 %v7925_v44 }
 0x33a   :  { %5926 = vpow2.f32 %v5081_v17  ;;  %vm8006_vm12 = vmor %vm1067_vm0, %vm1068_vm7 }
 0x33b   :  { %5928 = vrcp.f32 %v7909_v6  ;;  %v1064_v13 = vsub.f32 1.0, %v1063_v61  ;;  %v3505_v61 = vpop.f32.mrf.mxu1 }
 0x33c   :  { %5930 = vpow2.f32 %v5082_v39 }
 0x33d   :  { %v1065_v8 = vmul.f32 %v7925_v44, %v1064_v13 }
 0x340   :  { %v5927_v47 = vpop.eup %5926 }
 0x341   :  { %v7953_v53 = vadd.f32 1.0, %v5927_v47  ;;  %v7957_v24 = vpop.eup %5928  ;;  %v7970_v17 = vpop.permute.xlu0 %3574 }
 0x342   :  { %v5931_v19 = vpop.eup %5930  ;;  %vm1083_vm15 = vweird.f32 %v7957_v24 }
 0x343   :  { %5932 = vrcp.f32 %v7953_v53  ;;  %v7983_v22 = vadd.f32 1.0, %v5931_v19  ;;  %vm8033_vm1 = vmor %vm1082_vm14, %vm1083_vm15  ;;  %vm1097_vm3 = vweird.f32 %v7953_v53  ;;  %v1103_v41 = vand.u32 2147483648, %v7953_v53 }
 0x344   :  { %5934 = vpow2.f32 %v5083_v4  ;;  %v1101_v32 = vand.u32 2147483647, %v7953_v53 }
 0x345   :  { %5936 = vrcp.f32 %v7983_v22  ;;  %vm1112_vm8 = vweird.f32 %v7983_v22  ;;  %v1116_v13 = vand.u32 2147483647, %v7983_v22 }
 0x346   :  { %3431 = vmatmul.bf16.gmra.mxu3 %v3087_v62  ;;  %v1034_v62 = vsub.f32 1.0, %v1033_v56  ;;  %v1056_v56 = vand.u32 2147483647, %v7867_v21  ;;  %v1055_v21 = vsel %vm7965_vm10, %v7889_v27, %v1051_v42  ;;  %vm1102_vm6 = vcmp.eq.f32.partialorder %v1101_v32, 8.507059e+37 }
 0x348   :  { %v1035_v40 = vmul.f32 %v7870_v59, %v1034_v62  ;;  %vm1057_vm11 = vcmp.eq.f32.partialorder %v1056_v56, 8.507059e+37  ;;  %v1086_v56 = vand.u32 2147483647, %v7909_v6 }
 0x349   :  { %v7998_v9 = vpop.eup %5932 }
 0x34a   :  { %v1036_v28 = vadd.f32 %v7870_v59, %v1035_v40  ;;  %v1060_v40 = vsel %vm1057_vm11, %v1059_v35, %v1055_v21  ;;  %v5935_v14 = vpop.eup %5934  ;;  %v1093_v49 = vmul.f32 %v7998_v9, %v7953_v53  ;;  %vm1087_vm2 = vcmp.eq.f32.partialorder %v1086_v56, 8.507059e+37  ;;  %v6038_v53 = vld [vmem:[%s9079_s5 + $0x20] sm:$0xff] }
 0x34b   :  { %v8026_v42 = vadd.f32 1.0, %v5935_v14  ;;  %vm1098_vm4 = vweird.f32 %v7998_v9  ;;  %v1104_v14 = vor.u32 1.1754944e-38, %v1103_v41  ;;  %vm1117_vm11 = vcmp.eq.f32.partialorder %v1116_v13, 8.507059e+37 }
 0x34c   :  { %v1040_v2 = vsel %vm7933_vm5, %v7870_v59, %v1036_v28  ;;  %v1066_v28 = vadd.f32 %v7925_v44, %v1065_v8  ;;  %vm8068_vm5 = vmor %vm1097_vm3, %vm1098_vm4 }
 0x34d   :  { %v1045_v3 = vsel %vm1042_vm9, %v1044_v37, %v1040_v2  ;;  %vm1127_vm7 = vweird.f32 %v8026_v42  ;;  %v1133_v32 = vand.u32 2147483648, %v8026_v42 }
 0x34e   :  { %v1070_v37 = vsel %vm8006_vm12, %v7925_v44, %v1066_v28 }
 0x34f   :  { %v1075_v59 = vsel %vm1072_vm13, %v1074_v63, %v1070_v37 }
 0x359   :  { %v3397_v55 = vpop.f32.mrf.mxu3 }
 0x35a   :  { %v3398_v11 = vadd.f32 %v7894_v43, %v3397_v55 }
 0x35c   :  { %v3447_v34 = vadd.f32 %v3446_v18, %v3398_v11  ;;  %v1244_v11 = vpack.c.bf16 %v1045_v3, %v1045_v3  ;;  %v1094_v3 = vsub.f32 1.0, %v1093_v49 }
 0x35e   :  { %v3496_v12 = vadd.f32 %v3495_v33, %v3447_v34  ;;  %v6035_v34 = vld [vmem:[%s9079_s5 + $0x8] sm:$0xff] }
 0x360   :  { %v3551_v0 = vmul.f32 %v3535_v46, %v3496_v12  ;;  %v3537_v46 = vunpack.c.l.bf16 %v1244_v11  ;;  %v3507_v11 = vpop.f32.mrf.mxu1 }
 0x361   :  { %v3399_v20 = vpop.f32.mrf.mxu3 }
 0x362   :  { %v3647_v33 = vmul.f32 %v7919_v7, %v3551_v0  ;;  %v3400_v31 = vadd.f32 %v7894_v43, %v3399_v20  ;;  %v5084_v0 = vmul.f32 -1.442695, %v921_v23  ;;  %v1245_v20 = vpack.c.bf16 %v1060_v40, %v1060_v40  ;;  %v6037_v40 = vld [vmem:[%s9079_s5 + $0x18] sm:$0xff] }
 0x363   :  { %v1095_v23 = vmul.f32 %v7998_v9, %v1094_v3 }
 0x364   :  { %v7947_v57 = vadd.f32 %v6034_v45, %v3647_v33  ;;  %v3449_v58 = vadd.f32 %v7878_v29, %v3400_v31  ;;  %5938 = vpow2.f32 %v5084_v0  ;;  %v6036_v45 = vld [vmem:[%s9079_s5 + $0x10] sm:$0xff]  ;;  %v3538_v15 = vunpack.c.l.bf16 %v1245_v20 }
 0x365   :  { %5940 = vrcp.f32 %v8026_v42  ;;  %v1096_v28 = vadd.f32 %v7998_v9, %v1095_v23 }
 0x366   :  { %3681 = vadd.xlane.f32.xlu0 %v7947_v57  ;;  %v3736_v30 = vmul.f32 %v7947_v57, %v7947_v57  ;;  %v3498_v29 = vadd.f32 %v7882_v10, %v3449_v58  ;;  %v1078_v10 = vmul.f32 %v7957_v24, %v7909_v6 }
 0x367   :  { %v1100_v63 = vsel %vm8068_vm5, %v7998_v9, %v1096_v28  ;;  %v1118_v9 = vand.u32 2147483648, %v7983_v22  ;;  %v8124_v28 = vpop.permute.xlu0 %3599 }
 0x368   :  { %3752 = vadd.xlane.f32.xlu2 %v3736_v30  ;;  %v3552_v62 = vmul.f32 %v3536_v50, %v3498_v29  ;;  %v1079_v16 = vsub.f32 1.0, %v1078_v10  ;;  %v1088_v29 = vand.u32 2147483648, %v7909_v6  ;;  %v1246_v10 = vpack.c.bf16 %v1075_v59, %v1075_v59 }
 0x369   :  { %v3402_v52 = vpop.f32.mrf.mxu3 }
 0x36a   :  { %v3648_v55 = vmul.f32 %v7970_v17, %v3552_v62  ;;  %v3403_v25 = vadd.f32 %v7894_v43, %v3402_v52  ;;  %v1080_v18 = vmul.f32 %v7957_v24, %v1079_v16  ;;  %v1089_v52 = vor.u32 1.1754944e-38, %v1088_v29 }
 0x36c   :  { %v7988_v27 = vadd.f32 %v6035_v34, %v3648_v55  ;;  %v3452_v60 = vadd.f32 %v7917_v36, %v3403_v25  ;;  %v8000_v36 = vpop.permute.xlu1 %3579  ;;  %v1081_v30 = vadd.f32 %v7957_v24, %v1080_v18  ;;  %v3458_v25 = vpop.f32.mrf.mxu0  ;;  %v3539_v34 = vunpack.c.l.bf16 %v1246_v10 }
 0x36e   :  { %v3501_v12 = vadd.f32 %v7921_v26, %v3452_v60  ;;  %3683 = vadd.xlane.f32.xlu1 %v7988_v27  ;;  %v3737_v39 = vmul.f32 %v7988_v27, %v7988_v27  ;;  %v1085_v35 = vsel %vm8033_vm1, %v7957_v24, %v1081_v30 }
 0x36f   :  { %v1090_v60 = vsel %vm1087_vm2, %v1089_v52, %v1085_v35 }
 0x370   :  { %v3553_v47 = vmul.f32 %v3537_v46, %v3501_v12  ;;  %3754 = vadd.xlane.f32.xlu2 %v3737_v39  ;;  %v8062_v39 = vpop.permute.xlu2 %3589  ;;  %v1247_v26 = vpack.c.bf16 %v1090_v60, %v1090_v60 }
 0x371   :  { %v3404_v48 = vpop.f32.mrf.mxu3 }
 0x372   :  { %v3649_v33 = vmul.f32 %v8000_v36, %v3553_v47  ;;  %v3405_v31 = vadd.f32 %v7894_v43, %v3404_v48  ;;  %v3540_v37 = vunpack.c.l.bf16 %v1247_v26 }
 0x374   :  { %v8022_v58 = vadd.f32 %v6036_v45, %v3649_v33  ;;  %v3454_v2 = vadd.f32 %v3453_v38, %v3405_v31  ;;  %v8037_v38 = vpop.eup %5936  ;;  %v3461_v49 = vpop.f32.mrf.mxu0 }
 0x375   :  { %v5939_v62 = vpop.eup %5938  ;;  %v1108_v55 = vmul.f32 %v8037_v38, %v7983_v22  ;;  %v3510_v45 = vpop.f32.mrf.mxu1  ;;  %vm1113_vm9 = vweird.f32 %v8037_v38 }
 0x376   :  { %v3503_v44 = vadd.f32 %v3502_v1, %v3454_v2  ;;  %v3738_v50 = vmul.f32 %v8022_v58, %v8022_v58  ;;  %v8041_v1 = vpop.permute.xlu1 %3584  ;;  %v8051_v8 = vadd.f32 1.0, %v5939_v62  ;;  %v8060_v12 = vpop.eup %5940  ;;  %vm8102_vm10 = vmor %vm1112_vm8, %vm1113_vm9  ;;  %v6041_v62 = vld [vmem:[%s9079_s5 + $0x38] sm:$0xff] }
 0x377   :  { %v1109_v46 = vsub.f32 1.0, %v1108_v55  ;;  %v1123_v18 = vmul.f32 %v8060_v12, %v8026_v42  ;;  %v6039_v55 = vld [vmem:[%s9079_s5 + $0x28] sm:$0xff]  ;;  %vm1128_vm0 = vweird.f32 %v8060_v12 }
 0x378   :  { %v3554_v4 = vmul.f32 %v3538_v15, %v3503_v44  ;;  %3756 = vadd.xlane.f32.xlu0 %v3738_v50  ;;  %3685 = vadd.xlane.f32.xlu2 %v8022_v58  ;;  %5942 = vrcp.f32 %v8051_v8  ;;  %v1105_v44 = vsel %vm1102_vm6, %v1104_v14, %v1100_v63  ;;  %v8098_v3 = vpop.permute.xlu2 %3594  ;;  %vm1129_vm12 = vmor %vm1127_vm7, %vm1128_vm0  ;;  %vm1142_vm15 = vweird.f32 %v8051_v8 }
 0x379   :  { %v3407_v19 = vpop.f32.mrf.mxu3  ;;  %v1124_v29 = vsub.f32 1.0, %v1123_v18  ;;  %v1248_v10 = vpack.c.bf16 %v1105_v44, %v1105_v44  ;;  %v6040_v18 = vld [vmem:[%s9079_s5 + $0x30] sm:$0xff] }
 0x37a   :  { %v3650_v6 = vmul.f32 %v8041_v1, %v3554_v4  ;;  %v3408_v21 = vadd.f32 %v7894_v43, %v3407_v19 }
 0x37b   :  { %v1125_v35 = vmul.f32 %v8060_v12, %v1124_v29  ;;  %v3541_v23 = vunpack.c.l.bf16 %v1248_v10  ;;  %v1148_v29 = vand.u32 2147483648, %v8051_v8 }
 0x37c   :  { %v3457_v5 = vadd.f32 %v3456_v54, %v3408_v21  ;;  %v8056_v16 = vadd.f32 %v6037_v40, %v3650_v6  ;;  %v1119_v21 = vor.u32 1.1754944e-38, %v1118_v9  ;;  %v3463_v60 = vpop.f32.mrf.mxu0 }
 0x37e   :  { %v3506_v24 = vadd.f32 %v3505_v61, %v3457_v5  ;;  %v1110_v61 = vmul.f32 %v8037_v38, %v1109_v46  ;;  %v3739_v30 = vmul.f32 %v8056_v16, %v8056_v16  ;;  %v8094_v50 = vpop.eup %5942  ;;  %v3512_v46 = vpop.f32.mrf.mxu1 }
 0x37f   :  { %v1138_v6 = vmul.f32 %v8094_v50, %v8051_v8  ;;  %vm1143_vm14 = vweird.f32 %v8094_v50 }
 0x380   :  { %v3555_v0 = vmul.f32 %v3539_v34, %v3506_v24  ;;  %3687 = vadd.xlane.f32.xlu2 %v8056_v16  ;;  %v1111_v56 = vadd.f32 %v8037_v38, %v1110_v61  ;;  %vm1144_vm1 = vmor %vm1142_vm15, %vm1143_vm14 }
 0x381   :  { %v3409_v47 = vpop.f32.mrf.mxu3  ;;  %v1139_v24 = vsub.f32 1.0, %v1138_v6 }
 0x382   :  { %v3651_v48 = vmul.f32 %v8062_v39, %v3555_v0  ;;  %v3410_v20 = vadd.f32 %v7894_v43, %v3409_v47  ;;  %v1126_v0 = vadd.f32 %v8060_v12, %v1125_v35 }
 0x384   :  { %v8081_v33 = vadd.f32 %v6038_v53, %v3651_v48  ;;  %v3459_v31 = vadd.f32 %v3458_v25, %v3410_v20  ;;  %v1131_v48 = vand.u32 2147483647, %v8026_v42  ;;  %v1130_v61 = vsel %vm1129_vm12, %v8060_v12, %v1126_v0  ;;  %v8140_v42 = vpop.permute.xlu1 %3604 }
 0x385   :  { %v1140_v53 = vmul.f32 %v8094_v50, %v1139_v24  ;;  %v6042_v24 = vld [vmem:[%s9079_s5 + $0x40] sm:$0xff] }
 0x386   :  { %v3508_v2 = vadd.f32 %v3507_v11, %v3459_v31  ;;  %3689 = vadd.xlane.f32.xlu1 %v8081_v33  ;;  %v3740_v15 = vmul.f32 %v8081_v33, %v8081_v33  ;;  %v1115_v11 = vsel %vm8102_vm10, %v8037_v38, %v1111_v56  ;;  %v1134_v31 = vor.u32 1.1754944e-38, %v1133_v32  ;;  %v3515_v13 = vpop.f32.mrf.mxu1 }
 0x387   :  { %v1120_v40 = vsel %vm1117_vm11, %v1119_v21, %v1115_v11  ;;  %vm1132_vm13 = vcmp.eq.f32.partialorder %v1131_v48, 8.507059e+37  ;;  %v1146_v56 = vand.u32 2147483647, %v8051_v8  ;;  %v9210_v8 = vld [vmem:[#allocation43_spill] sm:$0xff] }
 0x388   :  { %v3556_v59 = vmul.f32 %v3540_v37, %v3508_v2  ;;  %3760 = vadd.xlane.f32.xlu0 %v3740_v15  ;;  %3758 = vadd.xlane.f32.xlu2 %v3739_v30  ;;  %v1249_v47 = vpack.c.bf16 %v1120_v40, %v1120_v40  ;;  %v1141_v15 = vadd.f32 %v8094_v50, %v1140_v53  ;;  %v3466_v30 = vpop.f32.mrf.mxu0  ;;  %v6043_v53 = vld [vmem:[%s9079_s5 + $0x48] sm:$0xff] }
 0x389   :  { %v3412_v4 = vpop.f32.mrf.mxu3  ;;  %vm1147_vm2 = vcmp.eq.f32.partialorder %v1146_v56, 8.507059e+37 }
 0x38a   :  { %v3652_v19 = vmul.f32 %v8098_v3, %v3556_v59  ;;  %v3413_v52 = vadd.f32 %v7894_v43, %v3412_v4  ;;  %v1145_v10 = vsel %vm1144_vm1, %v8094_v50, %v1141_v15 }
 0x38c   :  { %v8114_v22 = vadd.f32 %v6039_v55, %v3652_v19  ;;  %v3462_v25 = vadd.f32 %v3461_v49, %v3413_v52  ;;  %v3542_v49 = vunpack.c.l.bf16 %v1249_v47  ;;  %v1149_v52 = vor.u32 1.1754944e-38, %v1148_v29  ;;  %v8158_v11 = vpop.permute.xlu1 %3609 }
 0x38e   :  { %v3511_v5 = vadd.f32 %v3510_v45, %v3462_v25  ;;  %v3741_v34 = vmul.f32 %v8114_v22, %v8114_v22  ;;  %v1135_v45 = vsel %vm1132_vm13, %v1134_v31, %v1130_v61  ;;  %v1150_v35 = vsel %vm1147_vm2, %v1149_v52, %v1145_v10  ;;  %v3517_v0 = vpop.f32.mrf.mxu1  ;;  %v224_v52 = vld [vmem:[%s9179_s24 + $0x70] sm:$0xff] }
 0x38f   :  { %v1250_v44 = vpack.c.bf16 %v1135_v45, %v1135_v45  ;;  %v924_v25 = vadd.f32 %v7843_v51, %v9210_v8 }
 0x390   :  { %v3557_v41 = vmul.f32 %v3541_v23, %v3511_v5  ;;  %3762 = vadd.xlane.f32.xlu0 %v3741_v34  ;;  %3691 = vadd.xlane.f32.xlu2 %v8114_v22  ;;  %v1251_v23 = vpack.c.bf16 %v1150_v35, %v1150_v35  ;;  %v3468_v50 = vpop.f32.mrf.mxu0 }
 0x391   :  { %v3414_v38 = vpop.f32.mrf.mxu3  ;;  %v3543_v21 = vunpack.c.l.bf16 %v1250_v44 }
 0x392   :  { %v3415_v26 = vadd.f32 %v7894_v43, %v3414_v38  ;;  %v3653_v54 = vmul.f32 %v8124_v28, %v3557_v41  ;;  %v5085_v41 = vmul.f32 -1.442695, %v924_v25  ;;  %v223_v38 = vld [vmem:[%s9179_s24 + $0x68] sm:$0xff]  ;;  %v3544_v47 = vunpack.c.l.bf16 %v1251_v23 }
 0x394   :  { %v3464_v20 = vadd.f32 %v3463_v60, %v3415_v26  ;;  %v8134_v14 = vadd.f32 %v6040_v18, %v3653_v54  ;;  %v9211_v26 = vld [vmem:[#allocation44_spill] sm:$0xff]  ;;  %5944 = vpow2.f32 %v5085_v41 }
 0x395   :  { %v926_v54 = vadd.f32 %v7843_v51, %v9211_v26 }
 0x396   :  { %v3513_v63 = vadd.f32 %v3512_v46, %v3464_v20  ;;  %v3742_v37 = vmul.f32 %v8134_v14, %v8134_v14  ;;  %v8173_v20 = vpop.permute.xlu2 %3614 }
 0x397   :  { %v5086_v61 = vmul.f32 -1.442695, %v926_v54  ;;  %v3520_v54 = vpop.f32.mrf.mxu1 }
 0x398   :  { %v3558_v2 = vmul.f32 %v3542_v49, %v3513_v63  ;;  %3764 = vadd.xlane.f32.xlu1 %v3742_v37  ;;  %v9212_v37 = vld [vmem:[#allocation46_spill] sm:$0xff] }
 0x399   :  { %v3417_v12 = vpop.f32.mrf.mxu3  ;;  %5946 = vpow2.f32 %v5086_v61  ;;  %v929_v45 = vadd.f32 %v7843_v51, %v9212_v37 }
 0x39a   :  { %v3418_v9 = vadd.f32 %v7894_v43, %v3417_v12  ;;  %v3654_v59 = vmul.f32 %v8140_v42, %v3558_v2  ;;  %v5945_v49 = vpop.eup %5944 }
 0x39b   :  { %v996_v2 = vadd.f32 1.0, %v5945_v49  ;;  %v5087_v15 = vmul.f32 -1.442695, %v929_v45 }
 0x39c   :  { %v3467_v4 = vadd.f32 %v3466_v30, %v3418_v9  ;;  %v8152_v19 = vadd.f32 %v6041_v62, %v3654_v59  ;;  %v6294_v9 = vmov 128.0  }
 0x39d   :  { %5948 = vrcp.f32 %v996_v2  ;;  %vm1157_vm4 = vweird.f32 %v996_v2 }
 0x39e   :  { %v3516_v6 = vadd.f32 %v3515_v13, %v3467_v4  ;;  %3695 = vadd.xlane.f32.xlu0 %v8152_v19  ;;  %5950 = vpow2.f32 %v5087_v15  ;;  %v225_v13 = vld [vmem:[%s9179_s24 + $0x78] sm:$0xff]  ;;  %v8215_v49 = vpop.permute.xlu2 %3629 }
 0x39f   :  { %v5947_v30 = vpop.eup %5946 }
 0x3a0   :  { %v3559_v55 = vmul.f32 %v3543_v21, %v3516_v6  ;;  %v8186_v12 = vadd.f32 1.0, %v5947_v30  ;;  %v5583_v30 = vld [vmem:[#allocation13 + $0x78] sm:$0xf0] }
 0x3a1   :  { %v3419_v5 = vpop.f32.mrf.mxu3 }
 0x3a2   :  { %v3420_v34 = vadd.f32 %v7894_v43, %v3419_v5  ;;  %v3655_v60 = vmul.f32 %v8158_v11, %v3559_v55  ;;  %5952 = vrcp.f32 %v8186_v12  ;;  %vm1172_vm9 = vweird.f32 %v8186_v12 }
 0x3a3   :  { %v5949_v29 = vpop.eup %5948  ;;  %5954 = vrcp.f32 %v6294_v9 }
 0x3a4   :  { %v3469_v40 = vadd.f32 %v3468_v50, %v3420_v34  ;;  %v8165_v46 = vadd.f32 %v6042_v24, %v3655_v60  ;;  %v5951_v44 = vpop.eup %5950  ;;  %v1153_v59 = vmul.f32 %v5949_v29, %v996_v2  ;;  %vm1158_vm3 = vweird.f32 %v5949_v29  ;;  %v9213_v34 = vld [vmem:[#allocation47_spill] sm:$0xff] }
 0x3a5   :  { %v8189_v56 = vadd.f32 1.0, %v5951_v44  ;;  %v931_v60 = vadd.f32 %v7843_v51, %v9213_v34  ;;  %v1163_v50 = vand.u32 2147483648, %v996_v2  ;;  %v1161_v24 = vand.u32 2147483647, %v996_v2  ;;  %vm1159_vm5 = vmor %vm1157_vm4, %vm1158_vm3 }
 0x3a6   :  { %v3518_v32 = vadd.f32 %v3517_v0, %v3469_v40  ;;  %3697 = vadd.xlane.f32.xlu0 %v8165_v46  ;;  %v1154_v62 = vsub.f32 1.0, %v1153_v59  ;;  %v3471_v40 = vpop.f32.mrf.mxu0  ;;  %v1178_v2 = vand.u32 2147483648, %v8186_v12 }
 0x3a7   :  { %5956 = vrcp.f32 %v8189_v56  ;;  %v5088_v26 = vmul.f32 -1.442695, %v931_v60  ;;  %vm1162_vm6 = vcmp.eq.f32.partialorder %v1161_v24, 8.507059e+37  ;;  %vm1187_vm12 = vweird.f32 %v8189_v56 }
 0x3a8   :  { %v3560_v48 = vmul.f32 %v3544_v47, %v3518_v32  ;;  %3634 = vperm.xlu2 %5829, %v223_v38   ;;  %v8194_v4 = vpop.eup %5952  ;;  %v1155_v21 = vmul.f32 %v5949_v29, %v1154_v62 }
 0x3a9   :  { %v5955_v10 = vpop.eup %5954  ;;  %v1168_v6 = vmul.f32 %v8194_v4, %v8186_v12  ;;  %v3422_v35 = vpop.f32.mrf.mxu3  ;;  %vm1173_vm8 = vweird.f32 %v8194_v4  ;;  %5958 = vpow2.f32 %v5088_v26 }
 0x3aa   :  { %v3656_v18 = vmul.f32 %v8173_v20, %v3560_v48  ;;  %v3714_v55 = vmul.f32 128.0, %v5955_v10  ;;  %v1156_v5 = vadd.f32 %v5949_v29, %v1155_v21  ;;  %v3423_v32 = vadd.f32 %v7894_v43, %v3422_v35  ;;  %vm8219_vm11 = vmor %vm1172_vm9, %vm1173_vm8  ;;  %v8233_v35 = vpop.permute.xlu1 %3619 }
 0x3ab   :  { %v1169_v8 = vsub.f32 1.0, %v1168_v6  ;;  %v1164_v48 = vor.u32 1.1754944e-38, %v1163_v50  ;;  %vm3718_vm10 = vweird.f32 %v5955_v10  ;;  %v3743_v6 = vmul.f32 %v8152_v19, %v8152_v19 }
 0x3ac   :  { %v8179_v31 = vadd.f32 %v6043_v53, %v3656_v18  ;;  %v3715_v23 = vsub.f32 1.0, %v3714_v55  ;;  %v1160_v38 = vsel %vm1159_vm5, %v5949_v29, %v1156_v5  ;;  %v8210_v18 = vpop.permute.xlu0 %3624  ;;  %v3472_v37 = vadd.f32 %v3471_v40, %v3423_v32 }
 0x3ad   :  { %v8202_v25 = vpop.eup %5956  ;;  %v1170_v0 = vmul.f32 %v8194_v4, %v1169_v8  ;;  %v1165_v53 = vsel %vm1162_vm6, %v1164_v48, %v1160_v38  ;;  %v1176_v29 = vand.u32 2147483647, %v8186_v12  ;;  %v1179_v21 = vor.u32 1.1754944e-38, %v1178_v2 }
 0x3ae   :  { %3699 = vadd.xlane.f32.xlu1 %v8179_v31  ;;  %v3745_v63 = vmul.f32 %v8179_v31, %v8179_v31  ;;  %v1183_v41 = vmul.f32 %v8202_v25, %v8189_v56  ;;  %v3716_v47 = vmul.f32 %v5955_v10, %v3715_v23  ;;  %v1252_v15 = vpack.c.bf16 %v1165_v53, %v1165_v53  ;;  %v3473_v59 = vpop.f32.mrf.mxu0  ;;  %v3522_v23 = vpop.f32.mrf.mxu1  ;;  %v5581_v53 = vld [vmem:[#allocation13 + $0x70] sm:$0xf] }
 0x3af   :  { %vm1177_vm0 = vcmp.eq.f32.partialorder %v1176_v29, 8.507059e+37  ;;  %v1191_v12 = vand.u32 2147483647, %v8189_v56  ;;  %v5959_v5 = vpop.eup %5958  ;;  %vm1188_vm7 = vweird.f32 %v8202_v25  ;;  %v3744_v2 = vmul.f32 %v8165_v46, %v8165_v46  ;;  %v5573_v29 = vld [vmem:[#allocation13 + $0x60] sm:$0xf] }
 0x3b0   :  { %3770 = vadd.xlane.f32.xlu0 %v3745_v63  ;;  %v1184_v61 = vsub.f32 1.0, %v1183_v41  ;;  %v1171_v63 = vadd.f32 %v8194_v4, %v1170_v0  ;;  %v3717_v45 = vadd.f32 %v5955_v10, %v3716_v47  ;;  %v3545_v55 = vunpack.c.l.bf16 %v1252_v15  ;;  %vm8248_vm13 = vmor %vm1187_vm12, %vm1188_vm7 }
 0x3b1   :  { %v3424_v51 = vpop.f32.mrf.mxu3  ;;  %v8246_v32 = vadd.f32 1.0, %v5959_v5  ;;  %vm8252_vm14 = vcmp.eq.f32.partialorder %v1191_v12, 8.507059e+37 }
 0x3b2   :  { %v1175_v44 = vsel %vm8219_vm11, %v8194_v4, %v1171_v63  ;;  %v1185_v9 = vmul.f32 %v8202_v25, %v1184_v61  ;;  %v3425_v62 = vadd.f32 %v7894_v43, %v3424_v51  ;;  %v1193_v4 = vand.u32 2147483648, %v8189_v56  ;;  %v5778_v63 = vld [vmem:[#allocation13 + $0x74] sm:$0xf0] }
 0x3b3   :  { %v1180_v34 = vsel %vm1177_vm0, %v1179_v21, %v1175_v44  ;;  %v5582_v15 = vor.u32 %v5778_v63, %v5581_v53  ;;  %v5776_v44 = vld [vmem:[#allocation13 + $0x64] sm:$0xf0]  ;;  %v5774_v53 = vld [vmem:[#allocation13 + $0x54] sm:$0xf0]  ;;  %vm1202_vm4 = vweird.f32 %v8246_v32 }
 0x3b4   :  { %v3474_v40 = vadd.f32 %v3473_v59, %v3425_v62  ;;  %v1253_v47 = vpack.c.bf16 %v1180_v34, %v1180_v34  ;;  %v1194_v48 = vor.u32 1.1754944e-38, %v1193_v4  ;;  %v5575_v62 = vld [vmem:[#allocation13 + $0x68] sm:$0xf0]  ;;  %v5574_v12 = vor.u32 %v5776_v44, %v5573_v29 }
 0x3b5   :  { %4188 = vmatpush.bf16.msra.mxu2 %v5582_v15  ;;  %v5557_v15 = vld [vmem:[#allocation13 + $0x40] sm:$0xf] }
 0x3b9   :  { %v3427_v24 = vpop.f32.mrf.mxu3  ;;  %4189 = vmatpush.bf16.msra.mxu2 %v5574_v12  ;;  %v5559_v12 = vld [vmem:[#allocation13 + $0x48] sm:$0xf0] }
 0x3ba   :  { %v3428_v51 = vadd.f32 %v7894_v43, %v3427_v24  ;;  %v3476_v43 = vpop.f32.mrf.mxu0 }
 0x3bc   :  { %v3477_v4 = vadd.f32 %v3476_v43, %v3428_v51 }
 0x3c4   :  { %3644 = vperm.xlu0 %5827, %v225_v13   ;;  %v3521_v13 = vadd.f32 %v3520_v54, %v3472_v37  ;;  %v5777_v37 = vld [vmem:[#allocation13 + $0x74] sm:$0xf] }
 0x3c6   :  { %v3561_v50 = vmul.f32 %v3545_v55, %v3521_v13  ;;  %v5586_v13 = vor.u32 %v5777_v37, %v5583_v30 }
 0x3c7   :  { %3639 = vperm.xlu1 %5828, %v224_v52   ;;  %v8229_v52 = vsel %vm3718_vm10, %v5955_v10, %v3717_v45  ;;  %v1186_v10 = vadd.f32 %v8202_v25, %v1185_v9  ;;  %v3523_v45 = vadd.f32 %v3522_v23, %v3474_v40 }
 0x3c8   :  { %v3657_v9 = vmul.f32 %v8233_v35, %v3561_v50  ;;  %4237 = vmatpush.bf16.msra.mxu3 %v5586_v13  ;;  %v5771_v13 = vld [vmem:[#allocation13 + $0x44] sm:$0xf] }
 0x3c9   :  { %v1190_v56 = vsel %vm8248_vm13, %v8202_v25, %v1186_v10  ;;  %v5775_v25 = vld [vmem:[#allocation13 + $0x64] sm:$0xf]  ;;  %v6044_v10 = vld [vmem:[%s9079_s5 + $0x50] sm:$0xff] }
 0x3ca   :  { %v1195_v21 = vsel %vm8252_vm14, %v1194_v48, %v1190_v56  ;;  %v5578_v5 = vor.u32 %v5775_v25, %v5575_v62  ;;  %v8274_v50 = vadd.f32 %v6044_v10, %v3657_v9  ;;  %v5772_v9 = vld [vmem:[#allocation13 + $0x44] sm:$0xf0] }
 0x3cb   :  { %v1254_v40 = vpack.c.bf16 %v1195_v21, %v1195_v21 }
 0x3cc   :  { %4238 = vmatpush.bf16.msra.mxu3 %v5578_v5  ;;  %v3746_v26 = vmul.f32 %v8274_v50, %v8274_v50  ;;  %v5562_v5 = vor.u32 %v5771_v13, %v5559_v12  ;;  %v6046_v13 = vld [vmem:[%s9079_s5 + $0x60] sm:$0xff] }
 0x3cd   :  { %v3547_v56 = vunpack.c.l.bf16 %v1254_v40 }
 0x3d1   :  { %3693 = vadd.xlane.f32.xlu2 %v8134_v14 }
 0x3d9   :  { %v3682_v8 = vpop.xlane.xlu0 %3681  ;;  %3766 = vadd.xlane.f32.xlu2 %v3743_v6  ;;  %v3546_v6 = vunpack.c.l.bf16 %v1253_v47 }
 0x3da   :  { %v8240_v60 = vmul.f32 %v8229_v52, %v3682_v8 }
 0x3db   :  { %v3753_v41 = vpop.xlane.xlu2 %3752  ;;  %v3562_v23 = vmul.f32 %v3546_v6, %v3523_v45  ;;  %v5773_v45 = vld [vmem:[#allocation13 + $0x54] sm:$0xf]  ;;  %v6045_v6 = vld [vmem:[%s9079_s5 + $0x58] sm:$0xff] }
 0x3dc   :  { %v3800_v0 = vmul.f32 %v8240_v60, %v8240_v60  ;;  %v3784_v38 = vmul.f32 %v3753_v41, %v8229_v52 }
 0x3dd   :  { %v3658_v54 = vmul.f32 %v8210_v18, %v3562_v23  ;;  %v5549_v23 = vld [vmem:[#allocation13 + $0x30] sm:$0xf] }
 0x3de   :  { %v3816_v61 = vsub.f32 %v3784_v38, %v3800_v0  ;;  %v3525_v0 = vpop.f32.mrf.mxu1 }
 0x3df   :  { %v3526_v38 = vadd.f32 %v3525_v0, %v3477_v4  ;;  %v8296_v21 = vadd.f32 %v6045_v6, %v3658_v54 }
 0x3e0   :  { %v8263_v59 = vadd.f32 1e-05, %v3816_v61  ;;  %v5565_v61 = vld [vmem:[#allocation13 + $0x50] sm:$0xf] }
 0x3e1   :  { %v3684_v55 = vpop.xlane.xlu1 %3683  ;;  %3768 = vadd.xlane.f32.xlu2 %v3744_v2  ;;  %v5566_v37 = vor.u32 %v5774_v53, %v5565_v61  ;;  %v5567_v2 = vld [vmem:[#allocation13 + $0x58] sm:$0xf0]  ;;  %v3563_v29 = vmul.f32 %v3547_v56, %v3526_v38  ;;  %v3747_v54 = vmul.f32 %v8296_v21, %v8296_v21 }
 0x3e2   :  { %5960 = vrsqrt.f32 %v8263_v59  ;;  %v8269_v8 = vmul.f32 %v8229_v52, %v3684_v55  ;;  %v5570_v44 = vor.u32 %v5773_v45, %v5567_v2  ;;  %v5558_v55 = vor.u32 %v5772_v9, %v5557_v15  ;;  %v5768_v45 = vld [vmem:[#allocation13 + $0x24] sm:$0xf0]  ;;  %v5767_v15 = vld [vmem:[#allocation13 + $0x24] sm:$0xf] }
 0x3e3   :  { %v3755_v34 = vpop.xlane.xlu2 %3754  ;;  %5962 = vrcp.f32 %v8246_v32  ;;  %4190 = vmatpush.bf16.msra.mxu2 %v5566_v37  ;;  %v5541_v37 = vld [vmem:[#allocation13 + $0x20] sm:$0xf]  ;;  %vm3870_vm1 = vweird.f32 %v8263_v59 }
 0x3e4   :  { %v3801_v24 = vmul.f32 %v8269_v8, %v8269_v8  ;;  %v3785_v41 = vmul.f32 %v3755_v34, %v8229_v52  ;;  %4239 = vmatpush.bf16.msra.mxu3 %v5570_v44  ;;  %v5770_v34 = vld [vmem:[#allocation13 + $0x34] sm:$0xf0] }
 0x3e5   :  { %v5550_v56 = vor.u32 %v5770_v34, %v5549_v23  ;;  %v5766_v23 = vld [vmem:[#allocation13 + $0x14] sm:$0xf0] }
 0x3e6   :  { %v3817_v47 = vsub.f32 %v3785_v41, %v3801_v24  ;;  %v5769_v24 = vld [vmem:[#allocation13 + $0x34] sm:$0xf]  ;;  %v5551_v41 = vld [vmem:[#allocation13 + $0x38] sm:$0xf0] }
 0x3e7   :  { %4191 = vmatpush.bf16.msra.mxu2 %v5558_v55  ;;  %v5542_v55 = vor.u32 %v5768_v45, %v5541_v37  ;;  %v3832_v37 = vsub.f32 %v7947_v57, %v8240_v60  ;;  %v5763_v57 = vld [vmem:[#allocation13 + $0x4] sm:$0xf]  ;;  %v5527_v60 = vld [vmem:[#allocation13 + $0x8] sm:$0xf0] }
 0x3e8   :  { %v8283_v48 = vpop.eup %5960  ;;  %v8285_v51 = vadd.f32 1e-05, %v3817_v47  ;;  %v3659_v47 = vmul.f32 %v8215_v49, %v3563_v29  ;;  %4240 = vmatpush.bf16.msra.mxu3 %v5562_v5  ;;  %v5543_v29 = vld [vmem:[#allocation13 + $0x28] sm:$0xf0]  ;;  %v5533_v5 = vld [vmem:[#allocation13 + $0x10] sm:$0xf] }
 0x3e9   :  { %v3865_v63 = vmul.f32 %v8283_v48, %v8263_v59  ;;  %3772 = vadd.xlane.f32.xlu2 %v3746_v26  ;;  %v8289_v30 = vpop.eup %5962  ;;  %vm3871_vm15 = vweird.f32 %v8283_v48  ;;  %v5546_v12 = vor.u32 %v5767_v15, %v5543_v29  ;;  %v5764_v15 = vld [vmem:[#allocation13 + $0x4] sm:$0xf0] }
 0x3ea   :  { %5964 = vrsqrt.f32 %v8285_v51  ;;  %v1198_v10 = vmul.f32 %v8289_v30, %v8246_v32  ;;  %vm8335_vm2 = vmor %vm3870_vm1, %vm3871_vm15  ;;  %vm1203_vm5 = vweird.f32 %v8289_v30  ;;  %vm3880_vm6 = vweird.f32 %v8285_v51 }
 0x3eb   :  { %v3866_v25 = vmul.f32 %v8283_v48, %v3865_v63  ;;  %v3757_v62 = vpop.xlane.xlu0 %3756  ;;  %v3686_v43 = vpop.xlane.xlu2 %3685  ;;  %v5554_v63 = vor.u32 %v5769_v24, %v5551_v41  ;;  %4192 = vmatpush.bf16.msra.mxu2 %v5550_v56  ;;  %v6047_v41 = vld [vmem:[%s9183_s10] ss:$0 sm:$0xff]  ;;  %vm8382_vm9 = vmor %vm1202_vm4, %vm1203_vm5 }
 0x3ec   :  { %v8299_v4 = vmul.f32 %v8229_v52, %v3686_v43  ;;  %v3786_v0 = vmul.f32 %v3757_v62, %v8229_v52  ;;  %v1199_v44 = vsub.f32 1.0, %v1198_v10  ;;  %v5765_v10 = vld [vmem:[#allocation13 + $0x14] sm:$0xf] }
 0x3ed   :  { %v3867_v40 = vmul.f32 0.5, %v3866_v25  ;;  %v8320_v25 = vadd.f32 %v6046_v13, %v3659_v47  ;;  %4241 = vmatpush.bf16.msra.mxu3 %v5554_v63  ;;  %v9221_v47 = vld [vmem:[#allocation50_spill] sm:$0xff]  ;;  %v5534_v63 = vor.u32 %v5766_v23, %v5533_v5 }
 0x3ee   :  { %v3802_v38 = vmul.f32 %v8299_v4, %v8299_v4  ;;  %3703 = vadd.xlane.f32.xlu0 %v8296_v21  ;;  %v1200_v24 = vmul.f32 %v8289_v30, %v1199_v44 }
 0x3ef   :  { %v3868_v26 = vsub.f32 1.5, %v3867_v40  ;;  %v5535_v40 = vld [vmem:[#allocation13 + $0x18] sm:$0xf0]  ;;  %v3748_v59 = vmul.f32 %v8320_v25, %v8320_v25  ;;  %4193 = vmatpush.bf16.msra.mxu2 %v5542_v55 }
 0x3f0   :  { %v8310_v61 = vpop.eup %5964  ;;  %v3818_v53 = vsub.f32 %v3786_v0, %v3802_v38  ;;  %v9220_v0 = vld [vmem:[#allocation49_spill] sm:$0xff]  ;;  %v5538_v45 = vor.u32 %v5765_v10, %v5535_v40  ;;  %v1201_v13 = vadd.f32 %v8289_v30, %v1200_v24  ;;  %v1208_v24 = vand.u32 2147483648, %v8246_v32 }
 0x3f1   :  { %v3875_v2 = vmul.f32 %v8310_v61, %v8285_v51  ;;  %3701 = vadd.xlane.f32.xlu1 %v8274_v50  ;;  %3774 = vadd.xlane.f32.xlu2 %v3747_v54  ;;  %v3869_v62 = vmul.f32 %v8283_v48, %v3868_v26  ;;  %v934_v38 = vadd.f32 %v6047_v41, %v9220_v0  ;;  %vm3881_vm3 = vweird.f32 %v8310_v61 }
 0x3f2   :  { %v8315_v9 = vadd.f32 1e-05, %v3818_v53  ;;  %v936_v26 = vadd.f32 %v6047_v41, %v9221_v47  ;;  %4242 = vmatpush.bf16.msra.mxu3 %v5546_v12  ;;  %v3833_v51 = vsub.f32 %v7988_v27, %v8269_v8  ;;  %vm3882_vm8 = vmor %vm3880_vm6, %vm3881_vm3  ;;  %v1206_v12 = vand.u32 2147483647, %v8246_v32  ;;  %v3429_v27 = vpop.f32.mrf.mxu3 }
 0x3f3   :  { %v3876_v43 = vmul.f32 %v8310_v61, %v3875_v2  ;;  %v3688_v6 = vpop.xlane.xlu2 %3687  ;;  %v3873_v56 = vsel %vm8335_vm2, %v8283_v48, %v3869_v62  ;;  %v5525_v2 = vld [vmem:[#allocation13] sm:$0xf]  ;;  %4194 = vmatpush.bf16.msra.mxu2 %v5534_v63  ;;  %v5530_v47 = vor.u32 %v5763_v57, %v5527_v60  ;;  %v5089_v57 = vmul.f32 -1.442695, %v934_v38 }
 0x3f4   :  { %5966 = vrsqrt.f32 %v8315_v9  ;;  %v8352_v48 = vmul.f32 %v8229_v52, %v3688_v6  ;;  %v4024_v55 = vmul.f32 %v3873_v56, %v3832_v37  ;;  %v5526_v40 = vor.u32 %v5764_v15, %v5525_v2 }
 0x3f5   :  { %v3877_v34 = vmul.f32 0.5, %v3876_v43  ;;  %v8361_v43 = vld [vmem:[%s9034_s13] ss:$0 sm:$0xff]  ;;  %v5090_v54 = vmul.f32 -1.442695, %v936_v26  ;;  %vm1207_vm10 = vcmp.eq.f32.partialorder %v1206_v12, 8.507059e+37  ;;  %vm3890_vm0 = vweird.f32 %v8315_v9 }
 0x3f6   :  { %4243 = vmatpush.bf16.msra.mxu3 %v5538_v45  ;;  %v4043_v63 = vmul.f32 %v8361_v43, %v4024_v55  ;;  %v8398_v26 = vld [vmem:[%s9032_s11] ss:$0 sm:$0xff]  ;;  %v3478_v55 = vpop.f32.mrf.mxu0 }
 0x3f7   :  { %v3878_v53 = vsub.f32 1.5, %v3877_v34  ;;  %v3430_v2 = vadd.f32 %v8398_v26, %v3429_v27  ;;  %4195 = vmatpush.bf16.msra.mxu2 %v5526_v40  ;;  %5968 = vpow2.f32 %v5090_v54  ;;  %v3527_v27 = vpop.f32.mrf.mxu1 }
 0x3f9   :  { %v3879_v29 = vmul.f32 %v8310_v61, %v3878_v53  ;;  %3776 = vadd.xlane.f32.xlu1 %v3748_v59  ;;  %v3690_v44 = vpop.xlane.xlu1 %3689  ;;  %3705 = vadd.xlane.f32.xlu2 %v8320_v25  ;;  %v3803_v59 = vmul.f32 %v8352_v48, %v8352_v48  ;;  %v1205_v53 = vsel %vm8382_vm9, %v8289_v30, %v1201_v13  ;;  %v8406_v30 = vld [vmem:[%s9035_s14] ss:$0 sm:$0xff] }
 0x3fa   :  { %v8356_v62 = vpop.eup %5966  ;;  %v8368_v6 = vmul.f32 %v8229_v52, %v3690_v44  ;;  %4244 = vmatpush.bf16.msra.mxu3 %v5530_v47 }
 0x3fb   :  { %v3883_v5 = vsel %vm3882_vm8, %v8310_v61, %v3879_v29  ;;  %v3885_v23 = vmul.f32 %v8356_v62, %v8315_v9  ;;  %v3761_v34 = vpop.xlane.xlu0 %3760  ;;  %v3759_v10 = vpop.xlane.xlu2 %3758  ;;  %v1209_v29 = vor.u32 1.1754944e-38, %v1208_v24  ;;  %vm3891_vm11 = vweird.f32 %v8356_v62  ;;  %v6049_v9 = vld [vmem:[%s9079_s5 + $0x68] sm:$0xff] }
 0x3fc   :  { %v4025_v8 = vmul.f32 %v3883_v5, %v3833_v51  ;;  %v3804_v41 = vmul.f32 %v8368_v6, %v8368_v6  ;;  %v3788_v0 = vmul.f32 %v3761_v34, %v8229_v52  ;;  %v3787_v56 = vmul.f32 %v3759_v10, %v8229_v52  ;;  %vm3892_vm7 = vmor %vm3890_vm0, %vm3891_vm11 }
 0x3fd   :  { %v3886_v32 = vmul.f32 %v8356_v62, %v3885_v23  ;;  %v1210_v13 = vsel %vm1207_vm10, %v1209_v29, %v1205_v53  ;;  %v8410_v5 = vadd.f32 %v8406_v30, %v4043_v63  ;;  %v3479_v34 = vadd.f32 %v3478_v55, %v3430_v2  ;;  %v5969_v47 = vpop.eup %5968 }
 0x3fe   :  { %v4044_v37 = vmul.f32 %v8361_v43, %v4025_v8  ;;  %v3820_v45 = vsub.f32 %v3788_v0, %v3804_v41  ;;  %v3819_v15 = vsub.f32 %v3787_v56, %v3803_v59  ;;  %v1255_v24 = vpack.c.bf16 %v1210_v13, %v1210_v13 }
 0x3ff   :  { %v3887_v51 = vmul.f32 0.5, %v3886_v32  ;;  %v3528_v61 = vadd.f32 %v3527_v27, %v3479_v34  ;;  %v8429_v2 = vadd.f32 1.0, %v5969_v47 }
 0x400   :  { %v8401_v44 = vadd.f32 1e-05, %v3820_v45  ;;  %v3851_v60 = vadd.f32 1e-05, %v3819_v15  ;;  %v8413_v23 = vadd.f32 %v8406_v30, %v4044_v37  ;;  %v3548_v53 = vunpack.c.l.bf16 %v1255_v24 }
 0x401   :  { %v3888_v8 = vsub.f32 1.5, %v3887_v51  ;;  %vm1232_vm8 = vweird.f32 %v8429_v2 }
 0x402   :  { %5970 = vrsqrt.f32 %v8401_v44  ;;  %v4078_v38 = vpack.c.bf16 %v8413_v23, %v8410_v5  ;;  %v3564_v15 = vmul.f32 %v3548_v53, %v3528_v61  ;;  %vm3900_vm13 = vweird.f32 %v3851_v60 }
 0x403   :  { %5972 = vrsqrt.f32 %v3851_v60  ;;  %v3763_v10 = vpop.xlane.xlu0 %3762  ;;  %v3692_v40 = vpop.xlane.xlu2 %3691  ;;  %v3889_v63 = vmul.f32 %v8356_v62, %v3888_v8  ;;  %vm3910_vm3 = vweird.f32 %v8401_v44 }
 0x404   :  { %v8416_v12 = vmul.f32 %v8229_v52, %v3692_v40  ;;  %5974 = vpow2.f32 %v5089_v57  ;;  %v3789_v41 = vmul.f32 %v3763_v10, %v8229_v52  ;;  %4196 = vmatmul.bf16.vlgmr.msra.gmra.mxu2 %v4078_v38  ;;  %4245 = vmatmul.bf16.vlgmr.msra.gmra.mxu3 %v4078_v38  ;;  %v3834_v38 = vsub.f32 %v8022_v58, %v8299_v4 }
 0x405   :  { %v3893_v51 = vsel %vm3892_vm7, %v8356_v62, %v3889_v63  ;;  %v3835_v58 = vsub.f32 %v8056_v16, %v8352_v48 }
 0x406   :  { %v3805_v0 = vmul.f32 %v8416_v12, %v8416_v12  ;;  %v4026_v8 = vmul.f32 %v3893_v51, %v3834_v38  ;;  %v3432_v38 = vpop.f32.mrf.mxu3 }
 0x408   :  { %v8423_v54 = vpop.eup %5970  ;;  %v3821_v59 = vsub.f32 %v3789_v41, %v3805_v0 }
 0x409   :  { %v5973_v56 = vpop.eup %5972  ;;  %v3905_v37 = vmul.f32 %v8423_v54, %v8401_v44  ;;  %vm3911_vm1 = vweird.f32 %v8423_v54 }
 0x40a   :  { %v3895_v32 = vmul.f32 %v5973_v56, %v3851_v60  ;;  %v3853_v45 = vadd.f32 1e-05, %v3821_v59  ;;  %v5975_v57 = vpop.eup %5974  ;;  %vm3901_vm12 = vweird.f32 %v5973_v56  ;;  %v4045_v59 = vmul.f32 %v8361_v43, %v4026_v8  ;;  %vm3912_vm5 = vmor %vm3910_vm3, %vm3911_vm1 }
 0x40b   :  { %v8431_v29 = vpop.permute.xlu2 %3634  ;;  %v3906_v34 = vmul.f32 %v8423_v54, %v3905_v37  ;;  %v8437_v40 = vadd.f32 1.0, %v5975_v57  ;;  %vm3902_vm14 = vmor %vm3900_vm13, %vm3901_vm12 }
 0x40c   :  { %9226 = vst [vmem:[#allocation31_spill] sm:$0xff] %v8431_v29  ;;  %v3896_v13 = vmul.f32 %v5973_v56, %v3895_v32  ;;  %5976 = vrsqrt.f32 %v3853_v45  ;;  %v3660_v55 = vmul.f32 %v8431_v29, %v3564_v15  ;;  %vm3920_vm2 = vweird.f32 %v3853_v45 }
 0x40d   :  { %5978 = vrcp.f32 %v8429_v2  ;;  %v3907_v41 = vmul.f32 0.5, %v3906_v34  ;;  %vm1217_vm11 = vweird.f32 %v8437_v40 }
 0x40e   :  { %v3897_v10 = vmul.f32 0.5, %v3896_v13  ;;  %v8445_v24 = vadd.f32 %v6049_v9, %v3660_v55  ;;  %5980 = vrcp.f32 %v8437_v40 }
 0x40f   :  { %v3908_v37 = vsub.f32 1.5, %v3907_v41 }
 0x410   :  { %v3898_v27 = vsub.f32 1.5, %v3897_v10  ;;  %3707 = vadd.xlane.f32.xlu2 %v8445_v24  ;;  %v3749_v15 = vmul.f32 %v8445_v24, %v8445_v24 }
 0x411   :  { %v3909_v55 = vmul.f32 %v8423_v54, %v3908_v37  ;;  %v8474_v9 = vpop.xlane.xlu0 %3695 }
 0x412   :  { %v5977_v62 = vpop.eup %5976  ;;  %v3899_v0 = vmul.f32 %v5973_v56, %v3898_v27  ;;  %v3837_v27 = vsub.f32 %v8114_v22, %v8416_v12  ;;  %v3530_v22 = vpop.f32.mrf.mxu1 }
 0x413   :  { %v3915_v4 = vmul.f32 %v5977_v62, %v3853_v45  ;;  %v8451_v61 = vpop.eup %5978  ;;  %vm3921_vm15 = vweird.f32 %v5977_v62  ;;  %v3913_v41 = vsel %vm3912_vm5, %v8423_v54, %v3909_v55  ;;  %v3434_v54 = vpop.f32.mrf.mxu3 }
 0x414   :  { %v3903_v47 = vsel %vm3902_vm14, %v5973_v56, %v3899_v0  ;;  %v1228_v57 = vmul.f32 %v8451_v61, %v8429_v2  ;;  %v8459_v16 = vpop.eup %5980  ;;  %v8462_v56 = vadd.f32 %v8406_v30, %v4045_v59  ;;  %vm3922_vm4 = vmor %vm3920_vm2, %vm3921_vm15  ;;  %v3836_v0 = vsub.f32 %v8081_v33, %v8368_v6  ;;  %v3481_v59 = vpop.f32.mrf.mxu0 }
 0x415   :  { %v3916_v53 = vmul.f32 %v5977_v62, %v3915_v4  ;;  %v4027_v63 = vmul.f32 %v3903_v47, %v3835_v58  ;;  %v1213_v10 = vmul.f32 %v8459_v16, %v8437_v40  ;;  %vm1233_vm6 = vweird.f32 %v8451_v61 }
 0x416   :  { %v1229_v45 = vsub.f32 1.0, %v1228_v57  ;;  %v4028_v47 = vmul.f32 %v3913_v41, %v3836_v0  ;;  %v1238_v33 = vand.u32 2147483648, %v8429_v2  ;;  %vm8495_vm9 = vmor %vm1232_vm8, %vm1233_vm6  ;;  %vm1218_vm10 = vweird.f32 %v8459_v16 }
 0x417   :  { %v3917_v32 = vmul.f32 0.5, %v3916_v53  ;;  %v4046_v60 = vmul.f32 %v8361_v43, %v4027_v63  ;;  %v1214_v4 = vsub.f32 1.0, %v1213_v10  ;;  %v3435_v57 = vadd.f32 %v8398_v26, %v3434_v54  ;;  %vm1219_vm7 = vmor %vm1217_vm11, %vm1218_vm10 }
 0x418   :  { %3778 = vadd.xlane.f32.xlu2 %v3749_v15  ;;  %v1230_v44 = vmul.f32 %v8451_v61, %v1229_v45  ;;  %v4047_v12 = vmul.f32 %v8361_v43, %v4028_v47  ;;  %v1221_v10 = vand.u32 2147483647, %v8437_v40  ;;  %v3433_v45 = vadd.f32 %v8398_v26, %v3432_v38 }
 0x419   :  { %v3918_v48 = vsub.f32 1.5, %v3917_v32  ;;  %v8465_v13 = vadd.f32 %v8406_v30, %v4046_v60  ;;  %v1215_v63 = vmul.f32 %v8459_v16, %v1214_v4  ;;  %v8487_v37 = vpop.xlane.xlu0 %3697  ;;  %v1236_v32 = vand.u32 2147483647, %v8429_v2 }
 0x41a   :  { %v8503_v55 = vadd.f32 %v8406_v30, %v4047_v12  ;;  %v1223_v2 = vand.u32 2147483648, %v8437_v40  ;;  %vm1222_vm12 = vcmp.eq.f32.partialorder %v1221_v10, 8.507059e+37  ;;  %v3532_v40 = vpop.f32.mrf.mxu1 }
 0x41b   :  { %v3919_v51 = vmul.f32 %v5977_v62, %v3918_v48  ;;  %v4079_v34 = vpack.c.bf16 %v8465_v13, %v8462_v56  ;;  %v1216_v60 = vadd.f32 %v8459_v16, %v1215_v63  ;;  %v3765_v48 = vpop.xlane.xlu1 %3764  ;;  %vm1237_vm0 = vcmp.eq.f32.partialorder %v1236_v32, 8.507059e+37 }
 0x41d   :  { %v3923_v8 = vsel %vm3922_vm4, %v5977_v62, %v3919_v51  ;;  %4201 = vmatmul.bf16.gmra.mxu2 %v4079_v34  ;;  %4250 = vmatmul.bf16.gmra.mxu3 %v4079_v34  ;;  %v1231_v62 = vadd.f32 %v8451_v61, %v1230_v44  ;;  %v1239_v34 = vor.u32 1.1754944e-38, %v1238_v33  ;;  %v1220_v0 = vsel %vm1219_vm7, %v8459_v16, %v1216_v60  ;;  %v6050_v60 = vld [vmem:[%s9079_s5 + $0x78] sm:$0xff] }
 0x41e   :  { %v4029_v58 = vmul.f32 %v3923_v8, %v3837_v27  ;;  %v3483_v8 = vpop.f32.mrf.mxu0 }
 0x41f   :  { %v1235_v51 = vsel %vm8495_vm9, %v8451_v61, %v1231_v62  ;;  %v1224_v61 = vor.u32 1.1754944e-38, %v1223_v2 }
 0x420   :  { %v4048_v53 = vmul.f32 %v8361_v43, %v4029_v58  ;;  %v1240_v41 = vsel %vm1237_vm0, %v1239_v34, %v1235_v51  ;;  %v3484_v58 = vadd.f32 %v3483_v8, %v3435_v57 }
 0x421   :  { %v1257_v47 = vpack.c.bf16 %v1240_v41, %v1240_v41  ;;  %v1225_v44 = vsel %vm1222_vm12, %v1224_v61, %v1220_v0  ;;  %v3790_v41 = vmul.f32 %v3765_v48, %v8229_v52 }
 0x422   :  { %v8491_v6 = vadd.f32 %v8406_v30, %v4048_v53  ;;  %v3482_v53 = vadd.f32 %v3481_v59, %v3433_v45  ;;  %v3533_v63 = vadd.f32 %v3532_v40, %v3484_v58  ;;  %v1256_v62 = vpack.c.bf16 %v1225_v44, %v1225_v44 }
 0x423   :  { %v3771_v4 = vpop.xlane.xlu0 %3770  ;;  %v3700_v12 = vpop.xlane.xlu1 %3699  ;;  %v3550_v54 = vunpack.c.l.bf16 %v1257_v47  ;;  %v8548_v58 = vmul.f32 %v8229_v52, %v8474_v9  ;;  %v8558_v9 = vmul.f32 %v8229_v52, %v8487_v37 }
 0x424   :  { %v4080_v27 = vpack.c.bf16 %v8491_v6, %v8503_v55  ;;  %v3531_v33 = vadd.f32 %v3530_v22, %v3482_v53  ;;  %v3549_v38 = vunpack.c.l.bf16 %v1256_v62  ;;  %v6051_v22 = vld [vmem:[%s9079_s5 + $0x70] sm:$0xff]  ;;  %v8541_v45 = vmul.f32 %v8229_v52, %v3700_v12 }
 0x425   :  { %v3566_v32 = vmul.f32 %v3550_v54, %v3533_v63  ;;  %v3793_v44 = vmul.f32 %v3771_v4, %v8229_v52  ;;  %v3807_v63 = vmul.f32 %v8548_v58, %v8548_v58 }
 0x426   :  { %v3565_v15 = vmul.f32 %v3549_v38, %v3531_v33  ;;  %v3809_v47 = vmul.f32 %v8541_v45, %v8541_v45 }
 0x428   :  { %v3825_v12 = vsub.f32 %v3793_v44, %v3809_v47 }
 0x42a   :  { %v8560_v33 = vadd.f32 1e-05, %v3825_v12 }
 0x42c   :  { %vm3960_vm9 = vweird.f32 %v8560_v33 }
 0x42d   :  { %4206 = vmatmul.bf16.gmra.mxu2 %v4080_v27  ;;  %4255 = vmatmul.bf16.gmra.mxu3 %v4080_v27 }
 0x436   :  { %v8515_v26 = vpop.permute.xlu0 %3644 }
 0x437   :  { %9229 = vst [vmem:[#allocation54_spill] sm:$0xff] %v8515_v26  ;;  %v3662_v16 = vmul.f32 %v8515_v26, %v3566_v32 }
 0x439   :  { %v8521_v57 = vadd.f32 %v6050_v60, %v3662_v16  ;;  %v8523_v51 = vpop.permute.xlu1 %3639  ;;  %v3808_v16 = vmul.f32 %v8558_v9, %v8558_v9 }
 0x43a   :  { %9230 = vst [vmem:[#allocation63_spill] sm:$0xff] %v8523_v51  ;;  %v3661_v59 = vmul.f32 %v8523_v51, %v3565_v15  ;;  %v5786_v51 = vld [vmem:[#allocation14 + $0x38] sm:$0xff] }
 0x43b   :  { %3711 = vadd.xlane.f32.xlu1 %v8521_v57  ;;  %v3751_v27 = vmul.f32 %v8521_v57, %v8521_v57  ;;  %4466 = vmatpush.bf16.msra.mxu0 %v5786_v51  ;;  %v5784_v51 = vld [vmem:[#allocation14 + $0x28] sm:$0xff] }
 0x43c   :  { %v8530_v2 = vadd.f32 %v6051_v22, %v3661_v59 }
 0x43e   :  { %3709 = vadd.xlane.f32.xlu0 %v8530_v2  ;;  %v3750_v34 = vmul.f32 %v8530_v2, %v8530_v2 }
 0x440   :  { %3780 = vadd.xlane.f32.xlu2 %v3750_v34 }
 0x444   :  { %v3694_v10 = vpop.xlane.xlu2 %3693 }
 0x445   :  { %v8538_v8 = vmul.f32 %v8229_v52, %v3694_v10 }
 0x446   :  { %3782 = vadd.xlane.f32.xlu0 %v3751_v27 }
 0x447   :  { %v3806_v0 = vmul.f32 %v8538_v8, %v8538_v8 }
 0x449   :  { %v3822_v61 = vsub.f32 %v3790_v41, %v3806_v0 }
 0x44b   :  { %v3854_v40 = vadd.f32 1e-05, %v3822_v61 }
 0x44c   :  { %v3767_v53 = vpop.xlane.xlu2 %3766 }
 0x44d   :  { %5982 = vrsqrt.f32 %v3854_v40  ;;  %v3791_v48 = vmul.f32 %v3767_v53, %v8229_v52  ;;  %vm3930_vm14 = vweird.f32 %v3854_v40 }
 0x44f   :  { %v3823_v62 = vsub.f32 %v3791_v48, %v3807_v63 }
 0x451   :  { %v3855_v54 = vadd.f32 1e-05, %v3823_v62 }
 0x453   :  { %v5983_v32 = vpop.eup %5982  ;;  %5984 = vrsqrt.f32 %v3855_v54  ;;  %vm3940_vm2 = vweird.f32 %v3855_v54 }
 0x454   :  { %v3925_v4 = vmul.f32 %v5983_v32, %v3854_v40  ;;  %v3769_v38 = vpop.xlane.xlu2 %3768  ;;  %5986 = vrsqrt.f32 %v8560_v33  ;;  %vm3931_vm13 = vweird.f32 %v5983_v32  ;;  %v3838_v40 = vsub.f32 %v8134_v14, %v8538_v8 }
 0x455   :  { %v3792_v15 = vmul.f32 %v3769_v38, %v8229_v52  ;;  %vm8575_vm15 = vmor %vm3930_vm14, %vm3931_vm13 }
 0x456   :  { %v3926_v60 = vmul.f32 %v5983_v32, %v3925_v4 }
 0x457   :  { %v3824_v59 = vsub.f32 %v3792_v15, %v3808_v16 }
 0x458   :  { %v3927_v22 = vmul.f32 0.5, %v3926_v60 }
 0x459   :  { %v5985_v34 = vpop.eup %5984  ;;  %v8566_v37 = vadd.f32 1e-05, %v3824_v59 }
 0x45a   :  { %v3935_v10 = vmul.f32 %v5985_v34, %v3855_v54  ;;  %v3928_v27 = vsub.f32 1.5, %v3927_v22  ;;  %v8569_v41 = vpop.eup %5986  ;;  %vm3941_vm1 = vweird.f32 %v5985_v34 }
 0x45b   :  { %5988 = vrsqrt.f32 %v8566_v37  ;;  %v3955_v44 = vmul.f32 %v8569_v41, %v8560_v33  ;;  %vm3942_vm3 = vmor %vm3940_vm2, %vm3941_vm1  ;;  %vm3961_vm5 = vweird.f32 %v8569_v41  ;;  %vm3950_vm6 = vweird.f32 %v8566_v37 }
 0x45c   :  { %v3936_v0 = vmul.f32 %v5985_v34, %v3935_v10  ;;  %v3773_v61 = vpop.xlane.xlu2 %3772  ;;  %v3929_v53 = vmul.f32 %v5983_v32, %v3928_v27  ;;  %vm8637_vm10 = vmor %vm3960_vm9, %vm3961_vm5 }
 0x45d   :  { %v3956_v15 = vmul.f32 %v8569_v41, %v3955_v44  ;;  %v3794_v54 = vmul.f32 %v3773_v61, %v8229_v52  ;;  %v5785_v61 = vld [vmem:[#allocation14 + $0x30] sm:$0xff] }
 0x45e   :  { %v3937_v47 = vmul.f32 0.5, %v3936_v0  ;;  %v3933_v60 = vsel %vm8575_vm15, %v5983_v32, %v3929_v53  ;;  %v3839_v32 = vsub.f32 %v8152_v19, %v8548_v58  ;;  %4467 = vmatpush.bf16.msra.mxu0 %v5785_v61 }
 0x45f   :  { %v4030_v44 = vmul.f32 %v3933_v60, %v3838_v40  ;;  %v3957_v8 = vmul.f32 0.5, %v3956_v15 }
 0x460   :  { %v3938_v63 = vsub.f32 1.5, %v3937_v47 }
 0x461   :  { %v8573_v48 = vpop.eup %5988  ;;  %v3704_v12 = vpop.xlane.xlu0 %3703  ;;  %v4049_v29 = vmul.f32 %v8361_v43, %v4030_v44  ;;  %v3958_v19 = vsub.f32 1.5, %v3957_v8 }
 0x462   :  { %v3939_v4 = vmul.f32 %v5985_v34, %v3938_v63  ;;  %v3945_v38 = vmul.f32 %v8573_v48, %v8566_v37  ;;  %v8582_v16 = vmul.f32 %v8229_v52, %v3704_v12  ;;  %vm3951_vm4 = vweird.f32 %v8573_v48  ;;  %4468 = vmatpush.bf16.msra.mxu0 %v5784_v51 }
 0x463   :  { %v8612_v40 = vadd.f32 %v8406_v30, %v4049_v29  ;;  %vm8620_vm8 = vmor %vm3950_vm6, %vm3951_vm4 }
 0x464   :  { %v3946_v59 = vmul.f32 %v8573_v48, %v3945_v38  ;;  %v3811_v22 = vmul.f32 %v8582_v16, %v8582_v16  ;;  %v3702_v10 = vpop.xlane.xlu1 %3701  ;;  %v3775_v27 = vpop.xlane.xlu2 %3774  ;;  %v3943_v53 = vsel %vm3942_vm3, %v5985_v34, %v3939_v4  ;;  %v5793_v4 = vld [vmem:[#allocation14 + $0x70] sm:$0xff] }
 0x465   :  { %v8593_v0 = vmul.f32 %v8229_v52, %v3702_v10  ;;  %v3795_v47 = vmul.f32 %v3775_v27, %v8229_v52  ;;  %v4031_v10 = vmul.f32 %v3943_v53, %v3839_v32  ;;  %v5794_v27 = vld [vmem:[#allocation14 + $0x78] sm:$0xff]  ;;  %v5781_v32 = vld [vmem:[#allocation14 + $0x10] sm:$0xff] }
 0x466   :  { %v3947_v14 = vmul.f32 0.5, %v3946_v59  ;;  %4515 = vmatpush.bf16.msra.mxu1 %v5794_v27 }
 0x467   :  { %v3810_v63 = vmul.f32 %v8593_v0, %v8593_v0  ;;  %v3827_v12 = vsub.f32 %v3795_v47, %v3811_v22  ;;  %v4050_v34 = vmul.f32 %v8361_v43, %v4031_v10  ;;  %v3959_v22 = vmul.f32 %v8569_v41, %v3958_v19  ;;  %v5792_v47 = vld [vmem:[#allocation14 + $0x68] sm:$0xff] }
 0x468   :  { %v3948_v62 = vsub.f32 1.5, %v3947_v14  ;;  %v3840_v14 = vsub.f32 %v8165_v46, %v8558_v9  ;;  %v3841_v46 = vsub.f32 %v8179_v31, %v8541_v45 }
 0x469   :  { %v3826_v38 = vsub.f32 %v3794_v54, %v3810_v63  ;;  %v8601_v26 = vadd.f32 1e-05, %v3827_v12  ;;  %v8615_v59 = vadd.f32 %v8406_v30, %v4050_v34  ;;  %v5783_v63 = vld [vmem:[#allocation14 + $0x20] sm:$0xff] }
 0x46a   :  { %v3949_v15 = vmul.f32 %v8573_v48, %v3948_v62  ;;  %4516 = vmatpush.bf16.msra.mxu1 %v5793_v4  ;;  %v5791_v12 = vld [vmem:[#allocation14 + $0x60] sm:$0xff]  ;;  %4469 = vmatpush.bf16.msra.mxu0 %v5783_v63  ;;  %v5782_v4 = vld [vmem:[#allocation14 + $0x18] sm:$0xff] }
 0x46b   :  { %v8604_v58 = vadd.f32 1e-05, %v3826_v38  ;;  %5990 = vrsqrt.f32 %v8601_v26  ;;  %v4081_v29 = vpack.c.bf16 %v8615_v59, %v8612_v40  ;;  %vm3980_vm13 = vweird.f32 %v8601_v26 }
 0x46c   :  { %v3706_v60 = vpop.xlane.xlu2 %3705  ;;  %v3953_v53 = vsel %vm8620_vm8, %v8573_v48, %v3949_v15  ;;  %v3963_v48 = vsel %vm8637_vm10, %v8569_v41, %v3959_v22  ;;  %v3777_v38 = vpop.xlane.xlu1 %3776  ;;  %v5790_v15 = vld [vmem:[#allocation14 + $0x58] sm:$0xff] }
 0x46d   :  { %5992 = vrsqrt.f32 %v8604_v58  ;;  %v8633_v37 = vmul.f32 %v8229_v52, %v3706_v60  ;;  %4211 = vmatmul.bf16.gmra.mxu2 %v4081_v29  ;;  %4260 = vmatmul.bf16.gmra.mxu3 %v4081_v29  ;;  %v4032_v10 = vmul.f32 %v3953_v53, %v3840_v14  ;;  %v4033_v34 = vmul.f32 %v3963_v48, %v3841_v46  ;;  %v5789_v29 = vld [vmem:[#allocation14 + $0x50] sm:$0xff] }
 0x46e   :  { %4517 = vmatpush.bf16.msra.mxu1 %v5792_v47  ;;  %v3796_v41 = vmul.f32 %v3777_v38, %v8229_v52  ;;  %4470 = vmatpush.bf16.msra.mxu0 %v5782_v4  ;;  %vm3970_vm0 = vweird.f32 %v8604_v58  ;;  %v3842_v46 = vsub.f32 %v8274_v50, %v8593_v0 }
 0x46f   :  { %v3812_v27 = vmul.f32 %v8633_v37, %v8633_v37  ;;  %v4051_v31 = vmul.f32 %v8361_v43, %v4032_v10  ;;  %v4052_v51 = vmul.f32 %v8361_v43, %v4033_v34  ;;  %v5780_v10 = vld [vmem:[#allocation14 + $0x8] sm:$0xff] }
 0x471   :  { %v8626_v44 = vpop.eup %5990  ;;  %v3828_v45 = vsub.f32 %v3796_v41, %v3812_v27  ;;  %v8656_v53 = vadd.f32 %v8406_v30, %v4051_v31  ;;  %v5788_v27 = vld [vmem:[#allocation14 + $0x48] sm:$0xff] }
 0x472   :  { %v3975_v54 = vmul.f32 %v8626_v44, %v8601_v26  ;;  %4518 = vmatpush.bf16.msra.mxu1 %v5791_v12  ;;  %vm3981_vm7 = vweird.f32 %v8626_v44  ;;  %4471 = vmatpush.bf16.msra.mxu0 %v5781_v32  ;;  %v5779_v26 = vld [vmem:[#allocation14] sm:$0xff] }
 0x473   :  { %v5993_v33 = vpop.eup %5992  ;;  %v8658_v8 = vadd.f32 1e-05, %v3828_v45  ;;  %vm3982_vm14 = vmor %vm3980_vm13, %vm3981_vm7 }
 0x474   :  { %v3965_v9 = vmul.f32 %v5993_v33, %v8604_v58  ;;  %v3976_v62 = vmul.f32 %v8626_v44, %v3975_v54  ;;  %vm3971_vm11 = vweird.f32 %v5993_v33  ;;  %v8661_v54 = vadd.f32 %v8406_v30, %v4052_v51 }
 0x475   :  { %vm3972_vm12 = vmor %vm3970_vm0, %vm3971_vm11  ;;  %5994 = vrsqrt.f32 %v8658_v8  ;;  %vm3990_vm1 = vweird.f32 %v8658_v8 }
 0x476   :  { %v3966_v19 = vmul.f32 %v5993_v33, %v3965_v9  ;;  %v3977_v61 = vmul.f32 0.5, %v3976_v62  ;;  %4519 = vmatpush.bf16.msra.mxu1 %v5790_v15  ;;  %v4082_v63 = vpack.c.bf16 %v8661_v54, %v8656_v53  ;;  %v3843_v9 = vsub.f32 %v8296_v21, %v8582_v16  ;;  %4472 = vmatpush.bf16.msra.mxu0 %v5780_v10 }
 0x478   :  { %v3967_v60 = vmul.f32 0.5, %v3966_v19  ;;  %v3978_v47 = vsub.f32 1.5, %v3977_v61  ;;  %v5787_v19 = vld [vmem:[#allocation14 + $0x40] sm:$0xff] }
 0x47a   :  { %v3968_v22 = vsub.f32 1.5, %v3967_v60  ;;  %v3979_v48 = vmul.f32 %v8626_v44, %v3978_v47  ;;  %4520 = vmatpush.bf16.msra.mxu1 %v5789_v29  ;;  %4473 = vmatpush.bf16.msra.mxu0 %v5779_v26 }
 0x47b   :  { %v5995_v34 = vpop.eup %5994 }
 0x47c   :  { %v3969_v14 = vmul.f32 %v5993_v33, %v3968_v22  ;;  %v3983_v58 = vsel %vm3982_vm14, %v8626_v44, %v3979_v48  ;;  %v4102_v44 = vld [vmem:[%s9037_s16] sm:$0x3]  ;;  %v3985_v16 = vmul.f32 %v5995_v34, %v8658_v8  ;;  %vm3991_vm15 = vweird.f32 %v5995_v34 }
 0x47d   :  { %4216 = vmatmul.bf16.gmra.mxu2 %v4082_v63  ;;  %4265 = vmatmul.bf16.gmra.mxu3 %v4082_v63  ;;  %v8682_v4 = vperm.slane %v4102_v44, 0  ;;  %v8684_v15 = vperm.slane %v4102_v44, 1  ;;  %vm3992_vm2 = vmor %vm3990_vm1, %vm3991_vm15 }
 0x47e   :  { %v3973_v12 = vsel %vm3972_vm12, %v5993_v33, %v3969_v14  ;;  %v4035_v33 = vmul.f32 %v3983_v58, %v3843_v9  ;;  %4521 = vmatpush.bf16.msra.mxu1 %v5788_v27  ;;  %v3986_v51 = vmul.f32 %v5995_v34, %v3985_v16 }
 0x47f   :  { %v4034_v62 = vmul.f32 %v3973_v12, %v3842_v46 }
 0x480   :  { %v4054_v41 = vmul.f32 %v8361_v43, %v4035_v33  ;;  %v3987_v58 = vmul.f32 0.5, %v3986_v51 }
 0x481   :  { %v4053_v50 = vmul.f32 %v8361_v43, %v4034_v62 }
 0x482   :  { %4522 = vmatpush.bf16.msra.mxu1 %v5787_v19  ;;  %v8691_v47 = vadd.f32 %v8406_v30, %v4054_v41  ;;  %v3988_v26 = vsub.f32 1.5, %v3987_v58 }
 0x483   :  { %v3708_v38 = vpop.xlane.xlu2 %3707  ;;  %v8687_v31 = vadd.f32 %v8406_v30, %v4053_v50 }
 0x484   :  { %v3733_v0 = vmul.f32 %v8229_v52, %v3708_v38 }
 0x485   :  { %v4083_v48 = vpack.c.bf16 %v8691_v47, %v8687_v31 }
 0x486   :  { %v3813_v45 = vmul.f32 %v3733_v0, %v3733_v0 }
 0x487   :  { %v4197_v61 = vpop.f32.mrf.mxu2  ;;  %v4246_v21 = vpop.f32.mrf.mxu3 }
 0x488   :  { %v4198_v29 = vadd.f32 %v4197_v61, %v8682_v4  ;;  %v4247_v14 = vadd.f32 %v4246_v21, %v8684_v15  ;;  %v3989_v61 = vmul.f32 %v5995_v34, %v3988_v26 }
 0x48a   :  { %v4286_v38 = vmax.f32 %v4198_v29, 0.0  ;;  %v4287_v10 = vmax.f32 %v4247_v14, 0.0  ;;  %v3993_v41 = vsel %vm3992_vm2, %v5995_v34, %v3989_v61 }
 0x48b   :  { %v3779_v60 = vpop.xlane.xlu2 %3778 }
 0x48c   :  { %v3797_v22 = vmul.f32 %v3779_v60, %v8229_v52 }
 0x48d   :  { %4221 = vmatmul.bf16.gmra.mxu2 %v4083_v48  ;;  %4270 = vmatmul.bf16.gmra.mxu3 %v4083_v48  ;;  %v3845_v48 = vsub.f32 %v8445_v24, %v3733_v0 }
 0x48e   :  { %v3829_v32 = vsub.f32 %v3797_v22, %v3813_v45  ;;  %v3844_v45 = vsub.f32 %v8320_v25, %v8633_v37 }
 0x48f   :  { %v4199_v12 = vpop.f32.mrf.mxu2  ;;  %v4248_v46 = vpop.f32.mrf.mxu3 }
 0x490   :  { %v3861_v63 = vadd.f32 1e-05, %v3829_v32  ;;  %v4200_v9 = vadd.f32 %v4199_v12, %v8682_v4  ;;  %v4249_v62 = vadd.f32 %v4248_v46, %v8684_v15  ;;  %v4036_v29 = vmul.f32 %v3993_v41, %v3844_v45 }
 0x492   :  { %5996 = vrsqrt.f32 %v3861_v63  ;;  %v4288_v27 = vmax.f32 %v4200_v9, 0.0  ;;  %v4289_v33 = vmax.f32 %v4249_v62, 0.0  ;;  %vm4000_vm4 = vweird.f32 %v3861_v63 }
 0x493   :  { %v4055_v8 = vmul.f32 %v8361_v43, %v4036_v29 }
 0x494   :  { %v4318_v19 = vpack.c.bf16 %v4288_v27, %v4286_v38  ;;  %v4319_v50 = vpack.c.bf16 %v4289_v33, %v4287_v10 }
 0x496   :  { %4474 = vmatmul.bf16.vlgmr.msra.gmra.mxu0 %v4318_v19  ;;  %4523 = vmatmul.bf16.vlgmr.msra.gmra.mxu1 %v4319_v50 }
 0x498   :  { %v5997_v44 = vpop.eup %5996 }
 0x499   :  { %v3995_v21 = vmul.f32 %v5997_v44, %v3861_v63  ;;  %vm4001_vm3 = vweird.f32 %v5997_v44  ;;  %v8710_v63 = vadd.f32 %v8406_v30, %v4055_v8 }
 0x49a   :  { %vm4002_vm5 = vmor %vm4000_vm4, %vm4001_vm3 }
 0x49b   :  { %v3996_v16 = vmul.f32 %v5997_v44, %v3995_v21 }
 0x49d   :  { %v3997_v60 = vmul.f32 0.5, %v3996_v16 }
 0x49f   :  { %v3998_v22 = vsub.f32 1.5, %v3997_v60 }
 0x4a0   :  { %v4202_v51 = vpop.f32.mrf.mxu2  ;;  %v4251_v32 = vpop.f32.mrf.mxu3 }
 0x4a1   :  { %v3999_v14 = vmul.f32 %v5997_v44, %v3998_v22  ;;  %v4203_v34 = vadd.f32 %v4202_v51, %v8682_v4  ;;  %v4252_v58 = vadd.f32 %v4251_v32, %v8684_v15 }
 0x4a3   :  { %v4003_v12 = vsel %vm4002_vm5, %v5997_v44, %v3999_v14  ;;  %v4290_v0 = vmax.f32 %v4203_v34, 0.0  ;;  %v4291_v10 = vmax.f32 %v4252_v58, 0.0 }
 0x4a4   :  { %v4037_v46 = vmul.f32 %v4003_v12, %v3845_v48 }
 0x4a6   :  { %v4056_v25 = vmul.f32 %v8361_v43, %v4037_v46 }
 0x4a8   :  { %v4204_v37 = vpop.f32.mrf.mxu2  ;;  %v4253_v9 = vpop.f32.mrf.mxu3  ;;  %v8713_v24 = vadd.f32 %v8406_v30, %v4056_v25 }
 0x4a9   :  { %v4205_v62 = vadd.f32 %v4204_v37, %v8682_v4  ;;  %v4254_v38 = vadd.f32 %v4253_v9, %v8684_v15 }
 0x4aa   :  { %v4084_v26 = vpack.c.bf16 %v8713_v24, %v8710_v63 }
 0x4ab   :  { %v4292_v27 = vmax.f32 %v4205_v62, 0.0  ;;  %v4293_v33 = vmax.f32 %v4254_v38, 0.0 }
 0x4ac   :  { %4226 = vmatmul.bf16.gmra.mxu2 %v4084_v26  ;;  %4275 = vmatmul.bf16.gmra.mxu3 %v4084_v26 }
 0x4ad   :  { %v4320_v19 = vpack.c.bf16 %v4292_v27, %v4290_v0  ;;  %v4321_v50 = vpack.c.bf16 %v4293_v33, %v4291_v10 }
 0x4ae   :  { %v3712_v41 = vpop.xlane.xlu1 %3711 }
 0x4af   :  { %4479 = vmatmul.bf16.gmra.mxu0 %v4320_v19  ;;  %4528 = vmatmul.bf16.gmra.mxu1 %v4321_v50  ;;  %v3735_v51 = vmul.f32 %v8229_v52, %v3712_v41 }
 0x4b0   :  { %v4207_v44 = vpop.f32.mrf.mxu2  ;;  %v4256_v61 = vpop.f32.mrf.mxu3 }
 0x4b1   :  { %v3710_v21 = vpop.xlane.xlu0 %3709  ;;  %v4208_v29 = vadd.f32 %v4207_v44, %v8682_v4  ;;  %v4257_v14 = vadd.f32 %v4256_v61, %v8684_v15  ;;  %v3815_v25 = vmul.f32 %v3735_v51, %v3735_v51 }
 0x4b2   :  { %v3734_v16 = vmul.f32 %v8229_v52, %v3710_v21 }
 0x4b3   :  { %v3781_v60 = vpop.xlane.xlu2 %3780  ;;  %v4294_v9 = vmax.f32 %v4208_v29, 0.0  ;;  %v4295_v62 = vmax.f32 %v4257_v14, 0.0 }
 0x4b4   :  { %v3814_v45 = vmul.f32 %v3734_v16, %v3734_v16  ;;  %v3798_v22 = vmul.f32 %v3781_v60, %v8229_v52  ;;  %v3846_v14 = vsub.f32 %v8530_v2, %v3734_v16 }
 0x4b6   :  { %v3830_v32 = vsub.f32 %v3798_v22, %v3814_v45 }
 0x4b8   :  { %v3862_v48 = vadd.f32 1e-05, %v3830_v32  ;;  %v4209_v12 = vpop.f32.mrf.mxu2  ;;  %v4258_v8 = vpop.f32.mrf.mxu3 }
 0x4b9   :  { %v4210_v46 = vadd.f32 %v4209_v12, %v8682_v4  ;;  %v4259_v34 = vadd.f32 %v4258_v8, %v8684_v15  ;;  %v3783_v58 = vpop.xlane.xlu0 %3782 }
 0x4ba   :  { %5998 = vrsqrt.f32 %v3862_v48  ;;  %v3799_v37 = vmul.f32 %v3783_v58, %v8229_v52  ;;  %vm4010_vm8 = vweird.f32 %v3862_v48 }
 0x4bb   :  { %v4296_v38 = vmax.f32 %v4210_v46, 0.0  ;;  %v4297_v0 = vmax.f32 %v4259_v34, 0.0  ;;  %v3847_v34 = vsub.f32 %v8521_v57, %v3735_v51 }
 0x4bc   :  { %v3831_v10 = vsub.f32 %v3799_v37, %v3815_v25 }
 0x4bd   :  { %v4322_v27 = vpack.c.bf16 %v4296_v38, %v4294_v9  ;;  %v4323_v33 = vpack.c.bf16 %v4297_v0, %v4295_v62 }
 0x4be   :  { %v3863_v26 = vadd.f32 1e-05, %v3831_v10 }
 0x4bf   :  { %4484 = vmatmul.bf16.gmra.mxu0 %v4322_v27  ;;  %4533 = vmatmul.bf16.gmra.mxu1 %v4323_v33 }
 0x4c0   :  { %v5999_v19 = vpop.eup %5998  ;;  %6000 = vrsqrt.f32 %v3863_v26  ;;  %vm4020_vm11 = vweird.f32 %v3863_v26 }
 0x4c1   :  { %v4005_v50 = vmul.f32 %v5999_v19, %v3862_v48  ;;  %vm4011_vm6 = vweird.f32 %v5999_v19 }
 0x4c2   :  { %vm4012_vm9 = vmor %vm4010_vm8, %vm4011_vm6 }
 0x4c3   :  { %v4006_v44 = vmul.f32 %v5999_v19, %v4005_v50 }
 0x4c5   :  { %v4007_v61 = vmul.f32 0.5, %v4006_v44 }
 0x4c6   :  { %v6001_v21 = vpop.eup %6000 }
 0x4c7   :  { %v4008_v41 = vsub.f32 1.5, %v4007_v61  ;;  %v4015_v60 = vmul.f32 %v6001_v21, %v3863_v26  ;;  %vm4021_vm10 = vweird.f32 %v6001_v21 }
 0x4c8   :  { %vm4022_vm0 = vmor %vm4020_vm11, %vm4021_vm10 }
 0x4c9   :  { %v4009_v45 = vmul.f32 %v5999_v19, %v4008_v41  ;;  %v4016_v22 = vmul.f32 %v6001_v21, %v4015_v60 }
 0x4cb   :  { %v4013_v32 = vsel %vm4012_vm9, %v5999_v19, %v4009_v45  ;;  %v4017_v29 = vmul.f32 0.5, %v4016_v22 }
 0x4cc   :  { %v4038_v8 = vmul.f32 %v4013_v32, %v3846_v14 }
 0x4cd   :  { %v4018_v12 = vsub.f32 1.5, %v4017_v29 }
 0x4ce   :  { %v4057_v37 = vmul.f32 %v8361_v43, %v4038_v8 }
 0x4cf   :  { %v4019_v46 = vmul.f32 %v6001_v21, %v4018_v12 }
 0x4d0   :  { %v8730_v9 = vadd.f32 %v8406_v30, %v4057_v37 }
 0x4d1   :  { %v4023_v58 = vsel %vm4022_vm0, %v6001_v21, %v4019_v46 }
 0x4d2   :  { %v4039_v25 = vmul.f32 %v4023_v58, %v3847_v34 }
 0x4d4   :  { %v4058_v48 = vmul.f32 %v8361_v43, %v4039_v25  ;;  %v8748_v25 = vld [vmem:[%s9039_s18] ss:$0 sm:$0xff] }
 0x4d6   :  { %v8733_v62 = vadd.f32 %v8406_v30, %v4058_v48 }
 0x4d8   :  { %v4085_v2 = vpack.c.bf16 %v8733_v62, %v8730_v9 }
 0x4da   :  { %4231 = vmatmul.bf16.gmra.mxu2 %v4085_v2  ;;  %4280 = vmatmul.bf16.gmra.mxu3 %v4085_v2 }
 0x4f0   :  { %v4212_v16 = vpop.f32.mrf.mxu2  ;;  %v4261_v57 = vpop.f32.mrf.mxu3 }
 0x4f1   :  { %v4213_v51 = vadd.f32 %v4212_v16, %v8682_v4  ;;  %v4262_v38 = vadd.f32 %v4261_v57, %v8684_v15 }
 0x4f3   :  { %v4298_v33 = vmax.f32 %v4213_v51, 0.0  ;;  %v4299_v30 = vmax.f32 %v4262_v38, 0.0 }
 0x4f8   :  { %v4214_v0 = vpop.f32.mrf.mxu2  ;;  %v4263_v10 = vpop.f32.mrf.mxu3 }
 0x4f9   :  { %v4215_v43 = vadd.f32 %v4214_v0, %v8682_v4  ;;  %v4264_v27 = vadd.f32 %v4263_v10, %v8684_v15 }
 0x4fb   :  { %v4300_v26 = vmax.f32 %v4215_v43, 0.0  ;;  %v4301_v19 = vmax.f32 %v4264_v27, 0.0 }
 0x4fd   :  { %v4324_v50 = vpack.c.bf16 %v4300_v26, %v4298_v33  ;;  %v4325_v44 = vpack.c.bf16 %v4301_v19, %v4299_v30 }
 0x4ff   :  { %4489 = vmatmul.bf16.gmra.mxu0 %v4324_v50  ;;  %4538 = vmatmul.bf16.gmra.mxu1 %v4325_v44 }
 0x500   :  { %v4217_v61 = vpop.f32.mrf.mxu2  ;;  %v4266_v21 = vpop.f32.mrf.mxu3 }
 0x501   :  { %v4218_v41 = vadd.f32 %v4217_v61, %v8682_v4  ;;  %v4267_v60 = vadd.f32 %v4266_v21, %v8684_v15 }
 0x503   :  { %v4302_v14 = vmax.f32 %v4218_v41, 0.0  ;;  %v4303_v12 = vmax.f32 %v4267_v60, 0.0 }
 0x508   :  { %v4219_v45 = vpop.f32.mrf.mxu2  ;;  %v4268_v22 = vpop.f32.mrf.mxu3 }
 0x509   :  { %v4220_v32 = vadd.f32 %v4219_v45, %v8682_v4  ;;  %v4269_v29 = vadd.f32 %v4268_v22, %v8684_v15 }
 0x50b   :  { %v4304_v8 = vmax.f32 %v4220_v32, 0.0  ;;  %v4305_v46 = vmax.f32 %v4269_v29, 0.0 }
 0x50d   :  { %v4326_v34 = vpack.c.bf16 %v4304_v8, %v4302_v14  ;;  %v4327_v58 = vpack.c.bf16 %v4305_v46, %v4303_v12 }
 0x50f   :  { %4494 = vmatmul.bf16.gmra.mxu0 %v4326_v34  ;;  %4543 = vmatmul.bf16.gmra.mxu1 %v4327_v58 }
 0x510   :  { %v4222_v37 = vpop.f32.mrf.mxu2  ;;  %v4271_v48 = vpop.f32.mrf.mxu3 }
 0x511   :  { %v4223_v0 = vadd.f32 %v4222_v37, %v8682_v4  ;;  %v4272_v10 = vadd.f32 %v4271_v48, %v8684_v15 }
 0x513   :  { %v4475_v2 = vpop.f32.mrf.mxu0  ;;  %v4524_v16 = vpop.f32.mrf.mxu1  ;;  %v4306_v44 = vmax.f32 %v4223_v0, 0.0  ;;  %v4307_v61 = vmax.f32 %v4272_v10, 0.0 }
 0x514   :  { %v4476_v57 = vadd.f32 %v8748_v25, %v4475_v2 }
 0x516   :  { %v4525_v51 = vadd.f32 %v4524_v16, %v4476_v57 }
 0x518   :  { %v4564_v38 = vmul.f32 %v4525_v51, %v7919_v7  ;;  %v4224_v43 = vpop.f32.mrf.mxu2  ;;  %v4273_v27 = vpop.f32.mrf.mxu3 }
 0x519   :  { %v4225_v30 = vadd.f32 %v4224_v43, %v8682_v4  ;;  %v4274_v26 = vadd.f32 %v4273_v27, %v8684_v15 }
 0x51a   :  { %v8755_v33 = vadd.f32 %v4564_v38, %v8410_v5 }
 0x51b   :  { %v4477_v19 = vpop.f32.mrf.mxu0  ;;  %v4308_v21 = vmax.f32 %v4225_v30, 0.0  ;;  %v4309_v41 = vmax.f32 %v4274_v26, 0.0  ;;  %v4526_v60 = vpop.f32.mrf.mxu1 }
 0x51c   :  { %v4478_v50 = vadd.f32 %v8748_v25, %v4477_v19  ;;  %4598 = vadd.xlane.f32.xlu1 %v8755_v33  ;;  %v4646_v7 = vmul.f32 %v8755_v33, %v8755_v33 }
 0x51d   :  { %v4328_v5 = vpack.c.bf16 %v4308_v21, %v4306_v44  ;;  %v4329_v22 = vpack.c.bf16 %v4309_v41, %v4307_v61 }
 0x51e   :  { %v4527_v45 = vadd.f32 %v4526_v60, %v4478_v50  ;;  %4662 = vadd.xlane.f32.xlu2 %v4646_v7 }
 0x51f   :  { %4499 = vmatmul.bf16.gmra.mxu0 %v4328_v5  ;;  %4548 = vmatmul.bf16.gmra.mxu1 %v4329_v22 }
 0x520   :  { %v4565_v32 = vmul.f32 %v4527_v45, %v7970_v17 }
 0x522   :  { %v8765_v29 = vadd.f32 %v4565_v32, %v8413_v23 }
 0x524   :  { %v4647_v14 = vmul.f32 %v8765_v29, %v8765_v29 }
 0x526   :  { %4664 = vadd.xlane.f32.xlu0 %v4647_v14  ;;  %4600 = vadd.xlane.f32.xlu2 %v8765_v29 }
 0x52c   :  { %v4480_v12 = vpop.f32.mrf.mxu0  ;;  %v4529_v8 = vpop.f32.mrf.mxu1 }
 0x52d   :  { %v4481_v46 = vadd.f32 %v8748_v25, %v4480_v12 }
 0x52f   :  { %v4530_v34 = vadd.f32 %v4529_v8, %v4481_v46  ;;  %v4227_v58 = vpop.f32.mrf.mxu2  ;;  %v4276_v37 = vpop.f32.mrf.mxu3 }
 0x530   :  { %v4228_v51 = vadd.f32 %v4227_v58, %v8682_v4  ;;  %v4277_v38 = vadd.f32 %v4276_v37, %v8684_v15 }
 0x531   :  { %v4566_v17 = vmul.f32 %v4530_v34, %v8000_v36 }
 0x532   :  { %v4310_v30 = vmax.f32 %v4228_v51, 0.0  ;;  %v4311_v26 = vmax.f32 %v4277_v38, 0.0 }
 0x533   :  { %v8773_v48 = vadd.f32 %v4566_v17, %v8462_v56 }
 0x534   :  { %v4482_v23 = vpop.f32.mrf.mxu0  ;;  %v4531_v2 = vpop.f32.mrf.mxu1 }
 0x535   :  { %v4483_v16 = vadd.f32 %v8748_v25, %v4482_v23  ;;  %4602 = vadd.xlane.f32.xlu0 %v8773_v48  ;;  %v4648_v57 = vmul.f32 %v8773_v48, %v8773_v48 }
 0x537   :  { %v4532_v0 = vadd.f32 %v4531_v2, %v4483_v16  ;;  %4666 = vadd.xlane.f32.xlu1 %v4648_v57  ;;  %v4229_v10 = vpop.f32.mrf.mxu2  ;;  %v4278_v36 = vpop.f32.mrf.mxu3 }
 0x538   :  { %v4230_v43 = vadd.f32 %v4229_v10, %v8682_v4  ;;  %v4279_v27 = vadd.f32 %v4278_v36, %v8684_v15 }
 0x539   :  { %v4567_v56 = vmul.f32 %v4532_v0, %v8041_v1 }
 0x53a   :  { %v4312_v19 = vmax.f32 %v4230_v43, 0.0  ;;  %v4313_v50 = vmax.f32 %v4279_v27, 0.0 }
 0x53b   :  { %v8785_v7 = vadd.f32 %v4567_v56, %v8465_v13 }
 0x53c   :  { %v4485_v44 = vpop.f32.mrf.mxu0  ;;  %v4534_v61 = vpop.f32.mrf.mxu1  ;;  %v4330_v21 = vpack.c.bf16 %v4312_v19, %v4310_v30  ;;  %v4331_v41 = vpack.c.bf16 %v4313_v50, %v4311_v26 }
 0x53d   :  { %v4486_v60 = vadd.f32 %v8748_v25, %v4485_v44  ;;  %v4649_v1 = vmul.f32 %v8785_v7, %v8785_v7 }
 0x53e   :  { %4504 = vmatmul.bf16.gmra.mxu0 %v4330_v21  ;;  %4553 = vmatmul.bf16.gmra.mxu1 %v4331_v41 }
 0x53f   :  { %v4535_v45 = vadd.f32 %v4534_v61, %v4486_v60  ;;  %4604 = vadd.xlane.f32.xlu1 %v8785_v7  ;;  %4668 = vadd.xlane.f32.xlu2 %v4649_v1 }
 0x541   :  { %v4568_v5 = vmul.f32 %v4535_v45, %v8062_v39 }
 0x543   :  { %v8793_v13 = vadd.f32 %v4568_v5, %v8503_v55 }
 0x544   :  { %v4487_v22 = vpop.f32.mrf.mxu0  ;;  %v4536_v12 = vpop.f32.mrf.mxu1 }
 0x545   :  { %v4488_v32 = vadd.f32 %v8748_v25, %v4487_v22  ;;  %v4650_v14 = vmul.f32 %v8793_v13, %v8793_v13 }
 0x547   :  { %v4537_v8 = vadd.f32 %v4536_v12, %v4488_v32  ;;  %4670 = vadd.xlane.f32.xlu0 %v4650_v14  ;;  %4606 = vadd.xlane.f32.xlu2 %v8793_v13 }
 0x549   :  { %v4569_v46 = vmul.f32 %v4537_v8, %v8098_v3 }
 0x54b   :  { %v8801_v34 = vadd.f32 %v4569_v46, %v8491_v6 }
 0x54d   :  { %v4651_v39 = vmul.f32 %v8801_v34, %v8801_v34 }
 0x54f   :  { %4672 = vadd.xlane.f32.xlu1 %v4651_v39  ;;  %4608 = vadd.xlane.f32.xlu0 %v8801_v34 }
 0x55d   :  { %v4232_v55 = vpop.f32.mrf.mxu2  ;;  %v4281_v58 = vpop.f32.mrf.mxu3 }
 0x55e   :  { %v4233_v37 = vadd.f32 %v4232_v55, %v8682_v4  ;;  %v4282_v17 = vadd.f32 %v4281_v58, %v8684_v15 }
 0x560   :  { %v4314_v6 = vmax.f32 %v4233_v37, 0.0  ;;  %v4315_v57 = vmax.f32 %v4282_v17, 0.0 }
 0x565   :  { %v4234_v23 = vpop.f32.mrf.mxu2  ;;  %v4283_v2 = vpop.f32.mrf.mxu3 }
 0x566   :  { %v4235_v16 = vadd.f32 %v4234_v23, %v8682_v4  ;;  %v4284_v3 = vadd.f32 %v4283_v2, %v8684_v15 }
 0x568   :  { %v4316_v51 = vmax.f32 %v4235_v16, 0.0  ;;  %v4317_v38 = vmax.f32 %v4284_v3, 0.0 }
 0x56a   :  { %v4332_v0 = vpack.c.bf16 %v4316_v51, %v4314_v6  ;;  %v4333_v10 = vpack.c.bf16 %v4317_v38, %v4315_v57 }
 0x56c   :  { %4509 = vmatmul.bf16.gmra.mxu0 %v4332_v0  ;;  %4558 = vmatmul.bf16.gmra.mxu1 %v4333_v10 }
 0x57c   :  { %v4490_v36 = vpop.f32.mrf.mxu0  ;;  %v4539_v56 = vpop.f32.mrf.mxu1 }
 0x57d   :  { %v4491_v43 = vadd.f32 %v8748_v25, %v4490_v36 }
 0x57f   :  { %v4540_v27 = vadd.f32 %v4539_v56, %v4491_v43 }
 0x581   :  { %v4570_v30 = vmul.f32 %v4540_v27, %v8124_v28 }
 0x583   :  { %v8813_v26 = vadd.f32 %v4570_v30, %v8612_v40 }
 0x584   :  { %v4492_v4 = vpop.f32.mrf.mxu0  ;;  %v4541_v15 = vpop.f32.mrf.mxu1 }
 0x585   :  { %v4493_v19 = vadd.f32 %v8748_v25, %v4492_v4  ;;  %4610 = vadd.xlane.f32.xlu1 %v8813_v26  ;;  %v4652_v50 = vmul.f32 %v8813_v26, %v8813_v26 }
 0x587   :  { %v4542_v44 = vadd.f32 %v4541_v15, %v4493_v19  ;;  %4674 = vadd.xlane.f32.xlu2 %v4652_v50 }
 0x589   :  { %v4571_v61 = vmul.f32 %v4542_v44, %v8140_v42 }
 0x58b   :  { %v8821_v21 = vadd.f32 %v4571_v61, %v8615_v59 }
 0x58c   :  { %v4495_v28 = vpop.f32.mrf.mxu0  ;;  %v4544_v41 = vpop.f32.mrf.mxu1 }
 0x58d   :  { %v4496_v40 = vadd.f32 %v8748_v25, %v4495_v28  ;;  %v4653_v1 = vmul.f32 %v8821_v21, %v8821_v21 }
 0x58f   :  { %v4599_v60 = vpop.xlane.xlu1 %4598  ;;  %v4545_v5 = vadd.f32 %v4544_v41, %v4496_v40  ;;  %4676 = vadd.xlane.f32.xlu0 %v4653_v1  ;;  %4612 = vadd.xlane.f32.xlu2 %v8821_v21 }
 0x590   :  { %v8827_v45 = vmul.f32 %v4599_v60, %v8229_v52 }
 0x591   :  { %v4663_v22 = vpop.xlane.xlu2 %4662  ;;  %v4572_v32 = vmul.f32 %v4545_v5, %v8158_v11 }
 0x592   :  { %v4710_v42 = vmul.f32 %v8827_v45, %v8827_v45  ;;  %v4694_v59 = vmul.f32 %v4663_v22, %v8229_v52 }
 0x593   :  { %v8835_v12 = vadd.f32 %v4572_v32, %v8656_v53 }
 0x594   :  { %v4726_v14 = vsub.f32 %v4694_v59, %v4710_v42  ;;  %v4497_v46 = vpop.f32.mrf.mxu0  ;;  %v4546_v39 = vpop.f32.mrf.mxu1 }
 0x595   :  { %v4498_v55 = vadd.f32 %v8748_v25, %v4497_v46  ;;  %v4654_v58 = vmul.f32 %v8835_v12, %v8835_v12 }
 0x596   :  { %v4758_v8 = vadd.f32 1e-05, %v4726_v14 }
 0x597   :  { %v4547_v37 = vadd.f32 %v4546_v39, %v4498_v55  ;;  %4614 = vadd.xlane.f32.xlu0 %v8835_v12  ;;  %4678 = vadd.xlane.f32.xlu1 %v4654_v58 }
 0x598   :  { %6002 = vrsqrt.f32 %v4758_v8  ;;  %vm4780_vm12 = vweird.f32 %v4758_v8 }
 0x599   :  { %v4665_v17 = vpop.xlane.xlu0 %4664  ;;  %v4601_v23 = vpop.xlane.xlu2 %4600  ;;  %v4573_v53 = vmul.f32 %v4547_v37, %v8173_v20 }
 0x59a   :  { %v8842_v11 = vmul.f32 %v4601_v23, %v8229_v52  ;;  %v4695_v2 = vmul.f32 %v4665_v17, %v8229_v52 }
 0x59b   :  { %v8849_v3 = vadd.f32 %v4573_v53, %v8661_v54 }
 0x59c   :  { %v4711_v16 = vmul.f32 %v8842_v11, %v8842_v11  ;;  %v4500_v51 = vpop.f32.mrf.mxu0  ;;  %v4549_v38 = vpop.f32.mrf.mxu1 }
 0x59d   :  { %v4501_v10 = vadd.f32 %v8748_v25, %v4500_v51  ;;  %v4655_v36 = vmul.f32 %v8849_v3, %v8849_v3 }
 0x59e   :  { %v6003_v6 = vpop.eup %6002  ;;  %v4727_v57 = vsub.f32 %v4695_v2, %v4711_v16 }
 0x59f   :  { %v4775_v0 = vmul.f32 %v6003_v6, %v4758_v8  ;;  %v4550_v43 = vadd.f32 %v4549_v38, %v4501_v10  ;;  %4680 = vadd.xlane.f32.xlu2 %v4655_v36  ;;  %4616 = vadd.xlane.f32.xlu1 %v8849_v3  ;;  %vm4781_vm7 = vweird.f32 %v6003_v6 }
 0x5a0   :  { %v4759_v56 = vadd.f32 1e-05, %v4727_v57  ;;  %vm4782_vm13 = vmor %vm4780_vm12, %vm4781_vm7 }
 0x5a1   :  { %v4776_v20 = vmul.f32 %v6003_v6, %v4775_v0  ;;  %v4574_v54 = vmul.f32 %v4550_v43, %v8233_v35  ;;  %v4742_v35 = vsub.f32 %v8755_v33, %v8827_v45  ;;  %v8879_v33 = vld [vmem:[%s9041_s20] ss:$0 sm:$0xff] }
 0x5a2   :  { %6004 = vrsqrt.f32 %v4759_v56  ;;  %vm4790_vm15 = vweird.f32 %v4759_v56 }
 0x5a3   :  { %v4777_v27 = vmul.f32 0.5, %v4776_v20  ;;  %v8857_v15 = vadd.f32 %v4574_v54, %v8687_v31  ;;  %v8870_v31 = vld [vmem:[%s9040_s19] ss:$0 sm:$0xff]  ;;  %s6295_s19 = smov [#allocation16]  }
 0x5a4   :  { %v4502_v19 = vpop.f32.mrf.mxu0  ;;  %v4551_v60 = vpop.f32.mrf.mxu1  ;;  %s5008_s20 = sshll.u32 %s6295_s19, 4  ;;  %s5009_s20 = int_to_ptr.vmem [resolvable:$true] %s5008_s20 }
 0x5a5   :  { %v4778_v30 = vsub.f32 1.5, %v4777_v27  ;;  %v4503_v61 = vadd.f32 %v8748_v25, %v4502_v19  ;;  %v4656_v28 = vmul.f32 %v8857_v15, %v8857_v15 }
 0x5a7   :  { %v4779_v44 = vmul.f32 %v6003_v6, %v4778_v30  ;;  %v4552_v59 = vadd.f32 %v4551_v60, %v4503_v61  ;;  %4618 = vadd.xlane.f32.xlu2 %v8857_v15  ;;  %4682 = vadd.xlane.f32.xlu0 %v4656_v28 }
 0x5a8   :  { %v4603_v4 = vpop.xlane.xlu0 %4602  ;;  %v6005_v40 = vpop.eup %6004 }
 0x5a9   :  { %v8860_v50 = vmul.f32 %v4603_v4, %v8229_v52  ;;  %v4783_v22 = vsel %vm4782_vm13, %v6003_v6, %v4779_v44  ;;  %v4785_v42 = vmul.f32 %v6005_v40, %v4759_v56  ;;  %v4575_v8 = vmul.f32 %v4552_v59, %v8210_v18 }
 0x5aa   :  { %v4667_v41 = vpop.xlane.xlu1 %4666  ;;  %v4934_v45 = vmul.f32 %v4783_v22, %v4742_v35  ;;  %vm4791_vm14 = vweird.f32 %v6005_v40 }
 0x5ab   :  { %v4712_v1 = vmul.f32 %v8860_v50, %v8860_v50  ;;  %v4696_v5 = vmul.f32 %v4667_v41, %v8229_v52  ;;  %v4786_v14 = vmul.f32 %v6005_v40, %v4785_v42  ;;  %v8884_v58 = vadd.f32 %v4575_v8, %v8691_v47  ;;  %vm4792_vm1 = vmor %vm4790_vm15, %vm4791_vm14 }
 0x5ac   :  { %v4953_v46 = vmul.f32 %v8870_v31, %v4934_v45  ;;  %v4743_v47 = vsub.f32 %v8765_v29, %v8842_v11 }
 0x5ad   :  { %v4728_v32 = vsub.f32 %v4696_v5, %v4712_v1  ;;  %v4787_v55 = vmul.f32 0.5, %v4786_v14  ;;  %v4657_v23 = vmul.f32 %v8884_v58, %v8884_v58  ;;  %v4744_v5 = vsub.f32 %v8773_v48, %v8860_v50 }
 0x5ae   :  { %v4972_v37 = vadd.f32 %v8879_v33, %v4953_v46 }
 0x5af   :  { %v4760_v39 = vadd.f32 1e-05, %v4728_v32  ;;  %v4788_v17 = vsub.f32 1.5, %v4787_v55  ;;  %4684 = vadd.xlane.f32.xlu1 %v4657_v23  ;;  %4620 = vadd.xlane.f32.xlu0 %v8884_v58 }
 0x5b0   :  { %4988 = vst [vmem:[#allocation16] sm:$0xff] %v4972_v37 }
 0x5b1   :  { %6006 = vrsqrt.f32 %v4760_v39  ;;  %v4789_v16 = vmul.f32 %v6005_v40, %v4788_v17  ;;  %vm4800_vm3 = vweird.f32 %v4760_v39 }
 0x5b2   :  { %v4605_v53 = vpop.xlane.xlu1 %4604  ;;  %v4669_v2 = vpop.xlane.xlu2 %4668 }
 0x5b3   :  { %v8890_v18 = vmul.f32 %v4605_v53, %v8229_v52  ;;  %v4697_v57 = vmul.f32 %v4669_v2, %v8229_v52  ;;  %v4793_v51 = vsel %vm4792_vm1, %v6005_v40, %v4789_v16 }
 0x5b4   :  { %v4935_v0 = vmul.f32 %v4793_v51, %v4743_v47 }
 0x5b5   :  { %v4713_v6 = vmul.f32 %v8890_v18, %v8890_v18 }
 0x5b6   :  { %v4954_v20 = vmul.f32 %v8870_v31, %v4935_v0  ;;  %v4745_v0 = vsub.f32 %v8785_v7, %v8890_v18 }
 0x5b7   :  { %v6007_v38 = vpop.eup %6006  ;;  %v4729_v10 = vsub.f32 %v4697_v57, %v4713_v6 }
 0x5b8   :  { %v4795_v36 = vmul.f32 %v6007_v38, %v4760_v39  ;;  %v4973_v30 = vadd.f32 %v8879_v33, %v4954_v20  ;;  %vm4801_vm2 = vweird.f32 %v6007_v38 }
 0x5b9   :  { %v4761_v56 = vadd.f32 1e-05, %v4729_v10  ;;  %vm4802_vm4 = vmor %vm4800_vm3, %vm4801_vm2 }
 0x5ba   :  { %v4796_v43 = vmul.f32 %v6007_v38, %v4795_v36  ;;  %v4671_v27 = vpop.xlane.xlu0 %4670  ;;  %v4607_v54 = vpop.xlane.xlu2 %4606  ;;  %4989 = vst [vmem:[#allocation16 + $0x8] sm:$0xff] %v4973_v30  ;;  %v9237_v36 = vld [vmem:[#allocation31_spill] sm:$0xff] }
 0x5bb   :  { %6008 = vrsqrt.f32 %v4761_v56  ;;  %v8901_v11 = vmul.f32 %v4607_v54, %v8229_v52  ;;  %v4505_v4 = vpop.f32.mrf.mxu0  ;;  %v4554_v19 = vpop.f32.mrf.mxu1  ;;  %v4698_v61 = vmul.f32 %v4671_v27, %v8229_v52  ;;  %vm4810_vm6 = vweird.f32 %v4761_v56 }
 0x5bc   :  { %v4797_v29 = vmul.f32 0.5, %v4796_v43  ;;  %v4506_v41 = vadd.f32 %v8748_v25, %v4505_v4 }
 0x5bd   :  { %v4714_v28 = vmul.f32 %v8901_v11, %v8901_v11 }
 0x5be   :  { %v4798_v44 = vsub.f32 1.5, %v4797_v29  ;;  %v4555_v60 = vadd.f32 %v4554_v19, %v4506_v41 }
 0x5bf   :  { %v4730_v35 = vsub.f32 %v4698_v61, %v4714_v28  ;;  %v4746_v61 = vsub.f32 %v8793_v13, %v8901_v11 }
 0x5c0   :  { %v4799_v40 = vmul.f32 %v6007_v38, %v4798_v44  ;;  %v4576_v8 = vmul.f32 %v4555_v60, %v8215_v49 }
 0x5c1   :  { %v6009_v1 = vpop.eup %6008  ;;  %v4762_v59 = vadd.f32 1e-05, %v4730_v35 }
 0x5c2   :  { %v4803_v22 = vsel %vm4802_vm4, %v6007_v38, %v4799_v40  ;;  %v4805_v42 = vmul.f32 %v6009_v1, %v4761_v56  ;;  %v4673_v45 = vpop.xlane.xlu1 %4672  ;;  %v4609_v32 = vpop.xlane.xlu0 %4608  ;;  %v8914_v48 = vadd.f32 %v4576_v8, %v8710_v63  ;;  %vm4811_vm5 = vweird.f32 %v6009_v1 }
 0x5c3   :  { %v4936_v14 = vmul.f32 %v4803_v22, %v4744_v5  ;;  %v4635_v46 = vmul.f32 %v4609_v32, %v8229_v52  ;;  %6010 = vrsqrt.f32 %v4762_v59  ;;  %v4699_v37 = vmul.f32 %v4673_v45, %v8229_v52  ;;  %v4507_v23 = vpop.f32.mrf.mxu0  ;;  %v4556_v49 = vpop.f32.mrf.mxu1  ;;  %vm4812_vm8 = vmor %vm4810_vm6, %vm4811_vm5 }
 0x5c4   :  { %v4806_v55 = vmul.f32 %v6009_v1, %v4805_v42  ;;  %v4508_v53 = vadd.f32 %v8748_v25, %v4507_v23  ;;  %4622 = vadd.xlane.f32.xlu1 %v8914_v48  ;;  %v4658_v47 = vmul.f32 %v8914_v48, %v8914_v48  ;;  %vm4820_vm10 = vweird.f32 %v4762_v59 }
 0x5c5   :  { %v4955_v39 = vmul.f32 %v8870_v31, %v4936_v14  ;;  %v4715_v17 = vmul.f32 %v4635_v46, %v4635_v46  ;;  %v4747_v22 = vsub.f32 %v8801_v34, %v4635_v46 }
 0x5c6   :  { %v4807_v50 = vmul.f32 0.5, %v4806_v55  ;;  %v4557_v57 = vadd.f32 %v4556_v49, %v4508_v53  ;;  %4686 = vadd.xlane.f32.xlu2 %v4658_v47  ;;  %v9238_v55 = vld [vmem:[#allocation63_spill] sm:$0xff] }
 0x5c7   :  { %v4974_v2 = vadd.f32 %v8879_v33, %v4955_v39  ;;  %v4731_v16 = vsub.f32 %v4699_v37, %v4715_v17 }
 0x5c8   :  { %v4808_v6 = vsub.f32 1.5, %v4807_v50  ;;  %v4577_v20 = vmul.f32 %v4557_v57, %v9237_v36  ;;  %v9239_v50 = vld [vmem:[#allocation54_spill] sm:$0xff] }
 0x5c9   :  { %4990 = vst [vmem:[#allocation16 + $0x10] sm:$0xff] %v4974_v2  ;;  %v4763_v51 = vadd.f32 1e-05, %v4731_v16  ;;  %v6011_v63 = vpop.eup %6010 }
 0x5ca   :  { %v4809_v38 = vmul.f32 %v6009_v1, %v4808_v6  ;;  %v4815_v10 = vmul.f32 %v6011_v63, %v4762_v59  ;;  %v8926_v4 = vadd.f32 %v4577_v20, %v8713_v24  ;;  %vm4821_vm9 = vweird.f32 %v6011_v63 }
 0x5cb   :  { %6012 = vrsqrt.f32 %v4763_v51  ;;  %vm4822_vm11 = vmor %vm4820_vm10, %vm4821_vm9  ;;  %vm4830_vm7 = vweird.f32 %v4763_v51 }
 0x5cc   :  { %v4813_v43 = vsel %vm4812_vm8, %v6009_v1, %v4809_v38  ;;  %v4816_v54 = vmul.f32 %v6011_v63, %v4815_v10  ;;  %v4659_v16 = vmul.f32 %v8926_v4, %v8926_v4 }
 0x5cd   :  { %v4937_v27 = vmul.f32 %v4813_v43, %v4745_v0 }
 0x5ce   :  { %v4817_v29 = vmul.f32 0.5, %v4816_v54  ;;  %4624 = vadd.xlane.f32.xlu2 %v8926_v4 }
 0x5cf   :  { %v4956_v30 = vmul.f32 %v8870_v31, %v4937_v27 }
 0x5d0   :  { %v4818_v44 = vsub.f32 1.5, %v4817_v29 }
 0x5d1   :  { %v6013_v19 = vpop.eup %6012  ;;  %v4975_v56 = vadd.f32 %v8879_v33, %v4956_v30 }
 0x5d2   :  { %v4825_v7 = vmul.f32 %v6013_v19, %v4763_v51  ;;  %v4819_v18 = vmul.f32 %v6011_v63, %v4818_v44  ;;  %vm4831_vm0 = vweird.f32 %v6013_v19 }
 0x5d3   :  { %4991 = vst [vmem:[#allocation16 + $0x18] sm:$0xff] %v4975_v56  ;;  %vm4832_vm12 = vmor %vm4830_vm7, %vm4831_vm0 }
 0x5d4   :  { %v4826_v28 = vmul.f32 %v6013_v19, %v4825_v7  ;;  %v4823_v41 = vsel %vm4822_vm11, %v6011_v63, %v4819_v18 }
 0x5d5   :  { %v4938_v40 = vmul.f32 %v4823_v41, %v4746_v61 }
 0x5d6   :  { %v4827_v24 = vmul.f32 0.5, %v4826_v28 }
 0x5d7   :  { %v4957_v35 = vmul.f32 %v8870_v31, %v4938_v40 }
 0x5d8   :  { %v4828_v60 = vsub.f32 1.5, %v4827_v24 }
 0x5d9   :  { %v4976_v1 = vadd.f32 %v8879_v33, %v4957_v35 }
 0x5da   :  { %v4829_v5 = vmul.f32 %v6013_v19, %v4828_v60 }
 0x5db   :  { %4992 = vst [vmem:[#allocation16 + $0x20] sm:$0xff] %v4976_v1 }
 0x5dc   :  { %v4833_v42 = vsel %vm4832_vm12, %v6013_v19, %v4829_v5 }
 0x5dd   :  { %v4939_v59 = vmul.f32 %v4833_v42, %v4747_v22 }
 0x5df   :  { %v4958_v13 = vmul.f32 %v8870_v31, %v4939_v59 }
 0x5e1   :  { %v4977_v11 = vadd.f32 %v8879_v33, %v4958_v13 }
 0x5e3   :  { %4993 = vst [vmem:[#allocation16 + $0x28] sm:$0xff] %v4977_v11 }
 0x5e9   :  { %v4510_v45 = vpop.f32.mrf.mxu0  ;;  %v4559_v32 = vpop.f32.mrf.mxu1 }
 0x5ea   :  { %v4511_v14 = vadd.f32 %v8748_v25, %v4510_v45 }
 0x5ec   :  { %v4560_v8 = vadd.f32 %v4559_v32, %v4511_v14 }
 0x5ee   :  { %v4578_v39 = vmul.f32 %v4560_v8, %v9238_v55 }
 0x5f0   :  { %v8940_v37 = vadd.f32 %v4578_v39, %v8730_v9 }
 0x5f1   :  { %v4512_v34 = vpop.f32.mrf.mxu0  ;;  %v4561_v17 = vpop.f32.mrf.mxu1 }
 0x5f2   :  { %v4513_v46 = vadd.f32 %v8748_v25, %v4512_v34  ;;  %4626 = vadd.xlane.f32.xlu0 %v8940_v37 }
 0x5f4   :  { %v4562_v23 = vadd.f32 %v4561_v17, %v4513_v46 }
 0x5f6   :  { %v4579_v53 = vmul.f32 %v4562_v23, %v9239_v50 }
 0x5f8   :  { %v8946_v2 = vadd.f32 %v4579_v53, %v8733_v62  ;;  %v4611_v9 = vpop.xlane.xlu1 %4610  ;;  %v4660_v62 = vmul.f32 %v8940_v37, %v8940_v37 }
 0x5f9   :  { %v4636_v49 = vmul.f32 %v4611_v9, %v8229_v52 }
 0x5fa   :  { %4628 = vadd.xlane.f32.xlu1 %v8946_v2  ;;  %4688 = vadd.xlane.f32.xlu0 %v4659_v16  ;;  %v4661_v25 = vmul.f32 %v8946_v2, %v8946_v2  ;;  %v4675_v47 = vpop.xlane.xlu2 %4674 }
 0x5fb   :  { %v4716_v6 = vmul.f32 %v4636_v49, %v4636_v49  ;;  %v4700_v57 = vmul.f32 %v4675_v47, %v8229_v52  ;;  %v4748_v35 = vsub.f32 %v8813_v26, %v4636_v49 }
 0x5fc   :  { %4692 = vadd.xlane.f32.xlu2 %v4661_v25 }
 0x5fd   :  { %v4732_v51 = vsub.f32 %v4700_v57, %v4716_v6 }
 0x5ff   :  { %v4764_v63 = vadd.f32 1e-05, %v4732_v51 }
 0x601   :  { %6014 = vrsqrt.f32 %v4764_v63  ;;  %vm4840_vm14 = vweird.f32 %v4764_v63 }
 0x602   :  { %4690 = vadd.xlane.f32.xlu1 %v4660_v62  ;;  %v4677_v38 = vpop.xlane.xlu0 %4676  ;;  %v4613_v0 = vpop.xlane.xlu2 %4612 }
 0x603   :  { %v4637_v10 = vmul.f32 %v4613_v0, %v8229_v52  ;;  %v4701_v36 = vmul.f32 %v4677_v38, %v8229_v52 }
 0x605   :  { %v4717_v20 = vmul.f32 %v4637_v10, %v4637_v10  ;;  %v4749_v16 = vsub.f32 %v8821_v21, %v4637_v10 }
 0x607   :  { %v6015_v43 = vpop.eup %6014  ;;  %v4733_v27 = vsub.f32 %v4701_v36, %v4717_v20 }
 0x608   :  { %v4835_v54 = vmul.f32 %v6015_v43, %v4764_v63  ;;  %vm4841_vm13 = vweird.f32 %v6015_v43 }
 0x609   :  { %v4765_v30 = vadd.f32 1e-05, %v4733_v27  ;;  %vm4842_vm15 = vmor %vm4840_vm14, %vm4841_vm13 }
 0x60a   :  { %v4836_v29 = vmul.f32 %v6015_v43, %v4835_v54  ;;  %v4615_v19 = vpop.xlane.xlu0 %4614  ;;  %v4679_v56 = vpop.xlane.xlu1 %4678 }
 0x60b   :  { %6016 = vrsqrt.f32 %v4765_v30  ;;  %v8960_v44 = vmul.f32 %v4615_v19, %v8229_v52  ;;  %v4702_v61 = vmul.f32 %v4679_v56, %v8229_v52  ;;  %vm4850_vm2 = vweird.f32 %v4765_v30 }
 0x60c   :  { %v4837_v7 = vmul.f32 0.5, %v4836_v29 }
 0x60d   :  { %v4718_v18 = vmul.f32 %v8960_v44, %v8960_v44  ;;  %v4750_v54 = vsub.f32 %v8835_v12, %v8960_v44 }
 0x60e   :  { %v4838_v28 = vsub.f32 1.5, %v4837_v7 }
 0x60f   :  { %v4734_v41 = vsub.f32 %v4702_v61, %v4718_v18 }
 0x610   :  { %v4839_v40 = vmul.f32 %v6015_v43, %v4838_v28 }
 0x611   :  { %v6017_v24 = vpop.eup %6016  ;;  %v4766_v60 = vadd.f32 1e-05, %v4734_v41 }
 0x612   :  { %v4843_v1 = vsel %vm4842_vm15, %v6015_v43, %v4839_v40  ;;  %v4845_v5 = vmul.f32 %v6017_v24, %v4765_v30  ;;  %v4617_v22 = vpop.xlane.xlu1 %4616  ;;  %v4681_v42 = vpop.xlane.xlu2 %4680  ;;  %vm4851_vm1 = vweird.f32 %v6017_v24 }
 0x613   :  { %v4940_v59 = vmul.f32 %v4843_v1, %v4748_v35  ;;  %6018 = vrsqrt.f32 %v4766_v60  ;;  %v8967_v13 = vmul.f32 %v4617_v22, %v8229_v52  ;;  %v4703_v14 = vmul.f32 %v4681_v42, %v8229_v52  ;;  %vm4852_vm3 = vmor %vm4850_vm2, %vm4851_vm1 }
 0x614   :  { %v4846_v11 = vmul.f32 %v6017_v24, %v4845_v5  ;;  %vm4860_vm5 = vweird.f32 %v4766_v60 }
 0x615   :  { %v4959_v45 = vmul.f32 %v8870_v31, %v4940_v59  ;;  %v4719_v32 = vmul.f32 %v8967_v13, %v8967_v13  ;;  %v4751_v1 = vsub.f32 %v8849_v3, %v8967_v13 }
 0x616   :  { %v4847_v26 = vmul.f32 0.5, %v4846_v11 }
 0x617   :  { %v4978_v8 = vadd.f32 %v8879_v33, %v4959_v45  ;;  %v4735_v55 = vsub.f32 %v4703_v14, %v4719_v32 }
 0x618   :  { %v4848_v39 = vsub.f32 1.5, %v4847_v26 }
 0x619   :  { %v6019_v34 = vpop.eup %6018  ;;  %4994 = vst [vmem:[#allocation16 + $0x30] sm:$0xff] %v4978_v8  ;;  %v4767_v46 = vadd.f32 1e-05, %v4735_v55 }
 0x61a   :  { %v4849_v17 = vmul.f32 %v6017_v24, %v4848_v39  ;;  %v4855_v23 = vmul.f32 %v6019_v34, %v4766_v60  ;;  %v4683_v50 = vpop.xlane.xlu0 %4682  ;;  %v4619_v53 = vpop.xlane.xlu2 %4618  ;;  %vm4861_vm4 = vweird.f32 %v6019_v34 }
 0x61b   :  { %6020 = vrsqrt.f32 %v4767_v46  ;;  %v4640_v9 = vmul.f32 %v4619_v53, %v8229_v52  ;;  %v4704_v6 = vmul.f32 %v4683_v50, %v8229_v52  ;;  %vm4862_vm6 = vmor %vm4860_vm5, %vm4861_vm4  ;;  %vm4870_vm9 = vweird.f32 %v4767_v46 }
 0x61c   :  { %v4853_v49 = vsel %vm4852_vm3, %v6017_v24, %v4849_v17  ;;  %v4856_v25 = vmul.f32 %v6019_v34, %v4855_v23 }
 0x61d   :  { %v4941_v47 = vmul.f32 %v4853_v49, %v4749_v16  ;;  %v4720_v57 = vmul.f32 %v4640_v9, %v4640_v9  ;;  %v4752_v55 = vsub.f32 %v8857_v15, %v4640_v9 }
 0x61e   :  { %v4857_v62 = vmul.f32 0.5, %v4856_v25 }
 0x61f   :  { %v4960_v51 = vmul.f32 %v8870_v31, %v4941_v47  ;;  %v4736_v63 = vsub.f32 %v4704_v6, %v4720_v57 }
 0x620   :  { %v4858_v38 = vsub.f32 1.5, %v4857_v62 }
 0x621   :  { %v6021_v0 = vpop.eup %6020  ;;  %v4979_v36 = vadd.f32 %v8879_v33, %v4960_v51  ;;  %v4768_v21 = vadd.f32 1e-05, %v4736_v63 }
 0x622   :  { %v4859_v10 = vmul.f32 %v6019_v34, %v4858_v38  ;;  %v4865_v20 = vmul.f32 %v6021_v0, %v4767_v46  ;;  %v4685_v43 = vpop.xlane.xlu1 %4684  ;;  %v4621_v27 = vpop.xlane.xlu0 %4620  ;;  %vm4871_vm8 = vweird.f32 %v6021_v0 }
 0x623   :  { %4995 = vst [vmem:[#allocation16 + $0x38] sm:$0xff] %v4979_v36  ;;  %6022 = vrsqrt.f32 %v4768_v21  ;;  %v4641_v30 = vmul.f32 %v4621_v27, %v8229_v52  ;;  %v4705_v7 = vmul.f32 %v4685_v43, %v8229_v52  ;;  %vm4872_vm10 = vmor %vm4870_vm9, %vm4871_vm8  ;;  %vm4880_vm0 = vweird.f32 %v4768_v21 }
 0x624   :  { %v4863_v29 = vsel %vm4862_vm6, %v6019_v34, %v4859_v10  ;;  %v4866_v19 = vmul.f32 %v6021_v0, %v4865_v20 }
 0x625   :  { %v4942_v56 = vmul.f32 %v4863_v29, %v4750_v54  ;;  %v4721_v18 = vmul.f32 %v4641_v30, %v4641_v30  ;;  %v4753_v9 = vsub.f32 %v8884_v58, %v4641_v30 }
 0x626   :  { %v4867_v61 = vmul.f32 0.5, %v4866_v19 }
 0x627   :  { %v4961_v28 = vmul.f32 %v8870_v31, %v4942_v56  ;;  %v4737_v41 = vsub.f32 %v4705_v7, %v4721_v18 }
 0x628   :  { %v4868_v40 = vsub.f32 1.5, %v4867_v61 }
 0x629   :  { %v6023_v24 = vpop.eup %6022  ;;  %v4980_v35 = vadd.f32 %v8879_v33, %v4961_v28  ;;  %v4769_v12 = vadd.f32 1e-05, %v4737_v41 }
 0x62a   :  { %v4869_v44 = vmul.f32 %v6021_v0, %v4868_v40  ;;  %v4875_v60 = vmul.f32 %v6023_v24, %v4768_v21  ;;  %vm4881_vm11 = vweird.f32 %v6023_v24 }
 0x62b   :  { %4996 = vst [vmem:[#allocation16 + $0x40] sm:$0xff] %v4980_v35  ;;  %6024 = vrsqrt.f32 %v4769_v12  ;;  %vm4882_vm7 = vmor %vm4880_vm0, %vm4881_vm11  ;;  %vm4890_vm13 = vweird.f32 %v4769_v12 }
 0x62c   :  { %v4873_v5 = vsel %vm4872_vm10, %v6021_v0, %v4869_v44  ;;  %v4876_v22 = vmul.f32 %v6023_v24, %v4875_v60 }
 0x62d   :  { %v4943_v42 = vmul.f32 %v4873_v5, %v4751_v1 }
 0x62e   :  { %v4877_v59 = vmul.f32 0.5, %v4876_v22 }
 0x62f   :  { %v4962_v11 = vmul.f32 %v8870_v31, %v4943_v42 }
 0x630   :  { %v4878_v45 = vsub.f32 1.5, %v4877_v59 }
 0x631   :  { %v6025_v32 = vpop.eup %6024  ;;  %v4981_v14 = vadd.f32 %v8879_v33, %v4962_v11 }
 0x632   :  { %v4879_v26 = vmul.f32 %v6023_v24, %v4878_v45  ;;  %v4885_v8 = vmul.f32 %v6025_v32, %v4769_v12  ;;  %vm4891_vm12 = vweird.f32 %v6025_v32 }
 0x633   :  { %4997 = vst [vmem:[#allocation16 + $0x48] sm:$0xff] %v4981_v14  ;;  %vm4892_vm14 = vmor %vm4890_vm13, %vm4891_vm12 }
 0x634   :  { %v4883_v3 = vsel %vm4882_vm7, %v6023_v24, %v4879_v26  ;;  %v4886_v13 = vmul.f32 %v6025_v32, %v4885_v8 }
 0x635   :  { %v4944_v39 = vmul.f32 %v4883_v3, %v4752_v55 }
 0x636   :  { %v4887_v46 = vmul.f32 0.5, %v4886_v13 }
 0x637   :  { %v4623_v34 = vpop.xlane.xlu1 %4622  ;;  %v4963_v23 = vmul.f32 %v8870_v31, %v4944_v39 }
 0x638   :  { %v4642_v17 = vmul.f32 %v4623_v34, %v8229_v52  ;;  %v4888_v53 = vsub.f32 1.5, %v4887_v46 }
 0x639   :  { %v4687_v50 = vpop.xlane.xlu2 %4686  ;;  %v4982_v25 = vadd.f32 %v8879_v33, %v4963_v23 }
 0x63a   :  { %v4722_v16 = vmul.f32 %v4642_v17, %v4642_v17  ;;  %v4706_v49 = vmul.f32 %v4687_v50, %v8229_v52  ;;  %v4889_v47 = vmul.f32 %v6025_v32, %v4888_v53  ;;  %v4754_v58 = vsub.f32 %v8914_v48, %v4642_v17 }
 0x63b   :  { %4998 = vst [vmem:[#allocation16 + $0x50] sm:$0xff] %v4982_v25 }
 0x63c   :  { %v4738_v15 = vsub.f32 %v4706_v49, %v4722_v16  ;;  %v4893_v6 = vsel %vm4892_vm14, %v6025_v32, %v4889_v47 }
 0x63d   :  { %v4945_v62 = vmul.f32 %v4893_v6, %v4753_v9 }
 0x63e   :  { %v4770_v57 = vadd.f32 1e-05, %v4738_v15 }
 0x63f   :  { %v4964_v51 = vmul.f32 %v8870_v31, %v4945_v62 }
 0x640   :  { %6026 = vrsqrt.f32 %v4770_v57  ;;  %vm4900_vm1 = vweird.f32 %v4770_v57 }
 0x641   :  { %v4983_v63 = vadd.f32 %v8879_v33, %v4964_v51  ;;  %v4625_v19 = vpop.xlane.xlu2 %4624 }
 0x642   :  { %v4643_v56 = vmul.f32 %v4625_v19, %v8229_v52 }
 0x643   :  { %4999 = vst [vmem:[#allocation16 + $0x58] sm:$0xff] %v4983_v63 }
 0x644   :  { %v4723_v61 = vmul.f32 %v4643_v56, %v4643_v56 }
 0x646   :  { %v6027_v38 = vpop.eup %6026 }
 0x647   :  { %v4895_v0 = vmul.f32 %v6027_v38, %v4770_v57  ;;  %vm4901_vm15 = vweird.f32 %v6027_v38 }
 0x648   :  { %vm4902_vm2 = vmor %vm4900_vm1, %vm4901_vm15 }
 0x649   :  { %v4896_v36 = vmul.f32 %v6027_v38, %v4895_v0 }
 0x64b   :  { %v4897_v21 = vmul.f32 0.5, %v4896_v36 }
 0x64d   :  { %v4898_v10 = vsub.f32 1.5, %v4897_v21 }
 0x64f   :  { %v4899_v20 = vmul.f32 %v6027_v38, %v4898_v10 }
 0x651   :  { %v4903_v43 = vsel %vm4902_vm2, %v6027_v38, %v4899_v20 }
 0x652   :  { %v4946_v27 = vmul.f32 %v4903_v43, %v4754_v58 }
 0x654   :  { %v4965_v54 = vmul.f32 %v8870_v31, %v4946_v27 }
 0x656   :  { %v4984_v30 = vadd.f32 %v8879_v33, %v4965_v54 }
 0x658   :  { %5000 = vst [vmem:[#allocation16 + $0x60] sm:$0xff] %v4984_v30 }
 0x665   :  { %v4627_v29 = vpop.xlane.xlu0 %4626 }
 0x666   :  { %v4644_v40 = vmul.f32 %v4627_v29, %v8229_v52 }
 0x668   :  { %v4724_v1 = vmul.f32 %v4644_v40, %v4644_v40  ;;  %v4756_v62 = vsub.f32 %v8940_v37, %v4644_v40 }
 0x66d   :  { %v4629_v7 = vpop.xlane.xlu1 %4628  ;;  %v4689_v18 = vpop.xlane.xlu0 %4688 }
 0x66e   :  { %v4645_v28 = vmul.f32 %v4629_v7, %v8229_v52  ;;  %v4707_v41 = vmul.f32 %v4689_v18, %v8229_v52 }
 0x66f   :  { %v4693_v12 = vpop.xlane.xlu2 %4692 }
 0x670   :  { %v4739_v48 = vsub.f32 %v4707_v41, %v4723_v61  ;;  %v4725_v24 = vmul.f32 %v4645_v28, %v4645_v28  ;;  %v4709_v44 = vmul.f32 %v4693_v12, %v8229_v52  ;;  %v4757_v9 = vsub.f32 %v8946_v2, %v4645_v28 }
 0x672   :  { %v4771_v35 = vadd.f32 1e-05, %v4739_v48  ;;  %v4741_v5 = vsub.f32 %v4709_v44, %v4725_v24 }
 0x674   :  { %6028 = vrsqrt.f32 %v4771_v35  ;;  %v4773_v42 = vadd.f32 1e-05, %v4741_v5  ;;  %vm4910_vm4 = vweird.f32 %v4771_v35 }
 0x675   :  { %v4691_v60 = vpop.xlane.xlu1 %4690 }
 0x676   :  { %v4708_v22 = vmul.f32 %v4691_v60, %v8229_v52  ;;  %6030 = vrsqrt.f32 %v4773_v42  ;;  %v4755_v52 = vsub.f32 %v8926_v4, %v4643_v56  ;;  %vm4930_vm8 = vweird.f32 %v4773_v42 }
 0x678   :  { %v4740_v59 = vsub.f32 %v4708_v22, %v4724_v1 }
 0x67a   :  { %v6029_v11 = vpop.eup %6028  ;;  %v4772_v45 = vadd.f32 1e-05, %v4740_v59 }
 0x67b   :  { %v4905_v32 = vmul.f32 %v6029_v11, %v4771_v35  ;;  %vm4911_vm3 = vweird.f32 %v6029_v11 }
 0x67c   :  { %6032 = vrsqrt.f32 %v4772_v45  ;;  %v6031_v8 = vpop.eup %6030  ;;  %vm4912_vm5 = vmor %vm4910_vm4, %vm4911_vm3  ;;  %vm4920_vm11 = vweird.f32 %v4772_v45 }
 0x67d   :  { %v4906_v14 = vmul.f32 %v6029_v11, %v4905_v32  ;;  %v4925_v3 = vmul.f32 %v6031_v8, %v4773_v42  ;;  %vm4931_vm6 = vweird.f32 %v6031_v8 }
 0x67e   :  { %vm4932_vm10 = vmor %vm4930_vm8, %vm4931_vm6 }
 0x67f   :  { %v4907_v26 = vmul.f32 0.5, %v4906_v14  ;;  %v4926_v34 = vmul.f32 %v6031_v8, %v4925_v3 }
 0x681   :  { %v4908_v55 = vsub.f32 1.5, %v4907_v26  ;;  %v4927_v23 = vmul.f32 0.5, %v4926_v34 }
 0x682   :  { %v6033_v13 = vpop.eup %6032 }
 0x683   :  { %v4909_v39 = vmul.f32 %v6029_v11, %v4908_v55  ;;  %v4915_v46 = vmul.f32 %v6033_v13, %v4772_v45  ;;  %v4928_v16 = vsub.f32 1.5, %v4927_v23  ;;  %vm4921_vm9 = vweird.f32 %v6033_v13 }
 0x684   :  { %vm4922_vm0 = vmor %vm4920_vm11, %vm4921_vm9 }
 0x685   :  { %v4913_v17 = vsel %vm4912_vm5, %v6029_v11, %v4909_v39  ;;  %v4916_v50 = vmul.f32 %v6033_v13, %v4915_v46  ;;  %v4929_v47 = vmul.f32 %v6031_v8, %v4928_v16 }
 0x686   :  { %v4947_v53 = vmul.f32 %v4913_v17, %v4755_v52 }
 0x687   :  { %v4917_v49 = vmul.f32 0.5, %v4916_v50  ;;  %v4933_v4 = vsel %vm4932_vm10, %v6031_v8, %v4929_v47 }
 0x688   :  { %v4966_v25 = vmul.f32 %v8870_v31, %v4947_v53  ;;  %v4949_v51 = vmul.f32 %v4933_v4, %v4757_v9 }
 0x689   :  { %v4918_v15 = vsub.f32 1.5, %v4917_v49 }
 0x68a   :  { %v4985_v6 = vadd.f32 %v8879_v33, %v4966_v25  ;;  %v4968_v38 = vmul.f32 %v8870_v31, %v4949_v51 }
 0x68b   :  { %v4919_v57 = vmul.f32 %v6033_v13, %v4918_v15 }
 0x68c   :  { %5001 = vst [vmem:[#allocation16 + $0x68] sm:$0xff] %v4985_v6  ;;  %v4987_v2 = vadd.f32 %v8879_v33, %v4968_v38 }
 0x68d   :  { %v4923_v63 = vsel %vm4922_vm0, %v6033_v13, %v4919_v57 }
 0x68e   :  { %v4948_v0 = vmul.f32 %v4923_v63, %v4756_v62  ;;  %5003 = vst [vmem:[#allocation16 + $0x78] sm:$0xff] %v4987_v2 }
 0x690   :  { %v4967_v36 = vmul.f32 %v8870_v31, %v4948_v0 }
 0x692   :  { %v4986_v37 = vadd.f32 %v8879_v33, %v4967_v36 }
 0x694   :  { %5002 = vst [vmem:[#allocation16 + $0x70] sm:$0xff] %v4986_v37 }
 0x695   :  { %5016 = dma.vmem_to_hbm [thread:$0]  %s5009_s20, 2048, %s5011_s2, [#allocation4], %s6289_s22, %s6289_s22, %s6290_s1  }
 0x696   :  { %6278 = dma.done.wait [#allocation4], 2048  }
 0x697   :  { %6279 = vsyncadd [#allocation4], 4294965248 }
 0x698   :  { %5021 = vsyncpa [#allocation3], 1 }
 0x699   :  { %5022 = vsyncpa [#allocation6], 1 }
 0x69a   :  { %5023 = vsyncpa [#allocation9], 1 }
 0x69b   :  { %5024 = vsyncpa [#allocation12], 1 }
 0x69c   :  { %5025 = vsyncpa [#allocation15], 1 }
 0x69d   :  { %5026 = vsyncpa [#allocation4], 1 }

</bundles_post_ra>
